<compile_context>
chip_gen: v6e
topology: v6e:2x2x1
jax: 0.10.0
libtpu: 0.0.40
codegen_flags: <defaults>
</compile_context>

<pallas_src>
import functools
import math

import jax
import jax.numpy as jnp
from jax.experimental import pallas as pl
from jax.experimental.pallas import tpu as pltpu

LN_EPS = 1e-5


# ----------------------------- small config ---------------------------------
class SmallConfig:
    n_head = 4
    n_embd = 128         # head_size = 32
    block_size = 64
    bias = True
    dropout = 0.1        # identity at inference


# ------------------------------- kernel -------------------------------------
def block_kernel(n_head, head_size, block_b, seq_len,
                 x_ref,
                 ln1_g, ln1_b,
                 wq, bq, wk, bk, wv, bv,
                 wp, bp,
                 ln2_g, ln2_b,
                 w1, b1, w2, b2,
                 o_ref):
    mb = block_b * seq_len                        # rows in this block (M)
    x = x_ref[...].astype(jnp.float32)            # (mb, C)

    # ---- LayerNorm 1 ----
    mu = jnp.mean(x, axis=-1, keepdims=True)
    var = jnp.mean((x - mu) ** 2, axis=-1, keepdims=True)
    xn = (x - mu) * jax.lax.rsqrt(var + LN_EPS)
    xn = xn * ln1_g[...] + ln1_b[...]             # (mb, C)

    # ---- QKV projections, one big GEMM each (M = block_b * T) ----
    # (wq, bq already carry the 1/sqrt(head_size) attention scale.)
    q = jnp.dot(xn, wq[...], preferred_element_type=jnp.float32) + bq[...]
    k = jnp.dot(xn, wk[...], preferred_element_type=jnp.float32) + bk[...]
    v = jnp.dot(xn, wv[...], preferred_element_type=jnp.float32) + bv[...]

    wp_f = wp[...]                                # (C, C)

    # ---- attention (sequence-batched per head) + output proj + residual ----
    # x1 accumulates: x + bp + sum_h softmax(q_h k_h^T) v_h @ Wp[h]
    x1 = x + bp[...]
    for h in range(n_head):                       # static unroll, n_head small
        sl = slice(h * head_size, (h + 1) * head_size)
        qh = q[:, sl].reshape(block_b, seq_len, head_size)
        kh = k[:, sl].reshape(block_b, seq_len, head_size)
        vh = v[:, sl].reshape(block_b, seq_len, head_size)
        s = jnp.einsum('btd,bsd->bts', qh, kh,
                       preferred_element_type=jnp.float32)       # (Bb, T, T)
        s = s - jnp.max(s, axis=-1, keepdims=True)
        p = jnp.exp(s)
        # Exact reciprocal keeps the tight match vs the f32 reference; the
        # denominator is only (Bb, T, 1) so the cost is negligible either way.
        p = p * pl.reciprocal(jnp.sum(p, axis=-1, keepdims=True), approx=False)
        oh = jnp.einsum('bts,bsd->btd', p, vh,
                        preferred_element_type=jnp.float32)      # (Bb, T, hs)
        x1 = x1 + jnp.dot(oh.reshape(mb, head_size), wp_f[sl, :],
                          preferred_element_type=jnp.float32)

    # ---- LayerNorm 2 ----
    mu2 = jnp.mean(x1, axis=-1, keepdims=True)
    var2 = jnp.mean((x1 - mu2) ** 2, axis=-1, keepdims=True)
    x2n = (x1 - mu2) * jax.lax.rsqrt(var2 + LN_EPS)
    x2n = x2n * ln2_g[...] + ln2_b[...]

    # ---- FeedForward (Linear -> ReLU -> Linear) + residual ----
    h1 = jnp.dot(x2n, w1[...], preferred_element_type=jnp.float32) + b1[...]
    h1 = jnp.maximum(h1, 0.0)
    ff = jnp.dot(h1, w2[...], preferred_element_type=jnp.float32) + b2[...]

    o_ref[...] = (x1 + ff).astype(o_ref.dtype)


# ------------------------------- wrapper -------------------------------------
def _pick_block_b(B, T, target_rows=256):
    """Choose how many sequences to fold into one grid step (M ~ 256 rows)."""
    bb = max(1, min(B, max(1, target_rows // max(T, 1))))
    while B % bb:
        bb -= 1
    # Prefer >= 2 parallel grid steps so both v7x TensorCores get work.
    if B // bb < 2:
        for cand in range(bb - 1, 0, -1):
            if B % cand == 0 and B // cand >= 2:
                return cand
    return bb


def fold_attention_scale(params, head_size):
    """One-time constant fold of the 1/sqrt(head_size) score scale into Wq, bq."""
    (ln1_g, ln1_b, wq, bq, wk, bk, wv, bv, wp, bp,
     ln2_g, ln2_b, w1, b1, w2, b2) = params
    s = head_size ** (-0.5)
    return (ln1_g, ln1_b, wq * s, bq * s, wk, bk, wv, bv, wp, bp,
            ln2_g, ln2_b, w1, b1, w2, b2)


def block_forward(x, params, *, n_head, head_size, block_b=None):
    B, T, C = x.shape
    assert C == n_head * head_size
    H4 = 4 * C
    bb = _pick_block_b(B, T) if block_b is None else block_b
    assert B % bb == 0
    mb = bb * T
    assert mb % 8 == 0, "block rows must be a multiple of 8 (f32 sublane)"

    # Fold batch into the GEMM M-dimension; last dim C stays lane-dense.
    x2d = x.reshape(B * T, C)

    full = lambda shape: pl.BlockSpec(shape, lambda i: (0,) * len(shape))
    in_specs = [
        pl.BlockSpec((mb, C), lambda i: (i, 0)),        # x rows
        full((1, C)), full((1, C)),                     # ln1 gamma/beta
        full((C, C)), full((1, C)),                     # wq*scale, bq*scale
        full((C, C)), full((1, C)),                     # wk, bk
        full((C, C)), full((1, C)),                     # wv, bv
        full((C, C)), full((1, C)),                     # wproj, bproj
        full((1, C)), full((1, C)),                     # ln2 gamma/beta
        full((C, H4)), full((1, H4)),                   # w1, b1
        full((H4, C)), full((1, C)),                    # w2, b2
    ]

    m_total = B * T
    cost = pl.CostEstimate(
        flops=24 * m_total * C * C + 4 * m_total * T * C,
        transcendentals=B * n_head * T * T,
        bytes_accessed=4 * (2 * m_total * C + 12 * C * C + 10 * C),
    )

    kernel = functools.partial(block_kernel, n_head, head_size, bb, T)
    out2d = pl.pallas_call(
        kernel,
        out_shape=jax.ShapeDtypeStruct((B * T, C), x.dtype),
        grid_spec=pltpu.PrefetchScalarGridSpec(
            num_scalar_prefetch=0,
            grid=(B // bb,),
            in_specs=in_specs,
            out_specs=pl.BlockSpec((mb, C), lambda i: (i, 0)),
        ),
        compiler_params=pltpu.CompilerParams(
            dimension_semantics=("parallel",)),
        cost_estimate=cost,
    )(x2d, *params)
    return out2d.reshape(B, T, C)


# --------------------------- pure-JAX reference -------------------------------
def block_reference(x, params, *, n_head, head_size):
    (ln1_g, ln1_b, wq, bq, wk, bk, wv, bv, wp, bp,
     ln2_g, ln2_b, w1, b1, w2, b2) = params

    def ln(z, g, b):
        mu = jnp.mean(z, axis=-1, keepdims=True)
        var = jnp.mean((z - mu) ** 2, axis=-1, keepdims=True)
        return (z - mu) * jax.lax.rsqrt(var + LN_EPS) * g + b

    xn = ln(x, ln1_g[0], ln1_b[0])
    q = xn @ wq + bq[0]
    k = xn @ wk + bk[0]
    v = xn @ wv + bv[0]
    outs = []
    for h in range(n_head):
        sl = slice(h * head_size, (h + 1) * head_size)
        wei = (q[..., sl] @ jnp.swapaxes(k[..., sl], -1, -2)) * head_size ** -0.5
        wei = jax.nn.softmax(wei, axis=-1)
        outs.append(wei @ v[..., sl])
    att = jnp.concatenate(outs, axis=-1)
    x1 = x + (att @ wp + bp[0])
    x2n = ln(x1, ln2_g[0], ln2_b[0])
    ff = jnp.maximum(x2n @ w1 + b1[0], 0.0) @ w2 + b2[0]
    return x1 + ff


# ------------------------------ param init ------------------------------------
def init_params(key, C):
    H4 = 4 * C
    ks = jax.random.split(key, 6)

    def lin(k, fan_in, fan_out):
        kw, kb = jax.random.split(k)
        bound = 1.0 / math.sqrt(fan_in)
        w = jax.random.uniform(kw, (fan_in, fan_out), jnp.float32, -bound, bound)
        b = jax.random.uniform(kb, (1, fan_out), jnp.float32, -bound, bound)
        return w, b

    wq, bq = lin(ks[0], C, C)
    wk, bk = lin(ks[1], C, C)
    wv, bv = lin(ks[2], C, C)
    wp, bp = lin(ks[3], C, C)
    w1, b1 = lin(ks[4], C, H4)
    w2, b2 = lin(ks[5], H4, C)
    ln1_g = jnp.ones((1, C), jnp.float32)
    ln1_b = jnp.zeros((1, C), jnp.float32)
    ln2_g = jnp.ones((1, C), jnp.float32)
    ln2_b = jnp.zeros((1, C), jnp.float32)
    return (ln1_g, ln1_b, wq, bq, wk, bk, wv, bv, wp, bp,
            ln2_g, ln2_b, w1, b1, w2, b2)


# ---------------------------------- main --------------------------------------
if __name__ == "__main__":
    cfg = SmallConfig()
    B, T, C = 8, 64, cfg.n_embd
    n_head = cfg.n_head
    head_size = C // n_head

    key = jax.random.PRNGKey(0)
    kx, kp = jax.random.split(key)
    x = jax.random.normal(kx, (B, T, C), jnp.float32)
    params = init_params(kp, C)

    # One-time host-side constant fold of the attention scale into Wq/bq.
    kernel_params = fold_attention_scale(params, head_size)

    out = block_forward(x, kernel_params, n_head=n_head, head_size=head_size)
    out = jax.block_until_ready(out)

    ref = block_reference(x, params, n_head=n_head, head_size=head_size)
    assert out.shape == (B, T, C)
    # Small buffer over 1e-4 for MXU accumulation-order / scale-fold reassociation.
    assert jnp.allclose(out, ref, atol=2e-4, rtol=2e-4), "mismatch vs reference"

    print("KERNEL_OK")
</pallas_src>

<mosaic_0001>
module attributes {stable_mosaic.version = 11 : i64} {
  func.func @block_kernel(%arg0: i32, %arg1: memref<256x128xf32, #tpu.memory_space<vmem>>, %arg2: memref<1x128xf32, #tpu.memory_space<vmem>>, %arg3: memref<1x128xf32, #tpu.memory_space<vmem>>, %arg4: memref<128x128xf32, #tpu.memory_space<vmem>>, %arg5: memref<1x128xf32, #tpu.memory_space<vmem>>, %arg6: memref<128x128xf32, #tpu.memory_space<vmem>>, %arg7: memref<1x128xf32, #tpu.memory_space<vmem>>, %arg8: memref<128x128xf32, #tpu.memory_space<vmem>>, %arg9: memref<1x128xf32, #tpu.memory_space<vmem>>, %arg10: memref<128x128xf32, #tpu.memory_space<vmem>>, %arg11: memref<1x128xf32, #tpu.memory_space<vmem>>, %arg12: memref<1x128xf32, #tpu.memory_space<vmem>>, %arg13: memref<1x128xf32, #tpu.memory_space<vmem>>, %arg14: memref<128x512xf32, #tpu.memory_space<vmem>>, %arg15: memref<1x512xf32, #tpu.memory_space<vmem>>, %arg16: memref<512x128xf32, #tpu.memory_space<vmem>>, %arg17: memref<1x128xf32, #tpu.memory_space<vmem>>, %arg18: memref<256x128xf32, #tpu.memory_space<vmem>>) attributes {dimension_semantics = [#tpu.dimension_semantics<parallel>], iteration_bounds = array<i64: 2>, scalar_prefetch = 0 : i64, scratch_operands = 0 : i64, tpu.core_type = #tpu.core_type<tc>, window_params = [{transform_indices = @transform_0, window_bounds = array<i64: 256, 128>}, {pipeline_mode = #tpu.pipeline_mode<synchronous>, transform_indices = @transform_1, window_bounds = array<i64: 1, 128>}, {pipeline_mode = #tpu.pipeline_mode<synchronous>, transform_indices = @transform_2, window_bounds = array<i64: 1, 128>}, {pipeline_mode = #tpu.pipeline_mode<synchronous>, transform_indices = @transform_3, window_bounds = array<i64: 128, 128>}, {pipeline_mode = #tpu.pipeline_mode<synchronous>, transform_indices = @transform_4, window_bounds = array<i64: 1, 128>}, {pipeline_mode = #tpu.pipeline_mode<synchronous>, transform_indices = @transform_5, window_bounds = array<i64: 128, 128>}, {pipeline_mode = #tpu.pipeline_mode<synchronous>, transform_indices = @transform_6, window_bounds = array<i64: 1, 128>}, {pipeline_mode = #tpu.pipeline_mode<synchronous>, transform_indices = @transform_7, window_bounds = array<i64: 128, 128>}, {pipeline_mode = #tpu.pipeline_mode<synchronous>, transform_indices = @transform_8, window_bounds = array<i64: 1, 128>}, {pipeline_mode = #tpu.pipeline_mode<synchronous>, transform_indices = @transform_9, window_bounds = array<i64: 128, 128>}, {pipeline_mode = #tpu.pipeline_mode<synchronous>, transform_indices = @transform_10, window_bounds = array<i64: 1, 128>}, {pipeline_mode = #tpu.pipeline_mode<synchronous>, transform_indices = @transform_11, window_bounds = array<i64: 1, 128>}, {pipeline_mode = #tpu.pipeline_mode<synchronous>, transform_indices = @transform_12, window_bounds = array<i64: 1, 128>}, {pipeline_mode = #tpu.pipeline_mode<synchronous>, transform_indices = @transform_13, window_bounds = array<i64: 128, 512>}, {pipeline_mode = #tpu.pipeline_mode<synchronous>, transform_indices = @transform_14, window_bounds = array<i64: 1, 512>}, {pipeline_mode = #tpu.pipeline_mode<synchronous>, transform_indices = @transform_15, window_bounds = array<i64: 512, 128>}, {pipeline_mode = #tpu.pipeline_mode<synchronous>, transform_indices = @transform_16, window_bounds = array<i64: 1, 128>}, {transform_indices = @transform_17, window_bounds = array<i64: 256, 128>}]} {
    %c0 = arith.constant 0 : index
    %c0_0 = arith.constant 0 : index
    %0 = vector.load %arg1[%c0, %c0_0] : memref<256x128xf32, #tpu.memory_space<vmem>>, vector<256x128xf32>
    %cst = arith.constant dense<0.000000e+00> : vector<256xf32>
    %1 = vector.multi_reduction <add>, %0, %cst [1] : vector<256x128xf32> to vector<256xf32>
    %2 = vector.shape_cast %1 : vector<256xf32> to vector<256x1xf32>
    %cst_1 = arith.constant 1.280000e+02 : f32
    %3 = vector.broadcast %cst_1 : f32 to vector<256x1xf32>
    %4 = arith.divf %2, %3 : vector<256x1xf32>
    %5 = vector.broadcast %4 : vector<256x1xf32> to vector<256x128xf32>
    %6 = arith.subf %0, %5 : vector<256x128xf32>
    %7 = arith.mulf %6, %6 : vector<256x128xf32>
    %cst_2 = arith.constant dense<0.000000e+00> : vector<256xf32>
    %8 = vector.multi_reduction <add>, %7, %cst_2 [1] : vector<256x128xf32> to vector<256xf32>
    %9 = vector.shape_cast %8 : vector<256xf32> to vector<256x1xf32>
    %cst_3 = arith.constant 1.280000e+02 : f32
    %10 = vector.broadcast %cst_3 : f32 to vector<256x1xf32>
    %11 = arith.divf %9, %10 : vector<256x1xf32>
    %12 = vector.broadcast %4 : vector<256x1xf32> to vector<256x128xf32>
    %13 = arith.subf %0, %12 : vector<256x128xf32>
    %cst_4 = arith.constant 9.99999974E-6 : f32
    %14 = vector.broadcast %cst_4 : f32 to vector<256x1xf32>
    %15 = arith.addf %11, %14 : vector<256x1xf32>
    %16 = math.rsqrt %15 : vector<256x1xf32>
    %17 = vector.broadcast %16 : vector<256x1xf32> to vector<256x128xf32>
    %18 = arith.mulf %13, %17 : vector<256x128xf32>
    %c0_5 = arith.constant 0 : index
    %c0_6 = arith.constant 0 : index
    %19 = vector.load %arg2[%c0_5, %c0_6] : memref<1x128xf32, #tpu.memory_space<vmem>>, vector<1x128xf32>
    %20 = vector.broadcast %19 : vector<1x128xf32> to vector<256x128xf32>
    %21 = arith.mulf %18, %20 : vector<256x128xf32>
    %c0_7 = arith.constant 0 : index
    %c0_8 = arith.constant 0 : index
    %22 = vector.load %arg3[%c0_7, %c0_8] : memref<1x128xf32, #tpu.memory_space<vmem>>, vector<1x128xf32>
    %23 = vector.broadcast %22 : vector<1x128xf32> to vector<256x128xf32>
    %24 = arith.addf %21, %23 : vector<256x128xf32>
    %c0_9 = arith.constant 0 : index
    %c0_10 = arith.constant 0 : index
    %25 = vector.load %arg4[%c0_9, %c0_10] : memref<128x128xf32, #tpu.memory_space<vmem>>, vector<128x128xf32>
    %cst_11 = arith.constant dense<0.000000e+00> : vector<256x128xf32>
    %26 = tpu.matmul %24, %25, %cst_11 {dimension_numbers = #tpu.dot_dimension_numbers<[1], [0], [0], [1], [0, 0, 1, 1], [], []>} : vector<256x128xf32>, vector<128x128xf32>, vector<256x128xf32> -> vector<256x128xf32>
    %c0_12 = arith.constant 0 : index
    %c0_13 = arith.constant 0 : index
    %27 = vector.load %arg5[%c0_12, %c0_13] : memref<1x128xf32, #tpu.memory_space<vmem>>, vector<1x128xf32>
    %28 = vector.broadcast %27 : vector<1x128xf32> to vector<256x128xf32>
    %29 = arith.addf %26, %28 : vector<256x128xf32>
    %c0_14 = arith.constant 0 : index
    %c0_15 = arith.constant 0 : index
    %30 = vector.load %arg6[%c0_14, %c0_15] : memref<128x128xf32, #tpu.memory_space<vmem>>, vector<128x128xf32>
    %cst_16 = arith.constant dense<0.000000e+00> : vector<256x128xf32>
    %31 = tpu.matmul %24, %30, %cst_16 {dimension_numbers = #tpu.dot_dimension_numbers<[1], [0], [0], [1], [0, 0, 1, 1], [], []>} : vector<256x128xf32>, vector<128x128xf32>, vector<256x128xf32> -> vector<256x128xf32>
    %c0_17 = arith.constant 0 : index
    %c0_18 = arith.constant 0 : index
    %32 = vector.load %arg7[%c0_17, %c0_18] : memref<1x128xf32, #tpu.memory_space<vmem>>, vector<1x128xf32>
    %33 = vector.broadcast %32 : vector<1x128xf32> to vector<256x128xf32>
    %34 = arith.addf %31, %33 : vector<256x128xf32>
    %c0_19 = arith.constant 0 : index
    %c0_20 = arith.constant 0 : index
    %35 = vector.load %arg8[%c0_19, %c0_20] : memref<128x128xf32, #tpu.memory_space<vmem>>, vector<128x128xf32>
    %cst_21 = arith.constant dense<0.000000e+00> : vector<256x128xf32>
    %36 = tpu.matmul %24, %35, %cst_21 {dimension_numbers = #tpu.dot_dimension_numbers<[1], [0], [0], [1], [0, 0, 1, 1], [], []>} : vector<256x128xf32>, vector<128x128xf32>, vector<256x128xf32> -> vector<256x128xf32>
    %c0_22 = arith.constant 0 : index
    %c0_23 = arith.constant 0 : index
    %37 = vector.load %arg9[%c0_22, %c0_23] : memref<1x128xf32, #tpu.memory_space<vmem>>, vector<1x128xf32>
    %38 = vector.broadcast %37 : vector<1x128xf32> to vector<256x128xf32>
    %39 = arith.addf %36, %38 : vector<256x128xf32>
    %c0_24 = arith.constant 0 : index
    %c0_25 = arith.constant 0 : index
    %40 = vector.load %arg10[%c0_24, %c0_25] : memref<128x128xf32, #tpu.memory_space<vmem>>, vector<128x128xf32>
    %c0_26 = arith.constant 0 : index
    %c0_27 = arith.constant 0 : index
    %41 = vector.load %arg11[%c0_26, %c0_27] : memref<1x128xf32, #tpu.memory_space<vmem>>, vector<1x128xf32>
    %42 = vector.broadcast %41 : vector<1x128xf32> to vector<256x128xf32>
    %43 = arith.addf %0, %42 : vector<256x128xf32>
    %44 = vector.extract_strided_slice %29 {offsets = [0, 0], sizes = [256, 32], strides = [1, 1]} : vector<256x128xf32> to vector<256x32xf32>
    %45 = vector.shape_cast %44 : vector<256x32xf32> to vector<4x64x32xf32>
    %46 = vector.extract_strided_slice %34 {offsets = [0, 0], sizes = [256, 32], strides = [1, 1]} : vector<256x128xf32> to vector<256x32xf32>
    %47 = vector.shape_cast %46 : vector<256x32xf32> to vector<4x64x32xf32>
    %48 = vector.extract_strided_slice %39 {offsets = [0, 0], sizes = [256, 32], strides = [1, 1]} : vector<256x128xf32> to vector<256x32xf32>
    %49 = vector.shape_cast %48 : vector<256x32xf32> to vector<4x64x32xf32>
    "tpu.trace_start"() <{level = 10 : i32, message = "btd,bsd->bts"}> : () -> ()
    %cst_28 = arith.constant dense<0.000000e+00> : vector<4x64x64xf32>
    %50 = tpu.matmul %45, %47, %cst_28 {dimension_numbers = #tpu.dot_dimension_numbers<[2], [2], [1], [1], [0, 0, 0, 1, 1, 1], [0], [0]>} : vector<4x64x32xf32>, vector<4x64x32xf32>, vector<4x64x64xf32> -> vector<4x64x64xf32>
    "tpu.trace_stop"() : () -> ()
    %cst_29 = arith.constant dense<0xFF800000> : vector<4x64xf32>
    %51 = vector.multi_reduction <maximumf>, %50, %cst_29 [2] : vector<4x64x64xf32> to vector<4x64xf32>
    %52 = vector.shape_cast %51 : vector<4x64xf32> to vector<4x64x1xf32>
    %53 = vector.broadcast %52 : vector<4x64x1xf32> to vector<4x64x64xf32>
    %54 = arith.subf %50, %53 : vector<4x64x64xf32>
    %55 = math.exp %54 : vector<4x64x64xf32>
    %cst_30 = arith.constant dense<0.000000e+00> : vector<4x64xf32>
    %56 = vector.multi_reduction <add>, %55, %cst_30 [2] : vector<4x64x64xf32> to vector<4x64xf32>
    %57 = vector.shape_cast %56 : vector<4x64xf32> to vector<4x64x1xf32>
    %58 = tpu.reciprocal %57 : vector<4x64x1xf32> -> vector<4x64x1xf32>
    %59 = vector.broadcast %58 : vector<4x64x1xf32> to vector<4x64x64xf32>
    %60 = arith.mulf %55, %59 : vector<4x64x64xf32>
    "tpu.trace_start"() <{level = 10 : i32, message = "bts,bsd->btd"}> : () -> ()
    %cst_31 = arith.constant dense<0.000000e+00> : vector<4x64x32xf32>
    %61 = tpu.matmul %60, %49, %cst_31 {dimension_numbers = #tpu.dot_dimension_numbers<[2], [1], [1], [2], [0, 0, 0, 1, 1, 2], [0], [0]>} : vector<4x64x64xf32>, vector<4x64x32xf32>, vector<4x64x32xf32> -> vector<4x64x32xf32>
    "tpu.trace_stop"() : () -> ()
    %62 = vector.shape_cast %61 : vector<4x64x32xf32> to vector<256x32xf32>
    %63 = vector.extract_strided_slice %40 {offsets = [0, 0], sizes = [32, 128], strides = [1, 1]} : vector<128x128xf32> to vector<32x128xf32>
    %cst_32 = arith.constant dense<0.000000e+00> : vector<256x128xf32>
    %64 = tpu.matmul %62, %63, %cst_32 {dimension_numbers = #tpu.dot_dimension_numbers<[1], [0], [0], [1], [0, 0, 1, 1], [], []>} : vector<256x32xf32>, vector<32x128xf32>, vector<256x128xf32> -> vector<256x128xf32>
    %65 = arith.addf %43, %64 : vector<256x128xf32>
    %66 = vector.extract_strided_slice %29 {offsets = [0, 32], sizes = [256, 32], strides = [1, 1]} : vector<256x128xf32> to vector<256x32xf32>
    %67 = vector.shape_cast %66 : vector<256x32xf32> to vector<4x64x32xf32>
    %68 = vector.extract_strided_slice %34 {offsets = [0, 32], sizes = [256, 32], strides = [1, 1]} : vector<256x128xf32> to vector<256x32xf32>
    %69 = vector.shape_cast %68 : vector<256x32xf32> to vector<4x64x32xf32>
    %70 = vector.extract_strided_slice %39 {offsets = [0, 32], sizes = [256, 32], strides = [1, 1]} : vector<256x128xf32> to vector<256x32xf32>
    %71 = vector.shape_cast %70 : vector<256x32xf32> to vector<4x64x32xf32>
    "tpu.trace_start"() <{level = 10 : i32, message = "btd,bsd->bts"}> : () -> ()
    %cst_33 = arith.constant dense<0.000000e+00> : vector<4x64x64xf32>
    %72 = tpu.matmul %67, %69, %cst_33 {dimension_numbers = #tpu.dot_dimension_numbers<[2], [2], [1], [1], [0, 0, 0, 1, 1, 1], [0], [0]>} : vector<4x64x32xf32>, vector<4x64x32xf32>, vector<4x64x64xf32> -> vector<4x64x64xf32>
    "tpu.trace_stop"() : () -> ()
    %cst_34 = arith.constant dense<0xFF800000> : vector<4x64xf32>
    %73 = vector.multi_reduction <maximumf>, %72, %cst_34 [2] : vector<4x64x64xf32> to vector<4x64xf32>
    %74 = vector.shape_cast %73 : vector<4x64xf32> to vector<4x64x1xf32>
    %75 = vector.broadcast %74 : vector<4x64x1xf32> to vector<4x64x64xf32>
    %76 = arith.subf %72, %75 : vector<4x64x64xf32>
    %77 = math.exp %76 : vector<4x64x64xf32>
    %cst_35 = arith.constant dense<0.000000e+00> : vector<4x64xf32>
    %78 = vector.multi_reduction <add>, %77, %cst_35 [2] : vector<4x64x64xf32> to vector<4x64xf32>
    %79 = vector.shape_cast %78 : vector<4x64xf32> to vector<4x64x1xf32>
    %80 = tpu.reciprocal %79 : vector<4x64x1xf32> -> vector<4x64x1xf32>
    %81 = vector.broadcast %80 : vector<4x64x1xf32> to vector<4x64x64xf32>
    %82 = arith.mulf %77, %81 : vector<4x64x64xf32>
    "tpu.trace_start"() <{level = 10 : i32, message = "bts,bsd->btd"}> : () -> ()
    %cst_36 = arith.constant dense<0.000000e+00> : vector<4x64x32xf32>
    %83 = tpu.matmul %82, %71, %cst_36 {dimension_numbers = #tpu.dot_dimension_numbers<[2], [1], [1], [2], [0, 0, 0, 1, 1, 2], [0], [0]>} : vector<4x64x64xf32>, vector<4x64x32xf32>, vector<4x64x32xf32> -> vector<4x64x32xf32>
    "tpu.trace_stop"() : () -> ()
    %84 = vector.shape_cast %83 : vector<4x64x32xf32> to vector<256x32xf32>
    %85 = vector.extract_strided_slice %40 {offsets = [32, 0], sizes = [32, 128], strides = [1, 1]} : vector<128x128xf32> to vector<32x128xf32>
    %cst_37 = arith.constant dense<0.000000e+00> : vector<256x128xf32>
    %86 = tpu.matmul %84, %85, %cst_37 {dimension_numbers = #tpu.dot_dimension_numbers<[1], [0], [0], [1], [0, 0, 1, 1], [], []>} : vector<256x32xf32>, vector<32x128xf32>, vector<256x128xf32> -> vector<256x128xf32>
    %87 = arith.addf %65, %86 : vector<256x128xf32>
    %88 = vector.extract_strided_slice %29 {offsets = [0, 64], sizes = [256, 32], strides = [1, 1]} : vector<256x128xf32> to vector<256x32xf32>
    %89 = vector.shape_cast %88 : vector<256x32xf32> to vector<4x64x32xf32>
    %90 = vector.extract_strided_slice %34 {offsets = [0, 64], sizes = [256, 32], strides = [1, 1]} : vector<256x128xf32> to vector<256x32xf32>
    %91 = vector.shape_cast %90 : vector<256x32xf32> to vector<4x64x32xf32>
    %92 = vector.extract_strided_slice %39 {offsets = [0, 64], sizes = [256, 32], strides = [1, 1]} : vector<256x128xf32> to vector<256x32xf32>
    %93 = vector.shape_cast %92 : vector<256x32xf32> to vector<4x64x32xf32>
    "tpu.trace_start"() <{level = 10 : i32, message = "btd,bsd->bts"}> : () -> ()
    %cst_38 = arith.constant dense<0.000000e+00> : vector<4x64x64xf32>
    %94 = tpu.matmul %89, %91, %cst_38 {dimension_numbers = #tpu.dot_dimension_numbers<[2], [2], [1], [1], [0, 0, 0, 1, 1, 1], [0], [0]>} : vector<4x64x32xf32>, vector<4x64x32xf32>, vector<4x64x64xf32> -> vector<4x64x64xf32>
    "tpu.trace_stop"() : () -> ()
    %cst_39 = arith.constant dense<0xFF800000> : vector<4x64xf32>
    %95 = vector.multi_reduction <maximumf>, %94, %cst_39 [2] : vector<4x64x64xf32> to vector<4x64xf32>
    %96 = vector.shape_cast %95 : vector<4x64xf32> to vector<4x64x1xf32>
    %97 = vector.broadcast %96 : vector<4x64x1xf32> to vector<4x64x64xf32>
    %98 = arith.subf %94, %97 : vector<4x64x64xf32>
    %99 = math.exp %98 : vector<4x64x64xf32>
    %cst_40 = arith.constant dense<0.000000e+00> : vector<4x64xf32>
    %100 = vector.multi_reduction <add>, %99, %cst_40 [2] : vector<4x64x64xf32> to vector<4x64xf32>
    %101 = vector.shape_cast %100 : vector<4x64xf32> to vector<4x64x1xf32>
    %102 = tpu.reciprocal %101 : vector<4x64x1xf32> -> vector<4x64x1xf32>
    %103 = vector.broadcast %102 : vector<4x64x1xf32> to vector<4x64x64xf32>
    %104 = arith.mulf %99, %103 : vector<4x64x64xf32>
    "tpu.trace_start"() <{level = 10 : i32, message = "bts,bsd->btd"}> : () -> ()
    %cst_41 = arith.constant dense<0.000000e+00> : vector<4x64x32xf32>
    %105 = tpu.matmul %104, %93, %cst_41 {dimension_numbers = #tpu.dot_dimension_numbers<[2], [1], [1], [2], [0, 0, 0, 1, 1, 2], [0], [0]>} : vector<4x64x64xf32>, vector<4x64x32xf32>, vector<4x64x32xf32> -> vector<4x64x32xf32>
    "tpu.trace_stop"() : () -> ()
    %106 = vector.shape_cast %105 : vector<4x64x32xf32> to vector<256x32xf32>
    %107 = vector.extract_strided_slice %40 {offsets = [64, 0], sizes = [32, 128], strides = [1, 1]} : vector<128x128xf32> to vector<32x128xf32>
    %cst_42 = arith.constant dense<0.000000e+00> : vector<256x128xf32>
    %108 = tpu.matmul %106, %107, %cst_42 {dimension_numbers = #tpu.dot_dimension_numbers<[1], [0], [0], [1], [0, 0, 1, 1], [], []>} : vector<256x32xf32>, vector<32x128xf32>, vector<256x128xf32> -> vector<256x128xf32>
    %109 = arith.addf %87, %108 : vector<256x128xf32>
    %110 = vector.extract_strided_slice %29 {offsets = [0, 96], sizes = [256, 32], strides = [1, 1]} : vector<256x128xf32> to vector<256x32xf32>
    %111 = vector.shape_cast %110 : vector<256x32xf32> to vector<4x64x32xf32>
    %112 = vector.extract_strided_slice %34 {offsets = [0, 96], sizes = [256, 32], strides = [1, 1]} : vector<256x128xf32> to vector<256x32xf32>
    %113 = vector.shape_cast %112 : vector<256x32xf32> to vector<4x64x32xf32>
    %114 = vector.extract_strided_slice %39 {offsets = [0, 96], sizes = [256, 32], strides = [1, 1]} : vector<256x128xf32> to vector<256x32xf32>
    %115 = vector.shape_cast %114 : vector<256x32xf32> to vector<4x64x32xf32>
    "tpu.trace_start"() <{level = 10 : i32, message = "btd,bsd->bts"}> : () -> ()
    %cst_43 = arith.constant dense<0.000000e+00> : vector<4x64x64xf32>
    %116 = tpu.matmul %111, %113, %cst_43 {dimension_numbers = #tpu.dot_dimension_numbers<[2], [2], [1], [1], [0, 0, 0, 1, 1, 1], [0], [0]>} : vector<4x64x32xf32>, vector<4x64x32xf32>, vector<4x64x64xf32> -> vector<4x64x64xf32>
    "tpu.trace_stop"() : () -> ()
    %cst_44 = arith.constant dense<0xFF800000> : vector<4x64xf32>
    %117 = vector.multi_reduction <maximumf>, %116, %cst_44 [2] : vector<4x64x64xf32> to vector<4x64xf32>
    %118 = vector.shape_cast %117 : vector<4x64xf32> to vector<4x64x1xf32>
    %119 = vector.broadcast %118 : vector<4x64x1xf32> to vector<4x64x64xf32>
    %120 = arith.subf %116, %119 : vector<4x64x64xf32>
    %121 = math.exp %120 : vector<4x64x64xf32>
    %cst_45 = arith.constant dense<0.000000e+00> : vector<4x64xf32>
    %122 = vector.multi_reduction <add>, %121, %cst_45 [2] : vector<4x64x64xf32> to vector<4x64xf32>
    %123 = vector.shape_cast %122 : vector<4x64xf32> to vector<4x64x1xf32>
    %124 = tpu.reciprocal %123 : vector<4x64x1xf32> -> vector<4x64x1xf32>
    %125 = vector.broadcast %124 : vector<4x64x1xf32> to vector<4x64x64xf32>
    %126 = arith.mulf %121, %125 : vector<4x64x64xf32>
    "tpu.trace_start"() <{level = 10 : i32, message = "bts,bsd->btd"}> : () -> ()
    %cst_46 = arith.constant dense<0.000000e+00> : vector<4x64x32xf32>
    %127 = tpu.matmul %126, %115, %cst_46 {dimension_numbers = #tpu.dot_dimension_numbers<[2], [1], [1], [2], [0, 0, 0, 1, 1, 2], [0], [0]>} : vector<4x64x64xf32>, vector<4x64x32xf32>, vector<4x64x32xf32> -> vector<4x64x32xf32>
    "tpu.trace_stop"() : () -> ()
    %128 = vector.shape_cast %127 : vector<4x64x32xf32> to vector<256x32xf32>
    %129 = vector.extract_strided_slice %40 {offsets = [96, 0], sizes = [32, 128], strides = [1, 1]} : vector<128x128xf32> to vector<32x128xf32>
    %cst_47 = arith.constant dense<0.000000e+00> : vector<256x128xf32>
    %130 = tpu.matmul %128, %129, %cst_47 {dimension_numbers = #tpu.dot_dimension_numbers<[1], [0], [0], [1], [0, 0, 1, 1], [], []>} : vector<256x32xf32>, vector<32x128xf32>, vector<256x128xf32> -> vector<256x128xf32>
    %131 = arith.addf %109, %130 : vector<256x128xf32>
    %cst_48 = arith.constant dense<0.000000e+00> : vector<256xf32>
    %132 = vector.multi_reduction <add>, %131, %cst_48 [1] : vector<256x128xf32> to vector<256xf32>
    %133 = vector.shape_cast %132 : vector<256xf32> to vector<256x1xf32>
    %cst_49 = arith.constant 1.280000e+02 : f32
    %134 = vector.broadcast %cst_49 : f32 to vector<256x1xf32>
    %135 = arith.divf %133, %134 : vector<256x1xf32>
    %136 = vector.broadcast %135 : vector<256x1xf32> to vector<256x128xf32>
    %137 = arith.subf %131, %136 : vector<256x128xf32>
    %138 = arith.mulf %137, %137 : vector<256x128xf32>
    %cst_50 = arith.constant dense<0.000000e+00> : vector<256xf32>
    %139 = vector.multi_reduction <add>, %138, %cst_50 [1] : vector<256x128xf32> to vector<256xf32>
    %140 = vector.shape_cast %139 : vector<256xf32> to vector<256x1xf32>
    %cst_51 = arith.constant 1.280000e+02 : f32
    %141 = vector.broadcast %cst_51 : f32 to vector<256x1xf32>
    %142 = arith.divf %140, %141 : vector<256x1xf32>
    %143 = vector.broadcast %135 : vector<256x1xf32> to vector<256x128xf32>
    %144 = arith.subf %131, %143 : vector<256x128xf32>
    %cst_52 = arith.constant 9.99999974E-6 : f32
    %145 = vector.broadcast %cst_52 : f32 to vector<256x1xf32>
    %146 = arith.addf %142, %145 : vector<256x1xf32>
    %147 = math.rsqrt %146 : vector<256x1xf32>
    %148 = vector.broadcast %147 : vector<256x1xf32> to vector<256x128xf32>
    %149 = arith.mulf %144, %148 : vector<256x128xf32>
    %c0_53 = arith.constant 0 : index
    %c0_54 = arith.constant 0 : index
    %150 = vector.load %arg12[%c0_53, %c0_54] : memref<1x128xf32, #tpu.memory_space<vmem>>, vector<1x128xf32>
    %151 = vector.broadcast %150 : vector<1x128xf32> to vector<256x128xf32>
    %152 = arith.mulf %149, %151 : vector<256x128xf32>
    %c0_55 = arith.constant 0 : index
    %c0_56 = arith.constant 0 : index
    %153 = vector.load %arg13[%c0_55, %c0_56] : memref<1x128xf32, #tpu.memory_space<vmem>>, vector<1x128xf32>
    %154 = vector.broadcast %153 : vector<1x128xf32> to vector<256x128xf32>
    %155 = arith.addf %152, %154 : vector<256x128xf32>
    %c0_57 = arith.constant 0 : index
    %c0_58 = arith.constant 0 : index
    %156 = vector.load %arg14[%c0_57, %c0_58] : memref<128x512xf32, #tpu.memory_space<vmem>>, vector<128x512xf32>
    %cst_59 = arith.constant dense<0.000000e+00> : vector<256x512xf32>
    %157 = tpu.matmul %155, %156, %cst_59 {dimension_numbers = #tpu.dot_dimension_numbers<[1], [0], [0], [1], [0, 0, 1, 1], [], []>} : vector<256x128xf32>, vector<128x512xf32>, vector<256x512xf32> -> vector<256x512xf32>
    %c0_60 = arith.constant 0 : index
    %c0_61 = arith.constant 0 : index
    %158 = vector.load %arg15[%c0_60, %c0_61] : memref<1x512xf32, #tpu.memory_space<vmem>>, vector<1x512xf32>
    %159 = vector.broadcast %158 : vector<1x512xf32> to vector<256x512xf32>
    %160 = arith.addf %157, %159 : vector<256x512xf32>
    %cst_62 = arith.constant 0.000000e+00 : f32
    %161 = vector.broadcast %cst_62 : f32 to vector<256x512xf32>
    %162 = arith.maximumf %160, %161 : vector<256x512xf32>
    %c0_63 = arith.constant 0 : index
    %c0_64 = arith.constant 0 : index
    %163 = vector.load %arg16[%c0_63, %c0_64] : memref<512x128xf32, #tpu.memory_space<vmem>>, vector<512x128xf32>
    %cst_65 = arith.constant dense<0.000000e+00> : vector<256x128xf32>
    %164 = tpu.matmul %162, %163, %cst_65 {dimension_numbers = #tpu.dot_dimension_numbers<[1], [0], [0], [1], [0, 0, 1, 1], [], []>} : vector<256x512xf32>, vector<512x128xf32>, vector<256x128xf32> -> vector<256x128xf32>
    %c0_66 = arith.constant 0 : index
    %c0_67 = arith.constant 0 : index
    %165 = vector.load %arg17[%c0_66, %c0_67] : memref<1x128xf32, #tpu.memory_space<vmem>>, vector<1x128xf32>
    %166 = vector.broadcast %165 : vector<1x128xf32> to vector<256x128xf32>
    %167 = arith.addf %164, %166 : vector<256x128xf32>
    %168 = arith.addf %131, %167 : vector<256x128xf32>
    %c0_68 = arith.constant 0 : index
    %c0_69 = arith.constant 0 : index
    %169 = vector.load %arg18[%c0_68, %c0_69] : memref<256x128xf32, #tpu.memory_space<vmem>>, vector<256x128xf32>
    tpu.vector_store %arg18[%c0_68, %c0_69], %168 {strides = array<i32>} : memref<256x128xf32, #tpu.memory_space<vmem>>, vector<256x128xf32>,
    return
  }
  func.func @transform_0(%arg0: i32) -> (i32, i32) {
    %c0_i32 = arith.constant 0 : i32
    %c0_i32_0 = arith.constant 0 : i32
    return %arg0, %c0_i32 : i32, i32
  }
  func.func @transform_1(%arg0: i32) -> (i32, i32) {
    %c0_i32 = arith.constant 0 : i32
    %c0_i32_0 = arith.constant 0 : i32
    %c0_i32_1 = arith.constant 0 : i32
    return %c0_i32, %c0_i32_0 : i32, i32
  }
  func.func @transform_2(%arg0: i32) -> (i32, i32) {
    %c0_i32 = arith.constant 0 : i32
    %c0_i32_0 = arith.constant 0 : i32
    %c0_i32_1 = arith.constant 0 : i32
    return %c0_i32, %c0_i32_0 : i32, i32
  }
  func.func @transform_3(%arg0: i32) -> (i32, i32) {
    %c0_i32 = arith.constant 0 : i32
    %c0_i32_0 = arith.constant 0 : i32
    %c0_i32_1 = arith.constant 0 : i32
    return %c0_i32, %c0_i32_0 : i32, i32
  }
  func.func @transform_4(%arg0: i32) -> (i32, i32) {
    %c0_i32 = arith.constant 0 : i32
    %c0_i32_0 = arith.constant 0 : i32
    %c0_i32_1 = arith.constant 0 : i32
    return %c0_i32, %c0_i32_0 : i32, i32
  }
  func.func @transform_5(%arg0: i32) -> (i32, i32) {
    %c0_i32 = arith.constant 0 : i32
    %c0_i32_0 = arith.constant 0 : i32
    %c0_i32_1 = arith.constant 0 : i32
    return %c0_i32, %c0_i32_0 : i32, i32
  }
  func.func @transform_6(%arg0: i32) -> (i32, i32) {
    %c0_i32 = arith.constant 0 : i32
    %c0_i32_0 = arith.constant 0 : i32
    %c0_i32_1 = arith.constant 0 : i32
    return %c0_i32, %c0_i32_0 : i32, i32
  }
  func.func @transform_7(%arg0: i32) -> (i32, i32) {
    %c0_i32 = arith.constant 0 : i32
    %c0_i32_0 = arith.constant 0 : i32
    %c0_i32_1 = arith.constant 0 : i32
    return %c0_i32, %c0_i32_0 : i32, i32
  }
  func.func @transform_8(%arg0: i32) -> (i32, i32) {
    %c0_i32 = arith.constant 0 : i32
    %c0_i32_0 = arith.constant 0 : i32
    %c0_i32_1 = arith.constant 0 : i32
    return %c0_i32, %c0_i32_0 : i32, i32
  }
  func.func @transform_9(%arg0: i32) -> (i32, i32) {
    %c0_i32 = arith.constant 0 : i32
    %c0_i32_0 = arith.constant 0 : i32
    %c0_i32_1 = arith.constant 0 : i32
    return %c0_i32, %c0_i32_0 : i32, i32
  }
  func.func @transform_10(%arg0: i32) -> (i32, i32) {
    %c0_i32 = arith.constant 0 : i32
    %c0_i32_0 = arith.constant 0 : i32
    %c0_i32_1 = arith.constant 0 : i32
    return %c0_i32, %c0_i32_0 : i32, i32
  }
  func.func @transform_11(%arg0: i32) -> (i32, i32) {
    %c0_i32 = arith.constant 0 : i32
    %c0_i32_0 = arith.constant 0 : i32
    %c0_i32_1 = arith.constant 0 : i32
    return %c0_i32, %c0_i32_0 : i32, i32
  }
  func.func @transform_12(%arg0: i32) -> (i32, i32) {
    %c0_i32 = arith.constant 0 : i32
    %c0_i32_0 = arith.constant 0 : i32
    %c0_i32_1 = arith.constant 0 : i32
    return %c0_i32, %c0_i32_0 : i32, i32
  }
  func.func @transform_13(%arg0: i32) -> (i32, i32) {
    %c0_i32 = arith.constant 0 : i32
    %c0_i32_0 = arith.constant 0 : i32
    %c0_i32_1 = arith.constant 0 : i32
    return %c0_i32, %c0_i32_0 : i32, i32
  }
  func.func @transform_14(%arg0: i32) -> (i32, i32) {
    %c0_i32 = arith.constant 0 : i32
    %c0_i32_0 = arith.constant 0 : i32
    %c0_i32_1 = arith.constant 0 : i32
    return %c0_i32, %c0_i32_0 : i32, i32
  }
  func.func @transform_15(%arg0: i32) -> (i32, i32) {
    %c0_i32 = arith.constant 0 : i32
    %c0_i32_0 = arith.constant 0 : i32
    %c0_i32_1 = arith.constant 0 : i32
    return %c0_i32, %c0_i32_0 : i32, i32
  }
  func.func @transform_16(%arg0: i32) -> (i32, i32) {
    %c0_i32 = arith.constant 0 : i32
    %c0_i32_0 = arith.constant 0 : i32
    %c0_i32_1 = arith.constant 0 : i32
    return %c0_i32, %c0_i32_0 : i32, i32
  }
  func.func @transform_17(%arg0: i32) -> (i32, i32) {
    %c0_i32 = arith.constant 0 : i32
    %c0_i32_0 = arith.constant 0 : i32
    return %arg0, %c0_i32 : i32, i32
  }
}

</mosaic_0001>

<bundles_post_ra>
// kernel: tpu_custom_call.1
= control target key start
LH: loop header
LB: loop body
LE: loop exit
PB: predicated region body
PF: predicated region fallthrough
CT: control target
= control target key end

     0   :  { %s21058_s0 = inlined_call_operand.hbm [shape: f32[512,128], index: 0, kind: input, shape index: {}]   ;;  %s21059_s1 = inlined_call_operand.vmem [shape: f32[1,128], index: 1, kind: input, shape index: {}]   ;;  %s21060_s2 = inlined_call_operand.vmem [shape: f32[1,128], index: 2, kind: input, shape index: {}]   ;;  %s21061_s3 = inlined_call_operand.hbm [shape: f32[128,128], index: 3, kind: input, shape index: {}]   ;;  %s21062_s4 = inlined_call_operand.vmem [shape: f32[1,128], index: 4, kind: input, shape index: {}]   ;;  %s21063_s5 = inlined_call_operand.hbm [shape: f32[128,128], index: 5, kind: input, shape index: {}]   ;;  %s21064_s6 = inlined_call_operand.vmem [shape: f32[1,128], index: 6, kind: input, shape index: {}]   ;;  %s21065_s7 = inlined_call_operand.hbm [shape: f32[128,128], index: 7, kind: input, shape index: {}]   ;;  %s21066_s8 = inlined_call_operand.vmem [shape: f32[1,128], index: 8, kind: input, shape index: {}]   ;;  %s21067_s9 = inlined_call_operand.hbm [shape: f32[128,128], index: 9, kind: input, shape index: {}]   ;;  %s21068_s10 = inlined_call_operand.vmem [shape: f32[1,128], index: 10, kind: input, shape index: {}]   ;;  %s21069_s11 = inlined_call_operand.vmem [shape: f32[1,128], index: 11, kind: input, shape index: {}]   ;;  %s21070_s12 = inlined_call_operand.vmem [shape: f32[1,128], index: 12, kind: input, shape index: {}]   ;;  %s21071_s13 = inlined_call_operand.hbm [shape: f32[128,512], index: 13, kind: input, shape index: {}]   ;;  %s21072_s14 = inlined_call_operand.vmem [shape: f32[1,512], index: 14, kind: input, shape index: {}]   ;;  %s21073_s15 = inlined_call_operand.hbm [shape: f32[512,128], index: 15, kind: input, shape index: {}]   ;;  %s21074_s16 = inlined_call_operand.vmem [shape: f32[1,128], index: 16, kind: input, shape index: {}]   ;;  %s21075_s17 = inlined_call_operand.hbm [shape: f32[512,128], index: 17, kind: output, shape index: {}]  }
   0x1   :  { %21298 = sst [smem:[#allocation158_spill]] %s21058_s0 }
   0x2   :  { %21299 = sst [smem:[#allocation159_spill]] %s21059_s1 }
   0x3   :  { %21300 = sst [smem:[#allocation160_spill]] %s21061_s3 }
   0x4   :  { %21301 = sst [smem:[#allocation161_spill]] %s21063_s5 }
   0x5   :  { %21302 = sst [smem:[#allocation162_spill]] %s21065_s7 }
   0x6   :  { %21303 = sst [smem:[#allocation163_spill]] %s21067_s9 }
   0x7   :  { %21304 = sst [smem:[#allocation164_spill]] %s21071_s13 }
   0x8   :  { %21305 = sst [smem:[#allocation165_spill]] %s21073_s15 }
   0x9   :  { %21306 = sst [smem:[#allocation166_spill]] %s21074_s16 }
   0xa   :  { %21307 = sst [smem:[#allocation167_spill]] %s21075_s17 }
   0xb   :  { %22 = vsyncpa [#allocation3], 0 }
   0xc   :  { %24 = vsyncpa [#allocation3 + $0x1], 0 }
   0xd   :  { %25 = vsyncpa [#allocation6], 0 }
   0xe   :  { %26 = vsyncpa [#allocation9], 0 }
   0xf   :  { %27 = vsyncpa [#allocation12], 0 }
  0x10   :  { %28 = vsyncpa [#allocation4], 0 }
  0x11   :  { %30 = vsyncpa [#allocation4 + $0x1], 0  ;;  %s15523_s24 = smov 0   ;;  %s15525_s25 = smov 0  }
  0x12   :  { %s15527_s26 = smov 0   ;;  %s15529_s27 = smov 0  }
  0x13 LB: > { %21308 = sst [smem:[#allocation20_spill]] %s15409_s26  ;;  %s15415_s28 = smov [#allocation5]   ;;  %s15413_s27 = sphi %s15529_s27, %s21910_s27   ;;  %s15409_s26 = sphi %s15527_s26, %s21912_s26   ;;  %s15405_s25 = sphi %s15525_s25, %s21914_s25   ;;  %s15401_s24 = sphi %s15523_s24, %s21913_s24  }
  0x14   : > { %21309 = sst [smem:[#allocation21_spill]] %s15413_s27  ;;  %s447_s29 = sshll.u32 %s15415_s28, 4  ;;  %s448_s29 = int_to_ptr.vmem [resolvable:$true] %s447_s29 }
  0x15   : > { %s15544_s0 = sadd.s32 4294967295, %s15413_s27   ;;  %p11652_p0 = scmp.ge.s32.totalorder %s15413_s27, 1 }
  0x16   : > { %p21085_p1 = scmp.eq.s32.totalorder %s15544_s0, 0  ;;  %p429_p2 = scmp.lt.s32.totalorder %s15413_s27, 3 }
  0x17   : > { %s15416_s18 = smov [#allocation8]   ;;  %s15417_s20 = smov [#allocation11]  }
  0x18   : > { %p15549_p3 = pnand %p11652_p0, %p429_p2  ;;  %s479_s19 = sshll.u32 %s15416_s18, 4  ;;  %s15562_s19 = int_to_ptr.vmem [resolvable:$true] %s479_s19 }
  0x19   : > { %s517_s21 = sshll.u32 %s15417_s20, 4  ;;  %s15164_s23 = scalar_lea.vmem %s448_s29, 2048  ;;  %s15564_s21 = int_to_ptr.vmem [resolvable:$true] %s517_s21 }
  0x1a   : > { %s21310_s30 = scalar_select %p15549_p3, 1, 0 }
  0x1b   : > { %p14388_p5 = pneg %p15549_p3  ;;  %p15165_p8 = scmp.ne.s32.totalorder %s448_s29, %s15164_s23 }
  0x1c   : > { %p15172_p11 = scmp.lt.s32.totalorder %s448_s29, %s448_s29  ;;  %p15173_p12 = scmp.lt.s32.totalorder %s15164_s23, %s15164_s23 }
  0x1d   : > { %p15558_p6 = pnand %p14388_p5, %p21085_p1 }
  0x1e   : > { %p15174_p13 = por %p15173_p12, %p15172_p11 }
  0x1f   : > { %p15568_p7 = pneg %p15558_p6 }
  0x21   : > { %p15167_p9 = pnand %p15165_p8, %p15568_p7 }
  0x23   : > { %p15168_p10 = pneg %p15167_p9 }
  0x25   : > { %p15175_p0 = pnand %p15174_p13, %p15168_p10 }
  0x27   : > { %15178 = shalt.err (!%p15175_p0)
}
  0x28   : > { %s21078_s28 = smov 128   ;;  %s21080_s18 = smov 8  }
  0x29   : > { %s21313_s3 = sld [smem:[#allocation160_spill]]  ;;  %s15190_s16 = scalar_lea.vmem %s15562_s19, 2048 }
  0x2a   : > { %p15191_p2 = scmp.ne.s32.totalorder %s15562_s19, %s15190_s16  ;;  %p15198_p9 = scmp.lt.s32.totalorder %s15562_s19, %s15562_s19 }
  0x2b   : > { %p15199_p10 = scmp.lt.s32.totalorder %s15190_s16, %s15190_s16 }
  0x2c   : > { %p15193_p5 = pnand %p15191_p2, %p15568_p7 }
  0x2d   : > { %p15200_p11 = por %p15199_p10, %p15198_p9 }
  0x2e   : > { %p15194_p8 = pneg %p15193_p5 }
  0x2f   : > { %14391 = dma.hbm_to_vmem [thread:$0]  (!%p15558_p6), %s21313_s3, 2048, %s448_s29, [#allocation6], %s21078_s28, %s21078_s28, %s21080_s18  }
  0x30   : > { %p15201_p12 = pnand %p15200_p11, %p15194_p8 }
  0x32   : > { %15204 = shalt.err (!%p15201_p12)
}
  0x33   : > { %s21314_s7 = sld [smem:[#allocation162_spill]]  ;;  %s15216_s29 = scalar_lea.vmem %s15564_s21, 8192 }
  0x34   : > { %p15217_p13 = scmp.ne.s32.totalorder %s15564_s21, %s15216_s29  ;;  %p15224_p5 = scmp.lt.s32.totalorder %s15564_s21, %s15564_s21 }
  0x35   : > { %p15225_p8 = scmp.lt.s32.totalorder %s15216_s29, %s15216_s29 }
  0x36   : > { %p15219_p0 = pnand %p15217_p13, %p15568_p7 }
  0x37   : > { %p15226_p9 = por %p15225_p8, %p15224_p5 }
  0x38   : > { %p15220_p2 = pneg %p15219_p0 }
  0x39   : > { %14397 = dma.hbm_to_vmem [thread:$0]  (!%p15558_p6), %s21314_s7, 2048, %s15562_s19, [#allocation9], %s21078_s28, %s21078_s28, %s21080_s18  }
  0x3a   : > { %p15227_p10 = pnand %p15226_p9, %p15220_p2 }
  0x3c   : > { %15230 = shalt.err (!%p15227_p10)
}
  0x3d   : > { %s15420_s16 = smov 512   ;;  %s15421_s20 = smov 32  }
  0x3e   : > { %s21315_s13 = sld [smem:[#allocation164_spill]]  ;;  %s15422_s19 = smov [#allocation7]  }
  0x3f   : > { %s463_s28 = sshll.u32 %s15422_s19, 4  ;;  %s15423_s18 = smov [#allocation10]   ;;  %s464_s28 = int_to_ptr.vmem [resolvable:$true] %s463_s28 }
  0x40   : > { %s495_s3 = sshll.u32 %s15423_s18, 4  ;;  %s15242_s7 = scalar_lea.vmem %s464_s28, 2048  ;;  %s496_s3 = int_to_ptr.vmem [resolvable:$true] %s495_s3 }
  0x41   : > { %p15243_p11 = scmp.ne.s32.totalorder %s464_s28, %s15242_s7  ;;  %p15250_p0 = scmp.lt.s32.totalorder %s464_s28, %s464_s28 }
  0x42   : > { %p15251_p2 = scmp.lt.s32.totalorder %s15242_s7, %s15242_s7 }
  0x43   : > { %p15245_p12 = pnand %p15243_p11, %p15568_p7 }
  0x44   : > { %14403 = dma.hbm_to_vmem [thread:$0]  (!%p15558_p6), %s21315_s13, 8192, %s15564_s21, [#allocation12], %s15420_s16, %s15420_s16, %s15421_s20  }
  0x45   : > { %p15246_p13 = pneg %p15245_p12  ;;  %p15252_p5 = por %p15251_p2, %p15250_p0 }
  0x47   : > { %p15253_p8 = pnand %p15252_p5, %p15246_p13 }
  0x49   : > { %15256 = shalt.err (!%p15253_p8)
}
  0x4a   : > { %s21316_s29 = smov 8   ;;  %s21317_s23 = smov 128  }
  0x4b   : > { %s21318_s5 = sld [smem:[#allocation161_spill]]  ;;  %s15268_s18 = scalar_lea.vmem %s496_s3, 2048 }
  0x4c   : > { %p15269_p9 = scmp.ne.s32.totalorder %s496_s3, %s15268_s18  ;;  %p15276_p12 = scmp.lt.s32.totalorder %s496_s3, %s496_s3 }
  0x4d   : > { %p15277_p0 = scmp.lt.s32.totalorder %s15268_s18, %s15268_s18 }
  0x4e   : > { %p15271_p10 = pnand %p15269_p9, %p15568_p7 }
  0x4f   : > { %p15278_p13 = por %p15277_p0, %p15276_p12 }
  0x50   : > { %p15272_p11 = pneg %p15271_p10 }
  0x51   : > { %14394 = dma.hbm_to_vmem [thread:$0]  (!%p15558_p6), %s21318_s5, 2048, %s464_s28, [#allocation6], %s21317_s23, %s21317_s23, %s21316_s29  }
  0x52   : > { %p15279_p2 = pnand %p15278_p13, %p15272_p11 }
  0x54   : > { %15282 = shalt.err (!%p15279_p2)
}
  0x55   : > { %s21319_s9 = sld [smem:[#allocation163_spill]]  ;;  %s15424_s28 = smov [#allocation13]  }
  0x56   : > { %s533_s17 = sshll.u32 %s15424_s28, 4  ;;  %s534_s17 = int_to_ptr.vmem [resolvable:$true] %s533_s17 }
  0x57   : > { %s15294_s19 = scalar_lea.vmem %s534_s17, 8192  ;;  %p15302_p10 = scmp.lt.s32.totalorder %s534_s17, %s534_s17 }
  0x58   : > { %p15295_p5 = scmp.ne.s32.totalorder %s534_s17, %s15294_s19  ;;  %p15303_p11 = scmp.lt.s32.totalorder %s15294_s19, %s15294_s19 }
  0x5a   : > { %p15297_p8 = pnand %p15295_p5, %p15568_p7  ;;  %p15304_p12 = por %p15303_p11, %p15302_p10 }
  0x5b   : > { %14400 = dma.hbm_to_vmem [thread:$0]  (!%p15558_p6), %s21319_s9, 2048, %s496_s3, [#allocation9], %s21317_s23, %s21317_s23, %s21316_s29  }
  0x5c   : > { %p15298_p9 = pneg %p15297_p8 }
  0x5e   : > { %p15305_p0 = pnand %p15304_p12, %p15298_p9 }
  0x60   : > { %15308 = shalt.err (!%p15305_p0)
}
  0x61   : > { %s21320_s15 = sld [smem:[#allocation165_spill]]  ;;  %s11651_s1 = sadd.s32 4294967294, %s15413_s27  }
  0x62   : > { %s15641_s22 = sadd.s32 1, %s15413_s27   ;;  %s43_s18 = sadd.s32 1, %s15409_s26 }
  0x63   : > { %21321 = sst [smem:[#allocation22_spill]] %s15641_s22  ;;  %s40_s16 = ssub.s32 %s15413_s27, %s15641_s22 }
  0x64   : > { %p41_p7 = scmp.eq.s32.totalorder %s40_s16, 0  ;;  %p50_p13 = scmp.ne.s32.totalorder %s15409_s26, %s15405_s25 }
  0x65   : > { %p51_p2 = scmp.eq.s32.totalorder %s15413_s27, 0  ;;  %p56_p5 = scmp.ne.s32.totalorder %s15405_s25, %s15401_s24 }
  0x66   : > { %s15652_s7 = scalar_select %p41_p7, %s15409_s26, %s43_s18  }
  0x67   : > { %14406 = dma.hbm_to_vmem [thread:$0]  (!%p15558_p6), %s21320_s15, 8192, %s534_s17, [#allocation12], %s21317_s23, %s21317_s23, %s21316_s29  }
  0x68   : > { %21322 = sst [smem:[#allocation23_spill]] %s15652_s7  ;;  %p15654_p8 = por %p51_p2, %p50_p13 }
  0x69   : > { %p15660_p6 = por %p21085_p1, %p56_p5  ;;  %p416_p9 = scmp.eq.s32.totalorder %s15544_s0, 1 }
  0x6a   : > { %p422_p10 = scmp.eq.s32.totalorder %s11651_s1, 1  ;;  %p14421_p11 = scmp.lt.s32.totalorder %s15413_s27, 2 }
  0x6b   : > { %s21324_s28 = scalar_select %p15660_p6, 1, 0 }
  0x6c   : > { %s550_s17 = sand.u32 1, %s15409_s26   ;;  %p15667_p12 = por %p416_p9, %p50_p13 }
  0x6d   : > { %p15671_p0 = por %p422_p10, %p56_p5  ;;  %s11660_s3 = sshll.u32 %s550_s17, 8 }
  0x6e   : > { %s21325_s19 = scalar_select %p15667_p12, 1, 0 }
  0x6f   : > { %s21326_s21 = scalar_select %p15671_p0, 1, 0 }
  0x70   : > { %s12198_s16 = sshll.u32 %s15413_s27, 12  ;;  %s21327_s9 = sld [smem:[#allocation158_spill]] }
  0x71   : > { %s554_s1 = scalar_lea.vmem [#allocation2], %s11660_s3  ;;  %p15685_p7 = pnand %p14421_p11, %p15654_p8 }
  0x72   : > { %s561_s15 = sshll.u32 %s554_s1, 4  ;;  %s15689_s26 = scalar_lea.sflag [#allocation3], %s550_s17  ;;  %s15681_s15 = int_to_ptr.vmem [resolvable:$true] %s561_s15 }
  0x73   : > { %p15311_p2 = pneg %p15685_p7 }
  0x76   : > { %s15679_s13 = scalar_lea.hbm %s21327_s9, %s12198_s16  ;;  %s15314_s3 = scalar_lea.hbm %s21327_s9, 8192 }
  0x77   : > { %s15309_s22 = scalar_lea.hbm %s15679_s13, 4096  ;;  %p15315_p8 = scmp.lt.s32.totalorder %s15679_s13, %s21327_s9 }
  0x78   : > { %p15310_p13 = scmp.ne.s32.totalorder %s15679_s13, %s15309_s22  ;;  %p15316_p10 = scmp.lt.s32.totalorder %s15314_s3, %s15309_s22 }
  0x7a   : > { %p15312_p5 = pnand %p15311_p2, %p15310_p13  ;;  %p15317_p11 = por %p15316_p10, %p15315_p8 }
  0x7c   : > { %p15313_p9 = pneg %p15312_p5 }
  0x7e   : > { %p15318_p4 = pnand %p15317_p11, %p15313_p9 }
  0x80   : > { %15321 = shalt.err (!%p15318_p4)
}
  0x81   : > { %s15322_s20 = scalar_lea.vmem %s15681_s15, 4096  ;;  %s15425_s17 = smov [#allocation2]  }
  0x82   : > { %p15323_p1 = scmp.ne.s32.totalorder %s15681_s15, %s15322_s20  ;;  %s15327_s27 = sshll.u32 %s15425_s17, 4  ;;  %s15328_s27 = int_to_ptr.vmem [resolvable:$false] %s15327_s27 }
  0x83   : > { %s15329_s5 = scalar_lea.vmem %s15328_s27, 8192  ;;  %p15330_p5 = scmp.lt.s32.totalorder %s15681_s15, %s15328_s27 }
  0x84   : > { %p15325_p0 = pnand %p15323_p1, %p15311_p2  ;;  %p15331_p12 = scmp.lt.s32.totalorder %s15329_s5, %s15322_s20 }
  0x86   : > { %p15326_p13 = pneg %p15325_p0  ;;  %p15332_p6 = por %p15331_p12, %p15330_p5 }
  0x88   : > { %p15333_p3 = pnand %p15332_p6, %p15326_p13 }
  0x8a   : > { %15336 = shalt.err (!%p15333_p3)
}
  0x8b   : > { %14410 = dma.hbm_to_vmem [thread:$0]  (!%p15685_p7), %s15679_s13, 4096, %s15681_s15, %s15689_s26, %s21317_s23, %s21317_s23, %s21316_s29  }
  0x8c   : > { %p21329_p1 = scmp.ne.s32.totalorder %s21310_s30, 0 }
  0x8e   : > { %573 = sbr.rel (%p21329_p1) target bundleno = 4817 (0x12d1), region = 88 }
  0x93   : > { %s15716_s22 = sand.u32 1, %s15405_s25   ;;  %p21330_p3 = scmp.ne.s32.totalorder %s21324_s28, 0 }
  0x94   : > { %s11664_s27 = sshll.u32 %s15716_s22, 8  ;;  %s576_s16 = scalar_lea.sflag [#allocation3], %s15716_s22 }
  0x95   : > { %s15722_s7 = scalar_lea.vmem [#allocation2], %s11664_s27 }
  0x96   : > { %15380 = dma.done.wait (%p21330_p3), %s576_s16, 4096  }
  0x97   : > { %15382 = vsyncadd (%p21330_p3), %s576_s16, 4294963200  ;;  %p21331_p4 = scmp.eq.s32.totalorder %s15544_s0, 0 }
  0x99   : > { %15384 = dma.done.wait (%p21331_p4), [#allocation6], 4096   ;;  %p21332_p6 = pmov %p21331_p4 }
  0x9a   : > { %p21333_p12 = pmov %p21331_p4 }
  0x9b   : > { %15386 = vsyncadd (%p21332_p6), [#allocation6], 4294963200 }
  0x9c   : > { %15388 = dma.done.wait (%p21333_p12), [#allocation9], 4096   ;;  %p21334_p0 = pmov %p21331_p4 }
  0x9e   : > { %15390 = vsyncadd (%p21334_p0), [#allocation9], 4294963200  ;;  %p21335_p7 = pmov %p21334_p0 }
  0x9f   : > { %p21336_p2 = pmov %p21334_p0 }
  0xa0   : > { %15392 = dma.done.wait (%p21335_p7), [#allocation12], 16384  }
  0xa1   : > { %15394 = vsyncadd (%p21336_p2), [#allocation12], 4294950912  ;;  %v15741_v0 = vld [vmem:[%s15722_s7 + $0x10] sm:$0xff]  ;;  %v15744_v1 = vld [vmem:[%s15722_s7] sm:$0xff]  ;;  %s21337_s26 = sld [smem:[#allocation159_spill]]  ;;  %vm1918_vm0 = vcmask 261120  }
  0xa2   : > { %692 = vadd.xlane.f32.xlu1 %v15741_v0  ;;  %688 = vadd.xlane.f32.xlu0 %v15744_v1  ;;  %v15749_v2 = vld [vmem:[%s15722_s7 + $0x8] sm:$0xff]  ;;  %v15752_v3 = vld [vmem:[%s15722_s7 + $0x18] sm:$0xff]  ;;  %v15757_v4 = vld [vmem:[%s15722_s7 + $0x20] sm:$0xff]  ;;  %vm2531_vm1 = vcmask 523264   ;;  %s15426_s17 = smov 96   ;;  %s15427_s13 = smov 64  }
  0xa3   : > { %v15760_v5 = vld [vmem:[%s15722_s7 + $0x28] sm:$0xff]  ;;  %v15765_v6 = vld [vmem:[%s15722_s7 + $0x30] sm:$0xff]  ;;  %v15768_v7 = vld [vmem:[%s15722_s7 + $0x38] sm:$0xff]  ;;  %s15428_s30 = smov 32   ;;  %s20913_s29 = scalar_lea.vmem [#allocation14], %s11664_s27 }
  0xa4   : > { %v15773_v8 = vld [vmem:[%s15722_s7 + $0x40] sm:$0xff]  ;;  %v15776_v9 = vld [vmem:[%s15722_s7 + $0x48] sm:$0xff]  ;;  %v15781_v10 = vld [vmem:[%s15722_s7 + $0x50] sm:$0xff]  ;;  %s12199_s27 = sshll.u32 %s15544_s0, 12  ;;  %s11521_s23 = sshll.u32 %s20913_s29, 4  ;;  %s21013_s23 = int_to_ptr.vmem [resolvable:$true] %s11521_s23 }
  0xa5   : > { %v15784_v11 = vld [vmem:[%s15722_s7 + $0x58] sm:$0xff]  ;;  %v15789_v12 = vld [vmem:[%s15722_s7 + $0x60] sm:$0xff]  ;;  %v15792_v13 = vld [vmem:[%s15722_s7 + $0x68] sm:$0xff]  ;;  %s21904_s3 = sld [smem:[#allocation167_spill]]  ;;  %s11508_s1 = scalar_lea.sflag [#allocation4], %s15716_s22 }
  0xa6   : > { %690 = vadd.xlane.f32.xlu0 %v15749_v2  ;;  %694 = vadd.xlane.f32.xlu1 %v15752_v3  ;;  %v15797_v14 = vld [vmem:[%s15722_s7 + $0x70] sm:$0xff]  ;;  %v15800_v15 = vld [vmem:[%s15722_s7 + $0x78] sm:$0xff]  ;;  %v15805_v16 = vld [vmem:[%s15722_s7 + $0x80] sm:$0xff]  ;;  %s15337_s0 = scalar_lea.vmem %s21013_s23, 4096  ;;  %p21906_p8 = scmp.ne.s32.totalorder %s21325_s19, 0 }
  0xa7   : > { %v15808_v17 = vld [vmem:[%s15722_s7 + $0x88] sm:$0xff]  ;;  %v15813_v18 = vld [vmem:[%s15722_s7 + $0x90] sm:$0xff]  ;;  %v15816_v19 = vld [vmem:[%s15722_s7 + $0x98] sm:$0xff]  ;;  %p15338_p9 = scmp.ne.s32.totalorder %s21013_s23, %s15337_s0  ;;  %s15430_s20 = smov [#allocation14]  }
  0xa8   : > { %v15821_v20 = vld [vmem:[%s15722_s7 + $0xa0] sm:$0xff]  ;;  %v15824_v21 = vld [vmem:[%s15722_s7 + $0xa8] sm:$0xff]  ;;  %v15829_v22 = vld [vmem:[%s15722_s7 + $0xb0] sm:$0xff] }
  0xa9   : > { %v15832_v23 = vld [vmem:[%s15722_s7 + $0xb8] sm:$0xff]  ;;  %v15837_v24 = vld [vmem:[%s15722_s7 + $0xc0] sm:$0xff]  ;;  %v15840_v25 = vld [vmem:[%s15722_s7 + $0xc8] sm:$0xff]  ;;  %p15339_p10 = pnand %p15338_p9, %p21906_p8 }
  0xaa   : > { %696 = vadd.xlane.f32.xlu0 %v15757_v4  ;;  %698 = vadd.xlane.f32.xlu1 %v15760_v5  ;;  %v15845_v26 = vld [vmem:[%s15722_s7 + $0xd0] sm:$0xff]  ;;  %v15848_v27 = vld [vmem:[%s15722_s7 + $0xd8] sm:$0xff]  ;;  %v15853_v28 = vld [vmem:[%s15722_s7 + $0xe0] sm:$0xff] }
  0xab   : > { %v15856_v29 = vld [vmem:[%s15722_s7 + $0xe8] sm:$0xff]  ;;  %v15861_v30 = vld [vmem:[%s15722_s7 + $0xf0] sm:$0xff]  ;;  %v15865_v31 = vld [vmem:[%s15722_s7 + $0xf8] sm:$0xff]  ;;  %s21011_s18 = scalar_lea.hbm %s21904_s3, %s12199_s27  ;;  %p15340_p11 = pneg %p15339_p10 }
  0xac   : > { %v1134_v32 = vld [vmem:[#allocation5 + $0x78] sm:$0xff]  ;;  %v1133_v34 = vld [vmem:[#allocation5 + $0x70] sm:$0xff] }
  0xad   : > { %v1382_v33 = vld [vmem:[#allocation7 + $0x78] sm:$0xff]  ;;  %13000 = vmatprep.subr.mxu0 %v1134_v32  ;;  %v1381_v35 = vld [vmem:[#allocation7 + $0x70] sm:$0xff] }
  0xae   : > { %700 = vadd.xlane.f32.xlu0 %v15765_v6  ;;  %702 = vadd.xlane.f32.xlu1 %v15768_v7 }
  0xaf   : > { %13080 = vmatprep.subr.mxu1 %v1382_v33  ;;  %13001 = vmatpush3.msra.mxu0 %v1134_v32 }
  0xb0   : > { %13081 = vmatpush3.msra.mxu1 %v1382_v33  ;;  %13002 = vmatprep.subr.mxu0 %v1133_v34  ;;  %v1132_v33 = vld [vmem:[#allocation5 + $0x68] sm:$0xff] }
  0xb1   : > { %13082 = vmatprep.subr.mxu1 %v1381_v35  ;;  %13003 = vmatpush3.msra.mxu0 %v1133_v34  ;;  %v1380_v34 = vld [vmem:[#allocation7 + $0x68] sm:$0xff] }
  0xb2   : > { %704 = vadd.xlane.f32.xlu0 %v15773_v8  ;;  %706 = vadd.xlane.f32.xlu1 %v15776_v9 }
  0xb3   : > { %13083 = vmatpush3.msra.mxu1 %v1381_v35  ;;  %13004 = vmatprep.subr.mxu0 %v1132_v33 }
  0xb4   : > { %13084 = vmatprep.subr.mxu1 %v1380_v34  ;;  %13005 = vmatpush3.msra.mxu0 %v1132_v33 }
  0xb5   : > { %13085 = vmatpush3.msra.mxu1 %v1380_v34  ;;  %v1126_v34 = vld [vmem:[#allocation5 + $0x38] sm:$0xff] }
  0xb6   : > { %708 = vadd.xlane.f32.xlu0 %v15781_v10  ;;  %710 = vadd.xlane.f32.xlu1 %v15784_v11 }
  0xba   : > { %712 = vadd.xlane.f32.xlu0 %v15789_v12  ;;  %714 = vadd.xlane.f32.xlu1 %v15792_v13 }
  0xbe   : > { %716 = vadd.xlane.f32.xlu0 %v15797_v14  ;;  %718 = vadd.xlane.f32.xlu1 %v15800_v15 }
  0xc2   : > { %720 = vadd.xlane.f32.xlu0 %v15805_v16  ;;  %722 = vadd.xlane.f32.xlu1 %v15808_v17 }
  0xc6   : > { %724 = vadd.xlane.f32.xlu0 %v15813_v18  ;;  %726 = vadd.xlane.f32.xlu1 %v15816_v19 }
  0xca   : > { %728 = vadd.xlane.f32.xlu0 %v15821_v20  ;;  %730 = vadd.xlane.f32.xlu1 %v15824_v21 }
  0xce   : > { %732 = vadd.xlane.f32.xlu0 %v15829_v22  ;;  %734 = vadd.xlane.f32.xlu1 %v15832_v23 }
  0xd2   : > { %736 = vadd.xlane.f32.xlu0 %v15837_v24  ;;  %738 = vadd.xlane.f32.xlu1 %v15840_v25 }
  0xd6   : > { %740 = vadd.xlane.f32.xlu0 %v15845_v26  ;;  %742 = vadd.xlane.f32.xlu1 %v15848_v27 }
  0xda   : > { %744 = vadd.xlane.f32.xlu0 %v15853_v28  ;;  %746 = vadd.xlane.f32.xlu1 %v15856_v29 }
  0xde   : > { %748 = vadd.xlane.f32.xlu0 %v15861_v30 }
  0xe2   : > { %750 = vadd.xlane.f32.xlu0 %v15865_v31 }
 0x12b   : > { %v693_v36 = vpop.xlane.xlu1 %692  ;;  %v689_v37 = vpop.xlane.xlu0 %688 }
 0x12c   : > { %v755_v38 = vmul.f32 0.0078125, %v693_v36  ;;  %v753_v39 = vmul.f32 0.0078125, %v689_v37  ;;  %v1131_v36 = vld [vmem:[#allocation5 + $0x60] sm:$0xff] }
 0x12d   : > { %v1379_v37 = vld [vmem:[#allocation7 + $0x60] sm:$0xff]  ;;  %13006 = vmatprep.subr.mxu0 %v1131_v36 }
 0x12e   : > { %v15869_v40 = vsub.f32 %v15741_v0, %v755_v38  ;;  %v15872_v41 = vsub.f32 %v15744_v1, %v753_v39  ;;  %13086 = vmatprep.subr.mxu1 %v1379_v37  ;;  %13007 = vmatpush3.msra.mxu0 %v1131_v36 }
 0x12f   : > { %v691_v42 = vpop.xlane.xlu0 %690  ;;  %v695_v43 = vpop.xlane.xlu1 %694  ;;  %13087 = vmatpush3.msra.mxu1 %v1379_v37 }
 0x130   : > { %v754_v44 = vmul.f32 0.0078125, %v691_v42  ;;  %v819_v45 = vmul.f32 %v15869_v40, %v15869_v40  ;;  %v817_v46 = vmul.f32 %v15872_v41, %v15872_v41  ;;  %v756_v47 = vmul.f32 0.0078125, %v695_v43 }
 0x132   : > { %853 = vadd.xlane.f32.xlu0 %v819_v45  ;;  %849 = vadd.xlane.f32.xlu1 %v817_v46  ;;  %v15879_v48 = vsub.f32 %v15749_v2, %v754_v44  ;;  %v15882_v49 = vsub.f32 %v15752_v3, %v756_v47  ;;  %v1130_v45 = vld [vmem:[#allocation5 + $0x58] sm:$0xff] }
 0x133   : > { %v697_v50 = vpop.xlane.xlu0 %696  ;;  %v699_v51 = vpop.xlane.xlu1 %698  ;;  %v1378_v46 = vld [vmem:[#allocation7 + $0x58] sm:$0xff]  ;;  %13008 = vmatprep.subr.mxu0 %v1130_v45 }
 0x134   : > { %v757_v52 = vmul.f32 0.0078125, %v697_v50  ;;  %v818_v53 = vmul.f32 %v15879_v48, %v15879_v48  ;;  %v758_v54 = vmul.f32 0.0078125, %v699_v51  ;;  %v820_v55 = vmul.f32 %v15882_v49, %v15882_v49  ;;  %v1129_v50 = vld [vmem:[#allocation5 + $0x50] sm:$0xff]  ;;  %13088 = vmatprep.subr.mxu1 %v1378_v46  ;;  %13009 = vmatpush3.msra.mxu0 %v1130_v45 }
 0x135   : > { %v1377_v51 = vld [vmem:[#allocation7 + $0x50] sm:$0xff]  ;;  %13089 = vmatpush3.msra.mxu1 %v1378_v46  ;;  %13010 = vmatprep.subr.mxu0 %v1129_v50 }
 0x136   : > { %851 = vadd.xlane.f32.xlu1 %v818_v53  ;;  %v15889_v56 = vsub.f32 %v15757_v4, %v757_v52  ;;  %v15892_v57 = vsub.f32 %v15760_v5, %v758_v54  ;;  %13090 = vmatprep.subr.mxu1 %v1377_v51 }
 0x137   : > { %v701_v58 = vpop.xlane.xlu0 %700  ;;  %v703_v59 = vpop.xlane.xlu1 %702  ;;  %13011 = vmatpush3.msra.mxu0 %v1129_v50  ;;  %13091 = vmatpush3.msra.mxu1 %v1377_v51 }
 0x138   : > { %v759_v60 = vmul.f32 0.0078125, %v701_v58  ;;  %v821_v61 = vmul.f32 %v15889_v56, %v15889_v56  ;;  %v760_v62 = vmul.f32 0.0078125, %v703_v59  ;;  %v822_v63 = vmul.f32 %v15892_v57, %v15892_v57  ;;  %v1376_v59 = vld [vmem:[#allocation7 + $0x48] sm:$0xff] }
 0x139   : > { %13092 = vmatprep.subr.mxu1 %v1376_v59 }
 0x13a   : > { %855 = vadd.xlane.f32.xlu1 %v820_v55  ;;  %857 = vadd.xlane.f32.xlu0 %v821_v61  ;;  %v15899_v0 = vsub.f32 %v15765_v6, %v759_v60  ;;  %v15902_v1 = vsub.f32 %v15768_v7, %v760_v62 }
 0x13b   : > { %v705_v2 = vpop.xlane.xlu0 %704  ;;  %v707_v3 = vpop.xlane.xlu1 %706  ;;  %13093 = vmatpush3.msra.mxu1 %v1376_v59 }
 0x13c   : > { %v761_v4 = vmul.f32 0.0078125, %v705_v2  ;;  %v823_v5 = vmul.f32 %v15899_v0, %v15899_v0  ;;  %v762_v32 = vmul.f32 0.0078125, %v707_v3  ;;  %v824_v6 = vmul.f32 %v15902_v1, %v15902_v1 }
 0x13e   : > { %859 = vadd.xlane.f32.xlu1 %v822_v63  ;;  %861 = vadd.xlane.f32.xlu0 %v823_v5  ;;  %v15909_v35 = vsub.f32 %v15773_v8, %v761_v4  ;;  %v15912_v7 = vsub.f32 %v15776_v9, %v762_v32  ;;  %v1127_v5 = vld [vmem:[#allocation5 + $0x40] sm:$0xff] }
 0x13f   : > { %v709_v38 = vpop.xlane.xlu0 %708  ;;  %v711_v39 = vpop.xlane.xlu1 %710  ;;  %v1375_v32 = vld [vmem:[#allocation7 + $0x40] sm:$0xff] }
 0x140   : > { %v763_v42 = vmul.f32 0.0078125, %v709_v38  ;;  %v825_v43 = vmul.f32 %v15909_v35, %v15909_v35  ;;  %v764_v44 = vmul.f32 0.0078125, %v711_v39  ;;  %v826_v8 = vmul.f32 %v15912_v7, %v15912_v7  ;;  %13094 = vmatprep.subr.mxu1 %v1375_v32 }
 0x141   : > { %13095 = vmatpush3.msra.mxu1 %v1375_v32 }
 0x142   : > { %863 = vadd.xlane.f32.xlu1 %v824_v6  ;;  %865 = vadd.xlane.f32.xlu0 %v825_v43  ;;  %v15919_v9 = vsub.f32 %v15781_v10, %v763_v42  ;;  %v15922_v47 = vsub.f32 %v15784_v11, %v764_v44  ;;  %v1128_v10 = vld [vmem:[#allocation5 + $0x48] sm:$0xff]  ;;  %v1374_v6 = vld [vmem:[#allocation7 + $0x38] sm:$0xff]  ;;  %v1373_v43 = vld [vmem:[#allocation7 + $0x30] sm:$0xff] }
 0x143   : > { %v713_v52 = vpop.xlane.xlu0 %712  ;;  %v715_v53 = vpop.xlane.xlu1 %714  ;;  %13012 = vmatprep.subr.mxu0 %v1128_v10  ;;  %13096 = vmatprep.subr.mxu1 %v1374_v6 }
 0x144   : > { %v765_v54 = vmul.f32 0.0078125, %v713_v52  ;;  %v827_v55 = vmul.f32 %v15919_v9, %v15919_v9  ;;  %v766_v58 = vmul.f32 0.0078125, %v715_v53  ;;  %v828_v11 = vmul.f32 %v15922_v47, %v15922_v47  ;;  %13013 = vmatpush3.msra.mxu0 %v1128_v10  ;;  %13097 = vmatpush3.msra.mxu1 %v1374_v6  ;;  %v1124_v53 = vld [vmem:[#allocation5 + $0x28] sm:$0xff]  ;;  %v1371_v10 = vld [vmem:[#allocation7 + $0x20] sm:$0xff] }
 0x145   : > { %13014 = vmatprep.subr.mxu0 %v1127_v5  ;;  %13098 = vmatprep.subr.mxu1 %v1373_v43 }
 0x146   : > { %867 = vadd.xlane.f32.xlu1 %v826_v8  ;;  %869 = vadd.xlane.f32.xlu0 %v827_v55  ;;  %v15929_v60 = vsub.f32 %v15789_v12, %v765_v54  ;;  %v15932_v61 = vsub.f32 %v15792_v13, %v766_v58  ;;  %v1372_v54 = vld [vmem:[#allocation7 + $0x28] sm:$0xff]  ;;  %v1123_v58 = vld [vmem:[#allocation5 + $0x20] sm:$0xff] }
 0x147   : > { %v717_v62 = vpop.xlane.xlu0 %716  ;;  %v719_v63 = vpop.xlane.xlu1 %718  ;;  %13015 = vmatpush3.msra.mxu0 %v1127_v5  ;;  %13099 = vmatpush3.msra.mxu1 %v1373_v43 }
 0x148   : > { %v767_v2 = vmul.f32 0.0078125, %v717_v62  ;;  %v829_v3 = vmul.f32 %v15929_v60, %v15929_v60  ;;  %v768_v4 = vmul.f32 0.0078125, %v719_v63  ;;  %v830_v12 = vmul.f32 %v15932_v61, %v15932_v61  ;;  %13016 = vmatprep.subr.mxu0 %v1126_v34  ;;  %13100 = vmatprep.subr.mxu1 %v1372_v54 }
 0x149   : > { %13017 = vmatpush3.msra.mxu0 %v1126_v34  ;;  %13101 = vmatpush3.msra.mxu1 %v1372_v54 }
 0x14a   : > { %871 = vadd.xlane.f32.xlu1 %v828_v11  ;;  %873 = vadd.xlane.f32.xlu0 %v829_v3  ;;  %v15939_v13 = vsub.f32 %v15797_v14, %v767_v2  ;;  %v15942_v33 = vsub.f32 %v15800_v15, %v768_v4  ;;  %v1125_v14 = vld [vmem:[#allocation5 + $0x30] sm:$0xff]  ;;  %v1370_v3 = vld [vmem:[#allocation7 + $0x18] sm:$0xff] }
 0x14b   : > { %v721_v36 = vpop.xlane.xlu0 %720  ;;  %v723_v37 = vpop.xlane.xlu1 %722  ;;  %13018 = vmatprep.subr.mxu0 %v1125_v14  ;;  %13102 = vmatprep.subr.mxu1 %v1371_v10 }
 0x14c   : > { %v769_v38 = vmul.f32 0.0078125, %v721_v36  ;;  %v831_v39 = vmul.f32 %v15939_v13, %v15939_v13  ;;  %v770_v42 = vmul.f32 0.0078125, %v723_v37  ;;  %v832_v15 = vmul.f32 %v15942_v33, %v15942_v33  ;;  %13019 = vmatpush3.msra.mxu0 %v1125_v14  ;;  %13103 = vmatpush3.msra.mxu1 %v1371_v10  ;;  %v1121_v37 = vld [vmem:[#allocation5 + $0x10] sm:$0xff]  ;;  %v1368_v14 = vld [vmem:[#allocation7 + $0x8] sm:$0xff] }
 0x14d   : > { %13020 = vmatprep.subr.mxu0 %v1124_v53  ;;  %13104 = vmatprep.subr.mxu1 %v1370_v3 }
 0x14e   : > { %875 = vadd.xlane.f32.xlu1 %v830_v12  ;;  %877 = vadd.xlane.f32.xlu0 %v831_v39  ;;  %v15949_v44 = vsub.f32 %v15805_v16, %v769_v38  ;;  %v15952_v45 = vsub.f32 %v15808_v17, %v770_v42  ;;  %v1369_v38 = vld [vmem:[#allocation7 + $0x10] sm:$0xff]  ;;  %v1120_v42 = vld [vmem:[#allocation5 + $0x8] sm:$0xff] }
 0x14f   : > { %v725_v46 = vpop.xlane.xlu0 %724  ;;  %v727_v8 = vpop.xlane.xlu1 %726  ;;  %13021 = vmatpush3.msra.mxu0 %v1124_v53  ;;  %13105 = vmatpush3.msra.mxu1 %v1370_v3 }
 0x150   : > { %v771_v50 = vmul.f32 0.0078125, %v725_v46  ;;  %v833_v51 = vmul.f32 %v15949_v44, %v15949_v44  ;;  %v772_v52 = vmul.f32 0.0078125, %v727_v8  ;;  %v834_v16 = vmul.f32 %v15952_v45, %v15952_v45  ;;  %13022 = vmatprep.subr.mxu0 %v1123_v58  ;;  %13106 = vmatprep.subr.mxu1 %v1369_v38 }
 0x151   : > { %13023 = vmatpush3.msra.mxu0 %v1123_v58  ;;  %13107 = vmatpush3.msra.mxu1 %v1369_v38 }
 0x152   : > { %879 = vadd.xlane.f32.xlu1 %v832_v15  ;;  %881 = vadd.xlane.f32.xlu0 %v833_v51  ;;  %v15959_v17 = vsub.f32 %v15813_v18, %v771_v50  ;;  %v15962_v55 = vsub.f32 %v15816_v19, %v772_v52  ;;  %v1122_v18 = vld [vmem:[#allocation5 + $0x18] sm:$0xff]  ;;  %v1367_v51 = vld [vmem:[#allocation7] sm:$0xff] }
 0x153   : > { %v729_v59 = vpop.xlane.xlu0 %728  ;;  %v731_v11 = vpop.xlane.xlu1 %730  ;;  %13024 = vmatprep.subr.mxu0 %v1122_v18  ;;  %13108 = vmatprep.subr.mxu1 %v1368_v14 }
 0x154   : > { %v773_v62 = vmul.f32 0.0078125, %v729_v59  ;;  %v835_v63 = vmul.f32 %v15959_v17, %v15959_v17  ;;  %v774_v2 = vmul.f32 0.0078125, %v731_v11  ;;  %v836_v19 = vmul.f32 %v15962_v55, %v15962_v55  ;;  %13025 = vmatpush3.msra.mxu0 %v1122_v18  ;;  %13109 = vmatpush3.msra.mxu1 %v1368_v14 }
 0x155   : > { %13026 = vmatprep.subr.mxu0 %v1121_v37  ;;  %13110 = vmatprep.subr.mxu1 %v1367_v51 }
 0x156   : > { %883 = vadd.xlane.f32.xlu1 %v834_v16  ;;  %885 = vadd.xlane.f32.xlu0 %v835_v63  ;;  %v15969_v4 = vsub.f32 %v15821_v20, %v773_v62  ;;  %v15972_v5 = vsub.f32 %v15824_v21, %v774_v2 }
 0x157   : > { %v733_v32 = vpop.xlane.xlu0 %732  ;;  %v735_v12 = vpop.xlane.xlu1 %734  ;;  %13027 = vmatpush3.msra.mxu0 %v1121_v37  ;;  %13111 = vmatpush3.msra.mxu1 %v1367_v51 }
 0x158   : > { %v775_v34 = vmul.f32 0.0078125, %v733_v32  ;;  %v837_v6 = vmul.f32 %v15969_v4, %v15969_v4  ;;  %v776_v36 = vmul.f32 0.0078125, %v735_v12  ;;  %v838_v20 = vmul.f32 %v15972_v5, %v15972_v5  ;;  %13028 = vmatprep.subr.mxu0 %v1120_v42 }
 0x159   : > { %13029 = vmatpush3.msra.mxu0 %v1120_v42  ;;  %v16028_v42 = vld [vmem:[#allocation8 + $0x78] sm:$0xff] }
 0x15a   : > { %887 = vadd.xlane.f32.xlu1 %v836_v19  ;;  %889 = vadd.xlane.f32.xlu0 %v837_v6  ;;  %v15979_v21 = vsub.f32 %v15829_v22, %v775_v34  ;;  %v15982_v39 = vsub.f32 %v15832_v23, %v776_v36  ;;  %v1119_v22 = vld [vmem:[#allocation5] sm:$0xff] }
 0x15b   : > { %v737_v43 = vpop.xlane.xlu0 %736  ;;  %v739_v15 = vpop.xlane.xlu1 %738  ;;  %13030 = vmatprep.subr.mxu0 %v1119_v22 }
 0x15c   : > { %v777_v46 = vmul.f32 0.0078125, %v737_v43  ;;  %v839_v8 = vmul.f32 %v15979_v21, %v15979_v21  ;;  %v778_v50 = vmul.f32 0.0078125, %v739_v15  ;;  %v840_v23 = vmul.f32 %v15982_v39, %v15982_v39  ;;  %13031 = vmatpush3.msra.mxu0 %v1119_v22 }
 0x15d   : > { %13160 = vmatprep.subr.mxu0 %v16028_v42 }
 0x15e   : > { %891 = vadd.xlane.f32.xlu1 %v838_v20  ;;  %893 = vadd.xlane.f32.xlu0 %v839_v8  ;;  %v15989_v52 = vsub.f32 %v15837_v24, %v777_v46  ;;  %v15992_v53 = vsub.f32 %v15840_v25, %v778_v50 }
 0x15f   : > { %v741_v54 = vpop.xlane.xlu0 %740  ;;  %v743_v16 = vpop.xlane.xlu1 %742 }
 0x160   : > { %v779_v58 = vmul.f32 0.0078125, %v741_v54  ;;  %v841_v10 = vmul.f32 %v15989_v52, %v15989_v52  ;;  %v780_v59 = vmul.f32 0.0078125, %v743_v16  ;;  %v842_v24 = vmul.f32 %v15992_v53, %v15992_v53 }
 0x162   : > { %895 = vadd.xlane.f32.xlu1 %v840_v23  ;;  %897 = vadd.xlane.f32.xlu0 %v841_v10  ;;  %v15999_v25 = vsub.f32 %v15845_v26, %v779_v58  ;;  %v16002_v11 = vsub.f32 %v15848_v27, %v780_v59 }
 0x163   : > { %v745_v62 = vpop.xlane.xlu0 %744  ;;  %v747_v63 = vpop.xlane.xlu1 %746 }
 0x164   : > { %v781_v2 = vmul.f32 0.0078125, %v745_v62  ;;  %v843_v18 = vmul.f32 %v15999_v25, %v15999_v25  ;;  %v782_v3 = vmul.f32 0.0078125, %v747_v63  ;;  %v844_v19 = vmul.f32 %v16002_v11, %v16002_v11 }
 0x166   : > { %899 = vadd.xlane.f32.xlu1 %v842_v24  ;;  %901 = vadd.xlane.f32.xlu0 %v843_v18  ;;  %v16009_v32 = vsub.f32 %v15853_v28, %v781_v2  ;;  %v16012_v26 = vsub.f32 %v15856_v29, %v782_v3 }
 0x167   : > { %v749_v27 = vpop.xlane.xlu0 %748 }
 0x168   : > { %v783_v12 = vmul.f32 0.0078125, %v749_v27  ;;  %v845_v34 = vmul.f32 %v16009_v32, %v16009_v32  ;;  %v846_v6 = vmul.f32 %v16012_v26, %v16012_v26 }
 0x16a   : > { %903 = vadd.xlane.f32.xlu1 %v844_v19  ;;  %905 = vadd.xlane.f32.xlu0 %v845_v34  ;;  %v16019_v36 = vsub.f32 %v15861_v30, %v783_v12 }
 0x16b   : > { %v751_v37 = vpop.xlane.xlu0 %750 }
 0x16c   : > { %v784_v38 = vmul.f32 0.0078125, %v751_v37  ;;  %v847_v28 = vmul.f32 %v16019_v36, %v16019_v36 }
 0x16e   : > { %907 = vadd.xlane.f32.xlu1 %v846_v6  ;;  %909 = vadd.xlane.f32.xlu0 %v847_v28  ;;  %v16024_v29 = vsub.f32 %v15865_v31, %v784_v38  ;;  %v16034_v6 = vld [vmem:[%s21337_s26] ss:$0 sm:$0xff] }
 0x170   : > { %v848_v20 = vmul.f32 %v16024_v29, %v16024_v29 }
 0x172   : > { %911 = vadd.xlane.f32.xlu1 %v848_v20 }
 0x1bb   : > { %v850_v30 = vpop.xlane.xlu1 %849  ;;  %v854_v14 = vpop.xlane.xlu0 %853 }
 0x1bc   : > { %v913_v43 = vmul.f32 0.0078125, %v850_v30  ;;  %v915_v15 = vmul.f32 0.0078125, %v854_v14 }
 0x1be   : > { %v945_v46 = vadd.f32 1e-05, %v913_v43  ;;  %v947_v8 = vadd.f32 1e-05, %v915_v15  ;;  %v16040_v43 = vld [vmem:[%s21060_s2] ss:$0 sm:$0xff] }
 0x1bf   : > { %v852_v50 = vpop.xlane.xlu1 %851 }
 0x1c0   : > { %14477 = vrsqrt.f32 %v945_v46  ;;  %v914_v22 = vmul.f32 0.0078125, %v852_v50 }
 0x1c1   : > { %14479 = vrsqrt.f32 %v947_v8 }
 0x1c2   : > { %v946_v31 = vadd.f32 1e-05, %v914_v22 }
 0x1c3   : > { %v856_v51 = vpop.xlane.xlu1 %855  ;;  %v858_v23 = vpop.xlane.xlu0 %857 }
 0x1c4   : > { %14481 = vrsqrt.f32 %v946_v31  ;;  %v916_v54 = vmul.f32 0.0078125, %v856_v51  ;;  %v917_v16 = vmul.f32 0.0078125, %v858_v23 }
 0x1c6   : > { %v948_v58 = vadd.f32 1e-05, %v916_v54  ;;  %v949_v10 = vadd.f32 1e-05, %v917_v16 }
 0x1c7   : > { %v860_v59 = vpop.xlane.xlu1 %859  ;;  %v862_v24 = vpop.xlane.xlu0 %861 }
 0x1c8   : > { %14483 = vrsqrt.f32 %v948_v58  ;;  %v918_v62 = vmul.f32 0.0078125, %v860_v59  ;;  %v919_v63 = vmul.f32 0.0078125, %v862_v24 }
 0x1c9   : > { %14485 = vrsqrt.f32 %v949_v10 }
 0x1ca   : > { %v950_v2 = vadd.f32 1e-05, %v918_v62  ;;  %v951_v18 = vadd.f32 1e-05, %v919_v63 }
 0x1cb   : > { %v864_v3 = vpop.xlane.xlu1 %863  ;;  %v866_v19 = vpop.xlane.xlu0 %865 }
 0x1cc   : > { %14487 = vrsqrt.f32 %v950_v2  ;;  %v920_v27 = vmul.f32 0.0078125, %v864_v3  ;;  %v921_v12 = vmul.f32 0.0078125, %v866_v19 }
 0x1cd   : > { %v14478_v34 = vpop.eup %14477  ;;  %14489 = vrsqrt.f32 %v951_v18 }
 0x1ce   : > { %v14480_v37 = vpop.eup %14479  ;;  %v952_v38 = vadd.f32 1e-05, %v920_v27  ;;  %v953_v28 = vadd.f32 1e-05, %v921_v12  ;;  %v1009_v20 = vmul.f32 %v14478_v34, %v15872_v41 }
 0x1cf   : > { %v868_v30 = vpop.xlane.xlu1 %867  ;;  %v870_v14 = vpop.xlane.xlu0 %869  ;;  %v1011_v15 = vmul.f32 %v14480_v37, %v15869_v40 }
 0x1d0   : > { %14491 = vrsqrt.f32 %v952_v38  ;;  %v922_v46 = vmul.f32 0.0078125, %v868_v30  ;;  %v923_v8 = vmul.f32 0.0078125, %v870_v14  ;;  %v1048_v50 = vmul.f32 %v16034_v6, %v1009_v20 }
 0x1d1   : > { %v14482_v22 = vpop.eup %14481  ;;  %14493 = vrsqrt.f32 %v953_v28  ;;  %v1050_v58 = vmul.f32 %v16034_v6, %v1011_v15  ;;  %v1629_v28 = vld [vmem:[#allocation8 + $0x70] sm:$0xff] }
 0x1d2   : > { %v954_v31 = vadd.f32 1e-05, %v922_v46  ;;  %v955_v51 = vadd.f32 1e-05, %v923_v8  ;;  %v16045_v41 = vadd.f32 %v16040_v43, %v1048_v50  ;;  %v1010_v23 = vmul.f32 %v14482_v22, %v15879_v48 }
 0x1d3   : > { %v872_v54 = vpop.xlane.xlu1 %871  ;;  %v874_v16 = vpop.xlane.xlu0 %873  ;;  %v16057_v27 = vadd.f32 %v16040_v43, %v1050_v58 }
 0x1d4   : > { %14495 = vrsqrt.f32 %v954_v31  ;;  %v924_v40 = vmul.f32 0.0078125, %v872_v54  ;;  %v925_v10 = vmul.f32 0.0078125, %v874_v16  ;;  %13032 = vmatprep.mubr.f32.mxu0 %v16045_v41  ;;  %13112 = vmatprep.mubr.f32.mxu1 %v16045_v41  ;;  %v1049_v59 = vmul.f32 %v16034_v6, %v1010_v23 }
 0x1d5   : > { %v14484_v24 = vpop.eup %14483  ;;  %14497 = vrsqrt.f32 %v955_v51 }
 0x1d6   : > { %v14486_v62 = vpop.eup %14485  ;;  %v956_v63 = vadd.f32 1e-05, %v924_v40  ;;  %v957_v2 = vadd.f32 1e-05, %v925_v10  ;;  %v16053_v48 = vadd.f32 %v16040_v43, %v1049_v59  ;;  %v1012_v18 = vmul.f32 %v14484_v24, %v15882_v49 }
 0x1d7   : > { %v876_v3 = vpop.xlane.xlu1 %875  ;;  %v878_v19 = vpop.xlane.xlu0 %877  ;;  %v1013_v12 = vmul.f32 %v14486_v62, %v15889_v56 }
 0x1d8   : > { %14499 = vrsqrt.f32 %v956_v63  ;;  %v926_v34 = vmul.f32 0.0078125, %v876_v3  ;;  %v927_v37 = vmul.f32 0.0078125, %v878_v19  ;;  %13033 = vmatmul.mubr.f32.vlgmr.msra.gmra.mxu0 %v16053_v48  ;;  %13113 = vmatmul.mubr.f32.vlgmr.msra.gmra.mxu1 %v16053_v48  ;;  %v1051_v38 = vmul.f32 %v16034_v6, %v1012_v18 }
 0x1d9   : > { %v14488_v20 = vpop.eup %14487  ;;  %14501 = vrsqrt.f32 %v957_v2  ;;  %13035 = vmatprep.mubr.f32.mxu0 %v16057_v27  ;;  %13115 = vmatprep.mubr.f32.mxu1 %v16057_v27  ;;  %v1052_v49 = vmul.f32 %v16034_v6, %v1013_v12  ;;  %v1627_v12 = vld [vmem:[#allocation8 + $0x60] sm:$0xff] }
 0x1da   : > { %v14490_v30 = vpop.eup %14489  ;;  %v958_v56 = vadd.f32 1e-05, %v926_v34  ;;  %v959_v14 = vadd.f32 1e-05, %v927_v37  ;;  %v16067_v15 = vadd.f32 %v16040_v43, %v1051_v38  ;;  %v1014_v46 = vmul.f32 %v14488_v20, %v15892_v57  ;;  %13161 = vmatpush3.msra.mxu0 %v16028_v42  ;;  %v1628_v57 = vld [vmem:[#allocation8 + $0x68] sm:$0xff] }
 0x1db   : > { %v880_v8 = vpop.xlane.xlu1 %879  ;;  %v882_v50 = vpop.xlane.xlu0 %881  ;;  %v16072_v22 = vadd.f32 %v16040_v43, %v1052_v49  ;;  %v1015_v31 = vmul.f32 %v14490_v30, %v15899_v0  ;;  %13162 = vmatprep.subr.mxu0 %v1629_v28 }
 0x1dc   : > { %14503 = vrsqrt.f32 %v958_v56  ;;  %v928_v51 = vmul.f32 0.0078125, %v880_v8  ;;  %v929_v23 = vmul.f32 0.0078125, %v882_v50  ;;  %13036 = vmatmul.mubr.f32.gmra.mxu0 %v16067_v15  ;;  %13116 = vmatmul.mubr.f32.gmra.mxu1 %v16067_v15  ;;  %v1053_v54 = vmul.f32 %v16034_v6, %v1014_v46 }
 0x1dd   : > { %v14492_v16 = vpop.eup %14491  ;;  %14505 = vrsqrt.f32 %v959_v14  ;;  %13038 = vmatprep.mubr.f32.mxu0 %v16072_v22  ;;  %13118 = vmatprep.mubr.f32.mxu1 %v16072_v22  ;;  %v1054_v42 = vmul.f32 %v16034_v6, %v1015_v31  ;;  %v1626_v31 = vld [vmem:[#allocation8 + $0x58] sm:$0xff] }
 0x1de   : > { %v14494_v0 = vpop.eup %14493  ;;  %v960_v58 = vadd.f32 1e-05, %v928_v51  ;;  %v961_v40 = vadd.f32 1e-05, %v929_v23  ;;  %v16082_v10 = vadd.f32 %v16040_v43, %v1053_v54  ;;  %v1016_v59 = vmul.f32 %v14492_v16, %v15902_v1  ;;  %13163 = vmatpush3.msra.mxu0 %v1629_v28 }
 0x1df   : > { %v884_v24 = vpop.xlane.xlu1 %883  ;;  %v886_v62 = vpop.xlane.xlu0 %885  ;;  %v16086_v63 = vadd.f32 %v16040_v43, %v1054_v42  ;;  %v1017_v2 = vmul.f32 %v14494_v0, %v15909_v35  ;;  %13164 = vmatprep.subr.mxu0 %v1628_v57 }
 0x1e0   : > { %14507 = vrsqrt.f32 %v960_v58  ;;  %v930_v18 = vmul.f32 0.0078125, %v884_v24  ;;  %v931_v3 = vmul.f32 0.0078125, %v886_v62  ;;  %13039 = vmatmul.mubr.f32.gmra.mxu0 %v16082_v10  ;;  %13119 = vmatmul.mubr.f32.gmra.mxu1 %v16082_v10  ;;  %v1055_v19 = vmul.f32 %v16034_v6, %v1016_v59 }
 0x1e1   : > { %v14496_v1 = vpop.eup %14495  ;;  %14509 = vrsqrt.f32 %v961_v40  ;;  %13041 = vmatprep.mubr.f32.mxu0 %v16086_v63  ;;  %13121 = vmatprep.mubr.f32.mxu1 %v16086_v63  ;;  %v1056_v34 = vmul.f32 %v16034_v6, %v1017_v2  ;;  %v1625_v2 = vld [vmem:[#allocation8 + $0x50] sm:$0xff] }
 0x1e2   : > { %v14498_v35 = vpop.eup %14497  ;;  %v962_v37 = vadd.f32 1e-05, %v930_v18  ;;  %v963_v38 = vadd.f32 1e-05, %v931_v3  ;;  %v16096_v28 = vadd.f32 %v16040_v43, %v1055_v19  ;;  %v1018_v20 = vmul.f32 %v14496_v1, %v15912_v7  ;;  %13165 = vmatpush3.msra.mxu0 %v1628_v57 }
 0x1e3   : > { %v888_v49 = vpop.xlane.xlu1 %887  ;;  %v890_v30 = vpop.xlane.xlu0 %889  ;;  %v16100_v56 = vadd.f32 %v16040_v43, %v1056_v34  ;;  %v1019_v14 = vmul.f32 %v14498_v35, %v15919_v9  ;;  %13166 = vmatprep.subr.mxu0 %v1627_v12 }
 0x1e4   : > { %14511 = vrsqrt.f32 %v962_v37  ;;  %v932_v46 = vmul.f32 0.0078125, %v888_v49  ;;  %v933_v8 = vmul.f32 0.0078125, %v890_v30  ;;  %13042 = vmatmul.mubr.f32.gmra.mxu0 %v16096_v28  ;;  %13122 = vmatmul.mubr.f32.gmra.mxu1 %v16096_v28  ;;  %v1057_v50 = vmul.f32 %v16034_v6, %v1018_v20 }
 0x1e5   : > { %v14500_v7 = vpop.eup %14499  ;;  %14513 = vrsqrt.f32 %v963_v38  ;;  %13044 = vmatprep.mubr.f32.mxu0 %v16100_v56  ;;  %13124 = vmatprep.mubr.f32.mxu1 %v16100_v56  ;;  %v1058_v51 = vmul.f32 %v16034_v6, %v1019_v14  ;;  %v1624_v14 = vld [vmem:[#allocation8 + $0x48] sm:$0xff] }
 0x1e6   : > { %v14502_v9 = vpop.eup %14501  ;;  %v964_v23 = vadd.f32 1e-05, %v932_v46  ;;  %v965_v54 = vadd.f32 1e-05, %v933_v8  ;;  %v16110_v57 = vadd.f32 %v16040_v43, %v1057_v50  ;;  %v1020_v16 = vmul.f32 %v14500_v7, %v15922_v47  ;;  %13167 = vmatpush3.msra.mxu0 %v1627_v12 }
 0x1e7   : > { %v892_v42 = vpop.xlane.xlu1 %891  ;;  %v894_v0 = vpop.xlane.xlu0 %893  ;;  %v16114_v58 = vadd.f32 %v16040_v43, %v1058_v51  ;;  %v1021_v40 = vmul.f32 %v14502_v9, %v15929_v60  ;;  %13168 = vmatprep.subr.mxu0 %v1626_v31 }
 0x1e8   : > { %14515 = vrsqrt.f32 %v964_v23  ;;  %v934_v59 = vmul.f32 0.0078125, %v892_v42  ;;  %v935_v24 = vmul.f32 0.0078125, %v894_v0  ;;  %13045 = vmatmul.mubr.f32.gmra.mxu0 %v16110_v57  ;;  %13125 = vmatmul.mubr.f32.gmra.mxu1 %v16110_v57  ;;  %v1059_v62 = vmul.f32 %v16034_v6, %v1020_v16 }
 0x1e9   : > { %v14504_v47 = vpop.eup %14503  ;;  %14517 = vrsqrt.f32 %v965_v54  ;;  %13047 = vmatprep.mubr.f32.mxu0 %v16114_v58  ;;  %13127 = vmatprep.mubr.f32.mxu1 %v16114_v58  ;;  %v1060_v18 = vmul.f32 %v16034_v6, %v1021_v40  ;;  %v1623_v40 = vld [vmem:[#allocation8 + $0x40] sm:$0xff] }
 0x1ea   : > { %v14506_v60 = vpop.eup %14505  ;;  %v966_v3 = vadd.f32 1e-05, %v934_v59  ;;  %v967_v19 = vadd.f32 1e-05, %v935_v24  ;;  %v16124_v12 = vadd.f32 %v16040_v43, %v1059_v62  ;;  %v1022_v1 = vmul.f32 %v14504_v47, %v15932_v61  ;;  %13169 = vmatpush3.msra.mxu0 %v1626_v31 }
 0x1eb   : > { %v896_v34 = vpop.xlane.xlu1 %895  ;;  %v898_v35 = vpop.xlane.xlu0 %897  ;;  %v16128_v37 = vadd.f32 %v16040_v43, %v1060_v18  ;;  %v1023_v38 = vmul.f32 %v14506_v60, %v15939_v13  ;;  %13170 = vmatprep.subr.mxu0 %v1625_v2 }
 0x1ec   : > { %14519 = vrsqrt.f32 %v966_v3  ;;  %v936_v20 = vmul.f32 0.0078125, %v896_v34  ;;  %v937_v49 = vmul.f32 0.0078125, %v898_v35  ;;  %13048 = vmatmul.mubr.f32.gmra.mxu0 %v16124_v12  ;;  %13128 = vmatmul.mubr.f32.gmra.mxu1 %v16124_v12  ;;  %v1061_v30 = vmul.f32 %v16034_v6, %v1022_v1 }
 0x1ed   : > { %v14508_v61 = vpop.eup %14507  ;;  %14521 = vrsqrt.f32 %v967_v19  ;;  %13050 = vmatprep.mubr.f32.mxu0 %v16128_v37  ;;  %13130 = vmatprep.mubr.f32.mxu1 %v16128_v37  ;;  %v1062_v46 = vmul.f32 %v16034_v6, %v1023_v38  ;;  %v1622_v38 = vld [vmem:[#allocation8 + $0x38] sm:$0xff] }
 0x1ee   : > { %v14510_v13 = vpop.eup %14509  ;;  %v968_v8 = vadd.f32 1e-05, %v936_v20  ;;  %v969_v50 = vadd.f32 1e-05, %v937_v49  ;;  %v16138_v31 = vadd.f32 %v16040_v43, %v1061_v30  ;;  %v1024_v7 = vmul.f32 %v14508_v61, %v15942_v33  ;;  %13171 = vmatpush3.msra.mxu0 %v1625_v2 }
 0x1ef   : > { %v900_v51 = vpop.xlane.xlu1 %899  ;;  %v902_v9 = vpop.xlane.xlu0 %901  ;;  %v16142_v23 = vadd.f32 %v16040_v43, %v1062_v46  ;;  %v1025_v54 = vmul.f32 %v14510_v13, %v15949_v44  ;;  %13172 = vmatprep.subr.mxu0 %v1624_v14 }
 0x1f0   : > { %14523 = vrsqrt.f32 %v968_v8  ;;  %v938_v16 = vmul.f32 0.0078125, %v900_v51  ;;  %v939_v42 = vmul.f32 0.0078125, %v902_v9  ;;  %13051 = vmatmul.mubr.f32.gmra.mxu0 %v16138_v31  ;;  %13131 = vmatmul.mubr.f32.gmra.mxu1 %v16138_v31  ;;  %v1063_v0 = vmul.f32 %v16034_v6, %v1024_v7 }
 0x1f1   : > { %v14512_v33 = vpop.eup %14511  ;;  %14525 = vrsqrt.f32 %v969_v50  ;;  %13053 = vmatprep.mubr.f32.mxu0 %v16142_v23  ;;  %13133 = vmatprep.mubr.f32.mxu1 %v16142_v23  ;;  %v1064_v59 = vmul.f32 %v16034_v6, %v1025_v54  ;;  %v1621_v54 = vld [vmem:[#allocation8 + $0x30] sm:$0xff] }
 0x1f2   : > { %v14514_v44 = vpop.eup %14513  ;;  %v970_v24 = vadd.f32 1e-05, %v938_v16  ;;  %v971_v62 = vadd.f32 1e-05, %v939_v42  ;;  %v16152_v2 = vadd.f32 %v16040_v43, %v1063_v0  ;;  %v1026_v47 = vmul.f32 %v14512_v33, %v15952_v45  ;;  %13173 = vmatpush3.msra.mxu0 %v1624_v14 }
 0x1f3   : > { %v904_v18 = vpop.xlane.xlu1 %903  ;;  %v906_v60 = vpop.xlane.xlu0 %905  ;;  %v16156_v3 = vadd.f32 %v16040_v43, %v1064_v59  ;;  %v1027_v19 = vmul.f32 %v14514_v44, %v15959_v17  ;;  %13174 = vmatprep.subr.mxu0 %v1623_v40 }
 0x1f4   : > { %14527 = vrsqrt.f32 %v970_v24  ;;  %v940_v1 = vmul.f32 0.0078125, %v904_v18  ;;  %v941_v34 = vmul.f32 0.0078125, %v906_v60  ;;  %13054 = vmatmul.mubr.f32.gmra.mxu0 %v16152_v2  ;;  %13134 = vmatmul.mubr.f32.gmra.mxu1 %v16152_v2  ;;  %v1065_v35 = vmul.f32 %v16034_v6, %v1026_v47  ;;  %v1620_v18 = vld [vmem:[#allocation8 + $0x28] sm:$0xff] }
 0x1f5   : > { %v14516_v45 = vpop.eup %14515  ;;  %14529 = vrsqrt.f32 %v971_v62  ;;  %13056 = vmatprep.mubr.f32.mxu0 %v16156_v3  ;;  %13136 = vmatprep.mubr.f32.mxu1 %v16156_v3  ;;  %v1066_v20 = vmul.f32 %v16034_v6, %v1027_v19 }
 0x1f6   : > { %v14518_v17 = vpop.eup %14517  ;;  %v972_v49 = vadd.f32 1e-05, %v940_v1  ;;  %v973_v30 = vadd.f32 1e-05, %v941_v34  ;;  %v16166_v14 = vadd.f32 %v16040_v43, %v1065_v35  ;;  %v1028_v61 = vmul.f32 %v14516_v45, %v15962_v55  ;;  %13175 = vmatpush3.msra.mxu0 %v1623_v40 }
 0x1f7   : > { %v908_v46 = vpop.xlane.xlu1 %907  ;;  %v910_v13 = vpop.xlane.xlu0 %909  ;;  %v16170_v8 = vadd.f32 %v16040_v43, %v1066_v20  ;;  %v1029_v50 = vmul.f32 %v14518_v17, %v15969_v4  ;;  %13176 = vmatprep.subr.mxu0 %v1622_v38  ;;  %v1619_v20 = vld [vmem:[#allocation8 + $0x20] sm:$0xff] }
 0x1f8   : > { %14531 = vrsqrt.f32 %v972_v49  ;;  %v942_v7 = vmul.f32 0.0078125, %v908_v46  ;;  %v943_v51 = vmul.f32 0.0078125, %v910_v13  ;;  %13057 = vmatmul.mubr.f32.gmra.mxu0 %v16166_v14  ;;  %13137 = vmatmul.mubr.f32.gmra.mxu1 %v16166_v14  ;;  %v1067_v9 = vmul.f32 %v16034_v6, %v1028_v61 }
 0x1f9   : > { %v14520_v55 = vpop.eup %14519  ;;  %14533 = vrsqrt.f32 %v973_v30  ;;  %13059 = vmatprep.mubr.f32.mxu0 %v16170_v8  ;;  %13139 = vmatprep.mubr.f32.mxu1 %v16170_v8  ;;  %v1068_v16 = vmul.f32 %v16034_v6, %v1029_v50  ;;  %v1618_v50 = vld [vmem:[#allocation8 + $0x18] sm:$0xff] }
 0x1fa   : > { %v14522_v4 = vpop.eup %14521  ;;  %v974_v42 = vadd.f32 1e-05, %v942_v7  ;;  %v975_v0 = vadd.f32 1e-05, %v943_v51  ;;  %v16180_v40 = vadd.f32 %v16040_v43, %v1067_v9  ;;  %v1030_v33 = vmul.f32 %v14520_v55, %v15972_v5  ;;  %13177 = vmatpush3.msra.mxu0 %v1622_v38 }
 0x1fb   : > { %v912_v59 = vpop.xlane.xlu1 %911  ;;  %v16184_v44 = vadd.f32 %v16040_v43, %v1068_v16  ;;  %v1031_v24 = vmul.f32 %v14522_v4, %v15979_v21  ;;  %13178 = vmatprep.subr.mxu0 %v1621_v54  ;;  %v1617_v4 = vld [vmem:[#allocation8 + $0x10] sm:$0xff] }
 0x1fc   : > { %14535 = vrsqrt.f32 %v974_v42  ;;  %v944_v62 = vmul.f32 0.0078125, %v912_v59  ;;  %13060 = vmatmul.mubr.f32.gmra.mxu0 %v16180_v40  ;;  %13140 = vmatmul.mubr.f32.gmra.mxu1 %v16180_v40  ;;  %v1069_v47 = vmul.f32 %v16034_v6, %v1030_v33 }
 0x1fd   : > { %v14524_v60 = vpop.eup %14523  ;;  %14537 = vrsqrt.f32 %v975_v0  ;;  %13062 = vmatprep.mubr.f32.mxu0 %v16184_v44  ;;  %13142 = vmatprep.mubr.f32.mxu1 %v16184_v44  ;;  %v1070_v5 = vmul.f32 %v16034_v6, %v1031_v24 }
 0x1fe   : > { %v14526_v19 = vpop.eup %14525  ;;  %v976_v21 = vadd.f32 1e-05, %v944_v62  ;;  %v16194_v1 = vadd.f32 %v16040_v43, %v1069_v47  ;;  %v1032_v34 = vmul.f32 %v14524_v60, %v15982_v39  ;;  %13179 = vmatpush3.msra.mxu0 %v1621_v54  ;;  %v1616_v47 = vld [vmem:[#allocation8 + $0x8] sm:$0xff] }
 0x1ff   : > { %v16198_v35 = vadd.f32 %v16040_v43, %v1070_v5  ;;  %v1033_v38 = vmul.f32 %v14526_v19, %v15989_v52  ;;  %13180 = vmatprep.subr.mxu0 %v1620_v18 }
 0x200   : > { %14539 = vrsqrt.f32 %v976_v21  ;;  %13063 = vmatmul.mubr.f32.gmra.mxu0 %v16194_v1  ;;  %13143 = vmatmul.mubr.f32.gmra.mxu1 %v16194_v1  ;;  %v1071_v45 = vmul.f32 %v16034_v6, %v1032_v34  ;;  %v1615_v21 = vld [vmem:[#allocation8] sm:$0xff] }
 0x201   : > { %v14528_v17 = vpop.eup %14527  ;;  %13065 = vmatprep.mubr.f32.mxu0 %v16198_v35  ;;  %13145 = vmatprep.mubr.f32.mxu1 %v16198_v35  ;;  %v1072_v39 = vmul.f32 %v16034_v6, %v1033_v38 }
 0x202   : > { %v14530_v49 = vpop.eup %14529  ;;  %v16208_v30 = vadd.f32 %v16040_v43, %v1071_v45  ;;  %v1034_v52 = vmul.f32 %v14528_v17, %v15992_v53  ;;  %13181 = vmatpush3.msra.mxu0 %v1620_v18 }
 0x203   : > { %v16212_v61 = vadd.f32 %v16040_v43, %v1072_v39  ;;  %v1035_v46 = vmul.f32 %v14530_v49, %v15999_v25  ;;  %13182 = vmatprep.subr.mxu0 %v1619_v20 }
 0x204   : > { %13066 = vmatmul.mubr.f32.gmra.mxu0 %v16208_v30  ;;  %13146 = vmatmul.mubr.f32.gmra.mxu1 %v16208_v30  ;;  %v1073_v13 = vmul.f32 %v16034_v6, %v1034_v52 }
 0x205   : > { %v14532_v7 = vpop.eup %14531  ;;  %13068 = vmatprep.mubr.f32.mxu0 %v16212_v61  ;;  %13148 = vmatprep.mubr.f32.mxu1 %v16212_v61  ;;  %v1074_v53 = vmul.f32 %v16034_v6, %v1035_v46 }
 0x206   : > { %v14534_v51 = vpop.eup %14533  ;;  %v16222_v9 = vadd.f32 %v16040_v43, %v1073_v13  ;;  %v1036_v25 = vmul.f32 %v14532_v7, %v16002_v11  ;;  %13183 = vmatpush3.msra.mxu0 %v1619_v20 }
 0x207   : > { %v16226_v54 = vadd.f32 %v16040_v43, %v1074_v53  ;;  %v1037_v55 = vmul.f32 %v14534_v51, %v16009_v32  ;;  %13184 = vmatprep.subr.mxu0 %v1618_v50 }
 0x208   : > { %13069 = vmatmul.mubr.f32.gmra.mxu0 %v16222_v9  ;;  %13149 = vmatmul.mubr.f32.gmra.mxu1 %v16222_v9  ;;  %v1075_v16 = vmul.f32 %v16034_v6, %v1036_v25 }
 0x209   : > { %v14536_v42 = vpop.eup %14535  ;;  %13071 = vmatprep.mubr.f32.mxu0 %v16226_v54  ;;  %13151 = vmatprep.mubr.f32.mxu1 %v16226_v54  ;;  %v1076_v11 = vmul.f32 %v16034_v6, %v1037_v55 }
 0x20a   : > { %v14538_v0 = vpop.eup %14537  ;;  %v1114_v33 = vadd.f32 %v16040_v43, %v1075_v16  ;;  %v1038_v32 = vmul.f32 %v14536_v42, %v16012_v26  ;;  %13185 = vmatpush3.msra.mxu0 %v1618_v50 }
 0x20b   : > { %v1115_v59 = vadd.f32 %v16040_v43, %v1076_v11  ;;  %v1039_v24 = vmul.f32 %v14538_v0, %v16019_v36  ;;  %13186 = vmatprep.subr.mxu0 %v1617_v4 }
 0x20c   : > { %13072 = vmatmul.mubr.f32.gmra.mxu0 %v1114_v33  ;;  %13152 = vmatmul.mubr.f32.gmra.mxu1 %v1114_v33  ;;  %v1077_v62 = vmul.f32 %v16034_v6, %v1038_v32 }
 0x20d   : > { %v14540_v18 = vpop.eup %14539  ;;  %13074 = vmatprep.mubr.f32.mxu0 %v1115_v59  ;;  %13154 = vmatprep.mubr.f32.mxu1 %v1115_v59  ;;  %v1078_v60 = vmul.f32 %v16034_v6, %v1039_v24 }
 0x20e   : > { %v1116_v5 = vadd.f32 %v16040_v43, %v1077_v62  ;;  %13187 = vmatpush3.msra.mxu0 %v1617_v4  ;;  %v1040_v26 = vmul.f32 %v14540_v18, %v16024_v29 }
 0x20f   : > { %v1117_v19 = vadd.f32 %v16040_v43, %v1078_v60  ;;  %13188 = vmatprep.subr.mxu0 %v1616_v47 }
 0x210   : > { %13075 = vmatmul.mubr.f32.gmra.mxu0 %v1116_v5  ;;  %13155 = vmatmul.mubr.f32.gmra.mxu1 %v1116_v5  ;;  %v1079_v36 = vmul.f32 %v16034_v6, %v1040_v26 }
 0x211   : > { %13077 = vmatprep.mubr.f32.mxu0 %v1117_v19  ;;  %13157 = vmatprep.mubr.f32.mxu1 %v1117_v19 }
 0x212   : > { %v1118_v34 = vadd.f32 %v16040_v43, %v1079_v36  ;;  %13189 = vmatpush3.msra.mxu0 %v1616_v47  ;;  %v16278_v43 = vld [vmem:[%s21062_s4] ss:$0 sm:$0xff] }
 0x213   : > { %13190 = vmatprep.subr.mxu0 %v1615_v21 }
 0x214   : > { %13078 = vmatmul.mubr.f32.gmra.mxu0 %v1118_v34  ;;  %13158 = vmatmul.mubr.f32.gmra.mxu1 %v1118_v34 }
 0x215   : > { %13192 = vmatprep.mubr.f32.mxu0 %v16045_v41  ;;  %13191 = vmatpush3.msra.mxu0 %v1615_v21 }
 0x218   : > { %13193 = vmatmul.mubr.f32.vlgmr.msra.gmra.mxu0 %v16053_v48 }
 0x219   : > { %13195 = vmatprep.mubr.f32.mxu0 %v16057_v27 }
 0x21c   : > { %13196 = vmatmul.mubr.f32.gmra.mxu0 %v16067_v15 }
 0x21d   : > { %13198 = vmatprep.mubr.f32.mxu0 %v16072_v22 }
 0x220   : > { %13199 = vmatmul.mubr.f32.gmra.mxu0 %v16082_v10 }
 0x221   : > { %13201 = vmatprep.mubr.f32.mxu0 %v16086_v63 }
 0x224   : > { %13202 = vmatmul.mubr.f32.gmra.mxu0 %v16096_v28 }
 0x225   : > { %13204 = vmatprep.mubr.f32.mxu0 %v16100_v56 }
 0x228   : > { %13205 = vmatmul.mubr.f32.gmra.mxu0 %v16110_v57 }
 0x229   : > { %13207 = vmatprep.mubr.f32.mxu0 %v16114_v58 }
 0x22c   : > { %13208 = vmatmul.mubr.f32.gmra.mxu0 %v16124_v12  ;;  %v16298_v12 = vld [vmem:[%s21064_s6] ss:$0 sm:$0xff] }
 0x22d   : > { %13210 = vmatprep.mubr.f32.mxu0 %v16128_v37 }
 0x230   : > { %13211 = vmatmul.mubr.f32.gmra.mxu0 %v16138_v31 }
 0x231   : > { %13213 = vmatprep.mubr.f32.mxu0 %v16142_v23 }
 0x234   : > { %13214 = vmatmul.mubr.f32.gmra.mxu0 %v16152_v2 }
 0x235   : > { %13216 = vmatprep.mubr.f32.mxu0 %v16156_v3 }
 0x238   : > { %13217 = vmatmul.mubr.f32.gmra.mxu0 %v16166_v14 }
 0x239   : > { %13219 = vmatprep.mubr.f32.mxu0 %v16170_v8 }
 0x23c   : > { %13220 = vmatmul.mubr.f32.gmra.mxu0 %v16180_v40 }
 0x23d   : > { %13222 = vmatprep.mubr.f32.mxu0 %v16184_v44 }
 0x240   : > { %13223 = vmatmul.mubr.f32.gmra.mxu0 %v16194_v1 }
 0x241   : > { %13225 = vmatprep.mubr.f32.mxu0 %v16198_v35 }
 0x244   : > { %13226 = vmatmul.mubr.f32.gmra.mxu0 %v16208_v30 }
 0x245   : > { %13228 = vmatprep.mubr.f32.mxu0 %v16212_v61 }
 0x248   : > { %13229 = vmatmul.mubr.f32.gmra.mxu0 %v16222_v9 }
 0x249   : > { %13231 = vmatprep.mubr.f32.mxu0 %v16226_v54 }
 0x24c   : > { %13232 = vmatmul.mubr.f32.gmra.mxu0 %v1114_v33 }
 0x24d   : > { %13234 = vmatprep.mubr.f32.mxu0 %v1115_v59 }
 0x250   : > { %13235 = vmatmul.mubr.f32.gmra.mxu0 %v1116_v5 }
 0x251   : > { %13237 = vmatprep.mubr.f32.mxu0 %v1117_v19 }
 0x254   : > { %13238 = vmatmul.mubr.f32.gmra.mxu0 %v1118_v34 }
 0x298   : > { %v16273_v29 = vpop.f32.mrf.mxu0  ;;  %v13114_v6 = vpop.f32.mrf.mxu1 }
 0x299   : > { %v16377_v16 = vadd.f32 %v13114_v6, %v16298_v12  ;;  %v16417_v26 = vadd.f32 %v16273_v29, %v16278_v43 }
 0x29a   : > { %v1208_v41 = vpop.f32.mrf.mxu0  ;;  %v16280_v48 = vpop.f32.mrf.mxu1 }
 0x29b   : > { %v16283_v27 = vadd.f32 %v16278_v43, %v1208_v41  ;;  %21341 = vst [vmem:[#allocation27_spill] sm:$0xff] %v16377_v16  ;;  %v16398_v32 = vadd.f32 %v16298_v12, %v16280_v48  ;;  %21345 = vst [vmem:[#allocation31_spill] sm:$0xff] %v16417_v26 }
 0x29c   : > { %v16285_v15 = vpop.f32.mrf.mxu0  ;;  %v13117_v22 = vpop.f32.mrf.mxu1 }
 0x29d   : > { %21338 = vst [vmem:[#allocation24_spill] sm:$0xff] %v16283_v27  ;;  %13256 = vmatprep.mubr.msk.f32.mxu1 %vm1918_vm0, %v16283_v27  ;;  %v16353_v46 = vadd.f32 %v13117_v22, %v16298_v12  ;;  %21343 = vst [vmem:[#allocation29_spill] sm:$0xff] %v16398_v32  ;;  %v16448_v22 = vadd.f32 %v16285_v15, %v16278_v43 }
 0x29e   : > { %v16289_v10 = vpop.f32.mrf.mxu0  ;;  %v1466_v63 = vpop.f32.mrf.mxu1 }
 0x29f   : > { %21339 = vst [vmem:[#allocation25_spill] sm:$0xff] %v16353_v46  ;;  %v16364_v51 = vadd.f32 %v16298_v12, %v1466_v63  ;;  %v16426_v36 = vadd.f32 %v16278_v43, %v16289_v10  ;;  %21350 = vst [vmem:[#allocation36_spill] sm:$0xff] %v16448_v22 }
 0x2a0   : > { %v16291_v28 = vpop.f32.mrf.mxu0  ;;  %v13120_v56 = vpop.f32.mrf.mxu1 }
 0x2a1   : > { %v16325_v35 = vadd.f32 %v13120_v56, %v16298_v12  ;;  %21340 = vst [vmem:[#allocation26_spill] sm:$0xff] %v16364_v51  ;;  %21347 = vst [vmem:[#allocation33_spill] sm:$0xff] %v16426_v36 }
 0x2a2   : > { %v16293_v57 = vpop.f32.mrf.mxu0  ;;  %v1476_v58 = vpop.f32.mrf.mxu1 }
 0x2a3   : > { %v16340_v39 = vadd.f32 %v16298_v12, %v1476_v58  ;;  %v16459_v63 = vadd.f32 %v16278_v43, %v16293_v57  ;;  %v16481_v57 = vadd.f32 %v16291_v28, %v16278_v43 }
 0x2a4   : > { %v16300_v37 = vpop.f32.mrf.mxu0  ;;  %v13123_v31 = vpop.f32.mrf.mxu1 }
 0x2a5   : > { %v16303_v23 = vadd.f32 %v13123_v31, %v16298_v12  ;;  %21352 = vst [vmem:[#allocation38_spill] sm:$0xff] %v16459_v63  ;;  %21355 = vst [vmem:[#allocation41_spill] sm:$0xff] %v16481_v57 }
 0x2a6   : > { %v16305_v2 = vpop.f32.mrf.mxu0  ;;  %v1486_v3 = vpop.f32.mrf.mxu1 }
 0x2a7   : > { %v16308_v14 = vadd.f32 %v16298_v12, %v1486_v3  ;;  %13240 = vmatprep.subr.msk.mxu1 %vm1918_vm0, %v16303_v23 }
 0x2a8   : > { %v16312_v8 = vpop.f32.mrf.mxu0  ;;  %v16314_v40 = vpop.f32.mrf.mxu1  ;;  %13241 = vmatpush3.xpose.msk.msra.mxu1 %vm1918_vm0, %v16303_v23 }
 0x2a9   : > { %13242 = vmatprep.subr.msk.mxu1 %vm1918_vm0, %v16308_v14 }
 0x2aa   : > { %v16320_v44 = vpop.f32.mrf.mxu0  ;;  %v16322_v1 = vpop.f32.mrf.mxu1 }
 0x2ac   : > { %v16327_v38 = vpop.f32.mrf.mxu0  ;;  %v16329_v45 = vpop.f32.mrf.mxu1  ;;  %13243 = vmatpush3.xpose.msk.msra.mxu1 %vm1918_vm0, %v16308_v14 }
 0x2ad   : > { %13244 = vmatprep.subr.msk.mxu1 %vm1918_vm0, %v16325_v35 }
 0x2ae   : > { %v16335_v20 = vpop.f32.mrf.mxu0  ;;  %v16337_v17 = vpop.f32.mrf.mxu1 }
 0x2b0   : > { %v16342_v49 = vpop.f32.mrf.mxu0  ;;  %v13132_v30 = vpop.f32.mrf.mxu1  ;;  %13245 = vmatpush3.xpose.msk.msra.mxu1 %vm1918_vm0, %v16325_v35 }
 0x2b1   : > { %13246 = vmatprep.subr.msk.mxu1 %vm1918_vm0, %v16340_v39  ;;  %v16466_v15 = vadd.f32 %v13132_v30, %v16298_v12 }
 0x2b2   : > { %v16348_v52 = vpop.f32.mrf.mxu0  ;;  %v16350_v61 = vpop.f32.mrf.mxu1 }
 0x2b3   : > { %21353 = vst [vmem:[#allocation39_spill] sm:$0xff] %v16466_v15  ;;  %v16500_v28 = vadd.f32 %v16298_v12, %v16350_v61 }
 0x2b4   : > { %v16355_v13 = vpop.f32.mrf.mxu0  ;;  %v13135_v50 = vpop.f32.mrf.mxu1  ;;  %13247 = vmatpush3.xpose.msk.msra.mxu1 %vm1918_vm0, %v16340_v39 }
 0x2b5   : > { %13248 = vmatprep.subr.msk.mxu1 %vm1918_vm0, %v16353_v46  ;;  %v16409_v18 = vadd.f32 %v13135_v50, %v16298_v12  ;;  %v16492_v50 = vadd.f32 %v16278_v43, %v16305_v2  ;;  %21358 = vst [vmem:[#allocation44_spill] sm:$0xff] %v16500_v28  ;;  %v16515_v2 = vadd.f32 %v16300_v37, %v16278_v43 }
 0x2b6   : > { %v16361_v7 = vpop.f32.mrf.mxu0  ;;  %v1526_v53 = vpop.f32.mrf.mxu1  ;;  %v16534_v37 = vadd.f32 %v16329_v45, %v16298_v12 }
 0x2b7   : > { %21344 = vst [vmem:[#allocation30_spill] sm:$0xff] %v16409_v18  ;;  %v16431_v6 = vadd.f32 %v16298_v12, %v1526_v53  ;;  %21357 = vst [vmem:[#allocation43_spill] sm:$0xff] %v16492_v50 }
 0x2b8   : > { %v16366_v9 = vpop.f32.mrf.mxu0  ;;  %v16368_v25 = vpop.f32.mrf.mxu1  ;;  %13249 = vmatpush3.xpose.msk.msra.mxu1 %vm1918_vm0, %v16353_v46  ;;  %21360 = vst [vmem:[#allocation46_spill] sm:$0xff] %v16515_v2  ;;  %21363 = vst [vmem:[#allocation49_spill] sm:$0xff] %v16534_v37 }
 0x2b9   : > { %13250 = vmatprep.subr.msk.mxu1 %vm1918_vm0, %v16364_v51  ;;  %21348 = vst [vmem:[#allocation34_spill] sm:$0xff] %v16431_v6 }
 0x2ba   : > { %v1288_v54 = vpop.f32.mrf.mxu0  ;;  %v16374_v55 = vpop.f32.mrf.mxu1 }
 0x2bb   : > { %v16380_v4 = vadd.f32 %v16278_v43, %v1288_v54 }
 0x2bc   : > { %v16382_v42 = vpop.f32.mrf.mxu0  ;;  %v16384_v11 = vpop.f32.mrf.mxu1  ;;  %13251 = vmatpush3.xpose.msk.msra.mxu1 %vm1918_vm0, %v16364_v51 }
 0x2bd   : > { %21342 = vst [vmem:[#allocation28_spill] sm:$0xff] %v16380_v4  ;;  %13252 = vmatprep.subr.msk.mxu1 %vm1918_vm0, %v16377_v16  ;;  %13312 = vmatprep.mubr.msk.f32.mxu0 %vm1918_vm0, %v16380_v4 }
 0x2be   : > { %v16392_v0 = vpop.f32.mrf.mxu0  ;;  %v16394_v33 = vpop.f32.mrf.mxu1 }
 0x2bf   : > { %v16565_v4 = vadd.f32 %v16298_v12, %v16394_v33  ;;  %v16581_v33 = vadd.f32 %v16314_v40, %v16298_v12 }
 0x2c0   : > { %v16400_v59 = vpop.f32.mrf.mxu0  ;;  %v13144_v24 = vpop.f32.mrf.mxu1  ;;  %13253 = vmatpush3.xpose.msk.msra.mxu1 %vm1918_vm0, %v16377_v16 }
 0x2c1   : > { %13254 = vmatprep.subr.msk.mxu1 %vm1918_vm0, %v16398_v32  ;;  %v16471_v58 = vadd.f32 %v13144_v24, %v16298_v12  ;;  %21367 = vst [vmem:[#allocation53_spill] sm:$0xff] %v16565_v4  ;;  %21368 = vst [vmem:[#allocation54_spill] sm:$0xff] %v16581_v33 }
 0x2c2   : > { %v16406_v62 = vpop.f32.mrf.mxu0  ;;  %v1556_v47 = vpop.f32.mrf.mxu1 }
 0x2c3   : > { %21354 = vst [vmem:[#allocation40_spill] sm:$0xff] %v16471_v58  ;;  %v16505_v54 = vadd.f32 %v16298_v12, %v1556_v47  ;;  %v16526_v47 = vadd.f32 %v16278_v43, %v16320_v44 }
 0x2c4   : > { %v16411_v60 = vpop.f32.mrf.mxu0  ;;  %v13147_v5 = vpop.f32.mrf.mxu1  ;;  %13255 = vmatpush3.xpose.msk.msra.mxu1 %vm1918_vm0, %v16398_v32 }
 0x2c5   : > { %v16420_v19 = vadd.f32 %v13147_v5, %v16298_v12  ;;  %13268 = vmatprep.subr.msk.mxu1 %vm1918_vm0, %v16409_v18  ;;  %21359 = vst [vmem:[#allocation45_spill] sm:$0xff] %v16505_v54  ;;  %21362 = vst [vmem:[#allocation48_spill] sm:$0xff] %v16526_v47 }
 0x2c6   : > { %v16428_v21 = vpop.f32.mrf.mxu0  ;;  %v1566_v34 = vpop.f32.mrf.mxu1 }
 0x2c7   : > { %21346 = vst [vmem:[#allocation32_spill] sm:$0xff] %v16420_v19  ;;  %v16434_v41 = vadd.f32 %v16298_v12, %v1566_v34  ;;  %13257 = vmatmul.mubr.msk.f32.vlgmr.msra.gmra.mxu1 %vm1918_vm0, %v16417_v26  ;;  %13296 = vmatprep.subr.msk.mxu0 %vm1918_vm0, %v16420_v19 }
 0x2c8   : > { %v13070_v29 = vpop.f32.mrf.mxu0  ;;  %v16440_v48 = vpop.f32.mrf.mxu1  ;;  %13259 = vmatprep.mubr.msk.f32.mxu1 %vm1918_vm0, %v16426_v36  ;;  %13269 = vmatpush3.xpose.msk.msra.mxu1 %vm1918_vm0, %v16409_v18 }
 0x2c9   : > { %21349 = vst [vmem:[#allocation35_spill] sm:$0xff] %v16434_v41  ;;  %v16451_v10 = vadd.f32 %v13070_v29, %v16278_v43  ;;  %13297 = vmatpush3.xpose.msk.msra.mxu0 %vm1918_vm0, %v16420_v19  ;;  %13270 = vmatprep.subr.msk.mxu1 %vm1918_vm0, %v16431_v6  ;;  %v16540_v29 = vadd.f32 %v16384_v11, %v16298_v12 }
 0x2ca   : > { %13298 = vmatprep.subr.msk.mxu0 %vm1918_vm0, %v16434_v41  ;;  %v16463_v56 = vpop.f32.mrf.mxu0  ;;  %v16473_v31 = vpop.f32.mrf.mxu1  ;;  %v16561_v11 = vadd.f32 %v16298_v12, %v16337_v17 }
 0x2cb   : > { %21351 = vst [vmem:[#allocation37_spill] sm:$0xff] %v16451_v10  ;;  %13260 = vmatmul.mubr.msk.f32.gmra.mxu1 %vm1918_vm0, %v16448_v22  ;;  %21364 = vst [vmem:[#allocation50_spill] sm:$0xff] %v16540_v29 }
 0x2cc   : > { %v13073_v3 = vpop.f32.mrf.mxu0  ;;  %13262 = vmatprep.mubr.msk.f32.mxu1 %vm1918_vm0, %v16459_v63  ;;  %13271 = vmatpush3.xpose.msk.msra.mxu1 %vm1918_vm0, %v16431_v6  ;;  %v16507_v24 = vpop.f32.mrf.mxu1  ;;  %21366 = vst [vmem:[#allocation52_spill] sm:$0xff] %v16561_v11 }
 0x2cd   : > { %v16484_v30 = vadd.f32 %v13073_v3, %v16278_v43  ;;  %13299 = vmatpush3.xpose.msk.msra.mxu0 %vm1918_vm0, %v16434_v41  ;;  %13272 = vmatprep.subr.msk.mxu1 %vm1918_vm0, %v16466_v15 }
 0x2ce   : > { %13300 = vmatprep.subr.msk.mxu0 %vm1918_vm0, %v16471_v58  ;;  %v16496_v53 = vpop.f32.mrf.mxu0  ;;  %v16542_v3 = vpop.f32.mrf.mxu1 }
 0x2cf   : > { %21356 = vst [vmem:[#allocation42_spill] sm:$0xff] %v16484_v30  ;;  %13263 = vmatmul.mubr.msk.f32.gmra.mxu1 %vm1918_vm0, %v16481_v57 }
 0x2d0   : > { %v13076_v5 = vpop.f32.mrf.mxu0  ;;  %13265 = vmatprep.mubr.msk.f32.mxu1 %vm1918_vm0, %v16492_v50  ;;  %13273 = vmatpush3.xpose.msk.msra.mxu1 %vm1918_vm0, %v16466_v15 }
 0x2d1   : > { %v16518_v61 = vadd.f32 %v13076_v5, %v16278_v43  ;;  %13301 = vmatpush3.xpose.msk.msra.mxu0 %vm1918_vm0, %v16471_v58  ;;  %13274 = vmatprep.subr.msk.mxu1 %vm1918_vm0, %v16500_v28 }
 0x2d2   : > { %13302 = vmatprep.subr.msk.mxu0 %vm1918_vm0, %v16505_v54  ;;  %v16530_v34 = vpop.f32.mrf.mxu0 }
 0x2d3   : > { %21361 = vst [vmem:[#allocation47_spill] sm:$0xff] %v16518_v61  ;;  %13266 = vmatmul.mubr.msk.f32.gmra.mxu1 %vm1918_vm0, %v16515_v2 }
 0x2d4   : > { %v13079_v44 = vpop.f32.mrf.mxu0  ;;  %13275 = vmatpush3.xpose.msk.msra.mxu1 %vm1918_vm0, %v16500_v28  ;;  %13284 = vmatprep.mubr.msk.f32.mxu1 %vm1918_vm0, %v16526_v47 }
 0x2d5   : > { %v16549_v5 = vadd.f32 %v13079_v44, %v16278_v43  ;;  %13303 = vmatpush3.xpose.msk.msra.mxu0 %vm1918_vm0, %v16505_v54  ;;  %13276 = vmatprep.subr.msk.mxu1 %vm1918_vm0, %v16534_v37  ;;  %v13156_v44 = vpop.f32.mrf.mxu1  ;;  %v16585_v54 = vadd.f32 %v16368_v25, %v16298_v12  ;;  %v16603_v25 = vadd.f32 %v16298_v12, %v16322_v1 }
 0x2d6   : > { %13304 = vmatprep.subr.msk.mxu0 %vm1918_vm0, %v16540_v29  ;;  %v16557_v45 = vpop.f32.mrf.mxu0 }
 0x2d7   : > { %21365 = vst [vmem:[#allocation51_spill] sm:$0xff] %v16549_v5  ;;  %21369 = vst [vmem:[#allocation55_spill] sm:$0xff] %v16585_v54  ;;  %v16587_v2 = vpop.f32.mrf.mxu1 }
 0x2d8   : > { %v16567_v47 = vpop.f32.mrf.mxu0  ;;  %13277 = vmatpush3.xpose.msk.msra.mxu1 %vm1918_vm0, %v16534_v37  ;;  %21370 = vst [vmem:[#allocation56_spill] sm:$0xff] %v16603_v25 }
 0x2d9   : > { %13305 = vmatpush3.xpose.msk.msra.mxu0 %vm1918_vm0, %v16540_v29  ;;  %13278 = vmatprep.subr.msk.mxu1 %vm1918_vm0, %v16561_v11  ;;  %v16607_v29 = vadd.f32 %v16298_v12, %v16374_v55  ;;  %v13159_v58 = vpop.f32.mrf.mxu1  ;;  %v16623_v55 = vld [vmem:[%s21066_s8] ss:$0 sm:$0xff] }
 0x2da   : > { %13306 = vmatprep.subr.msk.mxu0 %vm1918_vm0, %v16565_v4  ;;  %v16577_v17 = vpop.f32.mrf.mxu0 }
 0x2db   : > { %21371 = vst [vmem:[#allocation57_spill] sm:$0xff] %v16607_v29 }
 0x2dc   : > { %v16589_v50 = vpop.f32.mrf.mxu0  ;;  %13279 = vmatpush3.xpose.msk.msra.mxu1 %vm1918_vm0, %v16561_v11  ;;  %v16648_v11 = vadd.f32 %v16278_v43, %v16392_v0  ;;  %v16665_v0 = vadd.f32 %v16327_v38, %v16278_v43 }
 0x2dd   : > { %13307 = vmatpush3.xpose.msk.msra.mxu0 %vm1918_vm0, %v16565_v4  ;;  %13280 = vmatprep.subr.msk.mxu1 %vm1918_vm0, %v16581_v33  ;;  %v16618_v4 = vadd.f32 %v13159_v58, %v16298_v12  ;;  %v16640_v58 = vadd.f32 %v16278_v43, %v16335_v20 }
 0x2de   : > { %13308 = vmatprep.subr.msk.mxu0 %vm1918_vm0, %v16585_v54  ;;  %v16599_v40 = vpop.f32.mrf.mxu0  ;;  %21377 = vst [vmem:[#allocation63_spill] sm:$0xff] %v16648_v11  ;;  %21380 = vst [vmem:[#allocation66_spill] sm:$0xff] %v16665_v0 }
 0x2df   : > { %21372 = vst [vmem:[#allocation58_spill] sm:$0xff] %v16618_v4  ;;  %21375 = vst [vmem:[#allocation61_spill] sm:$0xff] %v16640_v58 }
 0x2e0   : > { %v13200_v57 = vpop.f32.mrf.mxu0  ;;  %13281 = vmatpush3.xpose.msk.msra.mxu1 %vm1918_vm0, %v16581_v33  ;;  %v1606_v33 = vpop.f32.mrf.mxu1 }
 0x2e1   : > { %13309 = vmatpush3.xpose.msk.msra.mxu0 %vm1918_vm0, %v16585_v54  ;;  %13282 = vmatprep.subr.msk.mxu1 %vm1918_vm0, %v16603_v25  ;;  %v16629_v54 = vadd.f32 %v16312_v8, %v16278_v43  ;;  %v16657_v20 = vadd.f32 %v16298_v12, %v1606_v33  ;;  %v16676_v33 = vadd.f32 %v16278_v43, %v16348_v52 }
 0x2e2   : > { %13310 = vmatprep.subr.msk.mxu0 %vm1918_vm0, %v16607_v29  ;;  %v1724_v1 = vpop.f32.mrf.mxu0  ;;  %v16695_v52 = vadd.f32 %v16278_v43, %v16406_v62  ;;  %v16711_v62 = vadd.f32 %v16342_v49, %v16278_v43  ;;  %v16731_v49 = vadd.f32 %v16400_v59, %v16278_v43  ;;  %v16752_v59 = vadd.f32 %v16298_v12, %v16587_v2 }
 0x2e3   : > { %21373 = vst [vmem:[#allocation59_spill] sm:$0xff] %v16629_v54  ;;  %21379 = vst [vmem:[#allocation65_spill] sm:$0xff] %v16657_v20  ;;  %v16773_v2 = vadd.f32 %v16278_v43, %v16463_v56 }
 0x2e4   : > { %v13203_v63 = vpop.f32.mrf.mxu0  ;;  %13283 = vmatpush3.xpose.msk.msra.mxu1 %vm1918_vm0, %v16603_v25  ;;  %v16644_v25 = vadd.f32 %v16366_v9, %v16278_v43  ;;  %21382 = vst [vmem:[#allocation68_spill] sm:$0xff] %v16676_v33  ;;  %21386 = vst [vmem:[#allocation72_spill] sm:$0xff] %v16695_v52 }
 0x2e5   : > { %v16632_v41 = vadd.f32 %v13203_v63, %v16623_v55  ;;  %13311 = vmatpush3.xpose.msk.msra.mxu0 %vm1918_vm0, %v16607_v29  ;;  %13324 = vmatprep.subr.msk.mxu1 %vm1918_vm0, %v16618_v4  ;;  %21389 = vst [vmem:[#allocation75_spill] sm:$0xff] %v16711_v62  ;;  %21393 = vst [vmem:[#allocation79_spill] sm:$0xff] %v16731_v49 }
 0x2e6   : > { %21376 = vst [vmem:[#allocation62_spill] sm:$0xff] %v16644_v25  ;;  %v1734_v8 = vpop.f32.mrf.mxu0  ;;  %21397 = vst [vmem:[#allocation83_spill] sm:$0xff] %v16752_v59 }
 0x2e7   : > { %21374 = vst [vmem:[#allocation60_spill] sm:$0xff] %v16632_v41  ;;  %v16651_v63 = vadd.f32 %v16623_v55, %v1734_v8  ;;  %13285 = vmatmul.mubr.msk.f32.vlgmr.msra.gmra.mxu1 %vm1918_vm0, %v16629_v54  ;;  %13352 = vmatprep.subr.mxu0 %v16632_v41  ;;  %21401 = vst [vmem:[#allocation87_spill] sm:$0xff] %v16773_v2 }
 0x2e8   : > { %13313 = vmatmul.mubr.msk.f32.vlgmr.msra.gmra.mxu0 %vm1918_vm0, %v16644_v25  ;;  %v13206_v9 = vpop.f32.mrf.mxu0  ;;  %13287 = vmatprep.mubr.msk.f32.mxu1 %vm1918_vm0, %v16640_v58 }
 0x2e9   : > { %21378 = vst [vmem:[#allocation64_spill] sm:$0xff] %v16651_v63  ;;  %v16668_v8 = vadd.f32 %v13206_v9, %v16623_v55  ;;  %13315 = vmatprep.mubr.msk.f32.mxu0 %vm1918_vm0, %v16648_v11  ;;  %13325 = vmatpush3.xpose.msk.msra.mxu1 %vm1918_vm0, %v16618_v4  ;;  %v16685_v9 = vadd.f32 %v16382_v42, %v16278_v43 }
 0x2ea   : > { %13353 = vmatpush3.msra.mxu0 %v16632_v41  ;;  %13326 = vmatprep.subr.msk.mxu1 %vm1918_vm0, %v16657_v20  ;;  %v16681_v38 = vpop.f32.mrf.mxu0  ;;  %v16688_v11 = vadd.f32 %v13200_v57, %v16623_v55  ;;  %v16701_v42 = vadd.f32 %v13156_v44, %v16298_v12 }
 0x2eb   : > { %21381 = vst [vmem:[#allocation67_spill] sm:$0xff] %v16668_v8  ;;  %21383 = vst [vmem:[#allocation69_spill] sm:$0xff] %v16681_v38  ;;  %13354 = vmatprep.subr.mxu0 %v16651_v63  ;;  %13288 = vmatmul.mubr.msk.f32.gmra.mxu1 %vm1918_vm0, %v16665_v0 }
 0x2ec   : > { %21384 = vst [vmem:[#allocation70_spill] sm:$0xff] %v16685_v9  ;;  %21385 = vst [vmem:[#allocation71_spill] sm:$0xff] %v16688_v11  ;;  %13355 = vmatpush3.msra.mxu0 %v16651_v63  ;;  %v13209_v41 = vpop.f32.mrf.mxu0  ;;  %13290 = vmatprep.mubr.msk.f32.mxu1 %vm1918_vm0, %v16676_v33  ;;  %v16714_v63 = vadd.f32 %v16623_v55, %v1724_v1  ;;  %v16742_v1 = vadd.f32 %v16278_v43, %v16428_v21 }
 0x2ed   : > { %21387 = vst [vmem:[#allocation73_spill] sm:$0xff] %v16701_v42  ;;  %13316 = vmatmul.mubr.msk.f32.gmra.mxu0 %vm1918_vm0, %v16685_v9  ;;  %13356 = vmatprep.subr.mxu0 %v16688_v11  ;;  %v16707_v57 = vadd.f32 %v13209_v41, %v16623_v55  ;;  %v16724_v9 = vadd.f32 %v16278_v43, %v16361_v7 }
 0x2ee   : > { %21390 = vst [vmem:[#allocation76_spill] sm:$0xff] %v16714_v63  ;;  %13318 = vmatprep.mubr.msk.f32.mxu0 %vm1918_vm0, %v16695_v52  ;;  %13327 = vmatpush3.xpose.msk.msra.mxu1 %vm1918_vm0, %v16657_v20  ;;  %v16720_v44 = vpop.f32.mrf.mxu0  ;;  %v16735_v41 = vadd.f32 %v16589_v50, %v16623_v55  ;;  %21395 = vst [vmem:[#allocation81_spill] sm:$0xff] %v16742_v1  ;;  %v16761_v21 = vadd.f32 %v16355_v13, %v16278_v43 }
 0x2ef   : > { %21388 = vst [vmem:[#allocation74_spill] sm:$0xff] %v16707_v57  ;;  %21391 = vst [vmem:[#allocation77_spill] sm:$0xff] %v16720_v44  ;;  %13357 = vmatpush3.msra.mxu0 %v16688_v11  ;;  %13328 = vmatprep.subr.msk.mxu1 %vm1918_vm0, %v16701_v42 }
 0x2f0   : > { %21392 = vst [vmem:[#allocation78_spill] sm:$0xff] %v16724_v9  ;;  %21394 = vst [vmem:[#allocation80_spill] sm:$0xff] %v16735_v41  ;;  %13358 = vmatprep.subr.mxu0 %v16714_v63  ;;  %13291 = vmatmul.mubr.msk.f32.gmra.mxu1 %vm1918_vm0, %v16711_v62  ;;  %v13212_v7 = vpop.f32.mrf.mxu0 }
 0x2f1   : > { %13359 = vmatpush3.msra.mxu0 %v16714_v63  ;;  %v16746_v11 = vadd.f32 %v13212_v7, %v16623_v55  ;;  %13293 = vmatprep.mubr.msk.f32.mxu1 %vm1918_vm0, %v16724_v9  ;;  %21399 = vst [vmem:[#allocation85_spill] sm:$0xff] %v16761_v21  ;;  %v16765_v7 = vadd.f32 %v16623_v55, %v16599_v40 }
 0x2f2   : > { %13319 = vmatmul.mubr.msk.f32.gmra.mxu0 %vm1918_vm0, %v16731_v49  ;;  %13360 = vmatprep.subr.mxu0 %v16735_v41  ;;  %v16757_v50 = vpop.f32.mrf.mxu0  ;;  %v16780_v40 = vadd.f32 %v16411_v60, %v16278_v43  ;;  %v16784_v63 = vadd.f32 %v16567_v47, %v16623_v55  ;;  %v16796_v60 = vadd.f32 %v16507_v24, %v16298_v12 }
 0x2f3   : > { %21396 = vst [vmem:[#allocation82_spill] sm:$0xff] %v16746_v11  ;;  %21398 = vst [vmem:[#allocation84_spill] sm:$0xff] %v16757_v50  ;;  %13321 = vmatprep.mubr.msk.f32.mxu0 %vm1918_vm0, %v16742_v1  ;;  %13329 = vmatpush3.xpose.msk.msra.mxu1 %vm1918_vm0, %v16701_v42  ;;  %v16800_v47 = vadd.f32 %v16623_v55, %v16577_v17 }
 0x2f4   : > { %21400 = vst [vmem:[#allocation86_spill] sm:$0xff] %v16765_v7  ;;  %13361 = vmatpush3.msra.mxu0 %v16735_v41  ;;  %13330 = vmatprep.subr.msk.mxu1 %vm1918_vm0, %v16752_v59  ;;  %v13215_v13 = vpop.f32.mrf.mxu0  ;;  %21402 = vst [vmem:[#allocation88_spill] sm:$0xff] %v16780_v40 }
 0x2f5   : > { %21403 = vst [vmem:[#allocation89_spill] sm:$0xff] %v16784_v63  ;;  %13362 = vmatprep.subr.mxu0 %v16765_v7  ;;  %13294 = vmatmul.mubr.msk.f32.gmra.mxu1 %vm1918_vm0, %v16761_v21  ;;  %21405 = vst [vmem:[#allocation91_spill] sm:$0xff] %v16796_v60 }
 0x2f6   : > { %13363 = vmatpush3.msra.mxu0 %v16765_v7  ;;  %13340 = vmatprep.mubr.msk.f32.mxu1 %vm1918_vm0, %v16773_v2  ;;  %v16792_v56 = vpop.f32.mrf.mxu0  ;;  %21406 = vst [vmem:[#allocation92_spill] sm:$0xff] %v16800_v47  ;;  %v16806_v7 = vadd.f32 %v13215_v13, %v16623_v55  ;;  %v16822_v13 = vadd.f32 %v16298_v12, %v16542_v3 }
 0x2f7   : > { %21404 = vst [vmem:[#allocation90_spill] sm:$0xff] %v16792_v56  ;;  %13322 = vmatmul.mubr.msk.f32.gmra.mxu0 %vm1918_vm0, %v16780_v40  ;;  %13364 = vmatprep.subr.mxu0 %v16784_v63 }
 0x2f8   : > { %21407 = vst [vmem:[#allocation93_spill] sm:$0xff] %v16806_v7  ;;  %13331 = vmatpush3.xpose.msk.msra.mxu1 %vm1918_vm0, %v16752_v59  ;;  %13365 = vmatpush3.msra.mxu0 %v16784_v63  ;;  %v13218_v41 = vpop.f32.mrf.mxu0  ;;  %21410 = vst [vmem:[#allocation96_spill] sm:$0xff] %v16822_v13 }
 0x2f9   : > { %13332 = vmatprep.subr.msk.mxu1 %vm1918_vm0, %v16796_v60  ;;  %13366 = vmatprep.subr.mxu0 %v16800_v47  ;;  %v16815_v24 = vadd.f32 %v13218_v41, %v16623_v55 }
 0x2fa   : > { %13367 = vmatpush3.msra.mxu0 %v16800_v47  ;;  %v16818_v17 = vpop.f32.mrf.mxu0  ;;  %v16836_v47 = vadd.f32 %v16440_v48, %v16298_v12 }
 0x2fb   : > { %21408 = vst [vmem:[#allocation94_spill] sm:$0xff] %v16815_v24  ;;  %21409 = vst [vmem:[#allocation95_spill] sm:$0xff] %v16818_v17  ;;  %13380 = vmatprep.subr.mxu0 %v16806_v7 }
 0x2fc   : > { %13333 = vmatpush3.xpose.msk.msra.mxu1 %vm1918_vm0, %v16796_v60  ;;  %v13221_v63 = vpop.f32.mrf.mxu0  ;;  %21413 = vst [vmem:[#allocation99_spill] sm:$0xff] %v16836_v47 }
 0x2fd   : > { %13334 = vmatprep.subr.msk.mxu1 %vm1918_vm0, %v16822_v13  ;;  %v16830_v41 = vadd.f32 %v13221_v63, %v16623_v55  ;;  %v16849_v63 = vadd.f32 %v16298_v12, %v16473_v31  ;;  %v16864_v12 = vadd.f32 %v16278_v43, %v16496_v53 }
 0x2fe   : > { %v16832_v2 = vpop.f32.mrf.mxu0 }
 0x2ff   : > { %21411 = vst [vmem:[#allocation97_spill] sm:$0xff] %v16830_v41  ;;  %21412 = vst [vmem:[#allocation98_spill] sm:$0xff] %v16832_v2 }
 0x300   : > { %13335 = vmatpush3.xpose.msk.msra.mxu1 %vm1918_vm0, %v16822_v13  ;;  %v13224_v3 = vpop.f32.mrf.mxu0  ;;  %21416 = vst [vmem:[#allocation102_spill] sm:$0xff] %v16849_v63  ;;  %21419 = vst [vmem:[#allocation105_spill] sm:$0xff] %v16864_v12 }
 0x301   : > { %13336 = vmatprep.subr.msk.mxu1 %vm1918_vm0, %v16836_v47  ;;  %v16843_v40 = vadd.f32 %v13224_v3, %v16623_v55 }
 0x302   : > { %v16845_v1 = vpop.f32.mrf.mxu0 }
 0x303   : > { %21414 = vst [vmem:[#allocation100_spill] sm:$0xff] %v16843_v40  ;;  %21415 = vst [vmem:[#allocation101_spill] sm:$0xff] %v16845_v1 }
 0x304   : > { %13337 = vmatpush3.xpose.msk.msra.mxu1 %vm1918_vm0, %v16836_v47  ;;  %v13227_v48 = vpop.f32.mrf.mxu0 }
 0x305   : > { %13338 = vmatprep.subr.msk.mxu1 %vm1918_vm0, %v16849_v63  ;;  %v16856_v24 = vadd.f32 %v13227_v48, %v16623_v55  ;;  %v16872_v48 = vadd.f32 %v16278_v43, %v16530_v34 }
 0x306   : > { %v16858_v17 = vpop.f32.mrf.mxu0 }
 0x307   : > { %21417 = vst [vmem:[#allocation103_spill] sm:$0xff] %v16856_v24  ;;  %21418 = vst [vmem:[#allocation104_spill] sm:$0xff] %v16858_v17 }
 0x308   : > { %13339 = vmatpush3.xpose.msk.msra.mxu1 %vm1918_vm0, %v16849_v63  ;;  %v13230_v3 = vpop.f32.mrf.mxu0  ;;  %21420 = vst [vmem:[#allocation106_spill] sm:$0xff] %v16872_v48  ;;  %v16880_v63 = vadd.f32 %v16278_v43, %v16557_v45 }
 0x30a   : > { %v1824_v31 = vpop.f32.mrf.mxu0  ;;  %21421 = vst [vmem:[#allocation107_spill] sm:$0xff] %v16880_v63 }
 0x30b   : > { %13341 = vmatmul.mubr.msk.f32.vlgmr.msra.gmra.mxu1 %vm1918_vm0, %v16451_v10 }
 0x30c   : > { %13343 = vmatprep.mubr.msk.f32.mxu1 %vm1918_vm0, %v16864_v12  ;;  %v13233_v47 = vpop.f32.mrf.mxu0 }
 0x30e   : > { %v1834_v49 = vpop.f32.mrf.mxu0 }
 0x30f   : > { %13344 = vmatmul.mubr.msk.f32.gmra.mxu1 %vm1918_vm0, %v16484_v30 }
 0x310   : > { %13346 = vmatprep.mubr.msk.f32.mxu1 %vm1918_vm0, %v16872_v48  ;;  %v13236_v53 = vpop.f32.mrf.mxu0 }
 0x311   : > { %v16897_v43 = vadd.f32 %v13236_v53, %v16623_v55  ;;  %v16912_v53 = vadd.f32 %v16623_v55, %v1834_v49 }
 0x312   : > { %v1844_v10 = vpop.f32.mrf.mxu0 }
 0x313   : > { %13347 = vmatmul.mubr.msk.f32.gmra.mxu1 %vm1918_vm0, %v16518_v61  ;;  %21424 = vst [vmem:[#allocation110_spill] sm:$0xff] %v16897_v43  ;;  %v16902_v45 = vadd.f32 %v16623_v55, %v1844_v10  ;;  %21427 = vst [vmem:[#allocation113_spill] sm:$0xff] %v16912_v53  ;;  %v16917_v10 = vadd.f32 %v13230_v3, %v16623_v55 }
 0x314   : > { %13349 = vmatprep.mubr.msk.f32.mxu1 %vm1918_vm0, %v16880_v63  ;;  %v13239_v34 = vpop.f32.mrf.mxu0 }
 0x315   : > { %v16887_v12 = vadd.f32 %v13239_v34, %v16623_v55  ;;  %21425 = vst [vmem:[#allocation111_spill] sm:$0xff] %v16902_v45  ;;  %21428 = vst [vmem:[#allocation114_spill] sm:$0xff] %v16917_v10 }
 0x316   : > { %v1854_v30 = vpop.f32.mrf.mxu0 }
 0x317   : > { %21422 = vst [vmem:[#allocation108_spill] sm:$0xff] %v16887_v12  ;;  %13350 = vmatmul.mubr.msk.f32.gmra.mxu1 %vm1918_vm0, %v16549_v5  ;;  %v16892_v48 = vadd.f32 %v16623_v55, %v1854_v30  ;;  %13436 = vmatprep.subr.mxu1 %v16887_v12  ;;  %v16907_v30 = vadd.f32 %v13233_v47, %v16623_v55 }
 0x318   : > { %13437 = vmatpush3.msra.mxu1 %v16887_v12  ;;  %v16922_v47 = vadd.f32 %v16623_v55, %v1824_v31 }
 0x319   : > { %21423 = vst [vmem:[#allocation109_spill] sm:$0xff] %v16892_v48  ;;  %13438 = vmatprep.subr.mxu1 %v16892_v48  ;;  %21426 = vst [vmem:[#allocation112_spill] sm:$0xff] %v16907_v30 }
 0x31a   : > { %13439 = vmatpush3.msra.mxu1 %v16892_v48  ;;  %21429 = vst [vmem:[#allocation115_spill] sm:$0xff] %v16922_v47 }
 0x31b   : > { %13440 = vmatprep.subr.mxu1 %v16897_v43 }
 0x31c   : > { %13441 = vmatpush3.msra.mxu1 %v16897_v43 }
 0x31d   : > { %13442 = vmatprep.subr.mxu1 %v16902_v45 }
 0x31e   : > { %13443 = vmatpush3.msra.mxu1 %v16902_v45 }
 0x31f   : > { %13444 = vmatprep.subr.mxu1 %v16907_v30 }
 0x320   : > { %13445 = vmatpush3.msra.mxu1 %v16907_v30 }
 0x321   : > { %13446 = vmatprep.subr.mxu1 %v16912_v53 }
 0x322   : > { %13447 = vmatpush3.msra.mxu1 %v16912_v53 }
 0x323   : > { %13448 = vmatprep.subr.mxu1 %v16917_v10 }
 0x324   : > { %13449 = vmatpush3.msra.mxu1 %v16917_v10 }
 0x325   : > { %13450 = vmatprep.subr.mxu1 %v16922_v47 }
 0x326   : > { %13451 = vmatpush3.msra.mxu1 %v16922_v47 }
 0x387   : > { %v16928_v49 = vpop.f32.mrf.mxu1 }
 0x388   : > { %v2535_v3 = vsel %vm2531_vm1, %v16928_v49, -inf }
 0x389   : > { %2536 = vmax.xlane.f32.xlu1 %v2535_v3  ;;  %v16932_v34 = vpop.f32.mrf.mxu1 }
 0x38a   : > { %v2532_v55 = vsel %vm2531_vm1, %v16932_v34, -inf }
 0x38b   : > { %2533 = vmax.xlane.f32.xlu0 %v2532_v55  ;;  %v16936_v31 = vpop.f32.mrf.mxu1 }
 0x38c   : > { %v2541_v10 = vsel %vm2531_vm1, %v16936_v31, -inf }
 0x38d   : > { %2542 = vmax.xlane.f32.xlu1 %v2541_v10  ;;  %v16940_v47 = vpop.f32.mrf.mxu1 }
 0x38e   : > { %v2538_v30 = vsel %vm2531_vm1, %v16940_v47, -inf }
 0x38f   : > { %2539 = vmax.xlane.f32.xlu0 %v2538_v30  ;;  %v16944_v53 = vpop.f32.mrf.mxu1 }
 0x390   : > { %v2547_v3 = vsel %vm2531_vm1, %v16944_v53, -inf }
 0x391   : > { %2548 = vmax.xlane.f32.xlu1 %v2547_v3  ;;  %v16948_v45 = vpop.f32.mrf.mxu1 }
 0x392   : > { %v2544_v55 = vsel %vm2531_vm1, %v16948_v45, -inf }
 0x393   : > { %2545 = vmax.xlane.f32.xlu0 %v2544_v55  ;;  %v16952_v43 = vpop.f32.mrf.mxu1 }
 0x394   : > { %v2553_v10 = vsel %vm2531_vm1, %v16952_v43, -inf }
 0x395   : > { %2554 = vmax.xlane.f32.xlu1 %v2553_v10  ;;  %v16956_v48 = vpop.f32.mrf.mxu1 }
 0x396   : > { %v2550_v30 = vsel %vm2531_vm1, %v16956_v48, -inf }
 0x397   : > { %2551 = vmax.xlane.f32.xlu0 %v2550_v30 }
 0x3a7   : > { %v16960_v12 = vpop.f32.mrf.mxu1 }
 0x3a8   : > { %v2559_v3 = vsel %vm2531_vm1, %v16960_v12, -inf  ;;  %v16964_v5 = vpop.f32.mrf.mxu0 }
 0x3a9   : > { %2560 = vmax.xlane.f32.xlu1 %v2559_v3  ;;  %v16966_v55 = vpop.f32.mrf.mxu1  ;;  %v2583_v17 = vsel %vm2531_vm1, %v16964_v5, -inf }
 0x3aa   : > { %v2556_v63 = vsel %vm2531_vm1, %v16966_v55, -inf  ;;  %v16974_v30 = vpop.f32.mrf.mxu0 }
 0x3ab   : > { %2557 = vmax.xlane.f32.xlu0 %v2556_v63  ;;  %v16970_v10 = vpop.f32.mrf.mxu1 }
 0x3ac   : > { %v2565_v61 = vsel %vm2531_vm1, %v16970_v10, -inf }
 0x3ad   : > { %2566 = vmax.xlane.f32.xlu1 %v2565_v61  ;;  %v16976_v52 = vpop.f32.mrf.mxu1  ;;  %v16982_v41 = vpop.f32.mrf.mxu0 }
 0x3ae   : > { %v2562_v2 = vsel %vm2531_vm1, %v16976_v52, -inf }
 0x3af   : > { %2563 = vmax.xlane.f32.xlu0 %v2562_v2  ;;  %v16990_v61 = vpop.f32.mrf.mxu0 }
 0x3b0   : > { %v16980_v3 = vpop.f32.mrf.mxu1  ;;  %v2586_v29 = vsel %vm2531_vm1, %v16990_v61, -inf }
 0x3b1   : > { %v2571_v63 = vsel %vm2531_vm1, %v16980_v3, -inf }
 0x3b2   : > { %2572 = vmax.xlane.f32.xlu1 %v2571_v63  ;;  %v16986_v13 = vpop.f32.mrf.mxu1  ;;  %v17000_v63 = vpop.f32.mrf.mxu0 }
 0x3b3   : > { %v2568_v40 = vsel %vm2531_vm1, %v16986_v13, -inf }
 0x3b4   : > { %2569 = vmax.xlane.f32.xlu0 %v2568_v40  ;;  %v2580_v40 = vsel %vm2531_vm1, %v16974_v30, -inf  ;;  %v17006_v59 = vpop.f32.mrf.mxu0 }
 0x3b5   : > { %v16992_v1 = vpop.f32.mrf.mxu1 }
 0x3b6   : > { %v2577_v2 = vsel %vm2531_vm1, %v16992_v1, -inf }
 0x3b7   : > { %2578 = vmax.xlane.f32.xlu1 %v2577_v2  ;;  %v16996_v60 = vpop.f32.mrf.mxu1  ;;  %v2589_v2 = vsel %vm2531_vm1, %v16982_v41, -inf  ;;  %v17012_v21 = vpop.f32.mrf.mxu0 }
 0x3b8   : > { %v2574_v25 = vsel %vm2531_vm1, %v16996_v60, -inf }
 0x3b9   : > { %2575 = vmax.xlane.f32.xlu0 %v2574_v25  ;;  %v2595_v25 = vsel %vm2531_vm1, %v17000_v63, -inf  ;;  %v17018_v9 = vpop.f32.mrf.mxu0 }
 0x3bb   : > { %2584 = vmax.xlane.f32.xlu1 %v2583_v17  ;;  %v2592_v17 = vsel %vm2531_vm1, %v17006_v59, -inf }
 0x3bd   : > { %2581 = vmax.xlane.f32.xlu0 %v2580_v40  ;;  %v2601_v40 = vsel %vm2531_vm1, %v17012_v21, -inf }
 0x3bf   : > { %2590 = vmax.xlane.f32.xlu1 %v2589_v2  ;;  %v2598_v2 = vsel %vm2531_vm1, %v17018_v9, -inf }
 0x3c1   : > { %2587 = vmax.xlane.f32.xlu0 %v2586_v29 }
 0x3c3   : > { %2596 = vmax.xlane.f32.xlu1 %v2595_v25 }
 0x3c5   : > { %2593 = vmax.xlane.f32.xlu0 %v2592_v17 }
 0x3c7   : > { %2602 = vmax.xlane.f32.xlu1 %v2601_v40 }
 0x3c9   : > { %2599 = vmax.xlane.f32.xlu0 %v2598_v2 }
 0x3cb   : > { %v17024_v42 = vpop.f32.mrf.mxu1 }
 0x3cc   : > { %v2607_v29 = vsel %vm2531_vm1, %v17024_v42, -inf }
 0x3cd   : > { %v17028_v25 = vpop.f32.mrf.mxu1  ;;  %2608 = vmax.xlane.f32.xlu1 %v2607_v29 }
 0x3ce   : > { %v2604_v24 = vsel %vm2531_vm1, %v17028_v25, -inf }
 0x3cf   : > { %v17032_v17 = vpop.f32.mrf.mxu1  ;;  %2605 = vmax.xlane.f32.xlu0 %v2604_v24 }
 0x3d0   : > { %v2613_v40 = vsel %vm2531_vm1, %v17032_v17, -inf }
 0x3d1   : > { %v17036_v62 = vpop.f32.mrf.mxu1  ;;  %2614 = vmax.xlane.f32.xlu1 %v2613_v40 }
 0x3d2   : > { %v2610_v2 = vsel %vm2531_vm1, %v17036_v62, -inf }
 0x3d3   : > { %v17040_v33 = vpop.f32.mrf.mxu1  ;;  %2611 = vmax.xlane.f32.xlu0 %v2610_v2 }
 0x3d4   : > { %v2619_v29 = vsel %vm2531_vm1, %v17040_v33, -inf }
 0x3d5   : > { %v17044_v8 = vpop.f32.mrf.mxu1  ;;  %2620 = vmax.xlane.f32.xlu1 %v2619_v29 }
 0x3d6   : > { %v2616_v24 = vsel %vm2531_vm1, %v17044_v8, -inf }
 0x3d7   : > { %2617 = vmax.xlane.f32.xlu0 %v2616_v24  ;;  %v17048_v38 = vpop.f32.mrf.mxu1 }
 0x3d8   : > { %v2625_v40 = vsel %vm2531_vm1, %v17048_v38, -inf }
 0x3d9   : > { %2626 = vmax.xlane.f32.xlu1 %v2625_v40  ;;  %v17052_v20 = vpop.f32.mrf.mxu1 }
 0x3da   : > { %v2622_v2 = vsel %vm2531_vm1, %v17052_v20, -inf }
 0x3db   : > { %2623 = vmax.xlane.f32.xlu0 %v2622_v2 }
 0x412   : > { %v2537_v44 = vpop.xlane.xlu1 %2536 }
 0x413   : > { %v2629_v57 = vsub.f32 %v16928_v49, %v2537_v44 }
 0x414   : > { %v2534_v29 = vpop.xlane.xlu0 %2533 }
 0x415   : > { %v2662_v0 = vmul.f32 1.442695, %v2629_v57  ;;  %v2628_v58 = vsub.f32 %v16932_v34, %v2534_v29 }
 0x416   : > { %v2543_v24 = vpop.xlane.xlu1 %2542 }
 0x417   : > { %14541 = vpow2.f32 %v2662_v0  ;;  %v2660_v11 = vmul.f32 1.442695, %v2628_v58  ;;  %v2631_v50 = vsub.f32 %v16936_v31, %v2543_v24 }
 0x418   : > { %v2540_v4 = vpop.xlane.xlu0 %2539 }
 0x419   : > { %14543 = vpow2.f32 %v2660_v11  ;;  %v2666_v40 = vmul.f32 1.442695, %v2631_v50  ;;  %v2630_v7 = vsub.f32 %v16940_v47, %v2540_v4 }
 0x41a   : > { %v2549_v54 = vpop.xlane.xlu1 %2548 }
 0x41b   : > { %14545 = vpow2.f32 %v2666_v40  ;;  %v2664_v2 = vmul.f32 1.442695, %v2630_v7  ;;  %v2633_v56 = vsub.f32 %v16944_v53, %v2549_v54 }
 0x41c   : > { %v2546_v44 = vpop.xlane.xlu0 %2545 }
 0x41d   : > { %14547 = vpow2.f32 %v2664_v2  ;;  %v2670_v57 = vmul.f32 1.442695, %v2633_v56  ;;  %v2632_v49 = vsub.f32 %v16948_v45, %v2546_v44 }
 0x41e   : > { %v2555_v34 = vpop.xlane.xlu1 %2554 }
 0x41f   : > { %14549 = vpow2.f32 %v2670_v57  ;;  %v2668_v58 = vmul.f32 1.442695, %v2632_v49  ;;  %v2635_v0 = vsub.f32 %v16952_v43, %v2555_v34 }
 0x420   : > { %v2552_v31 = vpop.xlane.xlu0 %2551 }
 0x421   : > { %14551 = vpow2.f32 %v2668_v58  ;;  %v2674_v11 = vmul.f32 1.442695, %v2635_v0  ;;  %v2634_v4 = vsub.f32 %v16956_v48, %v2552_v31 }
 0x423   : > { %14553 = vpow2.f32 %v2674_v11  ;;  %v2672_v50 = vmul.f32 1.442695, %v2634_v4 }
 0x424   : > { %v17064_v7 = vpop.eup %14541 }
 0x425   : > { %14555 = vpow2.f32 %v2672_v50  ;;  %v2727_v54 = vsel %vm2531_vm1, %v17064_v7, 0.0 }
 0x426   : > { %v17068_v56 = vpop.eup %14543  ;;  %2728 = vadd.xlane.f32.xlu1 %v2727_v54 }
 0x427   : > { %v2724_v45 = vsel %vm2531_vm1, %v17068_v56, 0.0 }
 0x428   : > { %v17072_v43 = vpop.eup %14545  ;;  %2725 = vadd.xlane.f32.xlu0 %v2724_v45 }
 0x429   : > { %v2733_v48 = vsel %vm2531_vm1, %v17072_v43, 0.0 }
 0x42a   : > { %v17076_v53 = vpop.eup %14547  ;;  %2734 = vadd.xlane.f32.xlu1 %v2733_v48 }
 0x42b   : > { %v2730_v47 = vsel %vm2531_vm1, %v17076_v53, 0.0 }
 0x42c   : > { %v17080_v29 = vpop.eup %14549  ;;  %2731 = vadd.xlane.f32.xlu0 %v2730_v47 }
 0x42d   : > { %v2739_v24 = vsel %vm2531_vm1, %v17080_v29, 0.0 }
 0x42e   : > { %v17084_v40 = vpop.eup %14551  ;;  %2740 = vadd.xlane.f32.xlu1 %v2739_v24 }
 0x42f   : > { %v2736_v2 = vsel %vm2531_vm1, %v17084_v40, 0.0 }
 0x430   : > { %v17088_v44 = vpop.eup %14553  ;;  %2737 = vadd.xlane.f32.xlu0 %v2736_v2 }
 0x431   : > { %v2745_v57 = vsel %vm2531_vm1, %v17088_v44, 0.0 }
 0x432   : > { %v17092_v49 = vpop.eup %14555  ;;  %v2561_v34 = vpop.xlane.xlu1 %2560  ;;  %2746 = vadd.xlane.f32.xlu1 %v2745_v57 }
 0x433   : > { %v2637_v58 = vsub.f32 %v16960_v12, %v2561_v34  ;;  %v2742_v0 = vsel %vm2531_vm1, %v17092_v49, 0.0 }
 0x434   : > { %v2558_v31 = vpop.xlane.xlu0 %2557  ;;  %2743 = vadd.xlane.f32.xlu0 %v2742_v0 }
 0x435   : > { %v2678_v11 = vmul.f32 1.442695, %v2637_v58  ;;  %v2636_v4 = vsub.f32 %v16966_v55, %v2558_v31 }
 0x436   : > { %v2567_v50 = vpop.xlane.xlu1 %2566 }
 0x437   : > { %14557 = vpow2.f32 %v2678_v11  ;;  %v2676_v54 = vmul.f32 1.442695, %v2636_v4  ;;  %v2639_v45 = vsub.f32 %v16970_v10, %v2567_v50 }
 0x438   : > { %v2564_v48 = vpop.xlane.xlu0 %2563 }
 0x439   : > { %14559 = vpow2.f32 %v2676_v54  ;;  %v2682_v47 = vmul.f32 1.442695, %v2639_v45  ;;  %v2638_v24 = vsub.f32 %v16976_v52, %v2564_v48 }
 0x43b   : > { %14561 = vpow2.f32 %v2682_v47  ;;  %v2680_v12 = vmul.f32 1.442695, %v2638_v24  ;;  %v2573_v2 = vpop.xlane.xlu1 %2572 }
 0x43c   : > { %v2641_v57 = vsub.f32 %v16980_v3, %v2573_v2 }
 0x43d   : > { %14563 = vpow2.f32 %v2680_v12  ;;  %v2570_v34 = vpop.xlane.xlu0 %2569 }
 0x43e   : > { %v2686_v58 = vmul.f32 1.442695, %v2641_v57  ;;  %v2640_v55 = vsub.f32 %v16986_v13, %v2570_v34 }
 0x440   : > { %14565 = vpow2.f32 %v2686_v58  ;;  %v2684_v0 = vmul.f32 1.442695, %v2640_v55  ;;  %v2579_v31 = vpop.xlane.xlu1 %2578 }
 0x441   : > { %v2643_v10 = vsub.f32 %v16992_v1, %v2579_v31 }
 0x442   : > { %14567 = vpow2.f32 %v2684_v0  ;;  %v2576_v11 = vpop.xlane.xlu0 %2575 }
 0x443   : > { %v2690_v4 = vmul.f32 1.442695, %v2643_v10  ;;  %v2642_v52 = vsub.f32 %v16996_v60, %v2576_v11 }
 0x444   : > { %v17104_v50 = vpop.eup %14557  ;;  %v2585_v54 = vpop.xlane.xlu1 %2584 }
 0x445   : > { %14569 = vpow2.f32 %v2690_v4  ;;  %v2688_v3 = vmul.f32 1.442695, %v2642_v52  ;;  %v2645_v45 = vsub.f32 %v16964_v5, %v2585_v54  ;;  %v2751_v13 = vsel %vm2531_vm1, %v17104_v50, 0.0 }
 0x446   : > { %v17109_v48 = vpop.eup %14559  ;;  %v2582_v47 = vpop.xlane.xlu0 %2581  ;;  %2752 = vadd.xlane.f32.xlu1 %v2751_v13 }
 0x447   : > { %14571 = vpow2.f32 %v2688_v3  ;;  %v2694_v1 = vmul.f32 1.442695, %v2645_v45  ;;  %v2644_v24 = vsub.f32 %v16974_v30, %v2582_v47  ;;  %v2748_v60 = vsel %vm2531_vm1, %v17109_v48, 0.0 }
 0x448   : > { %v17114_v12 = vpop.eup %14561  ;;  %v2591_v2 = vpop.xlane.xlu1 %2590  ;;  %2749 = vadd.xlane.f32.xlu0 %v2748_v60 }
 0x449   : > { %14573 = vpow2.f32 %v2694_v1  ;;  %v2692_v5 = vmul.f32 1.442695, %v2644_v24  ;;  %v2647_v57 = vsub.f32 %v16982_v41, %v2591_v2  ;;  %v2757_v34 = vsel %vm2531_vm1, %v17114_v12, 0.0 }
 0x44a   : > { %v17119_v58 = vpop.eup %14563  ;;  %v2588_v55 = vpop.xlane.xlu0 %2587  ;;  %2758 = vadd.xlane.f32.xlu1 %v2757_v34 }
 0x44b   : > { %14575 = vpow2.f32 %v2692_v5  ;;  %v2698_v30 = vmul.f32 1.442695, %v2647_v57  ;;  %v2646_v0 = vsub.f32 %v16990_v61, %v2588_v55  ;;  %v2754_v31 = vsel %vm2531_vm1, %v17119_v58, 0.0 }
 0x44c   : > { %v2597_v10 = vpop.xlane.xlu1 %2596  ;;  %2755 = vadd.xlane.f32.xlu0 %v2754_v31 }
 0x44d   : > { %v17124_v11 = vpop.eup %14565  ;;  %14577 = vpow2.f32 %v2698_v30  ;;  %v2696_v41 = vmul.f32 1.442695, %v2646_v0  ;;  %v2649_v4 = vsub.f32 %v17000_v63, %v2597_v10 }
 0x44e   : > { %v2594_v52 = vpop.xlane.xlu0 %2593  ;;  %v2763_v54 = vsel %vm2531_vm1, %v17124_v11, 0.0 }
 0x44f   : > { %v17129_v3 = vpop.eup %14567  ;;  %14579 = vpow2.f32 %v2696_v41  ;;  %v2702_v45 = vmul.f32 1.442695, %v2649_v4  ;;  %v2648_v61 = vsub.f32 %v17006_v59, %v2594_v52  ;;  %2764 = vadd.xlane.f32.xlu1 %v2763_v54 }
 0x450   : > { %v2603_v13 = vpop.xlane.xlu1 %2602  ;;  %v2760_v47 = vsel %vm2531_vm1, %v17129_v3, 0.0 }
 0x451   : > { %14581 = vpow2.f32 %v2702_v45  ;;  %v2700_v1 = vmul.f32 1.442695, %v2648_v61  ;;  %v2651_v24 = vsub.f32 %v17012_v21, %v2603_v13  ;;  %2761 = vadd.xlane.f32.xlu0 %v2760_v47 }
 0x452   : > { %v17135_v63 = vpop.eup %14569  ;;  %v2600_v60 = vpop.xlane.xlu0 %2599 }
 0x453   : > { %14583 = vpow2.f32 %v2700_v1  ;;  %v2706_v2 = vmul.f32 1.442695, %v2651_v24  ;;  %v2650_v5 = vsub.f32 %v17018_v9, %v2600_v60  ;;  %v2769_v59 = vsel %vm2531_vm1, %v17135_v63, 0.0 }
 0x454   : > { %v17140_v57 = vpop.eup %14571  ;;  %2770 = vadd.xlane.f32.xlu1 %v2769_v59 }
 0x455   : > { %14585 = vpow2.f32 %v2706_v2  ;;  %v2704_v34 = vmul.f32 1.442695, %v2650_v5  ;;  %v2766_v55 = vsel %vm2531_vm1, %v17140_v57, 0.0 }
 0x456   : > { %v17144_v21 = vpop.eup %14573  ;;  %v2609_v30 = vpop.xlane.xlu1 %2608  ;;  %2767 = vadd.xlane.f32.xlu0 %v2766_v55 }
 0x457   : > { %14587 = vpow2.f32 %v2704_v34  ;;  %v2653_v0 = vsub.f32 %v17024_v42, %v2609_v30  ;;  %v2775_v9 = vsel %vm2531_vm1, %v17144_v21, 0.0 }
 0x458   : > { %v17149_v31 = vpop.eup %14575  ;;  %v2606_v10 = vpop.xlane.xlu0 %2605  ;;  %2776 = vadd.xlane.f32.xlu1 %v2775_v9 }
 0x459   : > { %v2710_v41 = vmul.f32 1.442695, %v2653_v0  ;;  %v2652_v4 = vsub.f32 %v17028_v25, %v2606_v10  ;;  %v2772_v52 = vsel %vm2531_vm1, %v17149_v31, 0.0 }
 0x45a   : > { %v17154_v54 = vpop.eup %14577  ;;  %v2615_v45 = vpop.xlane.xlu1 %2614  ;;  %2773 = vadd.xlane.f32.xlu0 %v2772_v52 }
 0x45b   : > { %14589 = vpow2.f32 %v2710_v41  ;;  %v2708_v61 = vmul.f32 1.442695, %v2652_v4  ;;  %v2655_v42 = vsub.f32 %v17032_v17, %v2615_v45  ;;  %v2781_v13 = vsel %vm2531_vm1, %v17154_v54, 0.0 }
 0x45c   : > { %v17159_v47 = vpop.eup %14579  ;;  %v2612_v1 = vpop.xlane.xlu0 %2611  ;;  %2782 = vadd.xlane.f32.xlu1 %v2781_v13 }
 0x45d   : > { %14591 = vpow2.f32 %v2708_v61  ;;  %v2714_v25 = vmul.f32 1.442695, %v2655_v42  ;;  %v2654_v24 = vsub.f32 %v17036_v62, %v2612_v1  ;;  %v2778_v60 = vsel %vm2531_vm1, %v17159_v47, 0.0 }
 0x45e   : > { %v17164_v2 = vpop.eup %14581  ;;  %v2621_v5 = vpop.xlane.xlu1 %2620  ;;  %2779 = vadd.xlane.f32.xlu0 %v2778_v60 }
 0x45f   : > { %14593 = vpow2.f32 %v2714_v25  ;;  %v2712_v17 = vmul.f32 1.442695, %v2654_v24  ;;  %v2657_v59 = vsub.f32 %v17040_v33, %v2621_v5  ;;  %v2787_v34 = vsel %vm2531_vm1, %v17164_v2, 0.0 }
 0x460   : > { %v17169_v55 = vpop.eup %14583  ;;  %v2618_v30 = vpop.xlane.xlu0 %2617  ;;  %2788 = vadd.xlane.f32.xlu1 %v2787_v34 }
 0x461   : > { %14595 = vpow2.f32 %v2712_v17  ;;  %v2718_v62 = vmul.f32 1.442695, %v2657_v59  ;;  %v2656_v0 = vsub.f32 %v17044_v8, %v2618_v30  ;;  %v2784_v9 = vsel %vm2531_vm1, %v17169_v55, 0.0 }
 0x462   : > { %v17174_v10 = vpop.eup %14585  ;;  %v2627_v41 = vpop.xlane.xlu1 %2626  ;;  %2785 = vadd.xlane.f32.xlu0 %v2784_v9 }
 0x463   : > { %14597 = vpow2.f32 %v2718_v62  ;;  %v2716_v33 = vmul.f32 1.442695, %v2656_v0  ;;  %v2659_v4 = vsub.f32 %v17048_v38, %v2627_v41  ;;  %v2793_v52 = vsel %vm2531_vm1, %v17174_v10, 0.0 }
 0x464   : > { %v17179_v45 = vpop.eup %14587  ;;  %v2624_v61 = vpop.xlane.xlu0 %2623  ;;  %2794 = vadd.xlane.f32.xlu1 %v2793_v52  ;;  %v21430_v52 = vld [vmem:[#allocation52_spill] sm:$0xff] }
 0x465   : > { %14599 = vpow2.f32 %v2716_v33  ;;  %v2722_v8 = vmul.f32 1.442695, %v2659_v4  ;;  %v2658_v42 = vsub.f32 %v17052_v20, %v2624_v61  ;;  %v2790_v13 = vsel %vm2531_vm1, %v17179_v45, 0.0  ;;  %v21431_v61 = vld [vmem:[#allocation35_spill] sm:$0xff] }
 0x466   : > { %2791 = vadd.xlane.f32.xlu0 %v2790_v13  ;;  %v21432_v13 = vld [vmem:[#allocation38_spill] sm:$0xff] }
 0x467   : > { %14601 = vpow2.f32 %v2722_v8  ;;  %v2720_v1 = vmul.f32 1.442695, %v2658_v42 }
 0x468   : > { %v17184_v25 = vpop.eup %14589 }
 0x469   : > { %14603 = vpow2.f32 %v2720_v1  ;;  %v2799_v38 = vsel %vm2531_vm1, %v17184_v25, 0.0  ;;  %v21433_v1 = vld [vmem:[#allocation41_spill] sm:$0xff] }
 0x46a   : > { %v17188_v24 = vpop.eup %14591  ;;  %2800 = vadd.xlane.f32.xlu1 %v2799_v38 }
 0x46b   : > { %v2796_v60 = vsel %vm2531_vm1, %v17188_v24, 0.0 }
 0x46c   : > { %v17192_v5 = vpop.eup %14593  ;;  %2797 = vadd.xlane.f32.xlu0 %v2796_v60 }
 0x46d   : > { %v2805_v20 = vsel %vm2531_vm1, %v17192_v5, 0.0 }
 0x46e   : > { %v17196_v17 = vpop.eup %14595  ;;  %2806 = vadd.xlane.f32.xlu1 %v2805_v20  ;;  %v21434_v20 = vld [vmem:[#allocation54_spill] sm:$0xff] }
 0x46f   : > { %v2802_v59 = vsel %vm2531_vm1, %v17196_v17, 0.0 }
 0x470   : > { %v17200_v34 = vpop.eup %14597  ;;  %2803 = vadd.xlane.f32.xlu0 %v2802_v59  ;;  %v21435_v59 = vld [vmem:[#allocation40_spill] sm:$0xff] }
 0x471   : > { %v2811_v30 = vsel %vm2531_vm1, %v17200_v34, 0.0 }
 0x472   : > { %v17204_v62 = vpop.eup %14599  ;;  %2812 = vadd.xlane.f32.xlu1 %v2811_v30 }
 0x473   : > { %v2808_v0 = vsel %vm2531_vm1, %v17204_v62, 0.0 }
 0x474   : > { %v17208_v9 = vpop.eup %14601  ;;  %2809 = vadd.xlane.f32.xlu0 %v2808_v0 }
 0x475   : > { %v2817_v41 = vsel %vm2531_vm1, %v17208_v9, 0.0 }
 0x476   : > { %v17212_v33 = vpop.eup %14603  ;;  %2818 = vadd.xlane.f32.xlu1 %v2817_v41  ;;  %v21436_v41 = vld [vmem:[#allocation43_spill] sm:$0xff] }
 0x477   : > { %v2814_v4 = vsel %vm2531_vm1, %v17212_v33, 0.0 }
 0x478   : > { %2815 = vadd.xlane.f32.xlu0 %v2814_v4  ;;  %v21437_v4 = vld [vmem:[#allocation46_spill] sm:$0xff] }
 0x487   : > { %3781 = vrot.lane.b32.xlu1 %v16308_v14, %s15426_s17 }
 0x48b   : > { %3779 = vrot.lane.b32.xlu1 %v16325_v35, %s15426_s17 }
 0x48e   : > { %3783 = vrot.lane.b32.xlu0 %v16303_v23, %s15426_s17 }
 0x48f   : > { %3777 = vrot.lane.b32.xlu1 %v16340_v39, %s15426_s17 }
 0x492   : > { %3775 = vrot.lane.b32.xlu0 %v16353_v46, %s15426_s17 }
 0x493   : > { %3773 = vrot.lane.b32.xlu1 %v16364_v51, %s15426_s17 }
 0x496   : > { %3771 = vrot.lane.b32.xlu0 %v16377_v16, %s15426_s17 }
 0x497   : > { %3769 = vrot.lane.b32.xlu1 %v16398_v32, %s15426_s17 }
 0x49a   : > { %3753 = vrot.lane.b32.xlu0 %v16283_v27, %s15426_s17 }
 0x49b   : > { %3952 = vrot.lane.b32.xlu1 %v16409_v18, %s15426_s17 }
 0x49e   : > { %3755 = vrot.lane.b32.xlu0 %v16417_v26, %s15426_s17 }
 0x49f   : > { %3950 = vrot.lane.b32.xlu1 %v16431_v6, %s15426_s17 }
 0x4a2   : > { %3948 = vrot.lane.b32.xlu0 %v16466_v15, %s15426_s17 }
 0x4a3   : > { %3946 = vrot.lane.b32.xlu1 %v16500_v28, %s15426_s17 }
 0x4a6   : > { %3944 = vrot.lane.b32.xlu0 %v16534_v37, %s15426_s17 }
 0x4a7   : > { %4121 = vrot.lane.b32.xlu1 %v16420_v19, %s15426_s17 }
 0x4aa   : > { %3757 = vrot.lane.b32.xlu0 %v16426_v36, %s15426_s17 }
 0x4ab   : > { %3759 = vrot.lane.b32.xlu1 %v16448_v22, %s15426_s17 }
 0x4ae   : > { %3942 = vrot.lane.b32.xlu0 %v21430_v52, %s15426_s17 }
 0x4af   : > { %4119 = vrot.lane.b32.xlu1 %v21431_v61, %s15426_s17  ;;  %v2729_v8 = vpop.xlane.xlu1 %2728 }
 0x4b0   : > { %14605 = vrcp.f32 %v2729_v8 }
 0x4b1   : > { %v2726_v42 = vpop.xlane.xlu0 %2725 }
 0x4b2   : > { %3761 = vrot.lane.b32.xlu0 %v21432_v13, %s15426_s17  ;;  %14607 = vrcp.f32 %v2726_v42  ;;  %v21467_v13 = vld [vmem:[#allocation57_spill] sm:$0xff] }
 0x4b3   : > { %3763 = vrot.lane.b32.xlu1 %v21433_v1, %s15426_s17  ;;  %v2735_v38 = vpop.xlane.xlu1 %2734  ;;  %v21438_v1 = vld [vmem:[#allocation56_spill] sm:$0xff] }
 0x4b4   : > { %14609 = vrcp.f32 %v2735_v38 }
 0x4b5   : > { %v2732_v60 = vpop.xlane.xlu0 %2731 }
 0x4b6   : > { %3940 = vrot.lane.b32.xlu0 %v21434_v20, %s15426_s17  ;;  %14611 = vrcp.f32 %v2732_v60 }
 0x4b7   : > { %4117 = vrot.lane.b32.xlu1 %v21435_v59, %s15426_s17  ;;  %v2741_v30 = vpop.xlane.xlu1 %2740  ;;  %v21439_v59 = vld [vmem:[#allocation45_spill] sm:$0xff] }
 0x4b9   : > { %v2738_v0 = vpop.xlane.xlu0 %2737 }
 0x4ba   : > { %3765 = vrot.lane.b32.xlu0 %v21436_v41, %s15426_s17  ;;  %14613 = vrcp.f32 %v2738_v0 }
 0x4bb   : > { %3767 = vrot.lane.b32.xlu1 %v21437_v4, %s15426_s17  ;;  %14615 = vrcp.f32 %v2741_v30  ;;  %v2747_v8 = vpop.xlane.xlu1 %2746  ;;  %v21440_v4 = vld [vmem:[#allocation48_spill] sm:$0xff] }
 0x4bd   : > { %v2744_v42 = vpop.xlane.xlu0 %2743  ;;  %v14606_v38 = vpop.eup %14605 }
 0x4be   : > { %3938 = vrot.lane.b32.xlu0 %v21438_v1, %s15426_s17  ;;  %14617 = vrcp.f32 %v2744_v42  ;;  %v2853_v0 = vmul.f32 %v14606_v38, %v17064_v7  ;;  %v17280_v42 = vld [vmem:[%s21066_s8] ss:$0 sm:$0xff]  ;;  %v21441_v1 = vld [vmem:[#allocation90_spill] sm:$0xff]  ;;  %v21444_v7 = vld [vmem:[#allocation93_spill] sm:$0xff] }
 0x4bf   : > { %v14608_v60 = vpop.eup %14607  ;;  %4115 = vrot.lane.b32.xlu1 %v21439_v59, %s15426_s17  ;;  %14619 = vrcp.f32 %v2747_v8  ;;  %v17284_v59 = vadd.f32 %v17280_v42, %v21441_v1 }
 0x4c0   : > { %v2852_v20 = vmul.f32 %v14608_v60, %v17068_v56  ;;  %v21443_v56 = vld [vmem:[#allocation59_spill] sm:$0xff]  ;;  %v21446_v60 = vld [vmem:[#allocation58_spill] sm:$0xff] }
 0x4c1   : > { %v14610_v41 = vpop.eup %14609  ;;  %21442 = vst [vmem:[#allocation90_spill] sm:$0xff] %v17284_v59 }
 0x4c2   : > { %3922 = vrot.lane.b32.xlu0 %v21440_v4, %s15426_s17  ;;  %13368 = vmatprep.mubr.msk.f32.mxu0 %vm2531_vm1, %v2852_v20  ;;  %v21445_v20 = vld [vmem:[#allocation50_spill] sm:$0xff]  ;;  %v2855_v38 = vmul.f32 %v14610_v41, %v17072_v43  ;;  %v21450_v43 = vld [vmem:[#allocation61_spill] sm:$0xff] }
 0x4c3   : > { %v14612_v30 = vpop.eup %14611  ;;  %3924 = vrot.lane.b32.xlu1 %v21443_v56, %s15426_s17  ;;  %13369 = vmatmul.mubr.msk.f32.vlgmr.msra.gmra.mxu0 %vm2531_vm1, %v2853_v0  ;;  %v21447_v56 = vld [vmem:[#allocation84_spill] sm:$0xff] }
 0x4c4   : > { %13381 = vmatpush3.msra.mxu0 %v21444_v7  ;;  %v2854_v8 = vmul.f32 %v14612_v30, %v17076_v53  ;;  %v17301_v4 = vadd.f32 %v17280_v42, %v21447_v56  ;;  %v21449_v53 = vld [vmem:[#allocation82_spill] sm:$0xff] }
 0x4c5   : > { %13382 = vmatprep.subr.mxu0 %v17284_v59 }
 0x4c6   : > { %4113 = vrot.lane.b32.xlu0 %v21445_v20, %s15426_s17  ;;  %13383 = vmatpush3.msra.mxu0 %v17284_v59  ;;  %21448 = vst [vmem:[#allocation84_spill] sm:$0xff] %v17301_v4  ;;  %v21455_v20 = vld [vmem:[#allocation53_spill] sm:$0xff] }
 0x4c7   : > { %v14614_v1 = vpop.eup %14613  ;;  %4290 = vrot.lane.b32.xlu1 %v21446_v60, %s15426_s17  ;;  %13371 = vmatprep.mubr.msk.f32.mxu0 %vm2531_vm1, %v2854_v8  ;;  %v21451_v8 = vld [vmem:[#allocation66_spill] sm:$0xff] }
 0x4c8   : > { %v14616_v0 = vpop.eup %14615  ;;  %13384 = vmatprep.subr.mxu0 %v21449_v53  ;;  %13372 = vmatmul.mubr.msk.f32.gmra.mxu0 %vm2531_vm1, %v2855_v38  ;;  %v2856_v30 = vmul.f32 %v14614_v1, %v17084_v40  ;;  %v21452_v38 = vld [vmem:[#allocation74_spill] sm:$0xff]  ;;  %v21453_v1 = vld [vmem:[#allocation77_spill] sm:$0xff] }
 0x4c9   : > { %13385 = vmatpush3.msra.mxu0 %v21449_v53  ;;  %v2857_v56 = vmul.f32 %v14616_v0, %v17080_v29  ;;  %v21456_v29 = vld [vmem:[#allocation65_spill] sm:$0xff] }
 0x4ca   : > { %3926 = vrot.lane.b32.xlu0 %v21450_v43, %s15426_s17  ;;  %13386 = vmatprep.subr.mxu0 %v17301_v4  ;;  %v17319_v43 = vadd.f32 %v17280_v42, %v21453_v1 }
 0x4cb   : > { %v14618_v41 = vpop.eup %14617  ;;  %3928 = vrot.lane.b32.xlu1 %v21451_v8, %s15426_s17  ;;  %13387 = vmatpush3.msra.mxu0 %v17301_v4 }
 0x4cc   : > { %v14620_v60 = vpop.eup %14619  ;;  %13374 = vmatprep.mubr.msk.f32.mxu0 %vm2531_vm1, %v2856_v30  ;;  %13388 = vmatprep.subr.mxu0 %v21452_v38  ;;  %v2858_v40 = vmul.f32 %v14618_v41, %v17092_v49  ;;  %21454 = vst [vmem:[#allocation77_spill] sm:$0xff] %v17319_v43  ;;  %v21457_v49 = vld [vmem:[#allocation69_spill] sm:$0xff] }
 0x4cd   : > { %13375 = vmatmul.mubr.msk.f32.gmra.mxu0 %vm2531_vm1, %v2857_v56  ;;  %v2859_v30 = vmul.f32 %v14620_v60, %v17088_v44  ;;  %v17333_v41 = vadd.f32 %v17280_v42, %v21457_v49  ;;  %v21459_v56 = vld [vmem:[#allocation67_spill] sm:$0xff]  ;;  %v21464_v49 = vld [vmem:[#allocation73_spill] sm:$0xff] }
 0x4ce   : > { %4111 = vrot.lane.b32.xlu0 %v21455_v20, %s15426_s17  ;;  %13389 = vmatpush3.msra.mxu0 %v21452_v38  ;;  %v21461_v44 = vld [vmem:[#allocation75_spill] sm:$0xff]  ;;  %v21466_v20 = vld [vmem:[#allocation85_spill] sm:$0xff] }
 0x4cf   : > { %4288 = vrot.lane.b32.xlu1 %v21456_v29, %s15426_s17  ;;  %13390 = vmatprep.subr.mxu0 %v17319_v43  ;;  %v2753_v0 = vpop.xlane.xlu1 %2752  ;;  %21458 = vst [vmem:[#allocation69_spill] sm:$0xff] %v17333_v41  ;;  %v21460_v29 = vld [vmem:[#allocation68_spill] sm:$0xff] }
 0x4d0   : > { %13391 = vmatpush3.msra.mxu0 %v17319_v43  ;;  %13377 = vmatprep.mubr.msk.f32.mxu0 %vm2531_vm1, %v2858_v40  ;;  %14621 = vrcp.f32 %v2753_v0  ;;  %v21462_v40 = vld [vmem:[#allocation103_spill] sm:$0xff] }
 0x4d1   : > { %13392 = vmatprep.subr.mxu0 %v21459_v56  ;;  %13378 = vmatmul.mubr.msk.f32.gmra.mxu0 %vm2531_vm1, %v2859_v30  ;;  %v2750_v1 = vpop.xlane.xlu0 %2749  ;;  %v21463_v30 = vld [vmem:[#allocation55_spill] sm:$0xff] }
 0x4d2   : > { %3930 = vrot.lane.b32.xlu0 %v21460_v29, %s15426_s17  ;;  %13393 = vmatpush3.msra.mxu0 %v21459_v56  ;;  %14623 = vrcp.f32 %v2750_v1  ;;  %v21465_v29 = vld [vmem:[#allocation78_spill] sm:$0xff] }
 0x4d3   : > { %3932 = vrot.lane.b32.xlu1 %v21461_v44, %s15426_s17  ;;  %13394 = vmatprep.subr.mxu0 %v17333_v41  ;;  %v2759_v60 = vpop.xlane.xlu1 %2758 }
 0x4d4   : > { %13395 = vmatpush3.msra.mxu0 %v17333_v41  ;;  %14625 = vrcp.f32 %v2759_v60 }
 0x4d5   : > { %13408 = vmatprep.subr.mxu0 %v21462_v40  ;;  %v2756_v0 = vpop.xlane.xlu0 %2755 }
 0x4d6   : > { %4109 = vrot.lane.b32.xlu0 %v21463_v30, %s15426_s17  ;;  %14627 = vrcp.f32 %v2756_v0  ;;  %v21468_v0 = vld [vmem:[#allocation83_spill] sm:$0xff] }
 0x4d7   : > { %4286 = vrot.lane.b32.xlu1 %v21464_v49, %s15426_s17 }
 0x4d8   : > { %v2765_v1 = vpop.xlane.xlu1 %2764 }
 0x4d9   : > { %14629 = vrcp.f32 %v2765_v1 }
 0x4da   : > { %3934 = vrot.lane.b32.xlu0 %v21465_v29, %s15426_s17  ;;  %v2762_v44 = vpop.xlane.xlu0 %2761 }
 0x4db   : > { %3936 = vrot.lane.b32.xlu1 %v21466_v20, %s15426_s17  ;;  %14631 = vrcp.f32 %v2762_v44  ;;  %v21469_v44 = vld [vmem:[#allocation28_spill] sm:$0xff] }
 0x4dd   : > { %v2771_v8 = vpop.xlane.xlu1 %2770  ;;  %v14622_v60 = vpop.eup %14621 }
 0x4de   : > { %4107 = vrot.lane.b32.xlu0 %v21467_v13, %s15426_s17  ;;  %14633 = vrcp.f32 %v2771_v8  ;;  %v2861_v1 = vmul.f32 %v14622_v60, %v17104_v50  ;;  %v21470_v13 = vld [vmem:[#allocation104_spill] sm:$0xff]  ;;  %v21472_v8 = vld [vmem:[#allocation62_spill] sm:$0xff] }
 0x4df   : > { %v14624_v30 = vpop.eup %14623  ;;  %4284 = vrot.lane.b32.xlu1 %v21468_v0, %s15426_s17  ;;  %v2768_v49 = vpop.xlane.xlu0 %2767  ;;  %v17364_v22 = vadd.f32 %v17280_v42, %v21470_v13 }
 0x4e0   : > { %14635 = vrcp.f32 %v2768_v49  ;;  %v2860_v29 = vmul.f32 %v14624_v30, %v17109_v48 }
 0x4e1   : > { %v2777_v61 = vpop.xlane.xlu1 %2776  ;;  %v14626_v52 = vpop.eup %14625  ;;  %21471 = vst [vmem:[#allocation104_spill] sm:$0xff] %v17364_v22 }
 0x4e2   : > { %4091 = vrot.lane.b32.xlu0 %v21469_v44, %s15426_s17  ;;  %13396 = vmatprep.mubr.msk.f32.mxu0 %vm2531_vm1, %v2860_v29  ;;  %14637 = vrcp.f32 %v2777_v61  ;;  %v21473_v29 = vld [vmem:[#allocation91_spill] sm:$0xff]  ;;  %v2863_v13 = vmul.f32 %v14626_v52, %v17114_v12  ;;  %v21478_v52 = vld [vmem:[#allocation70_spill] sm:$0xff] }
 0x4e3   : > { %v14628_v20 = vpop.eup %14627  ;;  %4093 = vrot.lane.b32.xlu1 %v21472_v8, %s15426_s17  ;;  %v2774_v49 = vpop.xlane.xlu0 %2773  ;;  %13397 = vmatmul.mubr.msk.f32.vlgmr.msra.gmra.mxu0 %vm2531_vm1, %v2861_v1  ;;  %v21474_v61 = vld [vmem:[#allocation63_spill] sm:$0xff] }
 0x4e4   : > { %14639 = vrcp.f32 %v2774_v49  ;;  %13409 = vmatpush3.msra.mxu0 %v21462_v40  ;;  %v2862_v50 = vmul.f32 %v14628_v20, %v17119_v58  ;;  %v21475_v58 = vld [vmem:[#allocation101_spill] sm:$0xff]  ;;  %v21477_v49 = vld [vmem:[#allocation100_spill] sm:$0xff] }
 0x4e5   : > { %v2783_v48 = vpop.xlane.xlu1 %2782  ;;  %13410 = vmatprep.subr.mxu0 %v17364_v22  ;;  %v17381_v20 = vadd.f32 %v17280_v42, %v21475_v58  ;;  %v21480_v58 = vld [vmem:[#allocation97_spill] sm:$0xff] }
 0x4e6   : > { %4282 = vrot.lane.b32.xlu0 %v21473_v29, %s15426_s17  ;;  %13411 = vmatpush3.msra.mxu0 %v17364_v22  ;;  %v14630_v30 = vpop.eup %14629  ;;  %14641 = vrcp.f32 %v2783_v48 }
 0x4e7   : > { %4095 = vrot.lane.b32.xlu1 %v21474_v61, %s15426_s17  ;;  %v2780_v60 = vpop.xlane.xlu0 %2779  ;;  %13399 = vmatprep.mubr.msk.f32.mxu0 %vm2531_vm1, %v2862_v50  ;;  %21476 = vst [vmem:[#allocation101_spill] sm:$0xff] %v17381_v20  ;;  %v21479_v50 = vld [vmem:[#allocation96_spill] sm:$0xff] }
 0x4e8   : > { %v14632_v1 = vpop.eup %14631  ;;  %14643 = vrcp.f32 %v2780_v60  ;;  %13412 = vmatprep.subr.mxu0 %v21477_v49  ;;  %13400 = vmatmul.mubr.msk.f32.gmra.mxu0 %vm2531_vm1, %v2863_v13  ;;  %v2865_v60 = vmul.f32 %v14630_v30, %v17124_v11  ;;  %v21484_v30 = vld [vmem:[#allocation79_spill] sm:$0xff] }
 0x4e9   : > { %v2789_v29 = vpop.xlane.xlu1 %2788  ;;  %13413 = vmatpush3.msra.mxu0 %v21477_v49  ;;  %v2864_v12 = vmul.f32 %v14632_v1, %v17129_v3  ;;  %v21481_v1 = vld [vmem:[#allocation98_spill] sm:$0xff] }
 0x4ea   : > { %4097 = vrot.lane.b32.xlu0 %v21478_v52, %s15426_s17  ;;  %13414 = vmatprep.subr.mxu0 %v17381_v20  ;;  %14645 = vrcp.f32 %v2789_v29  ;;  %v17398_v52 = vadd.f32 %v17280_v42, %v21481_v1  ;;  %v21483_v29 = vld [vmem:[#allocation72_spill] sm:$0xff] }
 0x4eb   : > { %4280 = vrot.lane.b32.xlu1 %v21479_v50, %s15426_s17  ;;  %13415 = vmatpush3.msra.mxu0 %v17381_v20  ;;  %v2786_v48 = vpop.xlane.xlu0 %2785  ;;  %v14634_v13 = vpop.eup %14633 }
 0x4ec   : > { %14647 = vrcp.f32 %v2786_v48  ;;  %13402 = vmatprep.mubr.msk.f32.mxu0 %vm2531_vm1, %v2864_v12  ;;  %13416 = vmatprep.subr.mxu0 %v21480_v58  ;;  %21482 = vst [vmem:[#allocation98_spill] sm:$0xff] %v17398_v52  ;;  %v2867_v48 = vmul.f32 %v14634_v13, %v17135_v63  ;;  %v1866_v13 = vld [vmem:[#allocation10 + $0x18] sm:$0xff] }
 0x4ed   : > { %v14636_v3 = vpop.eup %14635  ;;  %v2795_v61 = vpop.xlane.xlu1 %2794  ;;  %13403 = vmatmul.mubr.msk.f32.gmra.mxu0 %vm2531_vm1, %v2865_v60 }
 0x4ee   : > { %4099 = vrot.lane.b32.xlu0 %v21483_v29, %s15426_s17  ;;  %13417 = vmatpush3.msra.mxu0 %v21480_v58  ;;  %v2866_v11 = vmul.f32 %v14636_v3, %v17140_v57  ;;  %14649 = vrcp.f32 %v2795_v61  ;;  %v21485_v29 = vld [vmem:[#allocation95_spill] sm:$0xff]  ;;  %v21487_v57 = vld [vmem:[#allocation94_spill] sm:$0xff] }
 0x4ef   : > { %4101 = vrot.lane.b32.xlu1 %v21484_v30, %s15426_s17  ;;  %13418 = vmatprep.subr.mxu0 %v17398_v52  ;;  %v2792_v12 = vpop.xlane.xlu0 %2791  ;;  %v14638_v1 = vpop.eup %14637  ;;  %v17413_v50 = vadd.f32 %v17280_v42, %v21485_v29  ;;  %v21488_v61 = vld [vmem:[#allocation99_spill] sm:$0xff]  ;;  %v1865_v29 = vld [vmem:[#allocation10 + $0x10] sm:$0xff] }
 0x4f0   : > { %13419 = vmatpush3.msra.mxu0 %v17398_v52  ;;  %14651 = vrcp.f32 %v2792_v12  ;;  %13405 = vmatprep.mubr.msk.f32.mxu0 %vm2531_vm1, %v2866_v11  ;;  %v2869_v3 = vmul.f32 %v14638_v1, %v17144_v21  ;;  %v21489_v11 = vld [vmem:[#allocation81_spill] sm:$0xff]  ;;  %v21490_v21 = vld [vmem:[#allocation88_spill] sm:$0xff] }
 0x4f1   : > { %v14640_v60 = vpop.eup %14639  ;;  %21486 = vst [vmem:[#allocation95_spill] sm:$0xff] %v17413_v50  ;;  %13420 = vmatprep.subr.mxu0 %v21487_v57  ;;  %13406 = vmatmul.mubr.msk.f32.gmra.mxu0 %vm2531_vm1, %v2867_v48  ;;  %v1864_v1 = vld [vmem:[#allocation10 + $0x8] sm:$0xff] }
 0x4f2   : > { %4278 = vrot.lane.b32.xlu0 %v21488_v61, %s15426_s17  ;;  %13421 = vmatpush3.msra.mxu0 %v21487_v57  ;;  %v2868_v63 = vmul.f32 %v14640_v60, %v17149_v31  ;;  %v21491_v60 = vld [vmem:[#allocation102_spill] sm:$0xff] }
 0x4f3   : > { %4103 = vrot.lane.b32.xlu1 %v21489_v11, %s15426_s17  ;;  %v2801_v12 = vpop.xlane.xlu1 %2800  ;;  %13422 = vmatprep.subr.mxu0 %v17413_v50  ;;  %v14642_v42 = vpop.eup %14641 }
 0x4f4   : > { %13423 = vmatpush3.msra.mxu0 %v17413_v50  ;;  %13424 = vmatprep.mubr.msk.f32.mxu0 %vm2531_vm1, %v2868_v63  ;;  %14653 = vrcp.f32 %v2801_v12  ;;  %v2871_v63 = vmul.f32 %v14642_v42, %v17154_v54  ;;  %v21493_v54 = vld [vmem:[#allocation37_spill] sm:$0xff] }
 0x4f5   : > { %v14644_v48 = vpop.eup %14643  ;;  %v2798_v61 = vpop.xlane.xlu0 %2797  ;;  %13425 = vmatmul.mubr.msk.f32.vlgmr.msra.gmra.mxu0 %vm2531_vm1, %v2869_v3  ;;  %13464 = vmatprep.subr.mxu0 %v1866_v13  ;;  %v1863_v3 = vld [vmem:[#allocation10] sm:$0xff] }
 0x4f6   : > { %14655 = vrcp.f32 %v2798_v61  ;;  %4105 = vrot.lane.b32.xlu0 %v21490_v21, %s15426_s17  ;;  %v2870_v31 = vmul.f32 %v14644_v48, %v17159_v47  ;;  %13465 = vmatpush3.msra.mxu0 %v1866_v13  ;;  %v21492_v47 = vld [vmem:[#allocation87_spill] sm:$0xff] }
 0x4f7   : > { %4276 = vrot.lane.b32.xlu1 %v21491_v60, %s15426_s17  ;;  %v2807_v11 = vpop.xlane.xlu1 %2806  ;;  %13466 = vmatprep.subr.mxu0 %v1865_v29  ;;  %v14646_v12 = vpop.eup %14645 }
 0x4f8   : > { %13427 = vmatprep.mubr.msk.f32.mxu0 %vm2531_vm1, %v2870_v31  ;;  %13467 = vmatpush3.msra.mxu0 %v1865_v29  ;;  %14657 = vrcp.f32 %v2807_v11  ;;  %v2873_v29 = vmul.f32 %v14646_v12, %v17164_v2 }
 0x4f9   : > { %v14648_v61 = vpop.eup %14647  ;;  %v2804_v30 = vpop.xlane.xlu0 %2803  ;;  %13428 = vmatmul.mubr.msk.f32.gmra.mxu0 %vm2531_vm1, %v2871_v63  ;;  %13468 = vmatprep.subr.mxu0 %v1864_v1 }
 0x4fa   : > { %14659 = vrcp.f32 %v2804_v30  ;;  %4260 = vrot.lane.b32.xlu0 %v21492_v47, %s15426_s17  ;;  %v2872_v13 = vmul.f32 %v14648_v61, %v17169_v55  ;;  %13469 = vmatpush3.msra.mxu0 %v1864_v1  ;;  %v21494_v55 = vld [vmem:[#allocation105_spill] sm:$0xff]  ;;  %v21495_v1 = vld [vmem:[#allocation42_spill] sm:$0xff] }
 0x4fb   : > { %4262 = vrot.lane.b32.xlu1 %v21493_v54, %s15426_s17  ;;  %v2813_v42 = vpop.xlane.xlu1 %2812  ;;  %13470 = vmatprep.subr.mxu0 %v1863_v3  ;;  %v14650_v48 = vpop.eup %14649  ;;  %v21496_v61 = vld [vmem:[#allocation106_spill] sm:$0xff] }
 0x4fc   : > { %13430 = vmatprep.mubr.msk.f32.mxu0 %vm2531_vm1, %v2872_v13  ;;  %13471 = vmatpush3.msra.mxu0 %v1863_v3  ;;  %14661 = vrcp.f32 %v2813_v42  ;;  %v2875_v63 = vmul.f32 %v14650_v48, %v17174_v10 }
 0x4fd   : > { %v14652_v11 = vpop.eup %14651  ;;  %v2810_v30 = vpop.xlane.xlu0 %2809  ;;  %13431 = vmatmul.mubr.msk.f32.gmra.mxu0 %vm2531_vm1, %v2873_v29 }
 0x4fe   : > { %14663 = vrcp.f32 %v2810_v30  ;;  %4264 = vrot.lane.b32.xlu0 %v21494_v55, %s15426_s17  ;;  %v2874_v31 = vmul.f32 %v14652_v11, %v17179_v45  ;;  %v21497_v45 = vld [vmem:[#allocation47_spill] sm:$0xff] }
 0x4ff   : > { %4266 = vrot.lane.b32.xlu1 %v21495_v1, %s15426_s17  ;;  %v2819_v2 = vpop.xlane.xlu1 %2818  ;;  %v21498_v30 = vld [vmem:[#allocation107_spill] sm:$0xff] }
 0x500   : > { %13433 = vmatprep.mubr.msk.f32.mxu0 %vm2531_vm1, %v2874_v31  ;;  %14665 = vrcp.f32 %v2819_v2  ;;  %v21499_v2 = vld [vmem:[#allocation51_spill] sm:$0xff] }
 0x501   : > { %v2816_v12 = vpop.xlane.xlu0 %2815  ;;  %13434 = vmatmul.mubr.msk.f32.gmra.mxu0 %vm2531_vm1, %v2875_v63  ;;  %v14654_v3 = vpop.eup %14653 }
 0x502   : > { %14667 = vrcp.f32 %v2816_v12  ;;  %4268 = vrot.lane.b32.xlu0 %v21496_v61, %s15426_s17  ;;  %v2877_v48 = vmul.f32 %v14654_v3, %v17184_v25  ;;  %v21500_v3 = vld [vmem:[#allocation60_spill] sm:$0xff] }
 0x503   : > { %v14656_v13 = vpop.eup %14655  ;;  %4270 = vrot.lane.b32.xlu1 %v21497_v45, %s15426_s17  ;;  %v3782_v42 = vpop.permute.xlu1 %3781 }
 0x504   : > { %v2876_v29 = vmul.f32 %v14656_v13, %v17188_v24 }
 0x505   : > { %v3784_v11 = vpop.permute.xlu0 %3783  ;;  %v14658_v10 = vpop.eup %14657 }
 0x506   : > { %4272 = vrot.lane.b32.xlu0 %v21498_v30, %s15426_s17  ;;  %13452 = vmatprep.mubr.msk.f32.mxu1 %vm2531_vm1, %v2876_v29  ;;  %v2879_v13 = vmul.f32 %v14658_v10, %v17192_v5 }
 0x507   : > { %v14660_v31 = vpop.eup %14659  ;;  %13520 = vmatprep.subr.msk.mxu1 %vm1918_vm0, %v3784_v11  ;;  %4274 = vrot.lane.b32.xlu1 %v21499_v2, %s15426_s17  ;;  %v3780_v63 = vpop.permute.xlu1 %3779  ;;  %v21501_v2 = vld [vmem:[#allocation64_spill] sm:$0xff] }
 0x508   : > { %13453 = vmatmul.mubr.msk.f32.vlgmr.msra.gmra.mxu1 %vm2531_vm1, %v2877_v48  ;;  %v2878_v24 = vmul.f32 %v14660_v31, %v17196_v17 }
 0x509   : > { %13521 = vmatpush3.xpose.msk.msra.mxu1 %vm1918_vm0, %v3784_v11  ;;  %v3776_v12 = vpop.permute.xlu0 %3775  ;;  %v14662_v25 = vpop.eup %14661 }
 0x50a   : > { %13522 = vmatprep.subr.msk.mxu1 %vm1918_vm0, %v3782_v42  ;;  %4803 = vrot.lane.b32.xlu0 %v21500_v3, %s15426_s17  ;;  %v21502_v3 = vld [vmem:[#allocation71_spill] sm:$0xff]  ;;  %v2881_v5 = vmul.f32 %v14662_v25, %v17200_v34  ;;  %v21505_v25 = vld [vmem:[#allocation86_spill] sm:$0xff] }
 0x50b   : > { %v14664_v29 = vpop.eup %14663  ;;  %13455 = vmatprep.mubr.msk.f32.mxu1 %vm2531_vm1, %v2878_v24  ;;  %4801 = vrot.lane.b32.xlu1 %v21501_v2, %s15426_s17  ;;  %v3778_v48 = vpop.permute.xlu1 %3777  ;;  %v21503_v24 = vld [vmem:[#allocation76_spill] sm:$0xff] }
 0x50c   : > { %13456 = vmatmul.mubr.msk.f32.gmra.mxu1 %vm2531_vm1, %v2879_v13  ;;  %v2880_v17 = vmul.f32 %v14664_v29, %v17204_v62  ;;  %v21504_v29 = vld [vmem:[#allocation80_spill] sm:$0xff] }
 0x50d   : > { %13523 = vmatpush3.xpose.msk.msra.mxu1 %vm1918_vm0, %v3782_v42  ;;  %v3772_v11 = vpop.permute.xlu0 %3771  ;;  %v14666_v31 = vpop.eup %14665 }
 0x50e   : > { %13524 = vmatprep.subr.msk.mxu1 %vm1918_vm0, %v3780_v63  ;;  %4799 = vrot.lane.b32.xlu0 %v21502_v3, %s15426_s17  ;;  %v2883_v34 = vmul.f32 %v14666_v31, %v17208_v9  ;;  %v21507_v9 = vld [vmem:[#allocation92_spill] sm:$0xff] }
 0x50f   : > { %v14668_v10 = vpop.eup %14667  ;;  %13458 = vmatprep.mubr.msk.f32.mxu1 %vm2531_vm1, %v2880_v17  ;;  %4797 = vrot.lane.b32.xlu1 %v21503_v24, %s15426_s17  ;;  %v3774_v13 = vpop.permute.xlu1 %3773 }
 0x510   : > { %13459 = vmatmul.mubr.msk.f32.gmra.mxu1 %vm2531_vm1, %v2881_v5  ;;  %v2882_v62 = vmul.f32 %v14668_v10, %v17212_v33 }
 0x511   : > { %13525 = vmatpush3.xpose.msk.msra.mxu1 %vm1918_vm0, %v3780_v63  ;;  %v3754_v42 = vpop.permute.xlu0 %3753  ;;  %v21506_v63 = vld [vmem:[#allocation89_spill] sm:$0xff] }
 0x512   : > { %13526 = vmatprep.subr.msk.mxu1 %vm1918_vm0, %v3778_v48  ;;  %4795 = vrot.lane.b32.xlu0 %v21504_v29, %s15426_s17 }
 0x513   : > { %13461 = vmatprep.mubr.msk.f32.mxu1 %vm2531_vm1, %v2882_v62  ;;  %4793 = vrot.lane.b32.xlu1 %v21505_v25, %s15426_s17  ;;  %v3770_v17 = vpop.permute.xlu1 %3769 }
 0x514   : > { %13462 = vmatmul.mubr.msk.f32.gmra.mxu1 %vm2531_vm1, %v2883_v34 }
 0x515   : > { %13527 = vmatpush3.xpose.msk.msra.mxu1 %vm1918_vm0, %v3778_v48  ;;  %13536 = vmatprep.mubr.msk.f32.mxu1 %vm1918_vm0, %v3754_v42  ;;  %v3756_v33 = vpop.permute.xlu0 %3755 }
 0x516   : > { %13528 = vmatprep.subr.msk.mxu1 %vm1918_vm0, %v3776_v12  ;;  %4791 = vrot.lane.b32.xlu0 %v21506_v63, %s15426_s17 }
 0x517   : > { %4789 = vrot.lane.b32.xlu1 %v21507_v9, %s15426_s17  ;;  %v3953_v31 = vpop.permute.xlu1 %3952 }
 0x519   : > { %13529 = vmatpush3.xpose.msk.msra.mxu1 %vm1918_vm0, %v3776_v12  ;;  %v3949_v5 = vpop.permute.xlu0 %3948 }
 0x51a   : > { %13530 = vmatprep.subr.msk.mxu1 %vm1918_vm0, %v3774_v13  ;;  %4964 = vrot.lane.b32.xlu0 %v21444_v7, %s15426_s17 }
 0x51b   : > { %4962 = vrot.lane.b32.xlu1 %v17284_v59, %s15426_s17  ;;  %v3951_v48 = vpop.permute.xlu1 %3950 }
 0x51d   : > { %13531 = vmatpush3.xpose.msk.msra.mxu1 %vm1918_vm0, %v3774_v13  ;;  %v3945_v10 = vpop.permute.xlu0 %3944 }
 0x51e   : > { %13532 = vmatprep.subr.msk.mxu1 %vm1918_vm0, %v3772_v11  ;;  %4960 = vrot.lane.b32.xlu0 %v21449_v53, %s15426_s17 }
 0x51f   : > { %4958 = vrot.lane.b32.xlu1 %v17301_v4, %s15426_s17  ;;  %v3947_v12 = vpop.permute.xlu1 %3946 }
 0x521   : > { %13533 = vmatpush3.xpose.msk.msra.mxu1 %vm1918_vm0, %v3772_v11  ;;  %v3758_v62 = vpop.permute.xlu0 %3757 }
 0x522   : > { %13534 = vmatprep.subr.msk.mxu1 %vm1918_vm0, %v3770_v17  ;;  %4956 = vrot.lane.b32.xlu0 %v21452_v38, %s15426_s17 }
 0x523   : > { %4954 = vrot.lane.b32.xlu1 %v17319_v43, %s15426_s17  ;;  %v17520_v13 = vpop.permute.xlu1 %4121 }
 0x524   : > { %13576 = vmatprep.subr.msk.mxu0 %vm1918_vm0, %v17520_v13 }
 0x525   : > { %13535 = vmatpush3.xpose.msk.msra.mxu1 %vm1918_vm0, %v3770_v17  ;;  %v3943_v42 = vpop.permute.xlu0 %3942 }
 0x526   : > { %13548 = vmatprep.subr.msk.mxu1 %vm1918_vm0, %v3953_v31  ;;  %4952 = vrot.lane.b32.xlu0 %v21459_v56, %s15426_s17 }
 0x527   : > { %4950 = vrot.lane.b32.xlu1 %v17333_v41, %s15426_s17  ;;  %v3760_v11 = vpop.permute.xlu1 %3759 }
 0x528   : > { %13537 = vmatmul.mubr.msk.f32.vlgmr.msra.gmra.mxu1 %vm1918_vm0, %v3756_v33 }
 0x529   : > { %13539 = vmatprep.mubr.msk.f32.mxu1 %vm1918_vm0, %v3758_v62  ;;  %13549 = vmatpush3.xpose.msk.msra.mxu1 %vm1918_vm0, %v3953_v31  ;;  %v3762_v34 = vpop.permute.xlu0 %3761 }
 0x52a   : > { %13550 = vmatprep.subr.msk.mxu1 %vm1918_vm0, %v3951_v48  ;;  %5125 = vrot.lane.b32.xlu0 %v21462_v40, %s15426_s17 }
 0x52b   : > { %5123 = vrot.lane.b32.xlu1 %v17364_v22, %s15426_s17  ;;  %v17538_v17 = vpop.permute.xlu1 %4119 }
 0x52c   : > { %13540 = vmatmul.mubr.msk.f32.gmra.mxu1 %vm1918_vm0, %v3760_v11 }
 0x52d   : > { %13542 = vmatprep.mubr.msk.f32.mxu1 %vm1918_vm0, %v3762_v34  ;;  %13551 = vmatpush3.xpose.msk.msra.mxu1 %vm1918_vm0, %v3951_v48  ;;  %v3941_v33 = vpop.permute.xlu0 %3940 }
 0x52e   : > { %13552 = vmatprep.subr.msk.mxu1 %vm1918_vm0, %v3949_v5  ;;  %5121 = vrot.lane.b32.xlu0 %v21477_v49, %s15426_s17 }
 0x52f   : > { %5119 = vrot.lane.b32.xlu1 %v17381_v20, %s15426_s17  ;;  %v3764_v31 = vpop.permute.xlu1 %3763 }
 0x530   : > { %13543 = vmatmul.mubr.msk.f32.gmra.mxu1 %vm1918_vm0, %v3764_v31  ;;  %v21508_v31 = vld [vmem:[#allocation108_spill] sm:$0xff] }
 0x531   : > { %13553 = vmatpush3.xpose.msk.msra.mxu1 %vm1918_vm0, %v3949_v5  ;;  %v3766_v62 = vpop.permute.xlu0 %3765 }
 0x532   : > { %13554 = vmatprep.subr.msk.mxu1 %vm1918_vm0, %v3947_v12  ;;  %5117 = vrot.lane.b32.xlu0 %v21480_v58, %s15426_s17 }
 0x533   : > { %13545 = vmatprep.mubr.msk.f32.mxu1 %vm1918_vm0, %v3766_v62  ;;  %5115 = vrot.lane.b32.xlu1 %v17398_v52, %s15426_s17  ;;  %v17556_v48 = vpop.permute.xlu1 %4117 }
 0x535   : > { %13555 = vmatpush3.xpose.msk.msra.mxu1 %vm1918_vm0, %v3947_v12  ;;  %v3939_v11 = vpop.permute.xlu0 %3938  ;;  %v21509_v12 = vld [vmem:[#allocation109_spill] sm:$0xff] }
 0x536   : > { %13556 = vmatprep.subr.msk.mxu1 %vm1918_vm0, %v3945_v10  ;;  %5113 = vrot.lane.b32.xlu0 %v21487_v57, %s15426_s17 }
 0x537   : > { %5111 = vrot.lane.b32.xlu1 %v17413_v50, %s15426_s17  ;;  %v3768_v5 = vpop.permute.xlu1 %3767 }
 0x538   : > { %13546 = vmatmul.mubr.msk.f32.gmra.mxu1 %vm1918_vm0, %v3768_v5 }
 0x539   : > { %13557 = vmatpush3.xpose.msk.msra.mxu1 %vm1918_vm0, %v3945_v10  ;;  %v3923_v34 = vpop.permute.xlu0 %3922  ;;  %v21510_v10 = vld [vmem:[#allocation110_spill] sm:$0xff] }
 0x53a   : > { %13558 = vmatprep.subr.msk.mxu1 %vm1918_vm0, %v3943_v42  ;;  %5286 = vrot.lane.b32.xlu0 %v21508_v31, %s15426_s17 }
 0x53b   : > { %13564 = vmatprep.mubr.msk.f32.mxu1 %vm1918_vm0, %v3923_v34  ;;  %5284 = vrot.lane.b32.xlu1 %v21509_v12, %s15426_s17  ;;  %v17572_v62 = vpop.permute.xlu1 %4115  ;;  %v21511_v34 = vld [vmem:[#allocation111_spill] sm:$0xff] }
 0x53d   : > { %13559 = vmatpush3.xpose.msk.msra.mxu1 %vm1918_vm0, %v3943_v42  ;;  %v17575_v57 = vpop.permute.xlu0 %4113 }
 0x53e   : > { %13560 = vmatprep.subr.msk.mxu1 %vm1918_vm0, %v3941_v33 }
 0x53f   : > { %5282 = vrot.lane.b32.xlu1 %v21510_v10, %s15426_s17  ;;  %v3925_v5 = vpop.permute.xlu1 %3924 }
 0x541   : > { %13561 = vmatpush3.xpose.msk.msra.mxu1 %vm1918_vm0, %v3941_v33  ;;  %v3927_v31 = vpop.permute.xlu0 %3926 }
 0x542   : > { %13562 = vmatprep.subr.msk.mxu1 %vm1918_vm0, %v3939_v11 }
 0x543   : > { %5280 = vrot.lane.b32.xlu1 %v21511_v34, %s15426_s17  ;;  %v4291_v12 = vpop.permute.xlu1 %4290 }
 0x545   : > { %13563 = vmatpush3.xpose.msk.msra.mxu1 %vm1918_vm0, %v3939_v11  ;;  %v17585_v42 = vpop.permute.xlu0 %4111 }
 0x546   : > { %13604 = vmatprep.subr.msk.mxu1 %vm1918_vm0, %v4291_v12 }
 0x547   : > { %v3929_v50 = vpop.permute.xlu1 %3928 }
 0x548   : > { %13565 = vmatmul.mubr.msk.f32.vlgmr.msra.gmra.mxu1 %vm1918_vm0, %v3925_v5 }
 0x549   : > { %13567 = vmatprep.mubr.msk.f32.mxu1 %vm1918_vm0, %v3927_v31  ;;  %13605 = vmatpush3.xpose.msk.msra.mxu1 %vm1918_vm0, %v4291_v12  ;;  %v3931_v33 = vpop.permute.xlu0 %3930 }
 0x54b   : > { %v4289_v10 = vpop.permute.xlu1 %4288 }
 0x54c   : > { %13568 = vmatmul.mubr.msk.f32.gmra.mxu1 %vm1918_vm0, %v3929_v50  ;;  %13606 = vmatprep.subr.msk.mxu1 %vm1918_vm0, %v4289_v10 }
 0x54d   : > { %13570 = vmatprep.mubr.msk.f32.mxu1 %vm1918_vm0, %v3931_v33  ;;  %13607 = vmatpush3.xpose.msk.msra.mxu1 %vm1918_vm0, %v4289_v10  ;;  %v17595_v11 = vpop.permute.xlu0 %4109 }
 0x54f   : > { %v3933_v34 = vpop.permute.xlu1 %3932 }
 0x550   : > { %13571 = vmatmul.mubr.msk.f32.gmra.mxu1 %vm1918_vm0, %v3933_v34 }
 0x551   : > { %v3935_v5 = vpop.permute.xlu0 %3934 }
 0x552   : > { %13573 = vmatprep.mubr.msk.f32.mxu1 %vm1918_vm0, %v3935_v5 }
 0x553   : > { %v4287_v31 = vpop.permute.xlu1 %4286 }
 0x554   : > { %13608 = vmatprep.subr.msk.mxu1 %vm1918_vm0, %v4287_v31 }
 0x555   : > { %13609 = vmatpush3.xpose.msk.msra.mxu1 %vm1918_vm0, %v4287_v31  ;;  %v17601_v50 = vpop.permute.xlu0 %4107 }
 0x557   : > { %v3937_v12 = vpop.permute.xlu1 %3936 }
 0x558   : > { %13574 = vmatmul.mubr.msk.f32.gmra.mxu1 %vm1918_vm0, %v3937_v12 }
 0x559   : > { %v17604_v33 = vpop.permute.xlu0 %4091 }
 0x55b   : > { %v4285_v10 = vpop.permute.xlu1 %4284 }
 0x55c   : > { %13610 = vmatprep.subr.msk.mxu1 %vm1918_vm0, %v4285_v10 }
 0x55d   : > { %13611 = vmatpush3.xpose.msk.msra.mxu1 %vm1918_vm0, %v4285_v10  ;;  %v4283_v34 = vpop.permute.xlu0 %4282 }
 0x55e   : > { %13612 = vmatprep.subr.msk.mxu1 %vm1918_vm0, %v4283_v34 }
 0x55f   : > { %v17609_v5 = vpop.permute.xlu1 %4093 }
 0x561   : > { %13613 = vmatpush3.xpose.msk.msra.mxu1 %vm1918_vm0, %v4283_v34  ;;  %v17612_v31 = vpop.permute.xlu0 %4097 }
 0x563   : > { %v17614_v52 = vpop.permute.xlu1 %4095 }
 0x565   : > { %v17616_v58 = vpop.permute.xlu0 %4099 }
 0x567   : > { %v4281_v12 = vpop.permute.xlu1 %4280 }
 0x568   : > { %13614 = vmatprep.subr.msk.mxu1 %vm1918_vm0, %v4281_v12 }
 0x569   : > { %13615 = vmatpush3.xpose.msk.msra.mxu1 %vm1918_vm0, %v4281_v12  ;;  %v4279_v20 = vpop.permute.xlu0 %4278 }
 0x56a   : > { %13616 = vmatprep.subr.msk.mxu1 %vm1918_vm0, %v4279_v20 }
 0x56b   : > { %v17621_v10 = vpop.permute.xlu1 %4101 }
 0x56d   : > { %13617 = vmatpush3.xpose.msk.msra.mxu1 %vm1918_vm0, %v4279_v20  ;;  %v17624_v49 = vpop.permute.xlu0 %4105 }
 0x56f   : > { %v17626_v34 = vpop.permute.xlu1 %4103 }
 0x571   : > { %v4261_v22 = vpop.permute.xlu0 %4260 }
 0x572   : > { %13620 = vmatprep.mubr.msk.f32.mxu1 %vm1918_vm0, %v4261_v22 }
 0x573   : > { %v4277_v40 = vpop.permute.xlu1 %4276 }
 0x574   : > { %13618 = vmatprep.subr.msk.mxu1 %vm1918_vm0, %v4277_v40 }
 0x575   : > { %13619 = vmatpush3.xpose.msk.msra.mxu1 %vm1918_vm0, %v4277_v40  ;;  %v4265_v12 = vpop.permute.xlu0 %4264 }
 0x577   : > { %v4263_v41 = vpop.permute.xlu1 %4262 }
 0x578   : > { %13621 = vmatmul.mubr.msk.f32.vlgmr.msra.gmra.mxu1 %vm1918_vm0, %v4263_v41 }
 0x579   : > { %13623 = vmatprep.mubr.msk.f32.mxu1 %vm1918_vm0, %v4265_v12  ;;  %v4269_v56 = vpop.permute.xlu0 %4268 }
 0x57b   : > { %v4267_v20 = vpop.permute.xlu1 %4266 }
 0x57c   : > { %13624 = vmatmul.mubr.msk.f32.gmra.mxu1 %vm1918_vm0, %v4267_v20 }
 0x57d   : > { %13626 = vmatprep.mubr.msk.f32.mxu1 %vm1918_vm0, %v4269_v56  ;;  %v4273_v43 = vpop.permute.xlu0 %4272 }
 0x57f   : > { %v4271_v38 = vpop.permute.xlu1 %4270 }
 0x580   : > { %13627 = vmatmul.mubr.msk.f32.gmra.mxu1 %vm1918_vm0, %v4271_v38 }
 0x581   : > { %13629 = vmatprep.mubr.msk.f32.mxu1 %vm1918_vm0, %v4273_v43  ;;  %v17637_v22 = vpop.permute.xlu0 %4803 }
 0x583   : > { %v4275_v40 = vpop.permute.xlu1 %4274  ;;  %v13370_v4 = vpop.f32.mrf.mxu0 }
 0x584   : > { %13630 = vmatmul.mubr.msk.f32.gmra.mxu1 %vm1918_vm0, %v4275_v40 }
 0x585   : > { %v17640_v41 = vpop.permute.xlu0 %4799  ;;  %v2974_v12 = vpop.f32.mrf.mxu0 }
 0x586   : > { %13472 = vmatprep.mubr.msk.f32.mxu0 %vm1918_vm0, %v2974_v12 }
 0x587   : > { %v17643_v20 = vpop.permute.xlu1 %4801  ;;  %13473 = vmatmul.mubr.msk.f32.vlgmr.msra.gmra.mxu0 %vm1918_vm0, %v13370_v4 }
 0x588   : > { %v13373_v56 = vpop.f32.mrf.mxu0  ;;  %13577 = vmatpush3.xpose.msk.msra.mxu0 %vm1918_vm0, %v17520_v13 }
 0x589   : > { %v17648_v43 = vpop.permute.xlu0 %4795  ;;  %13578 = vmatprep.subr.msk.mxu0 %vm1918_vm0, %v17538_v17 }
 0x58a   : > { %v2984_v38 = vpop.f32.mrf.mxu0 }
 0x58b   : > { %v17652_v40 = vpop.permute.xlu1 %4797  ;;  %13475 = vmatprep.mubr.msk.f32.mxu0 %vm1918_vm0, %v2984_v38 }
 0x58c   : > { %13476 = vmatmul.mubr.msk.f32.gmra.mxu0 %vm1918_vm0, %v13373_v56 }
 0x58d   : > { %v17656_v12 = vpop.permute.xlu0 %4791  ;;  %v13376_v53 = vpop.f32.mrf.mxu0  ;;  %13579 = vmatpush3.xpose.msk.msra.mxu0 %vm1918_vm0, %v17538_v17 }
 0x58e   : > { %13580 = vmatprep.subr.msk.mxu0 %vm1918_vm0, %v17556_v48 }
 0x58f   : > { %v17662_v4 = vpop.permute.xlu1 %4793  ;;  %v2994_v13 = vpop.f32.mrf.mxu0 }
 0x590   : > { %13478 = vmatprep.mubr.msk.f32.mxu0 %vm1918_vm0, %v2994_v13 }
 0x591   : > { %v17665_v59 = vpop.permute.xlu0 %4964  ;;  %v13379_v7 = vpop.f32.mrf.mxu0  ;;  %13479 = vmatmul.mubr.msk.f32.gmra.mxu0 %vm1918_vm0, %v13376_v53 }
 0x592   : > { %13581 = vmatpush3.xpose.msk.msra.mxu0 %vm1918_vm0, %v17556_v48 }
 0x593   : > { %v17670_v56 = vpop.permute.xlu1 %4789  ;;  %13582 = vmatprep.subr.msk.mxu0 %vm1918_vm0, %v17572_v62  ;;  %v3004_v17 = vpop.f32.mrf.mxu0 }
 0x594   : > { %13481 = vmatprep.mubr.msk.f32.mxu0 %vm1918_vm0, %v3004_v17 }
 0x595   : > { %v17675_v38 = vpop.permute.xlu0 %4960  ;;  %13482 = vmatmul.mubr.msk.f32.gmra.mxu0 %vm1918_vm0, %v13379_v7 }
 0x596   : > { %13583 = vmatpush3.xpose.msk.msra.mxu0 %vm1918_vm0, %v17572_v62 }
 0x597   : > { %v17680_v13 = vpop.permute.xlu1 %4962  ;;  %13584 = vmatprep.subr.msk.mxu0 %vm1918_vm0, %v17575_v57 }
 0x599   : > { %v17684_v53 = vpop.permute.xlu0 %4956 }
 0x59a   : > { %13585 = vmatpush3.xpose.msk.msra.mxu0 %vm1918_vm0, %v17575_v57 }
 0x59b   : > { %v17688_v48 = vpop.permute.xlu1 %4958  ;;  %13586 = vmatprep.subr.msk.mxu0 %vm1918_vm0, %v17585_v42 }
 0x59d   : > { %v17692_v17 = vpop.permute.xlu0 %4952 }
 0x59e   : > { %13587 = vmatpush3.xpose.msk.msra.mxu0 %vm1918_vm0, %v17585_v42 }
 0x59f   : > { %v17696_v7 = vpop.permute.xlu1 %4954  ;;  %13588 = vmatprep.subr.msk.mxu0 %vm1918_vm0, %v17595_v11 }
 0x5a1   : > { %v5126_v62 = vpop.permute.xlu0 %5125 }
 0x5a2   : > { %13688 = vmatprep.subr.mxu1 %v5126_v62  ;;  %13589 = vmatpush3.xpose.msk.msra.mxu0 %vm1918_vm0, %v17595_v11 }
 0x5a3   : > { %v17702_v57 = vpop.permute.xlu1 %4950  ;;  %13689 = vmatpush3.msra.mxu1 %v5126_v62  ;;  %13590 = vmatprep.subr.msk.mxu0 %vm1918_vm0, %v17601_v50  ;;  %v13398_v9 = vpop.f32.mrf.mxu0 }
 0x5a5   : > { %v5122_v63 = vpop.permute.xlu0 %5121  ;;  %v3103_v25 = vpop.f32.mrf.mxu0 }
 0x5a6   : > { %13591 = vmatpush3.xpose.msk.msra.mxu0 %vm1918_vm0, %v17601_v50  ;;  %13484 = vmatprep.mubr.msk.f32.mxu0 %vm1918_vm0, %v3103_v25 }
 0x5a7   : > { %v5124_v42 = vpop.permute.xlu1 %5123  ;;  %13632 = vmatprep.subr.mxu0 %v17637_v22  ;;  %13485 = vmatmul.mubr.msk.f32.gmra.mxu0 %vm1918_vm0, %v13398_v9 }
 0x5a8   : > { %13690 = vmatprep.subr.mxu1 %v5124_v42  ;;  %v13401_v11 = vpop.f32.mrf.mxu0 }
 0x5a9   : > { %13691 = vmatpush3.msra.mxu1 %v5124_v42  ;;  %v5118_v29 = vpop.permute.xlu0 %5117 }
 0x5aa   : > { %13692 = vmatprep.subr.mxu1 %v5122_v63  ;;  %v3113_v62 = vpop.f32.mrf.mxu0 }
 0x5ab   : > { %v5120_v24 = vpop.permute.xlu1 %5119  ;;  %13693 = vmatpush3.msra.mxu1 %v5122_v63  ;;  %13487 = vmatprep.mubr.msk.f32.mxu0 %vm1918_vm0, %v3113_v62 }
 0x5ac   : > { %13694 = vmatprep.subr.mxu1 %v5120_v24  ;;  %13488 = vmatmul.mubr.msk.f32.gmra.mxu0 %vm1918_vm0, %v13401_v11 }
 0x5ad   : > { %13695 = vmatpush3.msra.mxu1 %v5120_v24  ;;  %v13404_v25 = vpop.f32.mrf.mxu0  ;;  %v5114_v9 = vpop.permute.xlu0 %5113 }
 0x5ae   : > { %13696 = vmatprep.subr.mxu1 %v5118_v29 }
 0x5af   : > { %v5116_v50 = vpop.permute.xlu1 %5115  ;;  %13697 = vmatpush3.msra.mxu1 %v5118_v29  ;;  %v3123_v3 = vpop.f32.mrf.mxu0 }
 0x5b0   : > { %13698 = vmatprep.subr.mxu1 %v5116_v50  ;;  %13490 = vmatprep.mubr.msk.f32.mxu0 %vm1918_vm0, %v3123_v3 }
 0x5b1   : > { %13699 = vmatpush3.msra.mxu1 %v5116_v50  ;;  %v13407_v42 = vpop.f32.mrf.mxu0  ;;  %13491 = vmatmul.mubr.msk.f32.gmra.mxu0 %vm1918_vm0, %v13404_v25 }
 0x5b2   : > { %13700 = vmatprep.subr.mxu1 %v5114_v9 }
 0x5b3   : > { %v5112_v63 = vpop.permute.xlu1 %5111  ;;  %13701 = vmatpush3.msra.mxu1 %v5114_v9  ;;  %v3133_v62 = vpop.f32.mrf.mxu0 }
 0x5b4   : > { %13702 = vmatprep.subr.mxu1 %v5112_v63  ;;  %13493 = vmatprep.mubr.msk.f32.mxu0 %vm1918_vm0, %v3133_v62 }
 0x5b5   : > { %13703 = vmatpush3.msra.mxu1 %v5112_v63  ;;  %v13426_v24 = vpop.f32.mrf.mxu0  ;;  %13494 = vmatmul.mubr.msk.f32.gmra.mxu0 %vm1918_vm0, %v13407_v42 }
 0x5b7   : > { %v3232_v29 = vpop.f32.mrf.mxu0 }
 0x5b8   : > { %13496 = vmatprep.mubr.msk.f32.mxu0 %vm1918_vm0, %v3232_v29 }
 0x5b9   : > { %v13429_v3 = vpop.f32.mrf.mxu0  ;;  %13497 = vmatmul.mubr.msk.f32.gmra.mxu0 %vm1918_vm0, %v13426_v24 }
 0x5bb   : > { %v3242_v11 = vpop.f32.mrf.mxu0 }
 0x5bc   : > { %13499 = vmatprep.mubr.msk.f32.mxu0 %vm1918_vm0, %v3242_v11 }
 0x5bd   : > { %v13432_v25 = vpop.f32.mrf.mxu0  ;;  %13500 = vmatmul.mubr.msk.f32.gmra.mxu0 %vm1918_vm0, %v13429_v3 }
 0x5bf   : > { %v3252_v50 = vpop.f32.mrf.mxu0 }
 0x5c0   : > { %13502 = vmatprep.mubr.msk.f32.mxu0 %vm1918_vm0, %v3252_v50 }
 0x5c1   : > { %v13435_v9 = vpop.f32.mrf.mxu0  ;;  %13503 = vmatmul.mubr.msk.f32.gmra.mxu0 %vm1918_vm0, %v13432_v25 }
 0x5c3   : > { %v3262_v63 = vpop.f32.mrf.mxu0 }
 0x5c4   : > { %13505 = vmatprep.mubr.msk.f32.mxu0 %vm1918_vm0, %v3262_v63 }
 0x5c5   : > { %13506 = vmatmul.mubr.msk.f32.gmra.mxu0 %vm1918_vm0, %v13435_v9 }
 0x5c8   : > { %v13454_v42 = vpop.f32.mrf.mxu1 }
 0x5ca   : > { %v3361_v62 = vpop.f32.mrf.mxu1 }
 0x5cb   : > { %13508 = vmatprep.mubr.msk.f32.mxu0 %vm1918_vm0, %v3361_v62 }
 0x5cc   : > { %v13457_v24 = vpop.f32.mrf.mxu1  ;;  %13509 = vmatmul.mubr.msk.f32.gmra.mxu0 %vm1918_vm0, %v13454_v42 }
 0x5ce   : > { %v3371_v29 = vpop.f32.mrf.mxu1 }
 0x5cf   : > { %13511 = vmatprep.mubr.msk.f32.mxu0 %vm1918_vm0, %v3371_v29 }
 0x5d0   : > { %v13460_v3 = vpop.f32.mrf.mxu1  ;;  %13512 = vmatmul.mubr.msk.f32.gmra.mxu0 %vm1918_vm0, %v13457_v24 }
 0x5d2   : > { %v3381_v11 = vpop.f32.mrf.mxu1 }
 0x5d3   : > { %13514 = vmatprep.mubr.msk.f32.mxu0 %vm1918_vm0, %v3381_v11 }
 0x5d4   : > { %v13463_v25 = vpop.f32.mrf.mxu1  ;;  %13515 = vmatmul.mubr.msk.f32.gmra.mxu0 %vm1918_vm0, %v13460_v3 }
 0x5d6   : > { %v3391_v50 = vpop.f32.mrf.mxu1 }
 0x5d7   : > { %13517 = vmatprep.mubr.msk.f32.mxu0 %vm1918_vm0, %v3391_v50 }
 0x5d8   : > { %13518 = vmatmul.mubr.msk.f32.gmra.mxu0 %vm1918_vm0, %v13463_v25 }
 0x5d9   : > { %13592 = vmatprep.mubr.msk.f32.mxu0 %vm1918_vm0, %v17604_v33 }
 0x5dc   : > { %13593 = vmatmul.mubr.msk.f32.vlgmr.msra.gmra.mxu0 %vm1918_vm0, %v17609_v5 }
 0x5dd   : > { %13633 = vmatpush3.msra.mxu0 %v17637_v22  ;;  %13595 = vmatprep.mubr.msk.f32.mxu0 %vm1918_vm0, %v17614_v52 }
 0x5de   : > { %13634 = vmatprep.subr.mxu0 %v17643_v20 }
 0x5df   : > { %13635 = vmatpush3.msra.mxu0 %v17643_v20 }
 0x5e0   : > { %13636 = vmatprep.subr.mxu0 %v17640_v41  ;;  %13596 = vmatmul.mubr.msk.f32.gmra.mxu0 %vm1918_vm0, %v17612_v31 }
 0x5e1   : > { %13637 = vmatpush3.msra.mxu0 %v17640_v41  ;;  %13598 = vmatprep.mubr.msk.f32.mxu0 %vm1918_vm0, %v17616_v58 }
 0x5e2   : > { %13638 = vmatprep.subr.mxu0 %v17652_v40 }
 0x5e3   : > { %13639 = vmatpush3.msra.mxu0 %v17652_v40 }
 0x5e4   : > { %13640 = vmatprep.subr.mxu0 %v17648_v43  ;;  %13599 = vmatmul.mubr.msk.f32.gmra.mxu0 %vm1918_vm0, %v17621_v10 }
 0x5e5   : > { %13641 = vmatpush3.msra.mxu0 %v17648_v43  ;;  %13601 = vmatprep.mubr.msk.f32.mxu0 %vm1918_vm0, %v17626_v34 }
 0x5e6   : > { %13642 = vmatprep.subr.mxu0 %v17662_v4 }
 0x5e7   : > { %13643 = vmatpush3.msra.mxu0 %v17662_v4 }
 0x5e8   : > { %v17758_v52 = vpop.f32.mrf.mxu1  ;;  %13644 = vmatprep.subr.mxu0 %v17656_v12  ;;  %13602 = vmatmul.mubr.msk.f32.gmra.mxu0 %vm1918_vm0, %v17624_v49 }
 0x5e9   : > { %13645 = vmatpush3.msra.mxu0 %v17656_v12  ;;  %v4432_v58 = vsel %vm2531_vm1, %v17758_v52, -inf }
 0x5ea   : > { %4433 = vmax.xlane.f32.xlu1 %v4432_v58  ;;  %v17766_v33 = vpop.f32.mrf.mxu1  ;;  %13646 = vmatprep.subr.mxu0 %v17670_v56 }
 0x5eb   : > { %13647 = vmatpush3.msra.mxu0 %v17670_v56  ;;  %v4429_v5 = vsel %vm2531_vm1, %v17766_v33, -inf }
 0x5ec   : > { %4430 = vmax.xlane.f32.xlu0 %v4429_v5  ;;  %v17772_v31 = vpop.f32.mrf.mxu1  ;;  %13660 = vmatprep.subr.mxu0 %v17665_v59 }
 0x5ed   : > { %v4438_v10 = vsel %vm2531_vm1, %v17772_v31, -inf }
 0x5ee   : > { %v17775_v49 = vpop.f32.mrf.mxu1 }
 0x5ef   : > { %v4435_v41 = vsel %vm2531_vm1, %v17775_v49, -inf }
 0x5f0   : > { %4439 = vmax.xlane.f32.xlu0 %v4438_v10  ;;  %v17779_v34 = vpop.f32.mrf.mxu1 }
 0x5f1   : > { %v4444_v22 = vsel %vm2531_vm1, %v17779_v34, -inf }
 0x5f2   : > { %4445 = vmax.xlane.f32.xlu1 %v4444_v22  ;;  %v17785_v20 = vpop.f32.mrf.mxu1 }
 0x5f3   : > { %v4441_v43 = vsel %vm2531_vm1, %v17785_v20, -inf }
 0x5f4   : > { %4436 = vmax.xlane.f32.xlu0 %v4435_v41 }
 0x5f8   : > { %4442 = vmax.xlane.f32.xlu0 %v4441_v43  ;;  %v17789_v40 = vpop.f32.mrf.mxu1 }
 0x5f9   : > { %v4450_v12 = vsel %vm2531_vm1, %v17789_v40, -inf }
 0x5fa   : > { %4451 = vmax.xlane.f32.xlu1 %v4450_v12  ;;  %v17793_v4 = vpop.f32.mrf.mxu1 }
 0x5fb   : > { %v4447_v56 = vsel %vm2531_vm1, %v17793_v4, -inf }
 0x5fc   : > { %4448 = vmax.xlane.f32.xlu0 %v4447_v56 }
 0x608   : > { %v17797_v9 = vpop.f32.mrf.mxu1 }
 0x609   : > { %v4456_v63 = vsel %vm2531_vm1, %v17797_v9, -inf }
 0x60a   : > { %4457 = vmax.xlane.f32.xlu1 %v4456_v63  ;;  %v17801_v42 = vpop.f32.mrf.mxu1 }
 0x60b   : > { %v4453_v62 = vsel %vm2531_vm1, %v17801_v42, -inf }
 0x60c   : > { %4454 = vmax.xlane.f32.xlu0 %v4453_v62  ;;  %v17805_v24 = vpop.f32.mrf.mxu1 }
 0x60d   : > { %v4462_v29 = vsel %vm2531_vm1, %v17805_v24, -inf }
 0x60e   : > { %4463 = vmax.xlane.f32.xlu1 %v4462_v29  ;;  %v17809_v3 = vpop.f32.mrf.mxu1 }
 0x60f   : > { %v4459_v11 = vsel %vm2531_vm1, %v17809_v3, -inf }
 0x610   : > { %4460 = vmax.xlane.f32.xlu0 %v4459_v11  ;;  %v17813_v25 = vpop.f32.mrf.mxu1 }
 0x611   : > { %v4468_v50 = vsel %vm2531_vm1, %v17813_v25, -inf }
 0x612   : > { %4469 = vmax.xlane.f32.xlu1 %v4468_v50  ;;  %v17817_v58 = vpop.f32.mrf.mxu1 }
 0x613   : > { %v4465_v5 = vsel %vm2531_vm1, %v17817_v58, -inf }
 0x614   : > { %4466 = vmax.xlane.f32.xlu0 %v4465_v5 }
 0x618   : > { %v17821_v10 = vpop.f32.mrf.mxu1 }
 0x619   : > { %v4474_v22 = vsel %vm2531_vm1, %v17821_v10, -inf }
 0x61a   : > { %4475 = vmax.xlane.f32.xlu1 %v4474_v22  ;;  %v17825_v41 = vpop.f32.mrf.mxu1 }
 0x61b   : > { %v4471_v43 = vsel %vm2531_vm1, %v17825_v41, -inf }
 0x61c   : > { %4472 = vmax.xlane.f32.xlu0 %v4471_v43 }
 0x638   : > { %v17829_v12 = vpop.f32.mrf.mxu1 }
 0x639   : > { %v4504_v56 = vsel %vm2531_vm1, %v17829_v12, -inf }
 0x63a   : > { %4505 = vmax.xlane.f32.xlu1 %v4504_v56  ;;  %v17833_v63 = vpop.f32.mrf.mxu1 }
 0x63b   : > { %v4501_v62 = vsel %vm2531_vm1, %v17833_v63, -inf }
 0x63c   : > { %4502 = vmax.xlane.f32.xlu0 %v4501_v62  ;;  %v17837_v29 = vpop.f32.mrf.mxu1 }
 0x63d   : > { %v4510_v11 = vsel %vm2531_vm1, %v17837_v29, -inf }
 0x63e   : > { %4511 = vmax.xlane.f32.xlu1 %v4510_v11  ;;  %v17841_v50 = vpop.f32.mrf.mxu1 }
 0x63f   : > { %v4507_v5 = vsel %vm2531_vm1, %v17841_v50, -inf }
 0x640   : > { %4508 = vmax.xlane.f32.xlu0 %v4507_v5  ;;  %v17845_v22 = vpop.f32.mrf.mxu1 }
 0x641   : > { %v4516_v43 = vsel %vm2531_vm1, %v17845_v22, -inf }
 0x642   : > { %4517 = vmax.xlane.f32.xlu1 %v4516_v43  ;;  %v17849_v56 = vpop.f32.mrf.mxu1 }
 0x643   : > { %v4513_v62 = vsel %vm2531_vm1, %v17849_v56, -inf }
 0x644   : > { %4514 = vmax.xlane.f32.xlu0 %v4513_v62  ;;  %v17853_v2 = vpop.f32.mrf.mxu1 }
 0x645   : > { %v4522_v11 = vsel %vm2531_vm1, %v17853_v2, -inf }
 0x646   : > { %4523 = vmax.xlane.f32.xlu1 %v4522_v11  ;;  %v17857_v30 = vpop.f32.mrf.mxu1  ;;  %v17875_v11 = vpop.permute.xlu1 %5284 }
 0x647   : > { %v4519_v5 = vsel %vm2531_vm1, %v17857_v30, -inf  ;;  %v17861_v45 = vpop.f32.mrf.mxu0 }
 0x648   : > { %4520 = vmax.xlane.f32.xlu0 %v4519_v5  ;;  %21512 = vst [vmem:[#allocation116_spill] sm:$0xff] %v17861_v45 }
 0x649   : > { %v17863_v43 = vpop.f32.mrf.mxu0 }
 0x64a   : > { %21513 = vst [vmem:[#allocation117_spill] sm:$0xff] %v17863_v43  ;;  %v17881_v5 = vpop.permute.xlu1 %5282 }
 0x64c   : > { %v17865_v61 = vpop.f32.mrf.mxu0 }
 0x64d   : > { %21514 = vst [vmem:[#allocation118_spill] sm:$0xff] %v17865_v61 }
 0x64e   : > { %v17867_v1 = vpop.f32.mrf.mxu0 }
 0x64f   : > { %21515 = vst [vmem:[#allocation119_spill] sm:$0xff] %v17867_v1  ;;  %v17889_v1 = vpop.permute.xlu1 %5280 }
 0x651   : > { %v17869_v62 = vpop.f32.mrf.mxu0 }
 0x652   : > { %21516 = vst [vmem:[#allocation120_spill] sm:$0xff] %v17869_v62  ;;  %v17891_v62 = vpop.permute.xlu0 %5286 }
 0x653   : > { %v17871_v55 = vpop.f32.mrf.mxu0 }
 0x654   : > { %21517 = vst [vmem:[#allocation121_spill] sm:$0xff] %v17871_v55 }
 0x655   : > { %v17873_v54 = vpop.f32.mrf.mxu0 }
 0x656   : > { %21518 = vst [vmem:[#allocation122_spill] sm:$0xff] %v17873_v54 }
 0x657   : > { %v17877_v47 = vpop.f32.mrf.mxu0 }
 0x658   : > { %21519 = vst [vmem:[#allocation123_spill] sm:$0xff] %v17877_v47 }
 0x667   : > { %v17879_v60 = vpop.f32.mrf.mxu0 }
 0x668   : > { %21520 = vst [vmem:[#allocation124_spill] sm:$0xff] %v17879_v60 }
 0x669   : > { %v17883_v45 = vpop.f32.mrf.mxu0 }
 0x66a   : > { %21521 = vst [vmem:[#allocation125_spill] sm:$0xff] %v17883_v45 }
 0x66c   : > { %v17885_v43 = vpop.f32.mrf.mxu0 }
 0x66d   : > { %21522 = vst [vmem:[#allocation126_spill] sm:$0xff] %v17885_v43 }
 0x66e   : > { %v17887_v61 = vpop.f32.mrf.mxu0 }
 0x66f   : > { %21523 = vst [vmem:[#allocation127_spill] sm:$0xff] %v17887_v61 }
 0x671   : > { %v17893_v55 = vpop.f32.mrf.mxu0 }
 0x672   : > { %21524 = vst [vmem:[#allocation128_spill] sm:$0xff] %v17893_v55 }
 0x673   : > { %v4434_v54 = vpop.xlane.xlu1 %4433  ;;  %v17895_v21 = vpop.f32.mrf.mxu0 }
 0x674   : > { %21525 = vst [vmem:[#allocation129_spill] sm:$0xff] %v17895_v21  ;;  %v4526_v47 = vsub.f32 %v17758_v52, %v4434_v54 }
 0x675   : > { %v4431_v60 = vpop.xlane.xlu0 %4430  ;;  %v17898_v8 = vpop.f32.mrf.mxu0 }
 0x676   : > { %21526 = vst [vmem:[#allocation130_spill] sm:$0xff] %v17898_v8  ;;  %v4559_v44 = vmul.f32 1.442695, %v4526_v47  ;;  %v4525_v45 = vsub.f32 %v17766_v33, %v4431_v60 }
 0x677   : > { %v17901_v43 = vpop.f32.mrf.mxu0 }
 0x678   : > { %21527 = vst [vmem:[#allocation131_spill] sm:$0xff] %v17901_v43  ;;  %14669 = vpow2.f32 %v4559_v44  ;;  %v4557_v61 = vmul.f32 1.442695, %v4525_v45 }
 0x679   : > { %v4440_v0 = vpop.xlane.xlu0 %4439  ;;  %v17903_v36 = vpop.f32.mrf.mxu0 }
 0x67a   : > { %21528 = vst [vmem:[#allocation132_spill] sm:$0xff] %v17903_v36  ;;  %14671 = vpow2.f32 %v4557_v61  ;;  %v4528_v55 = vsub.f32 %v17772_v31, %v4440_v0 }
 0x67b   : > { %v4446_v19 = vpop.xlane.xlu1 %4445  ;;  %v17906_v21 = vpop.f32.mrf.mxu0 }
 0x67c   : > { %21529 = vst [vmem:[#allocation133_spill] sm:$0xff] %v17906_v21  ;;  %v4563_v54 = vmul.f32 1.442695, %v4528_v55  ;;  %v4530_v52 = vsub.f32 %v17779_v34, %v4446_v19 }
 0x67d   : > { %v4437_v8 = vpop.xlane.xlu0 %4436  ;;  %v17909_v47 = vpop.f32.mrf.mxu0 }
 0x67e   : > { %21530 = vst [vmem:[#allocation134_spill] sm:$0xff] %v17909_v47  ;;  %14673 = vpow2.f32 %v4563_v54  ;;  %v4567_v60 = vmul.f32 1.442695, %v4530_v52  ;;  %v4527_v44 = vsub.f32 %v17775_v49, %v4437_v8 }
 0x67f   : > { %v17912_v45 = vpop.f32.mrf.mxu0 }
 0x680   : > { %21531 = vst [vmem:[#allocation135_spill] sm:$0xff] %v17912_v45  ;;  %14675 = vpow2.f32 %v4567_v60  ;;  %v4561_v33 = vmul.f32 1.442695, %v4527_v44 }
 0x681   : > { %v4443_v61 = vpop.xlane.xlu0 %4442  ;;  %v17914_v43 = vpop.f32.mrf.mxu0 }
 0x682   : > { %21532 = vst [vmem:[#allocation136_spill] sm:$0xff] %v17914_v43  ;;  %14677 = vpow2.f32 %v4561_v33  ;;  %v4529_v0 = vsub.f32 %v17785_v20, %v4443_v61 }
 0x683   : > { %v4452_v55 = vpop.xlane.xlu1 %4451  ;;  %v17917_v31 = vpop.f32.mrf.mxu0 }
 0x684   : > { %21533 = vst [vmem:[#allocation137_spill] sm:$0xff] %v17917_v31  ;;  %v4565_v19 = vmul.f32 1.442695, %v4529_v0  ;;  %v4532_v34 = vsub.f32 %v17789_v40, %v4452_v55 }
 0x685   : > { %v17920_v54 = vpop.eup %14669  ;;  %v4449_v52 = vpop.xlane.xlu0 %4448 }
 0x686   : > { %v17922_v8 = vpop.f32.mrf.mxu0  ;;  %14679 = vpow2.f32 %v4565_v19  ;;  %v4571_v49 = vmul.f32 1.442695, %v4532_v34  ;;  %v4624_v60 = vsel %vm2531_vm1, %v17920_v54, 0.0  ;;  %v4531_v44 = vsub.f32 %v17793_v4, %v4449_v52 }
 0x687   : > { %21534 = vst [vmem:[#allocation138_spill] sm:$0xff] %v17922_v8  ;;  %v17927_v33 = vpop.eup %14671  ;;  %4625 = vadd.xlane.f32.xlu1 %v4624_v60 }
 0x688   : > { %14681 = vpow2.f32 %v4571_v49  ;;  %v4569_v20 = vmul.f32 1.442695, %v4531_v44  ;;  %v4621_v40 = vsel %vm2531_vm1, %v17927_v33, 0.0  ;;  %v17931_v61 = vpop.f32.mrf.mxu0 }
 0x689   : > { %21535 = vst [vmem:[#allocation139_spill] sm:$0xff] %v17931_v61  ;;  %4622 = vadd.xlane.f32.xlu0 %v4621_v40 }
 0x68a   : > { %14683 = vpow2.f32 %v4569_v20 }
 0x68b   : > { %v17933_v0 = vpop.eup %14673 }
 0x68c   : > { %v17935_v55 = vpop.f32.mrf.mxu0  ;;  %v4630_v19 = vsel %vm2531_vm1, %v17933_v0, 0.0 }
 0x68d   : > { %21536 = vst [vmem:[#allocation140_spill] sm:$0xff] %v17935_v55  ;;  %v17939_v4 = vpop.eup %14675  ;;  %4631 = vadd.xlane.f32.xlu1 %v4630_v19 }
 0x68e   : > { %v17941_v34 = vpop.f32.mrf.mxu0  ;;  %v4636_v52 = vsel %vm2531_vm1, %v17939_v4, 0.0 }
 0x68f   : > { %21537 = vst [vmem:[#allocation141_spill] sm:$0xff] %v17941_v34  ;;  %v17945_v49 = vpop.eup %14677 }
 0x690   : > { %v17947_v60 = vpop.f32.mrf.mxu0  ;;  %v4627_v44 = vsel %vm2531_vm1, %v17945_v49, 0.0 }
 0x691   : > { %21538 = vst [vmem:[#allocation142_spill] sm:$0xff] %v17947_v60  ;;  %4637 = vadd.xlane.f32.xlu1 %v4636_v52  ;;  %4628 = vadd.xlane.f32.xlu0 %v4627_v44 }
 0x692   : > { %v17951_v20 = vpop.f32.mrf.mxu0 }
 0x693   : > { %21539 = vst [vmem:[#allocation143_spill] sm:$0xff] %v17951_v20  ;;  %v17953_v40 = vpop.eup %14679  ;;  %v4458_v61 = vpop.xlane.xlu1 %4457 }
 0x694   : > { %v4534_v19 = vsub.f32 %v17797_v9, %v4458_v61  ;;  %v17956_v34 = vpop.f32.mrf.mxu0  ;;  %v4633_v31 = vsel %vm2531_vm1, %v17953_v40, 0.0 }
 0x695   : > { %21540 = vst [vmem:[#allocation144_spill] sm:$0xff] %v17956_v34  ;;  %v17960_v45 = vpop.eup %14681  ;;  %4634 = vadd.xlane.f32.xlu0 %v4633_v31  ;;  %v4455_v21 = vpop.xlane.xlu0 %4454 }
 0x696   : > { %v4575_v60 = vmul.f32 1.442695, %v4534_v19  ;;  %v4533_v52 = vsub.f32 %v17801_v42, %v4455_v21  ;;  %v17963_v44 = vpop.f32.mrf.mxu0  ;;  %v4642_v20 = vsel %vm2531_vm1, %v17960_v45, 0.0 }
 0x697   : > { %21541 = vst [vmem:[#allocation145_spill] sm:$0xff] %v17963_v44  ;;  %v17967_v55 = vpop.eup %14683  ;;  %v4464_v9 = vpop.xlane.xlu1 %4463  ;;  %4643 = vadd.xlane.f32.xlu1 %v4642_v20 }
 0x698   : > { %14685 = vpow2.f32 %v4575_v60  ;;  %v4573_v61 = vmul.f32 1.442695, %v4533_v52  ;;  %v4536_v34 = vsub.f32 %v17805_v24, %v4464_v9  ;;  %v17970_v8 = vpop.f32.mrf.mxu0  ;;  %v4639_v31 = vsel %vm2531_vm1, %v17967_v55, 0.0 }
 0x699   : > { %21542 = vst [vmem:[#allocation146_spill] sm:$0xff] %v17970_v8  ;;  %4640 = vadd.xlane.f32.xlu0 %v4639_v31  ;;  %v4461_v37 = vpop.xlane.xlu0 %4460 }
 0x69a   : > { %14687 = vpow2.f32 %v4573_v61  ;;  %v17974_v21 = vpop.f32.mrf.mxu0  ;;  %v4579_v42 = vmul.f32 1.442695, %v4536_v34  ;;  %v4535_v6 = vsub.f32 %v17809_v3, %v4461_v37 }
 0x69b   : > { %21543 = vst [vmem:[#allocation147_spill] sm:$0xff] %v17974_v21 }
 0x69c   : > { %v17976_v19 = vpop.f32.mrf.mxu0  ;;  %14689 = vpow2.f32 %v4579_v42  ;;  %v4577_v18 = vmul.f32 1.442695, %v4535_v6 }
 0x69d   : > { %v4480_v44 = vsel %vm2531_vm1, %v17976_v19, -inf  ;;  %v4467_v28 = vpop.xlane.xlu0 %4466 }
 0x69e   : > { %v17980_v20 = vpop.f32.mrf.mxu0  ;;  %4481 = vmax.xlane.f32.xlu1 %v4480_v44  ;;  %14691 = vpow2.f32 %v4577_v18 }
 0x69f   : > { %v4477_v24 = vsel %vm2531_vm1, %v17980_v20, -inf }
 0x6a0   : > { %v17984_v60 = vpop.f32.mrf.mxu0  ;;  %4478 = vmax.xlane.f32.xlu0 %v4477_v24 }
 0x6a1   : > { %v4486_v52 = vsel %vm2531_vm1, %v17984_v60, -inf }
 0x6a2   : > { %v17988_v9 = vpop.f32.mrf.mxu0  ;;  %4487 = vmax.xlane.f32.xlu1 %v4486_v52 }
 0x6a3   : > { %v4483_v34 = vsel %vm2531_vm1, %v17988_v9, -inf }
 0x6a4   : > { %v17992_v61 = vpop.f32.mrf.mxu0  ;;  %4484 = vmax.xlane.f32.xlu0 %v4483_v34 }
 0x6a5   : > { %v17994_v44 = vpop.eup %14685  ;;  %v4492_v31 = vsel %vm2531_vm1, %v17992_v61, -inf  ;;  %v4473_v15 = vpop.xlane.xlu0 %4472 }
 0x6a6   : > { %v17998_v42 = vpop.f32.mrf.mxu0  ;;  %4493 = vmax.xlane.f32.xlu1 %v4492_v31  ;;  %v4648_v21 = vsel %vm2531_vm1, %v17994_v44, 0.0 }
 0x6a7   : > { %v18000_v24 = vpop.eup %14687  ;;  %v4489_v34 = vsel %vm2531_vm1, %v17998_v42, -inf }
 0x6a8   : > { %4649 = vadd.xlane.f32.xlu0 %v4648_v21  ;;  %v4645_v52 = vsel %vm2531_vm1, %v18000_v24, 0.0  ;;  %v18006_v8 = vpop.f32.mrf.mxu0 }
 0x6a9   : > { %v18010_v43 = vpop.eup %14689  ;;  %v4498_v31 = vsel %vm2531_vm1, %v18006_v8, -inf }
 0x6aa   : > { %4646 = vadd.xlane.f32.xlu1 %v4645_v52  ;;  %21544 = vst [vmem:[#allocation148_spill] sm:$0xff] %v18010_v43  ;;  %v4654_v47 = vsel %vm2531_vm1, %v18010_v43, 0.0  ;;  %v18016_v21 = vpop.f32.mrf.mxu0  ;;  %v21545_v52 = vld [vmem:[#allocation113_spill] sm:$0xff] }
 0x6ab   : > { %v4495_v36 = vsel %vm2531_vm1, %v18016_v21, -inf }
 0x6ac   : > { %4490 = vmax.xlane.f32.xlu0 %v4489_v34  ;;  %v4470_v34 = vpop.xlane.xlu1 %4469 }
 0x6ae   : > { %4499 = vmax.xlane.f32.xlu1 %v4498_v31  ;;  %v21546_v31 = vld [vmem:[#allocation112_spill] sm:$0xff] }
 0x6b0   : > { %4655 = vadd.xlane.f32.xlu0 %v4654_v47  ;;  %v4476_v43 = vpop.xlane.xlu1 %4475  ;;  %v4537_v47 = vsub.f32 %v17817_v58, %v4467_v28 }
 0x6b1   : > { %v4540_v46 = vsub.f32 %v17821_v10, %v4476_v43  ;;  %v18034_v43 = vpop.eup %14691 }
 0x6b2   : > { %v4581_v32 = vmul.f32 1.442695, %v4537_v47 }
 0x6b3   : > { %v4587_v6 = vmul.f32 1.442695, %v4540_v46 }
 0x6b4   : > { %4496 = vmax.xlane.f32.xlu0 %v4495_v36  ;;  %v4538_v36 = vsub.f32 %v17813_v25, %v4470_v34  ;;  %14693 = vpow2.f32 %v4581_v32 }
 0x6b6   : > { %v4583_v51 = vmul.f32 1.442695, %v4538_v36 }
 0x6b8   : > { %14695 = vpow2.f32 %v4583_v51 }
 0x6bf   : > { %5276 = vrot.lane.b32.xlu1 %v21545_v52, %s15426_s17  ;;  %v4539_v52 = vsub.f32 %v17825_v41, %v4473_v15 }
 0x6c1   : > { %v4585_v3 = vmul.f32 1.442695, %v4539_v52 }
 0x6c3   : > { %v4506_v27 = vpop.xlane.xlu1 %4505  ;;  %14697 = vpow2.f32 %v4585_v3 }
 0x6c4   : > { %v4550_v28 = vsub.f32 %v17829_v12, %v4506_v27  ;;  %14699 = vpow2.f32 %v4587_v6 }
 0x6c5   : > { %v4503_v26 = vpop.xlane.xlu0 %4502 }
 0x6c6   : > { %v4607_v15 = vmul.f32 1.442695, %v4550_v28 }
 0x6c7   : > { %v4512_v37 = vpop.xlane.xlu1 %4511 }
 0x6c8   : > { %v4552_v41 = vsub.f32 %v17837_v29, %v4512_v37  ;;  %v18040_v29 = vpop.eup %14693 }
 0x6c9   : > { %v4509_v16 = vpop.xlane.xlu0 %4508  ;;  %v18043_v52 = vpop.eup %14695 }
 0x6ca   : > { %5278 = vrot.lane.b32.xlu0 %v21546_v31, %s15426_s17  ;;  %v4549_v31 = vsub.f32 %v17833_v63, %v4503_v26  ;;  %v4551_v18 = vsub.f32 %v17841_v50, %v4509_v16  ;;  %v4611_v46 = vmul.f32 1.442695, %v4552_v41  ;;  %v4651_v63 = vsel %vm2531_vm1, %v18034_v43, 0.0 }
 0x6cb   : > { %v4518_v34 = vpop.xlane.xlu1 %4517  ;;  %v4660_v36 = vsel %vm2531_vm1, %v18043_v52, 0.0 }
 0x6cc   : > { %v4605_v25 = vmul.f32 1.442695, %v4549_v31  ;;  %v4609_v10 = vmul.f32 1.442695, %v4551_v18  ;;  %v4554_v27 = vsub.f32 %v17845_v22, %v4518_v34  ;;  %v4657_v22 = vsel %vm2531_vm1, %v18040_v29, 0.0 }
 0x6cd   : > { %v4515_v58 = vpop.xlane.xlu0 %4514 }
 0x6ce   : > { %14701 = vpow2.f32 %v4605_v25  ;;  %v4553_v32 = vsub.f32 %v17849_v56, %v4515_v58  ;;  %v4615_v50 = vmul.f32 1.442695, %v4554_v27 }
 0x6cf   : > { %14703 = vpow2.f32 %v4607_v15  ;;  %v4524_v26 = vpop.xlane.xlu1 %4523 }
 0x6d0   : > { %14705 = vpow2.f32 %v4609_v10  ;;  %v4613_v12 = vmul.f32 1.442695, %v4553_v32  ;;  %v4556_v56 = vsub.f32 %v17853_v2, %v4524_v26  ;;  %v18047_v47 = vpop.eup %14697 }
 0x6d1   : > { %v4521_v51 = vpop.xlane.xlu0 %4520  ;;  %14707 = vpow2.f32 %v4611_v46  ;;  %v18051_v37 = vpop.eup %14699  ;;  %v4663_v2 = vsel %vm2531_vm1, %v18047_v47, 0.0 }
 0x6d2   : > { %v4555_v16 = vsub.f32 %v17857_v30, %v4521_v51  ;;  %14709 = vpow2.f32 %v4613_v12  ;;  %v4619_v30 = vmul.f32 1.442695, %v4556_v56  ;;  %v4666_v6 = vsel %vm2531_vm1, %v18051_v37, 0.0 }
 0x6d3   : > { %14711 = vpow2.f32 %v4615_v50 }
 0x6d4   : > { %v4617_v31 = vmul.f32 1.442695, %v4555_v16 }
 0x6d6   : > { %14713 = vpow2.f32 %v4617_v31 }
 0x6d7   : > { %14715 = vpow2.f32 %v4619_v30 }
 0x6db   : > { %v18055_v3 = vpop.eup %14701 }
 0x6dc   : > { %v18059_v28 = vpop.eup %14703  ;;  %v4693_v58 = vsel %vm2531_vm1, %v18055_v3, 0.0 }
 0x6dd   : > { %v18063_v25 = vpop.eup %14705  ;;  %v4696_v18 = vsel %vm2531_vm1, %v18059_v28, 0.0 }
 0x6de   : > { %v18067_v34 = vpop.eup %14707  ;;  %v4699_v15 = vsel %vm2531_vm1, %v18063_v25, 0.0 }
 0x6df   : > { %v18071_v41 = vpop.eup %14709  ;;  %v4702_v10 = vsel %vm2531_vm1, %v18067_v34, 0.0 }
 0x6e0   : > { %v18075_v32 = vpop.eup %14711  ;;  %v4705_v51 = vsel %vm2531_vm1, %v18071_v41, 0.0 }
 0x6e1   : > { %v4708_v27 = vsel %vm2531_vm1, %v18075_v32, 0.0 }
 0x6e3   : > { %4652 = vadd.xlane.f32.xlu1 %v4651_v63  ;;  %v18079_v46 = vpop.eup %14713 }
 0x6e4   : > { %v18083_v26 = vpop.eup %14715  ;;  %v4711_v12 = vsel %vm2531_vm1, %v18079_v46, 0.0 }
 0x6e5   : > { %v4714_v16 = vsel %vm2531_vm1, %v18083_v26, 0.0 }
 0x6e7   : > { %4658 = vadd.xlane.f32.xlu1 %v4657_v22 }
 0x6e9   : > { %4661 = vadd.xlane.f32.xlu0 %v4660_v36 }
 0x6eb   : > { %4664 = vadd.xlane.f32.xlu1 %v4663_v2 }
 0x6ed   : > { %4667 = vadd.xlane.f32.xlu0 %v4666_v6 }
 0x6ef   : > { %4694 = vadd.xlane.f32.xlu1 %v4693_v58 }
 0x6f1   : > { %4697 = vadd.xlane.f32.xlu0 %v4696_v18 }
 0x6f3   : > { %4700 = vadd.xlane.f32.xlu1 %v4699_v15 }
 0x6f5   : > { %4703 = vadd.xlane.f32.xlu0 %v4702_v10 }
 0x6f7   : > { %4706 = vadd.xlane.f32.xlu1 %v4705_v51 }
 0x6f9   : > { %4709 = vadd.xlane.f32.xlu0 %v4708_v27 }
 0x6fb   : > { %4712 = vadd.xlane.f32.xlu1 %v4711_v12 }
 0x6fd   : > { %4715 = vadd.xlane.f32.xlu0 %v4714_v16 }
 0x710   : > { %v4626_v63 = vpop.xlane.xlu1 %4625 }
 0x711   : > { %14717 = vrcp.f32 %v4626_v63 }
 0x712   : > { %v4623_v50 = vpop.xlane.xlu0 %4622 }
 0x713   : > { %14719 = vrcp.f32 %v4623_v50 }
 0x716   : > { %v4632_v56 = vpop.xlane.xlu1 %4631 }
 0x717   : > { %14721 = vrcp.f32 %v4632_v56 }
 0x71a   : > { %v4629_v31 = vpop.xlane.xlu0 %4628  ;;  %v4638_v22 = vpop.xlane.xlu1 %4637 }
 0x71b   : > { %14723 = vrcp.f32 %v4629_v31 }
 0x71c   : > { %14725 = vrcp.f32 %v4638_v22 }
 0x71e   : > { %v4635_v30 = vpop.xlane.xlu0 %4634  ;;  %v14718_v36 = vpop.eup %14717 }
 0x71f   : > { %14727 = vrcp.f32 %v4635_v30  ;;  %v4750_v18 = vmul.f32 %v14718_v36, %v17920_v54 }
 0x720   : > { %v14720_v2 = vpop.eup %14719  ;;  %v4644_v6 = vpop.xlane.xlu1 %4643 }
 0x721   : > { %v4749_v58 = vmul.f32 %v14720_v2, %v17927_v33  ;;  %14729 = vrcp.f32 %v4644_v6 }
 0x722   : > { %v4641_v15 = vpop.xlane.xlu0 %4640 }
 0x723   : > { %13648 = vmatprep.mubr.msk.f32.mxu0 %vm2531_vm1, %v4749_v58  ;;  %14731 = vrcp.f32 %v4641_v15 }
 0x724   : > { %13649 = vmatmul.mubr.msk.f32.vlgmr.msra.gmra.mxu0 %vm2531_vm1, %v4750_v18  ;;  %v14722_v51 = vpop.eup %14721 }
 0x725   : > { %13661 = vmatpush3.msra.mxu0 %v17665_v59  ;;  %v4752_v50 = vmul.f32 %v14722_v51, %v17933_v0 }
 0x726   : > { %13662 = vmatprep.subr.mxu0 %v17680_v13 }
 0x727   : > { %13663 = vmatpush3.msra.mxu0 %v17680_v13  ;;  %v4482_v10 = vpop.xlane.xlu1 %4481 }
 0x728   : > { %13664 = vmatprep.subr.mxu0 %v17675_v38  ;;  %v4542_v33 = vsub.f32 %v17976_v19, %v4482_v10  ;;  %v14724_v54 = vpop.eup %14723 }
 0x729   : > { %13665 = vmatpush3.msra.mxu0 %v17675_v38  ;;  %v4479_v27 = vpop.xlane.xlu0 %4478  ;;  %v4751_v59 = vmul.f32 %v14724_v54, %v17945_v49  ;;  %v14726_v63 = vpop.eup %14725 }
 0x72a   : > { %v4591_v12 = vmul.f32 1.442695, %v4542_v33  ;;  %13666 = vmatprep.subr.mxu0 %v17688_v48  ;;  %v4541_v16 = vsub.f32 %v17980_v20, %v4479_v27  ;;  %v4754_v30 = vmul.f32 %v14726_v63, %v17939_v4 }
 0x72b   : > { %13667 = vmatpush3.msra.mxu0 %v17688_v48  ;;  %v4488_v13 = vpop.xlane.xlu1 %4487  ;;  %13651 = vmatprep.mubr.msk.f32.mxu0 %vm2531_vm1, %v4751_v59 }
 0x72c   : > { %v14728_v56 = vpop.eup %14727  ;;  %14733 = vpow2.f32 %v4591_v12  ;;  %v4589_v19 = vmul.f32 1.442695, %v4541_v16  ;;  %13668 = vmatprep.subr.mxu0 %v17684_v53  ;;  %v4544_v38 = vsub.f32 %v17984_v60, %v4488_v13  ;;  %13652 = vmatmul.mubr.msk.f32.gmra.mxu0 %vm2531_vm1, %v4752_v50 }
 0x72d   : > { %v4485_v20 = vpop.xlane.xlu0 %4484  ;;  %v4753_v49 = vmul.f32 %v14728_v56, %v17953_v40  ;;  %13669 = vmatpush3.msra.mxu0 %v17684_v53 }
 0x72e   : > { %14735 = vpow2.f32 %v4589_v19  ;;  %v4595_v31 = vmul.f32 1.442695, %v4544_v38  ;;  %v4543_v48 = vsub.f32 %v17988_v9, %v4485_v20  ;;  %v14730_v0 = vpop.eup %14729  ;;  %13670 = vmatprep.subr.mxu0 %v17696_v7 }
 0x72f   : > { %13654 = vmatprep.mubr.msk.f32.mxu0 %vm2531_vm1, %v4753_v49  ;;  %v4494_v22 = vpop.xlane.xlu1 %4493  ;;  %13671 = vmatpush3.msra.mxu0 %v17696_v7  ;;  %v4756_v7 = vmul.f32 %v14730_v0, %v17960_v45  ;;  %v21549_v0 = vld [vmem:[#allocation25_spill] sm:$0xff] }
 0x730   : > { %v14732_v60 = vpop.eup %14731  ;;  %14737 = vpow2.f32 %v4595_v31  ;;  %v4593_v36 = vmul.f32 1.442695, %v4543_v48  ;;  %v4546_v40 = vsub.f32 %v17992_v61, %v4494_v22  ;;  %13672 = vmatprep.subr.mxu0 %v17692_v17  ;;  %13655 = vmatmul.mubr.msk.f32.gmra.mxu0 %vm2531_vm1, %v4754_v30  ;;  %v21547_v31 = vld [vmem:[#allocation114_spill] sm:$0xff] }
 0x731   : > { %v4650_v53 = vpop.xlane.xlu0 %4649  ;;  %v4755_v9 = vmul.f32 %v14732_v60, %v17967_v55  ;;  %13673 = vmatpush3.msra.mxu0 %v17692_v17  ;;  %v21550_v22 = vld [vmem:[#allocation26_spill] sm:$0xff]  ;;  %v21551_v60 = vld [vmem:[#allocation27_spill] sm:$0xff] }
 0x732   : > { %14739 = vpow2.f32 %v4593_v36  ;;  %v4599_v2 = vmul.f32 1.442695, %v4546_v40  ;;  %13674 = vmatprep.subr.mxu0 %v17702_v57  ;;  %v21552_v36 = vld [vmem:[#allocation29_spill] sm:$0xff] }
 0x733   : > { %14741 = vrcp.f32 %v4650_v53  ;;  %v4647_v4 = vpop.xlane.xlu1 %4646  ;;  %13657 = vmatprep.mubr.msk.f32.mxu0 %vm2531_vm1, %v4755_v9  ;;  %13675 = vmatpush3.msra.mxu0 %v17702_v57  ;;  %v21553_v9 = vld [vmem:[#allocation24_spill] sm:$0xff] }
 0x734   : > { %14743 = vpow2.f32 %v4599_v2  ;;  %13716 = vmatprep.subr.mxu0 %v17891_v62  ;;  %13658 = vmatmul.mubr.msk.f32.gmra.mxu0 %vm2531_vm1, %v4756_v7  ;;  %v21554_v2 = vld [vmem:[#allocation30_spill] sm:$0xff] }
 0x735   : > { %14745 = vrcp.f32 %v4647_v4  ;;  %v4491_v55 = vpop.xlane.xlu0 %4490 }
 0x736   : > { %v4545_v61 = vsub.f32 %v17998_v42, %v4491_v55 }
 0x737   : > { %v4500_v17 = vpop.xlane.xlu1 %4499 }
 0x738   : > { %v4597_v6 = vmul.f32 1.442695, %v4545_v61  ;;  %v4548_v58 = vsub.f32 %v18006_v8, %v4500_v17  ;;  %v21555_v61 = vld [vmem:[#allocation31_spill] sm:$0xff] }
 0x739   : > { %v18128_v18 = vpop.eup %14733  ;;  %v4656_v15 = vpop.xlane.xlu0 %4655 }
 0x73a   : > { %14747 = vpow2.f32 %v4597_v6  ;;  %v4603_v45 = vmul.f32 1.442695, %v4548_v58  ;;  %v4672_v57 = vsel %vm2531_vm1, %v18128_v18, 0.0  ;;  %v21556_v6 = vld [vmem:[#allocation34_spill] sm:$0xff] }
 0x73b   : > { %v18132_v10 = vpop.eup %14735  ;;  %4673 = vadd.xlane.f32.xlu0 %v4672_v57  ;;  %v5277_v49 = vpop.permute.xlu1 %5276  ;;  %v21558_v57 = vld [vmem:[#allocation39_spill] sm:$0xff] }
 0x73c   : > { %14749 = vpow2.f32 %v4603_v45  ;;  %v4669_v51 = vsel %vm2531_vm1, %v18132_v10, 0.0 }
 0x73d   : > { %v18136_v42 = vpop.eup %14737  ;;  %4670 = vadd.xlane.f32.xlu1 %v4669_v51  ;;  %v4497_v33 = vpop.xlane.xlu0 %4496 }
 0x73e   : > { %v4547_v8 = vsub.f32 %v18016_v21, %v4497_v33  ;;  %v4678_v54 = vsel %vm2531_vm1, %v18136_v42, 0.0  ;;  %v21559_v33 = vld [vmem:[#allocation44_spill] sm:$0xff] }
 0x73f   : > { %v18141_v27 = vpop.eup %14739  ;;  %4679 = vadd.xlane.f32.xlu0 %v4678_v54 }
 0x740   : > { %v14742_v12 = vpop.eup %14741  ;;  %v4601_v16 = vmul.f32 1.442695, %v4547_v8  ;;  %v4675_v59 = vsel %vm2531_vm1, %v18141_v27, 0.0 }
 0x741   : > { %v18145_v63 = vpop.eup %14743  ;;  %4676 = vadd.xlane.f32.xlu1 %v4675_v59  ;;  %v4758_v56 = vmul.f32 %v14742_v12, %v17994_v44  ;;  %v21560_v12 = vld [vmem:[#allocation49_spill] sm:$0xff]  ;;  %v21561_v59 = vld [vmem:[#allocation32_spill] sm:$0xff] }
 0x742   : > { %v14746_v13 = vpop.eup %14745  ;;  %14751 = vpow2.f32 %v4601_v16  ;;  %v4684_v50 = vsel %vm2531_vm1, %v18145_v63, 0.0 }
 0x743   : > { %4685 = vadd.xlane.f32.xlu0 %v4684_v50  ;;  %v4757_v21 = vmul.f32 %v14746_v13, %v18000_v24  ;;  %14753 = vrcp.f32 %v4656_v15  ;;  %v21557_v15 = vld [vmem:[#allocation148_spill] sm:$0xff] }
 0x745   : > { %13676 = vmatprep.mubr.msk.f32.mxu0 %vm2531_vm1, %v4757_v21  ;;  %v21562_v21 = vld [vmem:[#allocation33_spill] sm:$0xff] }
 0x746   : > { %13677 = vmatmul.mubr.msk.f32.vlgmr.msra.gmra.mxu0 %vm2531_vm1, %v4758_v56 }
 0x747   : > { %v18153_v19 = vpop.eup %14747  ;;  %13717 = vmatpush3.msra.mxu0 %v17891_v62  ;;  %v5279_v62 = vpop.permute.xlu0 %5278 }
 0x748   : > { %13718 = vmatprep.subr.mxu0 %v17875_v11  ;;  %v4681_v38 = vsel %vm2531_vm1, %v18153_v19, 0.0 }
 0x749   : > { %v18159_v20 = vpop.eup %14749  ;;  %13719 = vmatpush3.msra.mxu0 %v17875_v11  ;;  %4682 = vadd.xlane.f32.xlu1 %v4681_v38  ;;  %v21563_v38 = vld [vmem:[#allocation36_spill] sm:$0xff] }
 0x74a   : > { %13720 = vmatprep.subr.mxu0 %v17881_v5  ;;  %v4690_v44 = vsel %vm2531_vm1, %v18159_v20, 0.0 }
 0x74b   : > { %13721 = vmatpush3.msra.mxu0 %v17881_v5  ;;  %4691 = vadd.xlane.f32.xlu0 %v4690_v44  ;;  %v21548_v5 = vld [vmem:[#allocation115_spill] sm:$0xff]  ;;  %v21564_v44 = vld [vmem:[#allocation52_spill] sm:$0xff] }
 0x74c   : > { %13722 = vmatprep.subr.mxu0 %v17889_v1 }
 0x74d   : > { %13723 = vmatpush3.msra.mxu0 %v17889_v1  ;;  %v18180_v1 = vld [vmem:[#allocation10 + $0x38] sm:$0xff] }
 0x74e   : > { %13724 = vmatprep.subr.mxu0 %v5279_v62  ;;  %13744 = vmatprep.subr.mxu1 %v18180_v1 }
 0x74f   : > { %v18168_v24 = vpop.eup %14751  ;;  %13725 = vmatpush3.msra.mxu0 %v5279_v62  ;;  %v21566_v62 = vld [vmem:[#allocation38_spill] sm:$0xff] }
 0x750   : > { %13726 = vmatprep.subr.mxu0 %v5277_v49  ;;  %v4687_v11 = vsel %vm2531_vm1, %v18168_v24, 0.0  ;;  %v14754_v55 = vpop.eup %14753 }
 0x751   : > { %13727 = vmatpush3.msra.mxu0 %v5277_v49  ;;  %4688 = vadd.xlane.f32.xlu1 %v4687_v11  ;;  %v4760_v45 = vmul.f32 %v14754_v55, %v21557_v15  ;;  %v21568_v49 = vld [vmem:[#allocation54_spill] sm:$0xff]  ;;  %v21569_v11 = vld [vmem:[#allocation40_spill] sm:$0xff]  ;;  %v21580_v15 = vld [vmem:[#allocation53_spill] sm:$0xff] }
 0x752   : > { %v21577_v55 = vld [vmem:[#allocation58_spill] sm:$0xff] }
 0x761   : > { %5274 = vrot.lane.b32.xlu0 %v21547_v31, %s15426_s17 }
 0x762   : > { %5272 = vrot.lane.b32.xlu1 %v21548_v5, %s15426_s17  ;;  %s15341_s17 = sshll.u32 %s15430_s20, 4  ;;  %s15342_s17 = int_to_ptr.vmem [resolvable:$false] %s15341_s17 }
 0x763   : > { %s15343_s5 = scalar_lea.vmem %s15342_s17, 8192  ;;  %p15344_p13 = scmp.lt.s32.totalorder %s21013_s23, %s15342_s17 }
 0x764   : > { %p15345_p5 = scmp.lt.s32.totalorder %s15343_s5, %s15337_s0 }
 0x765   : > { %5808 = vrot.lane.b32.xlu0 %v16303_v23, %s15427_s13 }
 0x766   : > { %5806 = vrot.lane.b32.xlu1 %v16308_v14, %s15427_s13  ;;  %p15346_p1 = por %p15345_p5, %p15344_p13 }
 0x768   : > { %p15347_p3 = pnand %p15346_p1, %p15340_p11 }
 0x769   : > { %5804 = vrot.lane.b32.xlu0 %v16325_v35, %s15427_s13 }
 0x76a   : > { %5802 = vrot.lane.b32.xlu1 %v16340_v39, %s15427_s13 }
 0x76c   : > { %v4653_v48 = vpop.xlane.xlu1 %4652 }
 0x76d   : > { %14755 = vrcp.f32 %v4653_v48  ;;  %5800 = vrot.lane.b32.xlu0 %v21549_v0, %s15427_s13  ;;  %v21571_v48 = vld [vmem:[#allocation46_spill] sm:$0xff] }
 0x76e   : > { %5798 = vrot.lane.b32.xlu1 %v21550_v22, %s15427_s13 }
 0x770   : > { %v4659_v30 = vpop.xlane.xlu1 %4658 }
 0x771   : > { %14757 = vrcp.f32 %v4659_v30  ;;  %5796 = vrot.lane.b32.xlu0 %v21551_v60, %s15427_s13  ;;  %v21572_v30 = vld [vmem:[#allocation56_spill] sm:$0xff] }
 0x772   : > { %5794 = vrot.lane.b32.xlu1 %v21552_v36, %s15427_s13  ;;  %v4662_v40 = vpop.xlane.xlu0 %4661 }
 0x773   : > { %14759 = vrcp.f32 %v4662_v40  ;;  %v21573_v40 = vld [vmem:[#allocation45_spill] sm:$0xff] }
 0x774   : > { %v4665_v53 = vpop.xlane.xlu1 %4664 }
 0x775   : > { %14761 = vrcp.f32 %v4665_v53  ;;  %5778 = vrot.lane.b32.xlu0 %v21553_v9, %s15427_s13  ;;  %v21574_v53 = vld [vmem:[#allocation48_spill] sm:$0xff] }
 0x776   : > { %5977 = vrot.lane.b32.xlu1 %v21554_v2, %s15427_s13  ;;  %v4668_v4 = vpop.xlane.xlu0 %4667 }
 0x777   : > { %14763 = vrcp.f32 %v4668_v4  ;;  %v21575_v4 = vld [vmem:[#allocation59_spill] sm:$0xff] }
 0x778   : > { %v4695_v7 = vpop.xlane.xlu1 %4694 }
 0x779   : > { %14765 = vrcp.f32 %v4695_v7  ;;  %5780 = vrot.lane.b32.xlu0 %v21555_v61, %s15427_s13  ;;  %v21576_v7 = vld [vmem:[#allocation50_spill] sm:$0xff] }
 0x77a   : > { %v14756_v17 = vpop.eup %14755  ;;  %5975 = vrot.lane.b32.xlu1 %v21556_v6, %s15427_s13 }
 0x77b   : > { %v4759_v58 = vmul.f32 %v14756_v17, %v18034_v43  ;;  %v21578_v17 = vld [vmem:[#allocation61_spill] sm:$0xff] }
 0x77d   : > { %5973 = vrot.lane.b32.xlu0 %v21558_v57, %s15427_s13  ;;  %13679 = vmatprep.mubr.msk.f32.mxu0 %vm2531_vm1, %v4759_v58  ;;  %v21579_v58 = vld [vmem:[#allocation66_spill] sm:$0xff] }
 0x77e   : > { %v14758_v51 = vpop.eup %14757  ;;  %13680 = vmatmul.mubr.msk.f32.gmra.mxu0 %vm2531_vm1, %v4760_v45  ;;  %5971 = vrot.lane.b32.xlu1 %v21559_v33, %s15427_s13  ;;  %v21581_v45 = vld [vmem:[#allocation65_spill] sm:$0xff] }
 0x77f   : > { %v4761_v8 = vmul.f32 %v14758_v51, %v18040_v29  ;;  %v21582_v51 = vld [vmem:[#allocation68_spill] sm:$0xff] }
 0x780   : > { %v14760_v54 = vpop.eup %14759 }
 0x781   : > { %5969 = vrot.lane.b32.xlu0 %v21560_v12, %s15427_s13  ;;  %13682 = vmatprep.mubr.msk.f32.mxu0 %vm2531_vm1, %v4761_v8  ;;  %v4762_v43 = vmul.f32 %v14760_v54, %v18043_v52  ;;  %v4698_v8 = vpop.xlane.xlu0 %4697  ;;  %v21583_v54 = vld [vmem:[#allocation75_spill] sm:$0xff] }
 0x782   : > { %v14762_v16 = vpop.eup %14761  ;;  %6146 = vrot.lane.b32.xlu1 %v21561_v59, %s15427_s13 }
 0x783   : > { %13683 = vmatmul.mubr.msk.f32.gmra.mxu0 %vm2531_vm1, %v4762_v43  ;;  %v4763_v13 = vmul.f32 %v14762_v16, %v18047_v47  ;;  %v21565_v47 = vld [vmem:[#allocation35_spill] sm:$0xff]  ;;  %v21585_v16 = vld [vmem:[#allocation73_spill] sm:$0xff] }
 0x784   : > { %v14764_v50 = vpop.eup %14763  ;;  %v21584_v43 = vld [vmem:[#allocation55_spill] sm:$0xff] }
 0x785   : > { %5782 = vrot.lane.b32.xlu0 %v21562_v21, %s15427_s13  ;;  %13685 = vmatprep.mubr.msk.f32.mxu0 %vm2531_vm1, %v4763_v13  ;;  %v4764_v29 = vmul.f32 %v14764_v50, %v18051_v37  ;;  %v21567_v37 = vld [vmem:[#allocation41_spill] sm:$0xff]  ;;  %v4704_v13 = vpop.xlane.xlu0 %4703  ;;  %v21586_v50 = vld [vmem:[#allocation78_spill] sm:$0xff] }
 0x786   : > { %v14766_v56 = vpop.eup %14765  ;;  %5784 = vrot.lane.b32.xlu1 %v21563_v38, %s15427_s13 }
 0x787   : > { %13686 = vmatmul.mubr.msk.f32.gmra.mxu0 %vm2531_vm1, %v4764_v29  ;;  %v4773_v52 = vmul.f32 %v14766_v56, %v18055_v3  ;;  %v21570_v3 = vld [vmem:[#allocation43_spill] sm:$0xff]  ;;  %v4701_v29 = vpop.xlane.xlu1 %4700  ;;  %v21587_v56 = vld [vmem:[#allocation85_spill] sm:$0xff] }
 0x789   : > { %5967 = vrot.lane.b32.xlu0 %v21564_v44, %s15427_s13  ;;  %13732 = vmatprep.mubr.msk.f32.mxu0 %vm2531_vm1, %v4773_v52  ;;  %v21588_v52 = vld [vmem:[#allocation57_spill] sm:$0xff] }
 0x78a   : > { %6144 = vrot.lane.b32.xlu1 %v21565_v47, %s15427_s13 }
 0x78d   : > { %5786 = vrot.lane.b32.xlu0 %v21566_v62, %s15427_s13  ;;  %v15126_v62 = vld [vmem:[%s15722_s7 + $0x88] sm:$0xff] }
 0x78e   : > { %5788 = vrot.lane.b32.xlu1 %v21567_v37, %s15427_s13 }
 0x791   : > { %5965 = vrot.lane.b32.xlu0 %v21568_v49, %s15427_s13  ;;  %v15119_v49 = vld [vmem:[%s15722_s7 + $0x18] sm:$0xff] }
 0x792   : > { %6142 = vrot.lane.b32.xlu1 %v21569_v11, %s15427_s13  ;;  %v21594_v11 = vld [vmem:[#allocation70_spill] sm:$0xff] }
 0x795   : > { %5790 = vrot.lane.b32.xlu0 %v21570_v3, %s15427_s13 }
 0x796   : > { %5792 = vrot.lane.b32.xlu1 %v21571_v48, %s15427_s13  ;;  %v15120_v48 = vld [vmem:[%s15722_s7 + $0x28] sm:$0xff] }
 0x799   : > { %5963 = vrot.lane.b32.xlu0 %v21572_v30, %s15427_s13  ;;  %v21635_v30 = vld [vmem:[#allocation118_spill] sm:$0xff] }
 0x79a   : > { %6140 = vrot.lane.b32.xlu1 %v21573_v40, %s15427_s13 }
 0x79d   : > { %5947 = vrot.lane.b32.xlu0 %v21574_v53, %s15427_s13  ;;  %v21632_v53 = vld [vmem:[#allocation116_spill] sm:$0xff] }
 0x79e   : > { %5949 = vrot.lane.b32.xlu1 %v21575_v4, %s15427_s13 }
 0x7a1   : > { %6138 = vrot.lane.b32.xlu0 %v21576_v7, %s15427_s13  ;;  %v4707_v7 = vpop.xlane.xlu1 %4706 }
 0x7a2   : > { %6315 = vrot.lane.b32.xlu1 %v21577_v55, %s15427_s13  ;;  %v4710_v55 = vpop.xlane.xlu0 %4709 }
 0x7a5   : > { %5951 = vrot.lane.b32.xlu0 %v21578_v17, %s15427_s13  ;;  %v21597_v17 = vld [vmem:[#allocation79_spill] sm:$0xff] }
 0x7a6   : > { %5953 = vrot.lane.b32.xlu1 %v21579_v58, %s15427_s13 }
 0x7a9   : > { %6136 = vrot.lane.b32.xlu0 %v21580_v15, %s15427_s13  ;;  %v4713_v15 = vpop.xlane.xlu1 %4712 }
 0x7aa   : > { %6313 = vrot.lane.b32.xlu1 %v21581_v45, %s15427_s13  ;;  %v21589_v45 = vld [vmem:[#allocation83_spill] sm:$0xff] }
 0x7ad   : > { %5955 = vrot.lane.b32.xlu0 %v21582_v51, %s15427_s13  ;;  %v4716_v51 = vpop.xlane.xlu0 %4715 }
 0x7ae   : > { %5957 = vrot.lane.b32.xlu1 %v21583_v54, %s15427_s13  ;;  %v21595_v54 = vld [vmem:[#allocation96_spill] sm:$0xff] }
 0x7b1   : > { %6134 = vrot.lane.b32.xlu0 %v21584_v43, %s15427_s13  ;;  %v21590_v43 = vld [vmem:[#allocation28_spill] sm:$0xff] }
 0x7b2   : > { %6311 = vrot.lane.b32.xlu1 %v21585_v16, %s15427_s13  ;;  %v21591_v16 = vld [vmem:[#allocation62_spill] sm:$0xff] }
 0x7b5   : > { %5959 = vrot.lane.b32.xlu0 %v21586_v50, %s15427_s13  ;;  %v21592_v50 = vld [vmem:[#allocation91_spill] sm:$0xff] }
 0x7b6   : > { %5961 = vrot.lane.b32.xlu1 %v21587_v56, %s15427_s13  ;;  %v21593_v56 = vld [vmem:[#allocation63_spill] sm:$0xff] }
 0x7b9   : > { %6132 = vrot.lane.b32.xlu0 %v21588_v52, %s15427_s13 }
 0x7ba   : > { %6309 = vrot.lane.b32.xlu1 %v21589_v45, %s15427_s13 }
 0x7bd   : > { %6116 = vrot.lane.b32.xlu0 %v21590_v43, %s15427_s13 }
 0x7be   : > { %6118 = vrot.lane.b32.xlu1 %v21591_v16, %s15427_s13  ;;  %v21596_v16 = vld [vmem:[#allocation72_spill] sm:$0xff] }
 0x7c1   : > { %6307 = vrot.lane.b32.xlu0 %v21592_v50, %s15427_s13 }
 0x7c2   : > { %6120 = vrot.lane.b32.xlu1 %v21593_v56, %s15427_s13  ;;  %v21598_v56 = vld [vmem:[#allocation99_spill] sm:$0xff] }
 0x7c4   : > { %v4674_v52 = vpop.xlane.xlu0 %4673 }
 0x7c5   : > { %6122 = vrot.lane.b32.xlu0 %v21594_v11, %s15427_s13  ;;  %14767 = vrcp.f32 %v4674_v52  ;;  %v21599_v52 = vld [vmem:[#allocation81_spill] sm:$0xff] }
 0x7c6   : > { %v4671_v45 = vpop.xlane.xlu1 %4670  ;;  %6305 = vrot.lane.b32.xlu1 %v21595_v54, %s15427_s13 }
 0x7c7   : > { %14769 = vrcp.f32 %v4671_v45  ;;  %v21600_v45 = vld [vmem:[#allocation88_spill] sm:$0xff] }
 0x7c8   : > { %v4680_v43 = vpop.xlane.xlu0 %4679 }
 0x7c9   : > { %6124 = vrot.lane.b32.xlu0 %v21596_v16, %s15427_s13  ;;  %14771 = vrcp.f32 %v4680_v43  ;;  %v21601_v43 = vld [vmem:[#allocation102_spill] sm:$0xff] }
 0x7ca   : > { %v4677_v50 = vpop.xlane.xlu1 %4676  ;;  %6126 = vrot.lane.b32.xlu1 %v21597_v17, %s15427_s13 }
 0x7cb   : > { %14773 = vrcp.f32 %v4677_v50 }
 0x7cc   : > { %14775 = vrcp.f32 %v4698_v8  ;;  %v4686_v11 = vpop.xlane.xlu0 %4685 }
 0x7cd   : > { %6303 = vrot.lane.b32.xlu0 %v21598_v56, %s15427_s13  ;;  %14777 = vrcp.f32 %v4701_v29  ;;  %v21602_v56 = vld [vmem:[#allocation87_spill] sm:$0xff] }
 0x7ce   : > { %6128 = vrot.lane.b32.xlu1 %v21599_v52, %s15427_s13  ;;  %14779 = vrcp.f32 %v4686_v11  ;;  %v21603_v52 = vld [vmem:[#allocation37_spill] sm:$0xff] }
 0x7d1   : > { %6130 = vrot.lane.b32.xlu0 %v21600_v45, %s15427_s13 }
 0x7d2   : > { %v4683_v16 = vpop.xlane.xlu1 %4682  ;;  %6301 = vrot.lane.b32.xlu1 %v21601_v43, %s15427_s13  ;;  %v14768_v54 = vpop.eup %14767 }
 0x7d3   : > { %14781 = vrcp.f32 %v4683_v16  ;;  %v4766_v29 = vmul.f32 %v14768_v54, %v18128_v18  ;;  %v21605_v18 = vld [vmem:[#allocation42_spill] sm:$0xff] }
 0x7d4   : > { %v14770_v50 = vpop.eup %14769  ;;  %14783 = vrcp.f32 %v4704_v13  ;;  %v4692_v17 = vpop.xlane.xlu0 %4691  ;;  %v1869_v13 = vld [vmem:[#allocation10 + $0x30] sm:$0xff] }
 0x7d5   : > { %14785 = vrcp.f32 %v4707_v7  ;;  %6285 = vrot.lane.b32.xlu0 %v21602_v56, %s15427_s13  ;;  %v4765_v8 = vmul.f32 %v14770_v50, %v18132_v10  ;;  %v21604_v7 = vld [vmem:[#allocation105_spill] sm:$0xff] }
 0x7d6   : > { %6287 = vrot.lane.b32.xlu1 %v21603_v52, %s15427_s13  ;;  %v14772_v11 = vpop.eup %14771  ;;  %14787 = vrcp.f32 %v4710_v55  ;;  %v1868_v55 = vld [vmem:[#allocation10 + $0x28] sm:$0xff] }
 0x7d7   : > { %13704 = vmatprep.mubr.msk.f32.mxu1 %vm2531_vm1, %v4765_v8  ;;  %14789 = vrcp.f32 %v4713_v15  ;;  %v4768_v50 = vmul.f32 %v14772_v11, %v18136_v42  ;;  %v21607_v42 = vld [vmem:[#allocation47_spill] sm:$0xff] }
 0x7d8   : > { %v14774_v43 = vpop.eup %14773  ;;  %13705 = vmatmul.mubr.msk.f32.vlgmr.msra.gmra.mxu1 %vm2531_vm1, %v4766_v29  ;;  %v5275_v16 = vpop.permute.xlu0 %5274  ;;  %14791 = vrcp.f32 %v4692_v17  ;;  %v21606_v17 = vld [vmem:[#allocation106_spill] sm:$0xff] }
 0x7d9   : > { %6289 = vrot.lane.b32.xlu0 %v21604_v7, %s15427_s13  ;;  %13728 = vmatprep.subr.mxu0 %v5275_v16  ;;  %v4767_v10 = vmul.f32 %v14774_v43, %v18141_v27  ;;  %v14776_v15 = vpop.eup %14775  ;;  %v1867_v43 = vld [vmem:[#allocation10 + $0x20] sm:$0xff] }
 0x7da   : > { %6291 = vrot.lane.b32.xlu1 %v21605_v18, %s15427_s13  ;;  %v4689_v54 = vpop.xlane.xlu1 %4688  ;;  %13729 = vmatpush3.msra.mxu0 %v5275_v16  ;;  %v14778_v8 = vpop.eup %14777 }
 0x7db   : > { %14793 = vrcp.f32 %v4689_v54  ;;  %13707 = vmatprep.mubr.msk.f32.mxu1 %vm2531_vm1, %v4767_v10  ;;  %13745 = vmatpush3.msra.mxu1 %v18180_v1  ;;  %v14780_v11 = vpop.eup %14779  ;;  %v4774_v1 = vmul.f32 %v14776_v15, %v18059_v28  ;;  %v21608_v54 = vld [vmem:[#allocation107_spill] sm:$0xff] }
 0x7dc   : > { %14795 = vrcp.f32 %v4716_v51  ;;  %13708 = vmatmul.mubr.msk.f32.gmra.mxu1 %vm2531_vm1, %v4768_v50  ;;  %v5809_v27 = vpop.permute.xlu0 %5808  ;;  %13746 = vmatprep.subr.mxu1 %v1869_v13  ;;  %v21609_v28 = vld [vmem:[#allocation51_spill] sm:$0xff]  ;;  %v4770_v15 = vmul.f32 %v14780_v11, %v18145_v63  ;;  %v21611_v63 = vld [vmem:[#allocation64_spill] sm:$0xff] }
 0x7dd   : > { %6293 = vrot.lane.b32.xlu0 %v21606_v17, %s15427_s13  ;;  %13747 = vmatpush3.msra.mxu1 %v1869_v13  ;;  %v4775_v13 = vmul.f32 %v14778_v8, %v18063_v25 }
 0x7de   : > { %6295 = vrot.lane.b32.xlu1 %v21607_v42, %s15427_s13  ;;  %v5273_v29 = vpop.permute.xlu1 %5272  ;;  %13748 = vmatprep.subr.mxu1 %v1868_v55 }
 0x7df   : > { %13730 = vmatprep.subr.mxu0 %v5273_v29  ;;  %13749 = vmatpush3.msra.mxu1 %v1868_v55 }
 0x7e0   : > { %v14782_v51 = vpop.eup %14781  ;;  %13731 = vmatpush3.msra.mxu0 %v5273_v29  ;;  %v5805_v16 = vpop.permute.xlu0 %5804  ;;  %13750 = vmatprep.subr.mxu1 %v1867_v43  ;;  %v21610_v29 = vld [vmem:[#allocation60_spill] sm:$0xff] }
 0x7e1   : > { %v14784_v10 = vpop.eup %14783  ;;  %6297 = vrot.lane.b32.xlu0 %v21608_v54, %s15427_s13  ;;  %13733 = vmatmul.mubr.msk.f32.vlgmr.msra.gmra.mxu0 %vm2531_vm1, %v4774_v1  ;;  %v4769_v50 = vmul.f32 %v14782_v51, %v18153_v19 }
 0x7e2   : > { %v14786_v17 = vpop.eup %14785  ;;  %13800 = vmatprep.subr.msk.mxu0 %vm1918_vm0, %v5809_v27  ;;  %6299 = vrot.lane.b32.xlu1 %v21609_v28, %s15427_s13  ;;  %v5807_v55 = vpop.permute.xlu1 %5806  ;;  %v4776_v19 = vmul.f32 %v14784_v10, %v18067_v34 }
 0x7e3   : > { %13735 = vmatprep.mubr.msk.f32.mxu0 %vm2531_vm1, %v4775_v13  ;;  %13801 = vmatpush3.xpose.msk.msra.mxu0 %vm1918_vm0, %v5809_v27  ;;  %v14788_v8 = vpop.eup %14787  ;;  %v4777_v1 = vmul.f32 %v14786_v17, %v18071_v41  ;;  %v21612_v17 = vld [vmem:[#allocation71_spill] sm:$0xff] }
 0x7e4   : > { %13710 = vmatprep.mubr.msk.f32.mxu1 %vm2531_vm1, %v4769_v50  ;;  %13802 = vmatprep.subr.msk.mxu0 %vm1918_vm0, %v5807_v55  ;;  %v5801_v25 = vpop.permute.xlu0 %5800  ;;  %v14790_v51 = vpop.eup %14789  ;;  %v4778_v50 = vmul.f32 %v14788_v8, %v18075_v32  ;;  %v21614_v8 = vld [vmem:[#allocation80_spill] sm:$0xff] }
 0x7e5   : > { %13711 = vmatmul.mubr.msk.f32.gmra.mxu1 %vm2531_vm1, %v4770_v15  ;;  %6820 = vrot.lane.b32.xlu0 %v21610_v29, %s15427_s13  ;;  %v14792_v11 = vpop.eup %14791  ;;  %v13650_v13 = vpop.f32.mrf.mxu0  ;;  %v4779_v15 = vmul.f32 %v14790_v51, %v18079_v46 }
 0x7e6   : > { %13736 = vmatmul.mubr.msk.f32.gmra.mxu0 %vm2531_vm1, %v4776_v19  ;;  %6818 = vrot.lane.b32.xlu1 %v21611_v63, %s15427_s13  ;;  %v5803_v27 = vpop.permute.xlu1 %5802  ;;  %v4772_v32 = vmul.f32 %v14792_v11, %v18159_v20  ;;  %v21615_v20 = vld [vmem:[#allocation86_spill] sm:$0xff] }
 0x7e7   : > { %13738 = vmatprep.mubr.msk.f32.mxu0 %vm2531_vm1, %v4777_v1  ;;  %13803 = vmatpush3.xpose.msk.msra.mxu0 %vm1918_vm0, %v5807_v55  ;;  %v21613_v1 = vld [vmem:[#allocation76_spill] sm:$0xff]  ;;  %v4903_v29 = vpop.f32.mrf.mxu0 }
 0x7e8   : > { %v14794_v34 = vpop.eup %14793  ;;  %13804 = vmatprep.subr.msk.mxu0 %vm1918_vm0, %v5805_v16  ;;  %v5797_v10 = vpop.permute.xlu0 %5796  ;;  %13751 = vmatpush3.msra.mxu1 %v1867_v43 }
 0x7e9   : > { %v14796_v41 = vpop.eup %14795  ;;  %6816 = vrot.lane.b32.xlu0 %v21612_v17, %s15427_s13  ;;  %v4771_v19 = vmul.f32 %v14794_v34, %v18168_v24  ;;  %v21616_v34 = vld [vmem:[#allocation89_spill] sm:$0xff] }
 0x7ea   : > { %13739 = vmatmul.mubr.msk.f32.gmra.mxu0 %vm2531_vm1, %v4778_v50  ;;  %6814 = vrot.lane.b32.xlu1 %v21613_v1, %s15427_s13  ;;  %v5799_v55 = vpop.permute.xlu1 %5798  ;;  %v4780_v24 = vmul.f32 %v14796_v41, %v18083_v26  ;;  %v21617_v41 = vld [vmem:[#allocation92_spill] sm:$0xff] }
 0x7eb   : > { %13741 = vmatprep.mubr.msk.f32.mxu0 %vm2531_vm1, %v4779_v15  ;;  %13805 = vmatpush3.xpose.msk.msra.mxu0 %vm1918_vm0, %v5805_v16 }
 0x7ec   : > { %13713 = vmatprep.mubr.msk.f32.mxu1 %vm2531_vm1, %v4771_v19  ;;  %13806 = vmatprep.subr.msk.mxu0 %vm1918_vm0, %v5803_v27  ;;  %v5779_v46 = vpop.permute.xlu0 %5778  ;;  %v13653_v43 = vpop.f32.mrf.mxu0 }
 0x7ed   : > { %13714 = vmatmul.mubr.msk.f32.gmra.mxu1 %vm2531_vm1, %v4772_v32  ;;  %6812 = vrot.lane.b32.xlu0 %v21614_v8, %s15427_s13  ;;  %v21619_v32 = vld [vmem:[#allocation90_spill] sm:$0xff] }
 0x7ee   : > { %13742 = vmatmul.mubr.msk.f32.gmra.mxu0 %vm2531_vm1, %v4780_v24  ;;  %13752 = vmatprep.mubr.msk.f32.mxu1 %vm1918_vm0, %v4903_v29  ;;  %v5795_v16 = vpop.permute.xlu1 %5794  ;;  %v4913_v51 = vpop.f32.mrf.mxu0  ;;  %v21620_v24 = vld [vmem:[#allocation82_spill] sm:$0xff] }
 0x7ef   : > { %6810 = vrot.lane.b32.xlu1 %v21615_v20, %s15427_s13  ;;  %13807 = vmatpush3.xpose.msk.msra.mxu0 %vm1918_vm0, %v5803_v27 }
 0x7f0   : > { %13816 = vmatprep.mubr.msk.f32.mxu0 %vm1918_vm0, %v5779_v46  ;;  %13808 = vmatprep.subr.msk.mxu0 %vm1918_vm0, %v5801_v25  ;;  %v5781_v26 = vpop.permute.xlu0 %5780  ;;  %v13656_v11 = vpop.f32.mrf.mxu0 }
 0x7f1   : > { %13753 = vmatmul.mubr.msk.f32.vlgmr.msra.gmra.mxu1 %vm1918_vm0, %v13650_v13  ;;  %6808 = vrot.lane.b32.xlu0 %v21616_v34, %s15427_s13  ;;  %v21618_v13 = vld [vmem:[#allocation93_spill] sm:$0xff] }
 0x7f2   : > { %13755 = vmatprep.mubr.msk.f32.mxu1 %vm1918_vm0, %v4913_v51  ;;  %v5978_v29 = vpop.permute.xlu1 %5977  ;;  %v4923_v50 = vpop.f32.mrf.mxu0  ;;  %v21621_v51 = vld [vmem:[#allocation84_spill] sm:$0xff] }
 0x7f3   : > { %6806 = vrot.lane.b32.xlu1 %v21617_v41, %s15427_s13  ;;  %13809 = vmatpush3.xpose.msk.msra.mxu0 %vm1918_vm0, %v5801_v25 }
 0x7f4   : > { %13810 = vmatprep.subr.msk.mxu0 %vm1918_vm0, %v5799_v55  ;;  %v5974_v27 = vpop.permute.xlu0 %5973  ;;  %v13659_v15 = vpop.f32.mrf.mxu0 }
 0x7f5   : > { %13756 = vmatmul.mubr.msk.f32.gmra.mxu1 %vm1918_vm0, %v13653_v43  ;;  %6973 = vrot.lane.b32.xlu0 %v21618_v13, %s15427_s13  ;;  %v21623_v13 = vld [vmem:[#allocation77_spill] sm:$0xff] }
 0x7f6   : > { %13758 = vmatprep.mubr.msk.f32.mxu1 %vm1918_vm0, %v4923_v50  ;;  %v5976_v19 = vpop.permute.xlu1 %5975  ;;  %v4933_v46 = vpop.f32.mrf.mxu0  ;;  %v21622_v50 = vld [vmem:[#allocation74_spill] sm:$0xff] }
 0x7f7   : > { %6971 = vrot.lane.b32.xlu1 %v21619_v32, %s15427_s13  ;;  %13811 = vmatpush3.xpose.msk.msra.mxu0 %vm1918_vm0, %v5799_v55 }
 0x7f8   : > { %13812 = vmatprep.subr.msk.mxu0 %vm1918_vm0, %v5797_v10  ;;  %v5970_v25 = vpop.permute.xlu0 %5969 }
 0x7f9   : > { %13759 = vmatmul.mubr.msk.f32.gmra.mxu1 %vm1918_vm0, %v13656_v11  ;;  %6969 = vrot.lane.b32.xlu0 %v21620_v24, %s15427_s13  ;;  %v21625_v24 = vld [vmem:[#allocation69_spill] sm:$0xff] }
 0x7fa   : > { %13761 = vmatprep.mubr.msk.f32.mxu1 %vm1918_vm0, %v4933_v46  ;;  %v5972_v43 = vpop.permute.xlu1 %5971 }
 0x7fb   : > { %6967 = vrot.lane.b32.xlu1 %v21621_v51, %s15427_s13  ;;  %13813 = vmatpush3.xpose.msk.msra.mxu0 %vm1918_vm0, %v5797_v10  ;;  %v21624_v10 = vld [vmem:[#allocation67_spill] sm:$0xff] }
 0x7fc   : > { %13814 = vmatprep.subr.msk.mxu0 %vm1918_vm0, %v5795_v16  ;;  %v5783_v55 = vpop.permute.xlu0 %5782 }
 0x7fd   : > { %13762 = vmatmul.mubr.msk.f32.gmra.mxu1 %vm1918_vm0, %v13659_v15  ;;  %6965 = vrot.lane.b32.xlu0 %v21622_v50, %s15427_s13 }
 0x7fe   : > { %v6147_v11 = vpop.permute.xlu1 %6146 }
 0x7ff   : > { %6963 = vrot.lane.b32.xlu1 %v21623_v13, %s15427_s13  ;;  %13815 = vmatpush3.xpose.msk.msra.mxu0 %vm1918_vm0, %v5795_v16  ;;  %v21626_v13 = vld [vmem:[#allocation103_spill] sm:$0xff] }
 0x800   : > { %13828 = vmatprep.subr.msk.mxu0 %vm1918_vm0, %v5978_v29  ;;  %13856 = vmatprep.subr.msk.mxu1 %vm1918_vm0, %v6147_v11  ;;  %v5968_v46 = vpop.permute.xlu0 %5967 }
 0x801   : > { %13857 = vmatpush3.xpose.msk.msra.mxu1 %vm1918_vm0, %v6147_v11  ;;  %6961 = vrot.lane.b32.xlu0 %v21624_v10, %s15427_s13 }
 0x802   : > { %13817 = vmatmul.mubr.msk.f32.vlgmr.msra.gmra.mxu0 %vm1918_vm0, %v5781_v26  ;;  %v5785_v15 = vpop.permute.xlu1 %5784  ;;  %v21627_v26 = vld [vmem:[#allocation104_spill] sm:$0xff] }
 0x803   : > { %6959 = vrot.lane.b32.xlu1 %v21625_v24, %s15427_s13  ;;  %13819 = vmatprep.mubr.msk.f32.mxu0 %vm1918_vm0, %v5783_v55 }
 0x804   : > { %13829 = vmatpush3.xpose.msk.msra.mxu0 %vm1918_vm0, %v5978_v29  ;;  %v5787_v16 = vpop.permute.xlu0 %5786 }
 0x805   : > { %13830 = vmatprep.subr.msk.mxu0 %vm1918_vm0, %v5976_v19  ;;  %7126 = vrot.lane.b32.xlu0 %v21626_v13, %s15427_s13 }
 0x806   : > { %v13678_v11 = vpop.f32.mrf.mxu0  ;;  %13820 = vmatmul.mubr.msk.f32.gmra.mxu0 %vm1918_vm0, %v5785_v15  ;;  %v6145_v10 = vpop.permute.xlu1 %6144  ;;  %v21628_v15 = vld [vmem:[#allocation100_spill] sm:$0xff] }
 0x807   : > { %7124 = vrot.lane.b32.xlu1 %v21627_v26, %s15427_s13  ;;  %13822 = vmatprep.mubr.msk.f32.mxu0 %vm1918_vm0, %v5787_v16  ;;  %v21629_v16 = vld [vmem:[#allocation101_spill] sm:$0xff] }
 0x808   : > { %13831 = vmatpush3.xpose.msk.msra.mxu0 %vm1918_vm0, %v5976_v19  ;;  %v5064_v55 = vpop.f32.mrf.mxu0  ;;  %13858 = vmatprep.subr.msk.mxu1 %vm1918_vm0, %v6145_v10  ;;  %v5966_v29 = vpop.permute.xlu0 %5965 }
 0x809   : > { %13832 = vmatprep.subr.msk.mxu0 %vm1918_vm0, %v5974_v27  ;;  %13764 = vmatprep.mubr.msk.f32.mxu1 %vm1918_vm0, %v5064_v55  ;;  %v21630_v55 = vld [vmem:[#allocation97_spill] sm:$0xff] }
 0x80a   : > { %13859 = vmatpush3.xpose.msk.msra.mxu1 %vm1918_vm0, %v6145_v10  ;;  %7122 = vrot.lane.b32.xlu0 %v21628_v15, %s15427_s13  ;;  %v5789_v13 = vpop.permute.xlu1 %5788  ;;  %v21631_v15 = vld [vmem:[#allocation98_spill] sm:$0xff] }
 0x80b   : > { %13765 = vmatmul.mubr.msk.f32.gmra.mxu1 %vm1918_vm0, %v13678_v11  ;;  %7120 = vrot.lane.b32.xlu1 %v21629_v16, %s15427_s13 }
 0x80c   : > { %13833 = vmatpush3.xpose.msk.msra.mxu0 %vm1918_vm0, %v5974_v27  ;;  %v5791_v19 = vpop.permute.xlu0 %5790 }
 0x80d   : > { %13823 = vmatmul.mubr.msk.f32.gmra.mxu0 %vm1918_vm0, %v5789_v13  ;;  %13834 = vmatprep.subr.msk.mxu0 %vm1918_vm0, %v5972_v43 }
 0x80e   : > { %7118 = vrot.lane.b32.xlu0 %v21630_v55, %s15427_s13  ;;  %13825 = vmatprep.mubr.msk.f32.mxu0 %vm1918_vm0, %v5791_v19  ;;  %v6143_v10 = vpop.permute.xlu1 %6142 }
 0x80f   : > { %7116 = vrot.lane.b32.xlu1 %v21631_v15, %s15427_s13  ;;  %13860 = vmatprep.subr.msk.mxu1 %vm1918_vm0, %v6143_v10 }
 0x810   : > { %13835 = vmatpush3.xpose.msk.msra.mxu0 %vm1918_vm0, %v5972_v43  ;;  %13861 = vmatpush3.xpose.msk.msra.mxu1 %vm1918_vm0, %v6143_v10  ;;  %v5964_v27 = vpop.permute.xlu0 %5963 }
 0x811   : > { %13836 = vmatprep.subr.msk.mxu0 %vm1918_vm0, %v5970_v25 }
 0x812   : > { %v5793_v13 = vpop.permute.xlu1 %5792 }
 0x813   : > { %13826 = vmatmul.mubr.msk.f32.gmra.mxu0 %vm1918_vm0, %v5793_v13 }
 0x814   : > { %13837 = vmatpush3.xpose.msk.msra.mxu0 %vm1918_vm0, %v5970_v25  ;;  %v5948_v11 = vpop.permute.xlu0 %5947 }
 0x815   : > { %13838 = vmatprep.subr.msk.mxu0 %vm1918_vm0, %v5968_v46  ;;  %13844 = vmatprep.mubr.msk.f32.mxu0 %vm1918_vm0, %v5948_v11 }
 0x816   : > { %v6141_v19 = vpop.permute.xlu1 %6140 }
 0x817   : > { %13862 = vmatprep.subr.msk.mxu1 %vm1918_vm0, %v6141_v19 }
 0x818   : > { %13839 = vmatpush3.xpose.msk.msra.mxu0 %vm1918_vm0, %v5968_v46  ;;  %13863 = vmatpush3.xpose.msk.msra.mxu1 %vm1918_vm0, %v6141_v19  ;;  %v6139_v43 = vpop.permute.xlu0 %6138 }
 0x819   : > { %13840 = vmatprep.subr.msk.mxu0 %vm1918_vm0, %v5966_v29  ;;  %13864 = vmatprep.subr.msk.mxu1 %vm1918_vm0, %v6139_v43 }
 0x81a   : > { %v5950_v10 = vpop.permute.xlu1 %5949 }
 0x81c   : > { %13841 = vmatpush3.xpose.msk.msra.mxu0 %vm1918_vm0, %v5966_v29  ;;  %13865 = vmatpush3.xpose.msk.msra.mxu1 %vm1918_vm0, %v6139_v43  ;;  %v5952_v25 = vpop.permute.xlu0 %5951 }
 0x81d   : > { %13842 = vmatprep.subr.msk.mxu0 %vm1918_vm0, %v5964_v27 }
 0x81e   : > { %v6316_v13 = vpop.permute.xlu1 %6315 }
 0x820   : > { %13843 = vmatpush3.xpose.msk.msra.mxu0 %vm1918_vm0, %v5964_v27  ;;  %v6137_v11 = vpop.permute.xlu0 %6136 }
 0x821   : > { %13884 = vmatprep.subr.msk.mxu0 %vm1918_vm0, %v6316_v13  ;;  %13866 = vmatprep.subr.msk.mxu1 %vm1918_vm0, %v6137_v11 }
 0x822   : > { %v5954_v46 = vpop.permute.xlu1 %5953  ;;  %13867 = vmatpush3.xpose.msk.msra.mxu1 %vm1918_vm0, %v6137_v11 }
 0x823   : > { %13845 = vmatmul.mubr.msk.f32.vlgmr.msra.gmra.mxu0 %vm1918_vm0, %v5950_v10 }
 0x824   : > { %13847 = vmatprep.mubr.msk.f32.mxu0 %vm1918_vm0, %v5952_v25  ;;  %13885 = vmatpush3.xpose.msk.msra.mxu0 %vm1918_vm0, %v6316_v13  ;;  %v5956_v29 = vpop.permute.xlu0 %5955 }
 0x826   : > { %v6314_v19 = vpop.permute.xlu1 %6313 }
 0x827   : > { %13848 = vmatmul.mubr.msk.f32.gmra.mxu0 %vm1918_vm0, %v5954_v46  ;;  %13886 = vmatprep.subr.msk.mxu0 %vm1918_vm0, %v6314_v19 }
 0x828   : > { %13850 = vmatprep.mubr.msk.f32.mxu0 %vm1918_vm0, %v5956_v29  ;;  %13887 = vmatpush3.xpose.msk.msra.mxu0 %vm1918_vm0, %v6314_v19  ;;  %v6135_v27 = vpop.permute.xlu0 %6134 }
 0x829   : > { %13868 = vmatprep.subr.msk.mxu1 %vm1918_vm0, %v6135_v27 }
 0x82a   : > { %v5958_v43 = vpop.permute.xlu1 %5957  ;;  %13869 = vmatpush3.xpose.msk.msra.mxu1 %vm1918_vm0, %v6135_v27 }
 0x82b   : > { %13851 = vmatmul.mubr.msk.f32.gmra.mxu0 %vm1918_vm0, %v5958_v43 }
 0x82c   : > { %v5960_v10 = vpop.permute.xlu0 %5959 }
 0x82d   : > { %13853 = vmatprep.mubr.msk.f32.mxu0 %vm1918_vm0, %v5960_v10 }
 0x82e   : > { %v6312_v25 = vpop.permute.xlu1 %6311 }
 0x82f   : > { %13888 = vmatprep.subr.msk.mxu0 %vm1918_vm0, %v6312_v25 }
 0x830   : > { %13889 = vmatpush3.xpose.msk.msra.mxu0 %vm1918_vm0, %v6312_v25  ;;  %v6133_v13 = vpop.permute.xlu0 %6132 }
 0x831   : > { %13870 = vmatprep.subr.msk.mxu1 %vm1918_vm0, %v6133_v13 }
 0x832   : > { %v5962_v11 = vpop.permute.xlu1 %5961  ;;  %13871 = vmatpush3.xpose.msk.msra.mxu1 %vm1918_vm0, %v6133_v13 }
 0x833   : > { %13854 = vmatmul.mubr.msk.f32.gmra.mxu0 %vm1918_vm0, %v5962_v11 }
 0x834   : > { %v18476_v46 = vpop.permute.xlu0 %6116 }
 0x836   : > { %v6310_v29 = vpop.permute.xlu1 %6309 }
 0x837   : > { %13890 = vmatprep.subr.msk.mxu0 %vm1918_vm0, %v6310_v29 }
 0x838   : > { %13891 = vmatpush3.xpose.msk.msra.mxu0 %vm1918_vm0, %v6310_v29  ;;  %v6308_v19 = vpop.permute.xlu0 %6307 }
 0x839   : > { %13892 = vmatprep.subr.msk.mxu0 %vm1918_vm0, %v6308_v19 }
 0x83a   : > { %v18481_v27 = vpop.permute.xlu1 %6118 }
 0x83c   : > { %13893 = vmatpush3.xpose.msk.msra.mxu0 %vm1918_vm0, %v6308_v19  ;;  %v18484_v43 = vpop.permute.xlu0 %6122 }
 0x83e   : > { %v13681_v10 = vpop.f32.mrf.mxu0  ;;  %v18486_v25 = vpop.permute.xlu1 %6120 }
 0x840   : > { %v5074_v13 = vpop.f32.mrf.mxu0  ;;  %v18488_v11 = vpop.permute.xlu0 %6124 }
 0x841   : > { %13767 = vmatprep.mubr.msk.f32.mxu1 %vm1918_vm0, %v5074_v13 }
 0x842   : > { %v6306_v15 = vpop.permute.xlu1 %6305  ;;  %13768 = vmatmul.mubr.msk.f32.gmra.mxu1 %vm1918_vm0, %v13681_v10 }
 0x843   : > { %v13684_v29 = vpop.f32.mrf.mxu0  ;;  %13894 = vmatprep.subr.msk.mxu0 %vm1918_vm0, %v6306_v15 }
 0x844   : > { %13895 = vmatpush3.xpose.msk.msra.mxu0 %vm1918_vm0, %v6306_v15  ;;  %v6304_v55 = vpop.permute.xlu0 %6303 }
 0x845   : > { %v5084_v19 = vpop.f32.mrf.mxu0  ;;  %13896 = vmatprep.subr.msk.mxu0 %vm1918_vm0, %v6304_v55 }
 0x846   : > { %v18495_v16 = vpop.permute.xlu1 %6126  ;;  %13770 = vmatprep.mubr.msk.f32.mxu1 %vm1918_vm0, %v5084_v19 }
 0x847   : > { %v13687_v26 = vpop.f32.mrf.mxu0  ;;  %13771 = vmatmul.mubr.msk.f32.gmra.mxu1 %vm1918_vm0, %v13684_v29 }
 0x848   : > { %13897 = vmatpush3.xpose.msk.msra.mxu0 %vm1918_vm0, %v6304_v55  ;;  %v18500_v13 = vpop.permute.xlu0 %6130 }
 0x849   : > { %v5094_v10 = vpop.f32.mrf.mxu0 }
 0x84a   : > { %v18502_v24 = vpop.permute.xlu1 %6128  ;;  %13773 = vmatprep.mubr.msk.f32.mxu1 %vm1918_vm0, %v5094_v10 }
 0x84b   : > { %13774 = vmatmul.mubr.msk.f32.gmra.mxu1 %vm1918_vm0, %v13687_v26 }
 0x84c   : > { %v6286_v15 = vpop.permute.xlu0 %6285 }
 0x84d   : > { %13900 = vmatprep.mubr.msk.f32.mxu0 %vm1918_vm0, %v6286_v15 }
 0x84e   : > { %v6302_v50 = vpop.permute.xlu1 %6301 }
 0x84f   : > { %13898 = vmatprep.subr.msk.mxu0 %vm1918_vm0, %v6302_v50 }
 0x850   : > { %13899 = vmatpush3.xpose.msk.msra.mxu0 %vm1918_vm0, %v6302_v50  ;;  %v6290_v29 = vpop.permute.xlu0 %6289 }
 0x852   : > { %v6288_v19 = vpop.permute.xlu1 %6287 }
 0x853   : > { %13901 = vmatmul.mubr.msk.f32.vlgmr.msra.gmra.mxu0 %vm1918_vm0, %v6288_v19 }
 0x854   : > { %13903 = vmatprep.mubr.msk.f32.mxu0 %vm1918_vm0, %v6290_v29  ;;  %v6294_v55 = vpop.permute.xlu0 %6293 }
 0x856   : > { %v6292_v51 = vpop.permute.xlu1 %6291 }
 0x857   : > { %13904 = vmatmul.mubr.msk.f32.gmra.mxu0 %vm1918_vm0, %v6292_v51 }
 0x858   : > { %13906 = vmatprep.mubr.msk.f32.mxu0 %vm1918_vm0, %v6294_v55  ;;  %v6298_v26 = vpop.permute.xlu0 %6297 }
 0x85a   : > { %v6296_v10 = vpop.permute.xlu1 %6295 }
 0x85b   : > { %13907 = vmatmul.mubr.msk.f32.gmra.mxu0 %vm1918_vm0, %v6296_v10 }
 0x85c   : > { %13909 = vmatprep.mubr.msk.f32.mxu0 %vm1918_vm0, %v6298_v26  ;;  %v18515_v15 = vpop.permute.xlu0 %6820 }
 0x85d   : > { %13912 = vmatprep.subr.mxu1 %v18515_v15 }
 0x85e   : > { %v6300_v50 = vpop.permute.xlu1 %6299 }
 0x85f   : > { %13910 = vmatmul.mubr.msk.f32.gmra.mxu0 %vm1918_vm0, %v6300_v50 }
 0x860   : > { %v18519_v29 = vpop.permute.xlu0 %6816 }
 0x862   : > { %v18521_v19 = vpop.permute.xlu1 %6818 }
 0x864   : > { %v18523_v51 = vpop.permute.xlu0 %6812 }
 0x866   : > { %v18525_v55 = vpop.permute.xlu1 %6814 }
 0x868   : > { %v18527_v34 = vpop.permute.xlu0 %6808 }
 0x86a   : > { %v18529_v10 = vpop.permute.xlu1 %6810 }
 0x86c   : > { %v18531_v26 = vpop.permute.xlu0 %6973 }
 0x86e   : > { %v18533_v32 = vpop.permute.xlu1 %6806 }
 0x870   : > { %v18535_v20 = vpop.permute.xlu0 %6969 }
 0x872   : > { %v18537_v41 = vpop.permute.xlu1 %6971 }
 0x874   : > { %v18539_v50 = vpop.permute.xlu0 %6965 }
 0x876   : > { %v18541_v17 = vpop.permute.xlu1 %6967 }
 0x878   : > { %v18543_v8 = vpop.permute.xlu0 %6961 }
 0x87a   : > { %v18545_v1 = vpop.permute.xlu1 %6963 }
 0x87c   : > { %v7127_v54 = vpop.permute.xlu0 %7126 }
 0x87d   : > { %13968 = vmatprep.subr.mxu0 %v7127_v54 }
 0x87e   : > { %v18547_v63 = vpop.permute.xlu1 %6959  ;;  %13969 = vmatpush3.msra.mxu0 %v7127_v54 }
 0x880   : > { %v7123_v28 = vpop.permute.xlu0 %7122 }
 0x882   : > { %v7125_v7 = vpop.permute.xlu1 %7124 }
 0x883   : > { %13970 = vmatprep.subr.mxu0 %v7125_v7 }
 0x884   : > { %13971 = vmatpush3.msra.mxu0 %v7125_v7  ;;  %v7119_v56 = vpop.permute.xlu0 %7118 }
 0x885   : > { %13972 = vmatprep.subr.mxu0 %v7123_v28 }
 0x886   : > { %v7121_v42 = vpop.permute.xlu1 %7120  ;;  %13973 = vmatpush3.msra.mxu0 %v7123_v28 }
 0x887   : > { %13974 = vmatprep.subr.mxu0 %v7121_v42 }
 0x888   : > { %13975 = vmatpush3.msra.mxu0 %v7121_v42 }
 0x889   : > { %13976 = vmatprep.subr.mxu0 %v7119_v56 }
 0x88a   : > { %v7117_v18 = vpop.permute.xlu1 %7116  ;;  %13977 = vmatpush3.msra.mxu0 %v7119_v56 }
 0x88b   : > { %13978 = vmatprep.subr.mxu0 %v7117_v18 }
 0x88c   : > { %13979 = vmatpush3.msra.mxu0 %v7117_v18  ;;  %v18557_v18 = vld [vmem:[%s21068_s10] ss:$0 sm:$0xff] }
 0x88d   : > { %v1903_v44 = vadd.f32 %v15126_v62, %v18557_v18 }
 0x898   : > { %v13706_v52 = vpop.f32.mrf.mxu1 }
 0x89a   : > { %v5225_v45 = vpop.f32.mrf.mxu1 }
 0x89b   : > { %13776 = vmatprep.mubr.msk.f32.mxu1 %vm1918_vm0, %v5225_v45 }
 0x89c   : > { %v13709_v54 = vpop.f32.mrf.mxu1  ;;  %13777 = vmatmul.mubr.msk.f32.gmra.mxu1 %vm1918_vm0, %v13706_v52  ;;  %v15118_v52 = vld [vmem:[%s15722_s7 + $0x8] sm:$0xff] }
 0x89e   : > { %v5235_v7 = vpop.f32.mrf.mxu1 }
 0x89f   : > { %13779 = vmatprep.mubr.msk.f32.mxu1 %vm1918_vm0, %v5235_v7  ;;  %v1887_v7 = vadd.f32 %v15118_v52, %v18557_v18 }
 0x8a0   : > { %13780 = vmatmul.mubr.msk.f32.gmra.mxu1 %vm1918_vm0, %v13709_v54 }
 0x8a1   : > { %v13734_v42 = vpop.f32.mrf.mxu0  ;;  %v3722_v47 = vadd.f32 %v21632_v53, %v1887_v7  ;;  %v1891_v53 = vadd.f32 %v15120_v48, %v18557_v18 }
 0x8a3   : > { %v5386_v28 = vpop.f32.mrf.mxu0 }
 0x8a5   : > { %v13712_v40 = vpop.f32.mrf.mxu1 }
 0x8a6   : > { %v13737_v45 = vpop.f32.mrf.mxu0 }
 0x8a7   : > { %v5245_v56 = vpop.f32.mrf.mxu1 }
 0x8a8   : > { %13782 = vmatprep.mubr.msk.f32.mxu1 %vm1918_vm0, %v5245_v56  ;;  %v5396_v59 = vpop.f32.mrf.mxu0  ;;  %v1889_v56 = vadd.f32 %v15119_v49, %v18557_v18 }
 0x8a9   : > { %13783 = vmatmul.mubr.msk.f32.gmra.mxu1 %vm1918_vm0, %v13712_v40 }
 0x8aa   : > { %v13740_v4 = vpop.f32.mrf.mxu0  ;;  %v3724_v12 = vadd.f32 %v21635_v30, %v1889_v56 }
 0x8ac   : > { %v5406_v7 = vpop.f32.mrf.mxu0 }
 0x8ad   : > { %v13715_v54 = vpop.f32.mrf.mxu1 }
 0x8af   : > { %v5255_v58 = vpop.f32.mrf.mxu1 }
 0x8b0   : > { %13785 = vmatprep.mubr.msk.f32.mxu1 %vm1918_vm0, %v5255_v58 }
 0x8b1   : > { %v13754_v3 = vpop.f32.mrf.mxu1  ;;  %13786 = vmatmul.mubr.msk.f32.gmra.mxu1 %vm1918_vm0, %v13715_v54 }
 0x8b2   : > { %v18567_v40 = vadd.f32 %v13754_v3, %v3722_v47  ;;  %13788 = vmatprep.mubr.msk.f32.mxu1 %vm1918_vm0, %v5386_v28  ;;  %v21638_v47 = vld [vmem:[#allocation120_spill] sm:$0xff]  ;;  %v15121_v28 = vld [vmem:[%s15722_s7 + $0x38] sm:$0xff] }
 0x8b3   : > { %v18570_v52 = vpop.f32.mrf.mxu1  ;;  %v3726_v3 = vadd.f32 %v21638_v47, %v1891_v53  ;;  %v15122_v47 = vld [vmem:[%s15722_s7 + $0x48] sm:$0xff] }
 0x8b4   : > { %21633 = vst [vmem:[#allocation114_spill] sm:$0xff] %v18567_v40  ;;  %21634 = vst [vmem:[#allocation115_spill] sm:$0xff] %v18570_v52  ;;  %v1893_v52 = vadd.f32 %v15121_v28, %v18557_v18  ;;  %v13743_v40 = vpop.f32.mrf.mxu0 }
 0x8b5   : > { %v13757_v49 = vpop.f32.mrf.mxu1  ;;  %13789 = vmatmul.mubr.msk.f32.gmra.mxu1 %vm1918_vm0, %v13734_v42  ;;  %v21641_v42 = vld [vmem:[#allocation122_spill] sm:$0xff] }
 0x8b6   : > { %v18576_v58 = vadd.f32 %v13757_v49, %v3724_v12  ;;  %13791 = vmatprep.mubr.msk.f32.mxu1 %vm1918_vm0, %v5396_v59  ;;  %v3728_v59 = vadd.f32 %v21641_v42, %v1893_v52  ;;  %v5416_v56 = vpop.f32.mrf.mxu0 }
 0x8b7   : > { %v18579_v54 = vpop.f32.mrf.mxu1 }
 0x8b8   : > { %21636 = vst [vmem:[#allocation25_spill] sm:$0xff] %v18576_v58  ;;  %21637 = vst [vmem:[#allocation26_spill] sm:$0xff] %v18579_v54  ;;  %v15125_v54 = vld [vmem:[%s15722_s7 + $0x78] sm:$0xff] }
 0x8b9   : > { %v13760_v30 = vpop.f32.mrf.mxu1  ;;  %13792 = vmatmul.mubr.msk.f32.gmra.mxu1 %vm1918_vm0, %v13737_v45 }
 0x8ba   : > { %v18585_v48 = vadd.f32 %v13760_v30, %v3726_v3  ;;  %13794 = vmatprep.mubr.msk.f32.mxu1 %vm1918_vm0, %v5406_v7 }
 0x8bb   : > { %v18588_v12 = vpop.f32.mrf.mxu1 }
 0x8bc   : > { %21639 = vst [vmem:[#allocation27_spill] sm:$0xff] %v18585_v48  ;;  %21640 = vst [vmem:[#allocation29_spill] sm:$0xff] %v18588_v12 }
 0x8bd   : > { %v13763_v49 = vpop.f32.mrf.mxu1  ;;  %13795 = vmatmul.mubr.msk.f32.gmra.mxu1 %vm1918_vm0, %v13740_v4 }
 0x8be   : > { %v18592_v53 = vadd.f32 %v13763_v49, %v3728_v59  ;;  %13797 = vmatprep.mubr.msk.f32.mxu1 %vm1918_vm0, %v5416_v56 }
 0x8c0   : > { %21642 = vst [vmem:[#allocation24_spill] sm:$0xff] %v18592_v53 }
 0x8c1   : > { %13798 = vmatmul.mubr.msk.f32.gmra.mxu1 %vm1918_vm0, %v13743_v40  ;;  %v1895_v40 = vadd.f32 %v15122_v47, %v18557_v18 }
 0x8c2   : > { %v18596_v45 = vpop.f32.mrf.mxu0  ;;  %13872 = vmatprep.mubr.msk.f32.mxu1 %vm1918_vm0, %v18476_v46  ;;  %v18617_v46 = vpop.f32.mrf.mxu1 }
 0x8c3   : > { %v6457_v7 = vsel %vm2531_vm1, %v18596_v45, -inf  ;;  %21643 = vst [vmem:[#allocation30_spill] sm:$0xff] %v18617_v46  ;;  %v21650_v46 = vld [vmem:[#allocation128_spill] sm:$0xff] }
 0x8c4   : > { %6458 = vmax.xlane.f32.xlu1 %v6457_v7  ;;  %v18602_v52 = vpop.f32.mrf.mxu0 }
 0x8c5   : > { %13873 = vmatmul.mubr.msk.f32.vlgmr.msra.gmra.mxu1 %vm1918_vm0, %v18481_v27  ;;  %v6454_v4 = vsel %vm2531_vm1, %v18602_v52, -inf }
 0x8c6   : > { %13913 = vmatpush3.msra.mxu1 %v18515_v15  ;;  %6455 = vmax.xlane.f32.xlu0 %v6454_v4  ;;  %v18611_v3 = vpop.f32.mrf.mxu0  ;;  %v21644_v15 = vld [vmem:[#allocation124_spill] sm:$0xff] }
 0x8c7   : > { %13875 = vmatprep.mubr.msk.f32.mxu1 %vm1918_vm0, %v18486_v25  ;;  %13914 = vmatprep.subr.mxu1 %v18521_v19  ;;  %v6463_v27 = vsel %vm2531_vm1, %v18611_v3, -inf  ;;  %v3730_v28 = vadd.f32 %v21644_v15, %v1895_v40 }
 0x8c8   : > { %13915 = vmatpush3.msra.mxu1 %v18521_v19  ;;  %v18625_v30 = vpop.f32.mrf.mxu0 }
 0x8c9   : > { %13916 = vmatprep.subr.mxu1 %v18519_v29  ;;  %13876 = vmatmul.mubr.msk.f32.gmra.mxu1 %vm1918_vm0, %v18484_v43 }
 0x8ca   : > { %13917 = vmatpush3.msra.mxu1 %v18519_v29  ;;  %6464 = vmax.xlane.f32.xlu0 %v6463_v27  ;;  %v6460_v29 = vsel %vm2531_vm1, %v18625_v30, -inf }
 0x8cb   : > { %v13766_v25 = vpop.f32.mrf.mxu1  ;;  %13878 = vmatprep.mubr.msk.f32.mxu1 %vm1918_vm0, %v18488_v11  ;;  %13918 = vmatprep.subr.mxu1 %v18525_v55 }
 0x8cc   : > { %v18631_v19 = vadd.f32 %v13766_v25, %v3730_v28  ;;  %13919 = vmatpush3.msra.mxu1 %v18525_v55 }
 0x8cd   : > { %v18634_v43 = vpop.f32.mrf.mxu0  ;;  %13920 = vmatprep.subr.mxu1 %v18523_v51  ;;  %13879 = vmatmul.mubr.msk.f32.gmra.mxu1 %vm1918_vm0, %v18495_v16 }
 0x8ce   : > { %21645 = vst [vmem:[#allocation31_spill] sm:$0xff] %v18631_v19  ;;  %13921 = vmatpush3.msra.mxu1 %v18523_v51  ;;  %6461 = vmax.xlane.f32.xlu0 %v6460_v29  ;;  %v6469_v11 = vsel %vm2531_vm1, %v18634_v43, -inf }
 0x8cf   : > { %6470 = vmax.xlane.f32.xlu1 %v6469_v11  ;;  %v18644_v42 = vpop.f32.mrf.mxu0  ;;  %13881 = vmatprep.mubr.msk.f32.mxu1 %vm1918_vm0, %v18502_v24 }
 0x8d0   : > { %13922 = vmatprep.subr.mxu1 %v18529_v10  ;;  %v6466_v16 = vsel %vm2531_vm1, %v18644_v42, -inf }
 0x8d1   : > { %13923 = vmatpush3.msra.mxu1 %v18529_v10 }
 0x8d2   : > { %13924 = vmatprep.subr.mxu1 %v18527_v34  ;;  %13882 = vmatmul.mubr.msk.f32.gmra.mxu1 %vm1918_vm0, %v18500_v13 }
 0x8d3   : > { %13925 = vmatpush3.msra.mxu1 %v18527_v34  ;;  %6467 = vmax.xlane.f32.xlu0 %v6466_v16  ;;  %v18656_v51 = vpop.f32.mrf.mxu0  ;;  %v15123_v16 = vld [vmem:[%s15722_s7 + $0x58] sm:$0xff] }
 0x8d4   : > { %13926 = vmatprep.subr.mxu1 %v18533_v32  ;;  %v6475_v24 = vsel %vm2531_vm1, %v18656_v51, -inf }
 0x8d5   : > { %13927 = vmatpush3.msra.mxu1 %v18533_v32  ;;  %6476 = vmax.xlane.f32.xlu1 %v6475_v24  ;;  %v18662_v55 = vpop.f32.mrf.mxu0  ;;  %v1897_v24 = vadd.f32 %v15123_v16, %v18557_v18 }
 0x8d6   : > { %13940 = vmatprep.subr.mxu1 %v18531_v26  ;;  %v6472_v13 = vsel %vm2531_vm1, %v18662_v55, -inf }
 0x8d7   : > { %6473 = vmax.xlane.f32.xlu0 %v6472_v13  ;;  %v18701_v13 = vpop.f32.mrf.mxu1 }
 0x8d8   : > { %21646 = vst [vmem:[#allocation34_spill] sm:$0xff] %v18701_v13  ;;  %v21653_v13 = vld [vmem:[#allocation130_spill] sm:$0xff] }
 0x8e3   : > { %v18667_v34 = vpop.f32.mrf.mxu0 }
 0x8e4   : > { %v6481_v10 = vsel %vm2531_vm1, %v18667_v34, -inf }
 0x8e5   : > { %6482 = vmax.xlane.f32.xlu1 %v6481_v10  ;;  %v18671_v59 = vpop.f32.mrf.mxu0  ;;  %v21647_v10 = vld [vmem:[#allocation126_spill] sm:$0xff] }
 0x8e6   : > { %v6478_v32 = vsel %vm2531_vm1, %v18671_v59, -inf }
 0x8e7   : > { %6479 = vmax.xlane.f32.xlu0 %v6478_v32  ;;  %v18675_v56 = vpop.f32.mrf.mxu0  ;;  %v3732_v32 = vadd.f32 %v21647_v10, %v1897_v24 }
 0x8e8   : > { %v6487_v49 = vsel %vm2531_vm1, %v18675_v56, -inf }
 0x8e9   : > { %6488 = vmax.xlane.f32.xlu1 %v6487_v49  ;;  %v18679_v7 = vpop.f32.mrf.mxu0  ;;  %v15124_v49 = vld [vmem:[%s15722_s7 + $0x68] sm:$0xff] }
 0x8ea   : > { %v6484_v4 = vsel %vm2531_vm1, %v18679_v7, -inf }
 0x8eb   : > { %6485 = vmax.xlane.f32.xlu0 %v6484_v4  ;;  %v18683_v47 = vpop.f32.mrf.mxu0  ;;  %v1899_v4 = vadd.f32 %v15124_v49, %v18557_v18 }
 0x8ec   : > { %v6493_v40 = vsel %vm2531_vm1, %v18683_v47, -inf }
 0x8ed   : > { %6494 = vmax.xlane.f32.xlu1 %v6493_v40  ;;  %v18687_v27 = vpop.f32.mrf.mxu0  ;;  %v3734_v12 = vadd.f32 %v21650_v46, %v1899_v4 }
 0x8ee   : > { %v6490_v15 = vsel %vm2531_vm1, %v18687_v27, -inf }
 0x8ef   : > { %6491 = vmax.xlane.f32.xlu0 %v6490_v15 }
 0x8f3   : > { %v18691_v28 = vpop.f32.mrf.mxu0 }
 0x8f4   : > { %v6499_v25 = vsel %vm2531_vm1, %v18691_v28, -inf }
 0x8f5   : > { %6500 = vmax.xlane.f32.xlu1 %v6499_v25  ;;  %v18695_v29 = vpop.f32.mrf.mxu0 }
 0x8f6   : > { %v6496_v11 = vsel %vm2531_vm1, %v18695_v29, -inf }
 0x8f7   : > { %6497 = vmax.xlane.f32.xlu0 %v6496_v11  ;;  %v1901_v11 = vadd.f32 %v15125_v54, %v18557_v18 }
 0x8f9   : > { %v3736_v24 = vadd.f32 %v21653_v13, %v1901_v11 }
 0x902   : > { %v13769_v40 = vpop.f32.mrf.mxu1 }
 0x903   : > { %v18706_v15 = vadd.f32 %v13769_v40, %v3732_v32 }
 0x904   : > { %v18708_v25 = vpop.f32.mrf.mxu1 }
 0x905   : > { %21648 = vst [vmem:[#allocation148_spill] sm:$0xff] %v18706_v15  ;;  %21649 = vst [vmem:[#allocation36_spill] sm:$0xff] %v18708_v25 }
 0x907   : > { %v13772_v19 = vpop.f32.mrf.mxu1 }
 0x908   : > { %v18713_v53 = vadd.f32 %v13772_v19, %v3734_v12 }
 0x909   : > { %v18715_v16 = vpop.f32.mrf.mxu1 }
 0x90a   : > { %21651 = vst [vmem:[#allocation116_spill] sm:$0xff] %v18713_v53  ;;  %21652 = vst [vmem:[#allocation118_spill] sm:$0xff] %v18715_v16 }
 0x90b   : > { %v13775_v10 = vpop.f32.mrf.mxu1 }
 0x90c   : > { %v18718_v48 = vadd.f32 %v13775_v10, %v3736_v24 }
 0x90e   : > { %21654 = vst [vmem:[#allocation120_spill] sm:$0xff] %v18718_v48 }
 0x913   : > { %v18720_v49 = vpop.f32.mrf.mxu0 }
 0x914   : > { %v6529_v32 = vsel %vm2531_vm1, %v18720_v49, -inf }
 0x915   : > { %6530 = vmax.xlane.f32.xlu1 %v6529_v32  ;;  %v18724_v46 = vpop.f32.mrf.mxu0 }
 0x916   : > { %v6526_v54 = vsel %vm2531_vm1, %v18724_v46, -inf }
 0x917   : > { %6527 = vmax.xlane.f32.xlu0 %v6526_v54  ;;  %v18728_v12 = vpop.f32.mrf.mxu0 }
 0x918   : > { %v6535_v19 = vsel %vm2531_vm1, %v18728_v12, -inf }
 0x919   : > { %6536 = vmax.xlane.f32.xlu1 %v6535_v19  ;;  %v18732_v13 = vpop.f32.mrf.mxu0 }
 0x91a   : > { %v6532_v4 = vsel %vm2531_vm1, %v18732_v13, -inf }
 0x91b   : > { %6533 = vmax.xlane.f32.xlu0 %v6532_v4  ;;  %v18736_v40 = vpop.f32.mrf.mxu0 }
 0x91c   : > { %v6541_v11 = vsel %vm2531_vm1, %v18736_v40, -inf }
 0x91d   : > { %6542 = vmax.xlane.f32.xlu1 %v6541_v11  ;;  %v18740_v24 = vpop.f32.mrf.mxu0 }
 0x91e   : > { %v6538_v10 = vsel %vm2531_vm1, %v18740_v24, -inf }
 0x91f   : > { %6539 = vmax.xlane.f32.xlu0 %v6538_v10  ;;  %v18744_v32 = vpop.f32.mrf.mxu0 }
 0x920   : > { %v6547_v54 = vsel %vm2531_vm1, %v18744_v32, -inf }
 0x921   : > { %6548 = vmax.xlane.f32.xlu1 %v6547_v54  ;;  %v18748_v19 = vpop.f32.mrf.mxu0 }
 0x922   : > { %v6544_v4 = vsel %vm2531_vm1, %v18748_v19, -inf }
 0x923   : > { %6545 = vmax.xlane.f32.xlu0 %v6544_v4 }
 0x94d   : > { %v6459_v11 = vpop.xlane.xlu1 %6458 }
 0x94e   : > { %v6551_v16 = vsub.f32 %v18596_v45, %v6459_v11  ;;  %v18759_v11 = vpop.f32.mrf.mxu1 }
 0x94f   : > { %v6456_v25 = vpop.xlane.xlu0 %6455  ;;  %21655 = vst [vmem:[#allocation122_spill] sm:$0xff] %v18759_v11  ;;  %v15130_v11 = vld [vmem:[%s15722_s7 + $0xc8] sm:$0xff] }
 0x950   : > { %v6584_v48 = vmul.f32 1.442695, %v6551_v16  ;;  %v6550_v10 = vsub.f32 %v18602_v52, %v6456_v25  ;;  %v21656_v52 = vld [vmem:[#allocation132_spill] sm:$0xff] }
 0x951   : > { %v3738_v25 = vadd.f32 %v21656_v52, %v1903_v44 }
 0x952   : > { %14797 = vpow2.f32 %v6584_v48  ;;  %v6582_v53 = vmul.f32 1.442695, %v6550_v10  ;;  %v15127_v10 = vld [vmem:[%s15722_s7 + $0x98] sm:$0xff] }
 0x953   : > { %v6465_v15 = vpop.xlane.xlu0 %6464 }
 0x954   : > { %14799 = vpow2.f32 %v6582_v53  ;;  %v6553_v54 = vsub.f32 %v18611_v3, %v6465_v15  ;;  %v1905_v53 = vadd.f32 %v15127_v10, %v18557_v18 }
 0x956   : > { %v6588_v58 = vmul.f32 1.442695, %v6553_v54 }
 0x957   : > { %v6462_v57 = vpop.xlane.xlu0 %6461 }
 0x958   : > { %14801 = vpow2.f32 %v6588_v58  ;;  %v6471_v4 = vpop.xlane.xlu1 %6470  ;;  %v6552_v45 = vsub.f32 %v18625_v30, %v6462_v57 }
 0x959   : > { %v6555_v16 = vsub.f32 %v18634_v43, %v6471_v4  ;;  %v21659_v4 = vld [vmem:[#allocation134_spill] sm:$0xff] }
 0x95a   : > { %v6586_v48 = vmul.f32 1.442695, %v6552_v45  ;;  %v3740_v45 = vadd.f32 %v21659_v4, %v1905_v53 }
 0x95b   : > { %v6592_v3 = vmul.f32 1.442695, %v6555_v16 }
 0x95c   : > { %14803 = vpow2.f32 %v6586_v48  ;;  %v6468_v15 = vpop.xlane.xlu0 %6467  ;;  %v13778_v54 = vpop.f32.mrf.mxu1 }
 0x95d   : > { %14805 = vpow2.f32 %v6592_v3  ;;  %v6554_v62 = vsub.f32 %v18644_v42, %v6468_v15  ;;  %v18765_v58 = vadd.f32 %v13778_v54, %v3738_v25 }
 0x95e   : > { %v18767_v57 = vpop.f32.mrf.mxu1  ;;  %v6477_v30 = vpop.xlane.xlu1 %6476 }
 0x95f   : > { %21657 = vst [vmem:[#allocation124_spill] sm:$0xff] %v18765_v58  ;;  %21658 = vst [vmem:[#allocation126_spill] sm:$0xff] %v18767_v57  ;;  %v18769_v43 = vpop.eup %14797  ;;  %v6590_v44 = vmul.f32 1.442695, %v6554_v62  ;;  %v6557_v52 = vsub.f32 %v18656_v51, %v6477_v30  ;;  %v15128_v51 = vld [vmem:[%s15722_s7 + $0xa8] sm:$0xff] }
 0x960   : > { %v13781_v16 = vpop.f32.mrf.mxu1  ;;  %v6649_v48 = vsel %vm2531_vm1, %v18769_v43, 0.0  ;;  %v6474_v10 = vpop.xlane.xlu0 %6473  ;;  %v1907_v62 = vadd.f32 %v15128_v51, %v18557_v18 }
 0x961   : > { %v18775_v3 = vpop.eup %14799  ;;  %14807 = vpow2.f32 %v6590_v44  ;;  %v6596_v42 = vmul.f32 1.442695, %v6557_v52  ;;  %v18777_v25 = vadd.f32 %v13781_v16, %v3740_v45  ;;  %6650 = vadd.xlane.f32.xlu1 %v6649_v48  ;;  %v6556_v15 = vsub.f32 %v18662_v55, %v6474_v10  ;;  %v21662_v55 = vld [vmem:[#allocation136_spill] sm:$0xff] }
 0x962   : > { %v6646_v53 = vsel %vm2531_vm1, %v18775_v3, 0.0  ;;  %v18788_v45 = vpop.f32.mrf.mxu1  ;;  %v3742_v44 = vadd.f32 %v21662_v55, %v1907_v62 }
 0x963   : > { %21660 = vst [vmem:[#allocation128_spill] sm:$0xff] %v18777_v25  ;;  %14809 = vpow2.f32 %v6596_v42  ;;  %v6594_v54 = vmul.f32 1.442695, %v6556_v15  ;;  %6647 = vadd.xlane.f32.xlu0 %v6646_v53  ;;  %21661 = vst [vmem:[#allocation130_spill] sm:$0xff] %v18788_v45  ;;  %v15129_v53 = vld [vmem:[%s15722_s7 + $0xb8] sm:$0xff]  ;;  %v21665_v45 = vld [vmem:[#allocation138_spill] sm:$0xff] }
 0x965   : > { %v18784_v30 = vpop.eup %14801  ;;  %14811 = vpow2.f32 %v6594_v54  ;;  %v1909_v54 = vadd.f32 %v15129_v53, %v18557_v18 }
 0x966   : > { %v6655_v4 = vsel %vm2531_vm1, %v18784_v30, 0.0 }
 0x967   : > { %6656 = vadd.xlane.f32.xlu1 %v6655_v4  ;;  %v3744_v57 = vadd.f32 %v21665_v45, %v1909_v54 }
 0x969   : > { %v18791_v52 = vpop.eup %14803  ;;  %v13784_v16 = vpop.f32.mrf.mxu1 }
 0x96a   : > { %v18793_v48 = vpop.eup %14805  ;;  %v18795_v10 = vadd.f32 %v13784_v16, %v3742_v44  ;;  %v6652_v42 = vsel %vm2531_vm1, %v18791_v52, 0.0 }
 0x96b   : > { %v6661_v15 = vsel %vm2531_vm1, %v18793_v48, 0.0  ;;  %6653 = vadd.xlane.f32.xlu0 %v6652_v42  ;;  %v18805_v4 = vpop.f32.mrf.mxu1  ;;  %v1911_v42 = vadd.f32 %v15130_v11, %v18557_v18 }
 0x96c   : > { %21663 = vst [vmem:[#allocation132_spill] sm:$0xff] %v18795_v10  ;;  %6662 = vadd.xlane.f32.xlu1 %v6661_v15  ;;  %21664 = vst [vmem:[#allocation134_spill] sm:$0xff] %v18805_v4 }
 0x96e   : > { %v18803_v51 = vpop.eup %14807  ;;  %v6483_v62 = vpop.xlane.xlu1 %6482 }
 0x96f   : > { %v6559_v55 = vsub.f32 %v18667_v34, %v6483_v62  ;;  %v6658_v44 = vsel %vm2531_vm1, %v18803_v51, 0.0 }
 0x970   : > { %v18810_v16 = vpop.eup %14809  ;;  %6659 = vadd.xlane.f32.xlu0 %v6658_v44  ;;  %v6480_v15 = vpop.xlane.xlu0 %6479 }
 0x971   : > { %v6600_v53 = vmul.f32 1.442695, %v6559_v55  ;;  %v6558_v10 = vsub.f32 %v18671_v59, %v6480_v15  ;;  %v13787_v25 = vpop.f32.mrf.mxu1  ;;  %v6667_v34 = vsel %vm2531_vm1, %v18810_v16, 0.0  ;;  %v21668_v59 = vld [vmem:[#allocation140_spill] sm:$0xff]  ;;  %v15131_v15 = vld [vmem:[%s15722_s7 + $0xd8] sm:$0xff] }
 0x972   : > { %v18818_v62 = vpop.eup %14811  ;;  %v18820_v4 = vadd.f32 %v13787_v25, %v3744_v57  ;;  %v6489_v58 = vpop.xlane.xlu1 %6488  ;;  %6668 = vadd.xlane.f32.xlu1 %v6667_v34  ;;  %v3746_v44 = vadd.f32 %v21668_v59, %v1911_v42  ;;  %v1913_v37 = vadd.f32 %v15131_v15, %v18557_v18  ;;  %v21671_v59 = vld [vmem:[#allocation142_spill] sm:$0xff]  ;;  %v15132_v15 = vld [vmem:[%s15722_s7 + $0xe8] sm:$0xff] }
 0x973   : > { %14813 = vpow2.f32 %v6600_v53  ;;  %v6598_v45 = vmul.f32 1.442695, %v6558_v10  ;;  %v6561_v11 = vsub.f32 %v18675_v56, %v6489_v58  ;;  %v18823_v54 = vpop.f32.mrf.mxu1  ;;  %v6664_v55 = vsel %vm2531_vm1, %v18818_v62, 0.0 }
 0x974   : > { %21666 = vst [vmem:[#allocation136_spill] sm:$0xff] %v18820_v4  ;;  %21667 = vst [vmem:[#allocation138_spill] sm:$0xff] %v18823_v54  ;;  %v6486_v21 = vpop.xlane.xlu0 %6485  ;;  %6665 = vadd.xlane.f32.xlu0 %v6664_v55  ;;  %v3748_v54 = vadd.f32 %v21671_v59, %v1913_v37  ;;  %v1915_v55 = vadd.f32 %v15132_v15, %v18557_v18  ;;  %v21677_v15 = vld [vmem:[#allocation146_spill] sm:$0xff] }
 0x975   : > { %14815 = vpow2.f32 %v6598_v45  ;;  %v6604_v57 = vmul.f32 1.442695, %v6561_v11  ;;  %v6560_v25 = vsub.f32 %v18679_v7, %v6486_v21  ;;  %v13790_v10 = vpop.f32.mrf.mxu1 }
 0x976   : > { %v18831_v53 = vadd.f32 %v13790_v10, %v3746_v44  ;;  %v6495_v56 = vpop.xlane.xlu1 %6494  ;;  %v21674_v10 = vld [vmem:[#allocation144_spill] sm:$0xff] }
 0x977   : > { %14817 = vpow2.f32 %v6604_v57  ;;  %v6602_v58 = vmul.f32 1.442695, %v6560_v25  ;;  %v18833_v34 = vpop.f32.mrf.mxu1  ;;  %v6563_v42 = vsub.f32 %v18683_v47, %v6495_v56  ;;  %v15133_v47 = vld [vmem:[%s15722_s7 + $0xf8] sm:$0xff] }
 0x978   : > { %21669 = vst [vmem:[#allocation140_spill] sm:$0xff] %v18831_v53  ;;  %21670 = vst [vmem:[#allocation149_spill] sm:$0xff] %v18833_v34  ;;  %v6492_v45 = vpop.xlane.xlu0 %6491  ;;  %v3750_v34 = vadd.f32 %v21674_v10, %v1915_v55  ;;  %v1917_v37 = vadd.f32 %v15133_v47, %v18557_v18 }
 0x979   : > { %14819 = vpow2.f32 %v6602_v58  ;;  %v6608_v11 = vmul.f32 1.442695, %v6563_v42  ;;  %v13793_v21 = vpop.f32.mrf.mxu1  ;;  %v6562_v7 = vsub.f32 %v18687_v27, %v6492_v45 }
 0x97a   : > { %v18840_v44 = vadd.f32 %v13793_v21, %v3748_v54  ;;  %v3752_v45 = vadd.f32 %v21677_v15, %v1917_v37 }
 0x97b   : > { %14821 = vpow2.f32 %v6608_v11  ;;  %v6606_v57 = vmul.f32 1.442695, %v6562_v7  ;;  %v18842_v25 = vpop.f32.mrf.mxu1 }
 0x97c   : > { %21672 = vst [vmem:[#allocation142_spill] sm:$0xff] %v18840_v44  ;;  %21673 = vst [vmem:[#allocation150_spill] sm:$0xff] %v18842_v25 }
 0x97d   : > { %14823 = vpow2.f32 %v6606_v57  ;;  %v13796_v56 = vpop.f32.mrf.mxu1 }
 0x97e   : > { %v18847_v59 = vadd.f32 %v13796_v56, %v3750_v34  ;;  %v6501_v58 = vpop.xlane.xlu1 %6500 }
 0x97f   : > { %v18849_v42 = vpop.f32.mrf.mxu1  ;;  %v6565_v27 = vsub.f32 %v18691_v28, %v6501_v58 }
 0x980   : > { %21675 = vst [vmem:[#allocation144_spill] sm:$0xff] %v18847_v59  ;;  %21676 = vst [vmem:[#allocation151_spill] sm:$0xff] %v18849_v42  ;;  %v18852_v54 = vpop.eup %14813  ;;  %v6498_v11 = vpop.xlane.xlu0 %6497 }
 0x981   : > { %v6612_v21 = vmul.f32 1.442695, %v6565_v27  ;;  %v13799_v7 = vpop.f32.mrf.mxu1  ;;  %v6673_v55 = vsel %vm2531_vm1, %v18852_v54, 0.0  ;;  %v6564_v18 = vsub.f32 %v18695_v29, %v6498_v11 }
 0x982   : > { %v18858_v57 = vpop.eup %14815  ;;  %v18860_v34 = vadd.f32 %v13799_v7, %v3752_v45  ;;  %6674 = vadd.xlane.f32.xlu0 %v6673_v55 }
 0x983   : > { %14825 = vpow2.f32 %v6612_v21  ;;  %v6610_v10 = vmul.f32 1.442695, %v6564_v18  ;;  %v6670_v28 = vsel %vm2531_vm1, %v18858_v57, 0.0  ;;  %v18892_v59 = vpop.f32.mrf.mxu1 }
 0x984   : > { %21678 = vst [vmem:[#allocation146_spill] sm:$0xff] %v18860_v34  ;;  %v18864_v47 = vpop.eup %14817  ;;  %6671 = vadd.xlane.f32.xlu1 %v6670_v28  ;;  %21679 = vst [vmem:[#allocation152_spill] sm:$0xff] %v18892_v59  ;;  %v21686_v59 = vld [vmem:[#allocation94_spill] sm:$0xff] }
 0x985   : > { %14827 = vpow2.f32 %v6610_v10  ;;  %v6679_v37 = vsel %vm2531_vm1, %v18864_v47, 0.0 }
 0x986   : > { %v18868_v56 = vpop.eup %14819  ;;  %6680 = vadd.xlane.f32.xlu0 %v6679_v37 }
 0x987   : > { %v6676_v29 = vsel %vm2531_vm1, %v18868_v56, 0.0 }
 0x988   : > { %v18872_v58 = vpop.eup %14821  ;;  %6677 = vadd.xlane.f32.xlu1 %v6676_v29 }
 0x989   : > { %v6685_v27 = vsel %vm2531_vm1, %v18872_v58, 0.0 }
 0x98a   : > { %v18876_v15 = vpop.eup %14823  ;;  %6686 = vadd.xlane.f32.xlu0 %v6685_v27 }
 0x98b   : > { %v6682_v45 = vsel %vm2531_vm1, %v18876_v15, 0.0 }
 0x98c   : > { %6683 = vadd.xlane.f32.xlu1 %v6682_v45 }
 0x990   : > { %v18880_v11 = vpop.eup %14825 }
 0x991   : > { %v6691_v21 = vsel %vm2531_vm1, %v18880_v11, 0.0 }
 0x992   : > { %v18884_v7 = vpop.eup %14827  ;;  %6692 = vadd.xlane.f32.xlu0 %v6691_v21 }
 0x993   : > { %v6688_v55 = vsel %vm2531_vm1, %v18884_v7, 0.0 }
 0x994   : > { %6689 = vadd.xlane.f32.xlu1 %v6688_v55 }
 0x99e   : > { %v6531_v18 = vpop.xlane.xlu1 %6530 }
 0x99f   : > { %v6575_v10 = vsub.f32 %v18720_v49, %v6531_v18 }
 0x9a0   : > { %v6528_v28 = vpop.xlane.xlu0 %6527 }
 0x9a1   : > { %v6632_v37 = vmul.f32 1.442695, %v6575_v10  ;;  %v6574_v29 = vsub.f32 %v18724_v46, %v6528_v28  ;;  %v18896_v28 = vpop.f32.mrf.mxu1 }
 0x9a2   : > { %v6537_v27 = vpop.xlane.xlu1 %6536 }
 0x9a3   : > { %14829 = vpow2.f32 %v6632_v37  ;;  %v6630_v45 = vmul.f32 1.442695, %v6574_v29  ;;  %v6577_v42 = vsub.f32 %v18728_v12, %v6537_v27 }
 0x9a4   : > { %v6534_v25 = vpop.xlane.xlu0 %6533 }
 0x9a5   : > { %14831 = vpow2.f32 %v6630_v45  ;;  %v6636_v34 = vmul.f32 1.442695, %v6577_v42  ;;  %v6576_v21 = vsub.f32 %v18732_v13, %v6534_v25  ;;  %v18898_v42 = vpop.f32.mrf.mxu1 }
 0x9a6   : > { %v6543_v55 = vpop.xlane.xlu1 %6542 }
 0x9a7   : > { %14833 = vpow2.f32 %v6636_v34  ;;  %v6634_v44 = vmul.f32 1.442695, %v6576_v21  ;;  %v6579_v49 = vsub.f32 %v18736_v40, %v6543_v55  ;;  %v18906_v40 = vpop.f32.mrf.mxu1 }
 0x9a8   : > { %v6540_v18 = vpop.xlane.xlu0 %6539 }
 0x9a9   : > { %14835 = vpow2.f32 %v6634_v44  ;;  %v6640_v46 = vmul.f32 1.442695, %v6579_v49  ;;  %v6578_v10 = vsub.f32 %v18740_v24, %v6540_v18  ;;  %v18916_v27 = vpop.f32.mrf.mxu1 }
 0x9aa   : > { %v6549_v53 = vpop.xlane.xlu1 %6548 }
 0x9ab   : > { %14837 = vpow2.f32 %v6640_v46  ;;  %v6638_v12 = vmul.f32 1.442695, %v6578_v10  ;;  %v18926_v18 = vpop.f32.mrf.mxu1  ;;  %v6502_v10 = vsel %vm2531_vm1, %v18898_v42, -inf  ;;  %v6581_v4 = vsub.f32 %v18744_v32, %v6549_v53 }
 0x9ad   : > { %14839 = vpow2.f32 %v6638_v12  ;;  %v18932_v12 = vpop.f32.mrf.mxu1 }
 0x9b0   : > { %v18900_v13 = vpop.eup %14829 }
 0x9b1   : > { %21680 = vst [vmem:[#allocation153_spill] sm:$0xff] %v18900_v13  ;;  %v6721_v25 = vsel %vm2531_vm1, %v18900_v13, 0.0 }
 0x9b2   : > { %v18904_v34 = vpop.eup %14831  ;;  %6722 = vadd.xlane.f32.xlu0 %v6721_v25  ;;  %v6505_v25 = vsel %vm2531_vm1, %v18896_v28, -inf }
 0x9b3   : > { %v6718_v24 = vsel %vm2531_vm1, %v18904_v34, 0.0 }
 0x9b4   : > { %v18910_v44 = vpop.eup %14833  ;;  %6719 = vadd.xlane.f32.xlu1 %v6718_v24  ;;  %v6508_v24 = vsel %vm2531_vm1, %v18916_v27, -inf }
 0x9b5   : > { %21681 = vst [vmem:[#allocation154_spill] sm:$0xff] %v18910_v44  ;;  %v6727_v37 = vsel %vm2531_vm1, %v18910_v44, 0.0 }
 0x9b6   : > { %v18914_v29 = vpop.eup %14835  ;;  %6728 = vadd.xlane.f32.xlu0 %v6727_v37  ;;  %v18938_v37 = vpop.f32.mrf.mxu1 }
 0x9b7   : > { %21682 = vst [vmem:[#allocation155_spill] sm:$0xff] %v18914_v29  ;;  %v6724_v45 = vsel %vm2531_vm1, %v18914_v29, 0.0 }
 0x9b8   : > { %v18920_v21 = vpop.eup %14837  ;;  %6725 = vadd.xlane.f32.xlu1 %v6724_v45  ;;  %v6511_v45 = vsel %vm2531_vm1, %v18906_v40, -inf }
 0x9b9   : > { %21683 = vst [vmem:[#allocation156_spill] sm:$0xff] %v18920_v21  ;;  %v6733_v55 = vsel %vm2531_vm1, %v18920_v21, 0.0  ;;  %v6644_v21 = vmul.f32 1.442695, %v6581_v4 }
 0x9ba   : > { %v18924_v49 = vpop.eup %14839  ;;  %6734 = vadd.xlane.f32.xlu0 %v6733_v55  ;;  %v6514_v55 = vsel %vm2531_vm1, %v18932_v12, -inf }
 0x9bb   : > { %21684 = vst [vmem:[#allocation157_spill] sm:$0xff] %v18924_v49  ;;  %v6730_v46 = vsel %vm2531_vm1, %v18924_v49, 0.0 }
 0x9bc   : > { %6731 = vadd.xlane.f32.xlu1 %v6730_v46  ;;  %v18944_v46 = vpop.f32.mrf.mxu1 }
 0x9be   : > { %6503 = vmax.xlane.f32.xlu0 %v6502_v10  ;;  %v6517_v10 = vsel %vm2531_vm1, %v18926_v18, -inf }
 0x9c0   : > { %6506 = vmax.xlane.f32.xlu1 %v6505_v25  ;;  %v6520_v25 = vsel %vm2531_vm1, %v18944_v46, -inf }
 0x9c2   : > { %6509 = vmax.xlane.f32.xlu0 %v6508_v24  ;;  %v6523_v24 = vsel %vm2531_vm1, %v18938_v37, -inf }
 0x9c4   : > { %6512 = vmax.xlane.f32.xlu1 %v6511_v45  ;;  %v21685_v45 = vld [vmem:[#allocation95_spill] sm:$0xff] }
 0x9c6   : > { %6515 = vmax.xlane.f32.xlu0 %v6514_v55  ;;  %v6546_v55 = vpop.xlane.xlu0 %6545 }
 0x9c8   : > { %6518 = vmax.xlane.f32.xlu1 %v6517_v10  ;;  %v6580_v10 = vsub.f32 %v18748_v19, %v6546_v55  ;;  %v21688_v55 = vld [vmem:[#allocation108_spill] sm:$0xff] }
 0x9ca   : > { %6521 = vmax.xlane.f32.xlu0 %v6520_v25  ;;  %v6642_v44 = vmul.f32 1.442695, %v6580_v10  ;;  %v21690_v10 = vld [vmem:[#allocation112_spill] sm:$0xff] }
 0x9cc   : > { %6524 = vmax.xlane.f32.xlu1 %v6523_v24 }
 0x9dd   : > { %7112 = vrot.lane.b32.xlu1 %v21685_v45, %s15427_s13 }
 0x9e0   : > { %7114 = vrot.lane.b32.xlu0 %v21686_v59, %s15427_s13 }
 0x9ea   : > { %v6651_v49 = vpop.xlane.xlu1 %6650 }
 0x9eb   : > { %14841 = vrcp.f32 %v6651_v49 }
 0x9ec   : > { %v6648_v25 = vpop.xlane.xlu0 %6647 }
 0x9ed   : > { %14843 = vrcp.f32 %v6648_v25 }
 0x9ee   : > { %14845 = vpow2.f32 %v6644_v21 }
 0x9ef   : > { %14847 = vpow2.f32 %v6642_v44 }
 0x9f0   : > { %v6657_v24 = vpop.xlane.xlu1 %6656 }
 0x9f1   : > { %14849 = vrcp.f32 %v6657_v24  ;;  %v21691_v24 = vld [vmem:[#allocation111_spill] sm:$0xff] }
 0x9f4   : > { %v6654_v45 = vpop.xlane.xlu0 %6653 }
 0x9f5   : > { %14851 = vrcp.f32 %v6654_v45  ;;  %v6663_v29 = vpop.xlane.xlu1 %6662 }
 0x9f6   : > { %14853 = vrcp.f32 %v6663_v29 }
 0x9f8   : > { %v14842_v59 = vpop.eup %14841 }
 0x9f9   : > { %v6660_v13 = vpop.xlane.xlu0 %6659  ;;  %v6775_v53 = vmul.f32 %v14842_v59, %v18769_v43 }
 0x9fa   : > { %v14844_v33 = vpop.eup %14843  ;;  %14855 = vrcp.f32 %v6660_v13 }
 0x9fb   : > { %v18958_v32 = vpop.eup %14845  ;;  %v6669_v19 = vpop.xlane.xlu1 %6668  ;;  %v6774_v4 = vmul.f32 %v14844_v33, %v18775_v3 }
 0x9fc   : > { %v18962_v49 = vpop.eup %14847  ;;  %14857 = vrcp.f32 %v6669_v19  ;;  %v6739_v29 = vsel %vm2531_vm1, %v18958_v32, 0.0 }
 0x9fd   : > { %13928 = vmatprep.mubr.msk.f32.mxu1 %vm2531_vm1, %v6774_v4  ;;  %v6666_v44 = vpop.xlane.xlu0 %6665  ;;  %v6736_v33 = vsel %vm2531_vm1, %v18962_v49, 0.0 }
 0x9fe   : > { %13929 = vmatmul.mubr.msk.f32.vlgmr.msra.gmra.mxu1 %vm2531_vm1, %v6775_v53  ;;  %14859 = vrcp.f32 %v6666_v44  ;;  %v14850_v43 = vpop.eup %14849 }
 0x9ff   : > { %13941 = vmatpush3.msra.mxu1 %v18531_v26  ;;  %6740 = vadd.xlane.f32.xlu0 %v6739_v29  ;;  %v6777_v26 = vmul.f32 %v14850_v43, %v18784_v30  ;;  %v21692_v43 = vld [vmem:[#allocation113_spill] sm:$0xff] }
 0xa00   : > { %13942 = vmatprep.subr.mxu1 %v18537_v41 }
 0xa01   : > { %13943 = vmatpush3.msra.mxu1 %v18537_v41  ;;  %6737 = vadd.xlane.f32.xlu1 %v6736_v33 }
 0xa02   : > { %v14852_v3 = vpop.eup %14851  ;;  %13944 = vmatprep.subr.mxu1 %v18535_v20 }
 0xa03   : > { %13945 = vmatpush3.msra.mxu1 %v18535_v20  ;;  %v6776_v59 = vmul.f32 %v14852_v3, %v18791_v52  ;;  %v14854_v13 = vpop.eup %14853 }
 0xa04   : > { %13946 = vmatprep.subr.mxu1 %v18541_v17  ;;  %v6779_v30 = vmul.f32 %v14854_v13, %v18793_v48 }
 0xa05   : > { %13947 = vmatpush3.msra.mxu1 %v18541_v17  ;;  %13931 = vmatprep.mubr.msk.f32.mxu1 %vm2531_vm1, %v6776_v59 }
 0xa06   : > { %13948 = vmatprep.subr.mxu1 %v18539_v50  ;;  %13932 = vmatmul.mubr.msk.f32.gmra.mxu1 %vm2531_vm1, %v6777_v26 }
 0xa07   : > { %v14856_v41 = vpop.eup %14855  ;;  %13949 = vmatpush3.msra.mxu1 %v18539_v50 }
 0xa08   : > { %13950 = vmatprep.subr.mxu1 %v18545_v1  ;;  %v6778_v20 = vmul.f32 %v14856_v41, %v18803_v51 }
 0xa09   : > { %13951 = vmatpush3.msra.mxu1 %v18545_v1  ;;  %v14858_v52 = vpop.eup %14857 }
 0xa0a   : > { %13934 = vmatprep.mubr.msk.f32.mxu1 %vm2531_vm1, %v6778_v20  ;;  %13952 = vmatprep.subr.mxu1 %v18543_v8  ;;  %v6781_v1 = vmul.f32 %v14858_v52, %v18810_v16 }
 0xa0b   : > { %v14860_v17 = vpop.eup %14859  ;;  %13935 = vmatmul.mubr.msk.f32.gmra.mxu1 %vm2531_vm1, %v6779_v30  ;;  %v6675_v21 = vpop.xlane.xlu0 %6674 }
 0xa0c   : > { %13953 = vmatpush3.msra.mxu1 %v18543_v8  ;;  %v6780_v50 = vmul.f32 %v14860_v17, %v18818_v62  ;;  %14861 = vrcp.f32 %v6675_v21  ;;  %v21687_v8 = vld [vmem:[#allocation109_spill] sm:$0xff] }
 0xa0d   : > { %13954 = vmatprep.subr.mxu1 %v18547_v63  ;;  %v6672_v51 = vpop.xlane.xlu1 %6671 }
 0xa0e   : > { %14863 = vrcp.f32 %v6672_v51  ;;  %13955 = vmatpush3.msra.mxu1 %v18547_v63  ;;  %13937 = vmatprep.mubr.msk.f32.mxu1 %vm2531_vm1, %v6780_v50  ;;  %v21689_v63 = vld [vmem:[#allocation110_spill] sm:$0xff] }
 0xa0f   : > { %v6681_v48 = vpop.xlane.xlu0 %6680  ;;  %13938 = vmatmul.mubr.msk.f32.gmra.mxu1 %vm2531_vm1, %v6781_v1 }
 0xa10   : > { %14865 = vrcp.f32 %v6681_v48 }
 0xa11   : > { %v6678_v45 = vpop.xlane.xlu1 %6677 }
 0xa12   : > { %14867 = vrcp.f32 %v6678_v45  ;;  %7277 = vrot.lane.b32.xlu1 %v21687_v8, %s15427_s13 }
 0xa13   : > { %v6687_v62 = vpop.xlane.xlu0 %6686 }
 0xa14   : > { %14869 = vrcp.f32 %v6687_v62 }
 0xa15   : > { %7279 = vrot.lane.b32.xlu0 %v21688_v55, %s15427_s13  ;;  %v6684_v16 = vpop.xlane.xlu1 %6683 }
 0xa16   : > { %14871 = vrcp.f32 %v6684_v16  ;;  %7275 = vrot.lane.b32.xlu1 %v21689_v63, %s15427_s13 }
 0xa19   : > { %7271 = vrot.lane.b32.xlu0 %v21690_v10, %s15427_s13  ;;  %v14862_v25 = vpop.eup %14861 }
 0xa1a   : > { %7273 = vrot.lane.b32.xlu1 %v21691_v24, %s15427_s13  ;;  %v6783_v44 = vmul.f32 %v14862_v25, %v18852_v54 }
 0xa1b   : > { %v14864_v19 = vpop.eup %14863  ;;  %v6693_v4 = vpop.xlane.xlu0 %6692 }
 0xa1c   : > { %v6782_v53 = vmul.f32 %v14864_v19, %v18858_v57  ;;  %14873 = vrcp.f32 %v6693_v4 }
 0xa1d   : > { %v6690_v29 = vpop.xlane.xlu1 %6689  ;;  %v14866_v33 = vpop.eup %14865 }
 0xa1e   : > { %13956 = vmatprep.mubr.msk.f32.mxu1 %vm2531_vm1, %v6782_v53  ;;  %14875 = vrcp.f32 %v6690_v29  ;;  %7269 = vrot.lane.b32.xlu1 %v21692_v43, %s15427_s13  ;;  %v6785_v26 = vmul.f32 %v14866_v33, %v18864_v47 }
 0xa1f   : > { %v14868_v3 = vpop.eup %14867  ;;  %13957 = vmatmul.mubr.msk.f32.vlgmr.msra.gmra.mxu1 %vm2531_vm1, %v6783_v44 }
 0xa20   : > { %v6784_v59 = vmul.f32 %v14868_v3, %v18868_v56 }
 0xa21   : > { %v14870_v13 = vpop.eup %14869 }
 0xa22   : > { %13959 = vmatprep.mubr.msk.f32.mxu1 %vm2531_vm1, %v6784_v59  ;;  %v6787_v41 = vmul.f32 %v14870_v13, %v18872_v58 }
 0xa23   : > { %v14872_v54 = vpop.eup %14871  ;;  %13960 = vmatmul.mubr.msk.f32.gmra.mxu1 %vm2531_vm1, %v6785_v26 }
 0xa24   : > { %v6786_v57 = vmul.f32 %v14872_v54, %v18876_v15 }
 0xa26   : > { %13962 = vmatprep.mubr.msk.f32.mxu1 %vm2531_vm1, %v6786_v57 }
 0xa27   : > { %13963 = vmatmul.mubr.msk.f32.gmra.mxu1 %vm2531_vm1, %v6787_v41 }
 0xa29   : > { %v14874_v20 = vpop.eup %14873 }
 0xa2a   : > { %v6789_v47 = vmul.f32 %v14874_v20, %v18880_v11 }
 0xa2b   : > { %v14876_v30 = vpop.eup %14875 }
 0xa2c   : > { %v6788_v56 = vmul.f32 %v14876_v30, %v18884_v7 }
 0xa2e   : > { %13965 = vmatprep.mubr.msk.f32.mxu1 %vm2531_vm1, %v6788_v56 }
 0xa2f   : > { %13966 = vmatmul.mubr.msk.f32.gmra.mxu1 %vm2531_vm1, %v6789_v47 }
 0xa3b   : > { %v19025_v52 = vpop.xlane.xlu0 %6722 }
 0xa3d   : > { %v6720_v17 = vpop.xlane.xlu1 %6719 }
 0xa3e   : > { %14877 = vrcp.f32 %v6720_v17 }
 0xa3f   : > { %v19027_v15 = vpop.xlane.xlu0 %6728 }
 0xa41   : > { %v19029_v58 = vpop.xlane.xlu1 %6725 }
 0xa43   : > { %v19031_v21 = vpop.xlane.xlu0 %6734 }
 0xa45   : > { %v19033_v50 = vpop.xlane.xlu1 %6731 }
 0xa47   : > { %v6504_v51 = vpop.xlane.xlu0 %6503 }
 0xa48   : > { %v6566_v7 = vsub.f32 %v18898_v42, %v6504_v51 }
 0xa49   : > { %v6507_v11 = vpop.xlane.xlu1 %6506 }
 0xa4a   : > { %v6614_v1 = vmul.f32 1.442695, %v6566_v7  ;;  %v6567_v48 = vsub.f32 %v18896_v28, %v6507_v11 }
 0xa4b   : > { %v14878_v45 = vpop.eup %14877  ;;  %v6510_v62 = vpop.xlane.xlu0 %6509 }
 0xa4c   : > { %14879 = vpow2.f32 %v6614_v1  ;;  %v6616_v16 = vmul.f32 1.442695, %v6567_v48  ;;  %v6568_v25 = vsub.f32 %v18916_v27, %v6510_v62  ;;  %v6798_v19 = vmul.f32 %v14878_v45, %v18904_v34 }
 0xa4d   : > { %v6513_v4 = vpop.xlane.xlu1 %6512 }
 0xa4e   : > { %14881 = vpow2.f32 %v6616_v16  ;;  %v6618_v53 = vmul.f32 1.442695, %v6568_v25  ;;  %v6569_v44 = vsub.f32 %v18906_v40, %v6513_v4  ;;  %14012 = vmatprep.mubr.msk.f32.mxu1 %vm2531_vm1, %v6798_v19  ;;  %v19085_v25 = vld [vmem:[#allocation10 + $0x58] sm:$0xff]  ;;  %v21699_v4 = vld [vmem:[#allocation46_spill] sm:$0xff] }
 0xa4f   : > { %v6516_v42 = vpop.xlane.xlu0 %6515 }
 0xa50   : > { %14883 = vpow2.f32 %v6618_v53  ;;  %v6620_v29 = vmul.f32 1.442695, %v6569_v44  ;;  %v6570_v28 = vsub.f32 %v18932_v12, %v6516_v42  ;;  %v21700_v53 = vld [vmem:[#allocation49_spill] sm:$0xff]  ;;  %v21701_v44 = vld [vmem:[#allocation56_spill] sm:$0xff]  ;;  %v21702_v42 = vld [vmem:[#allocation43_spill] sm:$0xff] }
 0xa51   : > { %v6519_v33 = vpop.xlane.xlu1 %6518 }
 0xa52   : > { %14885 = vpow2.f32 %v6620_v29  ;;  %v6622_v3 = vmul.f32 1.442695, %v6570_v28  ;;  %v6571_v59 = vsub.f32 %v18926_v18, %v6519_v33  ;;  %v21703_v29 = vld [vmem:[#allocation59_spill] sm:$0xff]  ;;  %v21704_v28 = vld [vmem:[#allocation54_spill] sm:$0xff] }
 0xa53   : > { %v6522_v27 = vpop.xlane.xlu0 %6521  ;;  %v21705_v33 = vld [vmem:[#allocation35_spill] sm:$0xff] }
 0xa54   : > { %14887 = vpow2.f32 %v6622_v3  ;;  %v6624_v34 = vmul.f32 1.442695, %v6571_v59  ;;  %v6572_v26 = vsub.f32 %v18944_v46, %v6522_v27  ;;  %v21706_v3 = vld [vmem:[#allocation48_spill] sm:$0xff]  ;;  %v21707_v59 = vld [vmem:[#allocation66_spill] sm:$0xff] }
 0xa55   : > { %v6525_v13 = vpop.xlane.xlu1 %6524  ;;  %v21708_v27 = vld [vmem:[#allocation32_spill] sm:$0xff] }
 0xa56   : > { %14889 = vpow2.f32 %v6624_v34  ;;  %v6626_v40 = vmul.f32 1.442695, %v6572_v26  ;;  %v6573_v54 = vsub.f32 %v18938_v37, %v6525_v13  ;;  %v21709_v34 = vld [vmem:[#allocation45_spill] sm:$0xff]  ;;  %v21711_v13 = vld [vmem:[#allocation75_spill] sm:$0xff] }
 0xa57   : > { %v7115_v57 = vpop.permute.xlu0 %7114  ;;  %v21710_v26 = vld [vmem:[#allocation61_spill] sm:$0xff] }
 0xa58   : > { %14891 = vpow2.f32 %v6626_v40  ;;  %v6628_v41 = vmul.f32 1.442695, %v6573_v54  ;;  %13980 = vmatprep.subr.mxu0 %v7115_v57  ;;  %v21712_v40 = vld [vmem:[#allocation40_spill] sm:$0xff]  ;;  %v21713_v54 = vld [vmem:[#allocation53_spill] sm:$0xff] }
 0xa59   : > { %v19045_v12 = vpop.eup %14879  ;;  %v7113_v20 = vpop.permute.xlu1 %7112  ;;  %13981 = vmatpush3.msra.mxu0 %v7115_v57  ;;  %v21714_v57 = vld [vmem:[#allocation68_spill] sm:$0xff] }
 0xa5a   : > { %14893 = vpow2.f32 %v6628_v41  ;;  %13982 = vmatprep.subr.mxu0 %v7113_v20  ;;  %v6694_v18 = vsel %vm2531_vm1, %v19045_v12, 0.0  ;;  %v21715_v41 = vld [vmem:[#allocation85_spill] sm:$0xff] }
 0xa5b   : > { %v19049_v30 = vpop.eup %14881  ;;  %6695 = vadd.xlane.f32.xlu1 %v6694_v18  ;;  %13983 = vmatpush3.msra.mxu0 %v7113_v20  ;;  %v21716_v20 = vld [vmem:[#allocation50_spill] sm:$0xff]  ;;  %v21717_v18 = vld [vmem:[#allocation57_spill] sm:$0xff] }
 0xa5c   : > { %v6697_v37 = vsel %vm2531_vm1, %v19049_v30, 0.0  ;;  %14024 = vmatprep.subr.mxu0 %v19085_v25 }
 0xa5d   : > { %v19053_v46 = vpop.eup %14883  ;;  %6698 = vadd.xlane.f32.xlu0 %v6697_v37  ;;  %v21718_v37 = vld [vmem:[#allocation78_spill] sm:$0xff] }
 0xa5e   : > { %v6700_v56 = vsel %vm2531_vm1, %v19053_v46, 0.0 }
 0xa5f   : > { %v19057_v47 = vpop.eup %14885  ;;  %6701 = vadd.xlane.f32.xlu1 %v6700_v56  ;;  %v21719_v56 = vld [vmem:[#allocation62_spill] sm:$0xff] }
 0xa60   : > { %v6703_v17 = vsel %vm2531_vm1, %v19057_v47, 0.0 }
 0xa61   : > { %v19061_v51 = vpop.eup %14887  ;;  %6704 = vadd.xlane.f32.xlu0 %v6703_v17  ;;  %v21720_v17 = vld [vmem:[#allocation55_spill] sm:$0xff] }
 0xa62   : > { %v6706_v7 = vsel %vm2531_vm1, %v19061_v51, 0.0 }
 0xa63   : > { %v19065_v11 = vpop.eup %14889  ;;  %6707 = vadd.xlane.f32.xlu1 %v6706_v7  ;;  %v21721_v7 = vld [vmem:[#allocation65_spill] sm:$0xff] }
 0xa64   : > { %v6709_v1 = vsel %vm2531_vm1, %v19065_v11, 0.0 }
 0xa65   : > { %v19069_v48 = vpop.eup %14891  ;;  %6710 = vadd.xlane.f32.xlu0 %v6709_v1  ;;  %v21722_v1 = vld [vmem:[#allocation28_spill] sm:$0xff] }
 0xa66   : > { %v6712_v45 = vsel %vm2531_vm1, %v19069_v48, 0.0 }
 0xa67   : > { %v19073_v62 = vpop.eup %14893  ;;  %6713 = vadd.xlane.f32.xlu1 %v6712_v45  ;;  %v21723_v45 = vld [vmem:[#allocation70_spill] sm:$0xff] }
 0xa68   : > { %v6715_v16 = vsel %vm2531_vm1, %v19073_v62, 0.0 }
 0xa69   : > { %6716 = vadd.xlane.f32.xlu0 %v6715_v16  ;;  %v21724_v16 = vld [vmem:[#allocation58_spill] sm:$0xff] }
 0xa78   : > { %7265 = vrot.lane.b32.xlu1 %v21548_v5, %s15427_s13 }
 0xa7c   : > { %7799 = vrot.lane.b32.xlu1 %v16308_v14, %s15428_s30 }
 0xa7f   : > { %7267 = vrot.lane.b32.xlu0 %v21547_v31, %s15427_s13 }
 0xa80   : > { %7795 = vrot.lane.b32.xlu1 %v16340_v39, %s15428_s30 }
 0xa83   : > { %7801 = vrot.lane.b32.xlu0 %v16303_v23, %s15428_s30 }
 0xa84   : > { %7791 = vrot.lane.b32.xlu1 %v21550_v22, %s15428_s30 }
 0xa87   : > { %7797 = vrot.lane.b32.xlu0 %v16325_v35, %s15428_s30 }
 0xa88   : > { %7787 = vrot.lane.b32.xlu1 %v21552_v36, %s15428_s30  ;;  %v19096_v14 = vpop.xlane.xlu0 %6740 }
 0xa8a   : > { %v19098_v19 = vpop.xlane.xlu1 %6737 }
 0xa8b   : > { %7793 = vrot.lane.b32.xlu0 %v21549_v0, %s15428_s30 }
 0xa8c   : > { %7773 = vrot.lane.b32.xlu1 %v21555_v61, %s15428_s30  ;;  %v7280_v23 = vpop.permute.xlu0 %7279  ;;  %v21695_v61 = vld [vmem:[#allocation41_spill] sm:$0xff] }
 0xa8d   : > { %13996 = vmatprep.subr.mxu1 %v7280_v23 }
 0xa8e   : > { %v7278_v39 = vpop.permute.xlu1 %7277  ;;  %13997 = vmatpush3.msra.mxu1 %v7280_v23  ;;  %v21725_v23 = vld [vmem:[#allocation83_spill] sm:$0xff] }
 0xa8f   : > { %7789 = vrot.lane.b32.xlu0 %v21551_v60, %s15428_s30  ;;  %13998 = vmatprep.subr.mxu1 %v7278_v39  ;;  %v21693_v60 = vld [vmem:[#allocation44_spill] sm:$0xff] }
 0xa90   : > { %7968 = vrot.lane.b32.xlu1 %v21556_v6, %s15428_s30  ;;  %13999 = vmatpush3.msra.mxu1 %v7278_v39  ;;  %v7272_v22 = vpop.permute.xlu0 %7271  ;;  %v21696_v6 = vld [vmem:[#allocation39_spill] sm:$0xff] }
 0xa91   : > { %v21726_v39 = vld [vmem:[#allocation63_spill] sm:$0xff] }
 0xa92   : > { %v7276_v35 = vpop.permute.xlu1 %7275 }
 0xa93   : > { %7771 = vrot.lane.b32.xlu0 %v21553_v9, %s15428_s30  ;;  %14000 = vmatprep.subr.mxu1 %v7276_v35  ;;  %v21694_v9 = vld [vmem:[#allocation33_spill] sm:$0xff] }
 0xa94   : > { %7777 = vrot.lane.b32.xlu1 %v21563_v38, %s15428_s30  ;;  %14001 = vmatpush3.msra.mxu1 %v7276_v35  ;;  %v21698_v38 = vld [vmem:[#allocation38_spill] sm:$0xff]  ;;  %v21727_v35 = vld [vmem:[#allocation79_spill] sm:$0xff] }
 0xa96   : > { %v7274_v0 = vpop.permute.xlu1 %7273 }
 0xa97   : > { %7970 = vrot.lane.b32.xlu0 %v21554_v2, %s15428_s30  ;;  %14002 = vmatprep.subr.mxu1 %v7274_v0  ;;  %v21697_v2 = vld [vmem:[#allocation52_spill] sm:$0xff] }
 0xa98   : > { %7964 = vrot.lane.b32.xlu1 %v21693_v60, %s15428_s30  ;;  %14003 = vmatpush3.msra.mxu1 %v7274_v0  ;;  %v21728_v0 = vld [vmem:[#allocation73_spill] sm:$0xff]  ;;  %v21730_v60 = vld [vmem:[#allocation72_spill] sm:$0xff] }
 0xa99   : > { %14004 = vmatprep.subr.mxu1 %v7272_v22 }
 0xa9a   : > { %v7270_v36 = vpop.permute.xlu1 %7269  ;;  %14005 = vmatpush3.msra.mxu1 %v7272_v22  ;;  %v21729_v22 = vld [vmem:[#allocation96_spill] sm:$0xff] }
 0xa9b   : > { %7775 = vrot.lane.b32.xlu0 %v21694_v9, %s15428_s30  ;;  %14006 = vmatprep.subr.mxu1 %v7270_v36  ;;  %v21731_v9 = vld [vmem:[#allocation88_spill] sm:$0xff] }
 0xa9c   : > { %7781 = vrot.lane.b32.xlu1 %v21695_v61, %s15428_s30  ;;  %14007 = vmatpush3.msra.mxu1 %v7270_v36 }
 0xa9f   : > { %7966 = vrot.lane.b32.xlu0 %v21696_v6, %s15428_s30  ;;  %v21732_v6 = vld [vmem:[#allocation91_spill] sm:$0xff] }
 0xaa0   : > { %7960 = vrot.lane.b32.xlu1 %v21697_v2, %s15428_s30 }
 0xaa3   : > { %7779 = vrot.lane.b32.xlu0 %v21698_v38, %s15428_s30  ;;  %v21733_v38 = vld [vmem:[#allocation102_spill] sm:$0xff] }
 0xaa4   : > { %7785 = vrot.lane.b32.xlu1 %v21699_v4, %s15428_s30 }
 0xaa7   : > { %7962 = vrot.lane.b32.xlu0 %v21700_v53, %s15428_s30  ;;  %v21734_v53 = vld [vmem:[#allocation81_spill] sm:$0xff] }
 0xaa8   : > { %7956 = vrot.lane.b32.xlu1 %v21701_v44, %s15428_s30 }
 0xaab   : > { %7783 = vrot.lane.b32.xlu0 %v21702_v42, %s15428_s30  ;;  %v21735_v42 = vld [vmem:[#allocation37_spill] sm:$0xff] }
 0xaac   : > { %7942 = vrot.lane.b32.xlu1 %v21703_v29, %s15428_s30 }
 0xaaf   : > { %7958 = vrot.lane.b32.xlu0 %v21704_v28, %s15428_s30  ;;  %v21736_v28 = vld [vmem:[#allocation99_spill] sm:$0xff] }
 0xab0   : > { %8137 = vrot.lane.b32.xlu1 %v21705_v33, %s15428_s30 }
 0xab3   : > { %7940 = vrot.lane.b32.xlu0 %v21706_v3, %s15428_s30 }
 0xab4   : > { %7946 = vrot.lane.b32.xlu1 %v21707_v59, %s15428_s30 }
 0xab7   : > { %8139 = vrot.lane.b32.xlu0 %v21708_v27, %s15428_s30  ;;  %v21738_v27 = vld [vmem:[#allocation87_spill] sm:$0xff] }
 0xab8   : > { %8133 = vrot.lane.b32.xlu1 %v21709_v34, %s15428_s30 }
 0xabb   : > { %7944 = vrot.lane.b32.xlu0 %v21710_v26, %s15428_s30 }
 0xabc   : > { %7950 = vrot.lane.b32.xlu1 %v21711_v13, %s15428_s30 }
 0xabe   : > { %v19208_v3 = vpop.f32.mrf.mxu1 }
 0xabf   : > { %8135 = vrot.lane.b32.xlu0 %v21712_v40, %s15428_s30 }
 0xac0   : > { %8129 = vrot.lane.b32.xlu1 %v21713_v54, %s15428_s30  ;;  %v19219_v54 = vpop.f32.mrf.mxu1 }
 0xac3   : > { %7948 = vrot.lane.b32.xlu0 %v21714_v57, %s15428_s30 }
 0xac4   : > { %7954 = vrot.lane.b32.xlu1 %v21715_v41, %s15428_s30 }
 0xac7   : > { %8131 = vrot.lane.b32.xlu0 %v21716_v20, %s15428_s30 }
 0xac8   : > { %8125 = vrot.lane.b32.xlu1 %v21717_v18, %s15428_s30  ;;  %v19225_v18 = vpop.f32.mrf.mxu1 }
 0xacb   : > { %7952 = vrot.lane.b32.xlu0 %v21718_v37, %s15428_s30 }
 0xacc   : > { %8111 = vrot.lane.b32.xlu1 %v21719_v56, %s15428_s30 }
 0xacf   : > { %8127 = vrot.lane.b32.xlu0 %v21720_v17, %s15428_s30 }
 0xad0   : > { %8306 = vrot.lane.b32.xlu1 %v21721_v7, %s15428_s30  ;;  %v21742_v7 = vld [vmem:[#allocation153_spill] sm:$0xff] }
 0xad3   : > { %8109 = vrot.lane.b32.xlu0 %v21722_v1, %s15428_s30 }
 0xad4   : > { %8115 = vrot.lane.b32.xlu1 %v21723_v45, %s15428_s30 }
 0xad7   : > { %8308 = vrot.lane.b32.xlu0 %v21724_v16, %s15428_s30  ;;  %v21743_v16 = vld [vmem:[#allocation106_spill] sm:$0xff] }
 0xad8   : > { %8302 = vrot.lane.b32.xlu1 %v21725_v23, %s15428_s30 }
 0xadb   : > { %8113 = vrot.lane.b32.xlu0 %v21726_v39, %s15428_s30  ;;  %v19237_v39 = vpop.f32.mrf.mxu1 }
 0xadc   : > { %8119 = vrot.lane.b32.xlu1 %v21727_v35, %s15428_s30  ;;  %v21744_v35 = vld [vmem:[#allocation155_spill] sm:$0xff] }
 0xadf   : > { %8304 = vrot.lane.b32.xlu0 %v21728_v0, %s15428_s30 }
 0xae0   : > { %8298 = vrot.lane.b32.xlu1 %v21729_v22, %s15428_s30 }
 0xae3   : > { %8117 = vrot.lane.b32.xlu0 %v21730_v60, %s15428_s30 }
 0xae4   : > { %v6696_v36 = vpop.xlane.xlu1 %6695  ;;  %8123 = vrot.lane.b32.xlu1 %v21731_v9, %s15428_s30  ;;  %v21746_v9 = vld [vmem:[#allocation154_spill] sm:$0xff] }
 0xae5   : > { %14895 = vrcp.f32 %v6696_v36 }
 0xae6   : > { %v6699_v61 = vpop.xlane.xlu0 %6698 }
 0xae7   : > { %14897 = vrcp.f32 %v6699_v61  ;;  %8300 = vrot.lane.b32.xlu0 %v21732_v6, %s15428_s30 }
 0xae8   : > { %v6702_v2 = vpop.xlane.xlu1 %6701  ;;  %8294 = vrot.lane.b32.xlu1 %v21733_v38, %s15428_s30  ;;  %v19254_v38 = vpop.f32.mrf.mxu1 }
 0xae9   : > { %14899 = vrcp.f32 %v6702_v2 }
 0xaea   : > { %14901 = vrcp.f32 %v19025_v52  ;;  %v6705_v4 = vpop.xlane.xlu0 %6704  ;;  %v21737_v52 = vld [vmem:[#allocation42_spill] sm:$0xff] }
 0xaeb   : > { %14903 = vrcp.f32 %v6705_v4  ;;  %8121 = vrot.lane.b32.xlu0 %v21734_v53, %s15428_s30  ;;  %v21747_v4 = vld [vmem:[#allocation107_spill] sm:$0xff]  ;;  %v21748_v53 = vld [vmem:[#allocation157_spill] sm:$0xff] }
 0xaec   : > { %14905 = vrcp.f32 %v19029_v58  ;;  %v6708_v44 = vpop.xlane.xlu1 %6707  ;;  %8280 = vrot.lane.b32.xlu1 %v21735_v42, %s15428_s30  ;;  %v1873_v42 = vld [vmem:[#allocation10 + $0x50] sm:$0xff] }
 0xaed   : > { %14907 = vrcp.f32 %v6708_v44 }
 0xaee   : > { %14909 = vrcp.f32 %v19027_v15  ;;  %v6711_v29 = vpop.xlane.xlu0 %6710 }
 0xaef   : > { %14911 = vrcp.f32 %v6711_v29  ;;  %8296 = vrot.lane.b32.xlu0 %v21736_v28, %s15428_s30  ;;  %v21749_v28 = vld [vmem:[#allocation76_spill] sm:$0xff] }
 0xaf0   : > { %14913 = vrcp.f32 %v19033_v50  ;;  %8284 = vrot.lane.b32.xlu1 %v21737_v52, %s15428_s30  ;;  %v6714_v33 = vpop.xlane.xlu1 %6713  ;;  %v21739_v50 = vld [vmem:[#allocation47_spill] sm:$0xff] }
 0xaf1   : > { %14915 = vrcp.f32 %v6714_v33 }
 0xaf2   : > { %v14896_v58 = vpop.eup %14895  ;;  %v6717_v59 = vpop.xlane.xlu0 %6716 }
 0xaf3   : > { %14917 = vrcp.f32 %v6717_v59  ;;  %8278 = vrot.lane.b32.xlu0 %v21738_v27, %s15428_s30  ;;  %v6790_v15 = vmul.f32 %v14896_v58, %v19045_v12  ;;  %v21740_v12 = vld [vmem:[#allocation105_spill] sm:$0xff]  ;;  %v6940_v59 = vpop.f32.mrf.mxu1  ;;  %v21750_v27 = vld [vmem:[#allocation156_spill] sm:$0xff] }
 0xaf4   : > { %v14898_v34 = vpop.eup %14897  ;;  %14919 = vrcp.f32 %v19031_v21  ;;  %8288 = vrot.lane.b32.xlu1 %v21739_v50, %s15428_s30  ;;  %v7266_v26 = vpop.permute.xlu1 %7265  ;;  %v1872_v58 = vld [vmem:[#allocation10 + $0x48] sm:$0xff] }
 0xaf5   : > { %14921 = vrcp.f32 %v19098_v19  ;;  %v6791_v13 = vmul.f32 %v14898_v34, %v19049_v30  ;;  %13984 = vmatprep.mubr.msk.f32.mxu0 %vm2531_vm1, %v6790_v15  ;;  %v21741_v30 = vld [vmem:[#allocation51_spill] sm:$0xff] }
 0xaf6   : > { %v14900_v40 = vpop.eup %14899  ;;  %v7268_v57 = vpop.permute.xlu0 %7267  ;;  %14923 = vrcp.f32 %v19096_v14 }
 0xaf7   : > { %v14902_v41 = vpop.eup %14901  ;;  %8282 = vrot.lane.b32.xlu0 %v21740_v12, %s15428_s30  ;;  %13985 = vmatmul.mubr.msk.f32.vlgmr.msra.gmra.mxu0 %vm2531_vm1, %v6791_v13  ;;  %v6792_v21 = vmul.f32 %v14900_v40, %v19053_v46  ;;  %v13939_v13 = vpop.f32.mrf.mxu1  ;;  %v1871_v40 = vld [vmem:[#allocation10 + $0x40] sm:$0xff] }
 0xaf8   : > { %v14904_v20 = vpop.eup %14903  ;;  %14008 = vmatprep.subr.mxu1 %v7268_v57  ;;  %8292 = vrot.lane.b32.xlu1 %v21741_v30, %s15428_s30  ;;  %v7800_v19 = vpop.permute.xlu1 %7799  ;;  %v6799_v1 = vmul.f32 %v14902_v41, %v21742_v7  ;;  %v21752_v41 = vld [vmem:[#allocation80_spill] sm:$0xff]  ;;  %v21753_v30 = vld [vmem:[#allocation71_spill] sm:$0xff] }
 0xaf9   : > { %v14906_v37 = vpop.eup %14905  ;;  %14009 = vmatpush3.msra.mxu1 %v7268_v57  ;;  %13987 = vmatprep.mubr.msk.f32.mxu0 %vm2531_vm1, %v6792_v21  ;;  %v6793_v56 = vmul.f32 %v14904_v20, %v19057_v47  ;;  %v6950_v21 = vpop.f32.mrf.mxu1 }
 0xafa   : > { %v14908_v17 = vpop.eup %14907  ;;  %14010 = vmatprep.subr.mxu1 %v7266_v26  ;;  %v7802_v46 = vpop.permute.xlu0 %7801  ;;  %14025 = vmatpush3.msra.mxu0 %v19085_v25  ;;  %v6800_v0 = vmul.f32 %v14906_v37, %v21744_v35  ;;  %v21745_v25 = vld [vmem:[#allocation64_spill] sm:$0xff] }
 0xafb   : > { %v14910_v45 = vpop.eup %14909  ;;  %14011 = vmatpush3.msra.mxu1 %v7266_v26  ;;  %8286 = vrot.lane.b32.xlu0 %v21743_v16, %s15428_s30  ;;  %v6794_v23 = vmul.f32 %v14908_v17, %v19061_v51 }
 0xafc   : > { %v14912_v14 = vpop.eup %14911  ;;  %13988 = vmatmul.mubr.msk.f32.gmra.mxu0 %vm2531_vm1, %v6793_v56  ;;  %14013 = vmatmul.mubr.msk.f32.vlgmr.msra.gmra.mxu1 %vm2531_vm1, %v6799_v1  ;;  %v19241_v47 = vpop.permute.xlu1 %7795  ;;  %v6801_v61 = vmul.f32 %v14910_v45, %v21746_v9  ;;  %v21755_v56 = vld [vmem:[#allocation86_spill] sm:$0xff] }
 0xafd   : > { %v14914_v22 = vpop.eup %14913  ;;  %14080 = vmatprep.subr.msk.mxu1 %vm1918_vm0, %v7802_v46  ;;  %8811 = vrot.lane.b32.xlu1 %v21745_v25, %s15428_s30  ;;  %v6795_v60 = vmul.f32 %v14912_v14, %v19065_v11  ;;  %v21759_v14 = vld [vmem:[#allocation93_spill] sm:$0xff]  ;;  %v21761_v25 = vld [vmem:[#allocation82_spill] sm:$0xff] }
 0xafe   : > { %v14916_v51 = vpop.eup %14915  ;;  %14015 = vmatprep.mubr.msk.f32.mxu1 %vm2531_vm1, %v6800_v0  ;;  %14081 = vmatpush3.xpose.msk.msra.mxu1 %vm1918_vm0, %v7802_v46  ;;  %v7798_v36 = vpop.permute.xlu0 %7797  ;;  %v6802_v44 = vmul.f32 %v14914_v22, %v21748_v53  ;;  %v21757_v46 = vld [vmem:[#allocation89_spill] sm:$0xff] }
 0xaff   : > { %13990 = vmatprep.mubr.msk.f32.mxu0 %vm2531_vm1, %v6794_v23  ;;  %14082 = vmatprep.subr.msk.mxu1 %vm1918_vm0, %v7800_v19  ;;  %v6796_v6 = vmul.f32 %v14916_v51, %v19069_v48 }
 0xb00   : > { %v14918_v2 = vpop.eup %14917  ;;  %8290 = vrot.lane.b32.xlu0 %v21747_v4, %s15428_s30  ;;  %13991 = vmatmul.mubr.msk.f32.gmra.mxu0 %vm2531_vm1, %v6795_v60  ;;  %v19259_v11 = vpop.permute.xlu1 %7791  ;;  %v21762_v60 = vld [vmem:[#allocation77_spill] sm:$0xff] }
 0xb01   : > { %v14920_v29 = vpop.eup %14919  ;;  %14016 = vmatmul.mubr.msk.f32.gmra.mxu1 %vm2531_vm1, %v6801_v61  ;;  %8807 = vrot.lane.b32.xlu1 %v21749_v28, %s15428_s30  ;;  %v6797_v48 = vmul.f32 %v14918_v2, %v19073_v62  ;;  %v21751_v62 = vld [vmem:[#allocation60_spill] sm:$0xff]  ;;  %v21763_v61 = vld [vmem:[#allocation67_spill] sm:$0xff] }
 0xb02   : > { %v14922_v52 = vpop.eup %14921  ;;  %14018 = vmatprep.mubr.msk.f32.mxu1 %vm2531_vm1, %v6802_v44  ;;  %14083 = vmatpush3.xpose.msk.msra.mxu1 %vm1918_vm0, %v7800_v19  ;;  %v7794_v33 = vpop.permute.xlu0 %7793  ;;  %v6803_v15 = vmul.f32 %v14920_v29, %v21750_v27  ;;  %v21767_v28 = vld [vmem:[#allocation100_spill] sm:$0xff]  ;;  %v21770_v27 = vld [vmem:[#allocation97_spill] sm:$0xff] }
 0xb03   : > { %13993 = vmatprep.mubr.msk.f32.mxu0 %vm2531_vm1, %v6796_v6  ;;  %14026 = vmatprep.subr.mxu0 %v1873_v42  ;;  %v6804_v50 = vmul.f32 %v14922_v52, %v18962_v49  ;;  %v14924_v26 = vpop.eup %14923  ;;  %v13958_v19 = vpop.f32.mrf.mxu1  ;;  %v21768_v52 = vld [vmem:[#allocation101_spill] sm:$0xff] }
 0xb04   : > { %14084 = vmatprep.subr.msk.mxu1 %vm1918_vm0, %v7798_v36  ;;  %14027 = vmatpush3.msra.mxu0 %v1873_v42  ;;  %v19271_v34 = vpop.permute.xlu1 %7787  ;;  %v6805_v49 = vmul.f32 %v14924_v26, %v18958_v32  ;;  %v21766_v42 = vld [vmem:[#allocation104_spill] sm:$0xff] }
 0xb05   : > { %8813 = vrot.lane.b32.xlu0 %v21751_v62, %s15428_s30  ;;  %13994 = vmatmul.mubr.msk.f32.gmra.mxu0 %vm2531_vm1, %v6797_v48  ;;  %v7073_v17 = vpop.f32.mrf.mxu1  ;;  %v21771_v62 = vld [vmem:[#allocation98_spill] sm:$0xff] }
 0xb06   : > { %14019 = vmatmul.mubr.msk.f32.gmra.mxu1 %vm2531_vm1, %v6803_v15  ;;  %14028 = vmatprep.subr.mxu0 %v1872_v58  ;;  %v7790_v57 = vpop.permute.xlu0 %7789 }
 0xb07   : > { %8805 = vrot.lane.b32.xlu1 %v21752_v41, %s15428_s30  ;;  %14021 = vmatprep.mubr.msk.f32.mxu1 %vm2531_vm1, %v6804_v50  ;;  %v13961_v45 = vpop.f32.mrf.mxu1 }
 0xb08   : > { %14029 = vmatpush3.msra.mxu0 %v1872_v58  ;;  %14032 = vmatprep.mubr.msk.f32.mxu0 %vm1918_vm0, %v19219_v54  ;;  %v7774_v12 = vpop.permute.xlu1 %7773  ;;  %v21754_v54 = vld [vmem:[#allocation92_spill] sm:$0xff]  ;;  %v21769_v58 = vld [vmem:[#allocation94_spill] sm:$0xff] }
 0xb09   : > { %14085 = vmatpush3.xpose.msk.msra.mxu1 %vm1918_vm0, %v7798_v36  ;;  %14030 = vmatprep.subr.mxu0 %v1871_v40 }
 0xb0a   : > { %14086 = vmatprep.subr.msk.mxu1 %vm1918_vm0, %v19241_v47  ;;  %14031 = vmatpush3.msra.mxu0 %v1871_v40  ;;  %v7772_v20 = vpop.permute.xlu0 %7771 }
 0xb0b   : > { %8809 = vrot.lane.b32.xlu0 %v21753_v30, %s15428_s30  ;;  %14022 = vmatmul.mubr.msk.f32.gmra.mxu1 %vm2531_vm1, %v6805_v49 }
 0xb0c   : > { %14033 = vmatmul.mubr.msk.f32.vlgmr.msra.gmra.mxu0 %vm1918_vm0, %v19208_v3  ;;  %8799 = vrot.lane.b32.xlu1 %v21754_v54, %s15428_s30  ;;  %v7969_v37 = vpop.permute.xlu1 %7968  ;;  %v21756_v3 = vld [vmem:[#allocation90_spill] sm:$0xff] }
 0xb0d   : > { %14035 = vmatprep.mubr.msk.f32.mxu0 %vm1918_vm0, %v19237_v39  ;;  %14087 = vmatpush3.xpose.msk.msra.mxu1 %vm1918_vm0, %v19241_v47  ;;  %v7083_v39 = vpop.f32.mrf.mxu1  ;;  %v21760_v47 = vld [vmem:[#allocation74_spill] sm:$0xff] }
 0xb0e   : > { %14088 = vmatprep.subr.msk.mxu1 %vm1918_vm0, %v7794_v33  ;;  %14096 = vmatprep.mubr.msk.f32.mxu1 %vm1918_vm0, %v7772_v20  ;;  %v7971_v32 = vpop.permute.xlu0 %7970 }
 0xb0f   : > { %8803 = vrot.lane.b32.xlu0 %v21755_v56, %s15428_s30  ;;  %v13964_v0 = vpop.f32.mrf.mxu1 }
 0xb10   : > { %14036 = vmatmul.mubr.msk.f32.gmra.mxu0 %vm1918_vm0, %v19225_v18  ;;  %8964 = vrot.lane.b32.xlu1 %v21756_v3, %s15428_s30  ;;  %v7778_v7 = vpop.permute.xlu1 %7777  ;;  %v21758_v18 = vld [vmem:[#allocation84_spill] sm:$0xff] }
 0xb11   : > { %14038 = vmatprep.mubr.msk.f32.mxu0 %vm1918_vm0, %v6940_v59  ;;  %14089 = vmatpush3.xpose.msk.msra.mxu1 %vm1918_vm0, %v7794_v33  ;;  %v7093_v36 = vpop.f32.mrf.mxu1 }
 0xb12   : > { %14090 = vmatprep.subr.msk.mxu1 %vm1918_vm0, %v19259_v11  ;;  %v7776_v1 = vpop.permute.xlu0 %7775 }
 0xb13   : > { %8801 = vrot.lane.b32.xlu0 %v21757_v46, %s15428_s30  ;;  %v13967_v6 = vpop.f32.mrf.mxu1 }
 0xb14   : > { %14039 = vmatmul.mubr.msk.f32.gmra.mxu0 %vm1918_vm0, %v19254_v38  ;;  %8960 = vrot.lane.b32.xlu1 %v21758_v18, %s15428_s30  ;;  %v7965_v16 = vpop.permute.xlu1 %7964  ;;  %v21764_v38 = vld [vmem:[#allocation69_spill] sm:$0xff] }
 0xb15   : > { %14041 = vmatprep.mubr.msk.f32.mxu0 %vm1918_vm0, %v6950_v21  ;;  %14091 = vmatpush3.xpose.msk.msra.mxu1 %vm1918_vm0, %v19259_v11  ;;  %v21765_v11 = vld [vmem:[#allocation103_spill] sm:$0xff]  ;;  %v7103_v53 = vpop.f32.mrf.mxu1 }
 0xb16   : > { %14092 = vmatprep.subr.msk.mxu1 %vm1918_vm0, %v7790_v57  ;;  %v7967_v23 = vpop.permute.xlu0 %7966 }
 0xb17   : > { %8966 = vrot.lane.b32.xlu0 %v21759_v14, %s15428_s30 }
 0xb18   : > { %14042 = vmatmul.mubr.msk.f32.gmra.mxu0 %vm1918_vm0, %v13939_v13  ;;  %8958 = vrot.lane.b32.xlu1 %v21760_v47, %s15428_s30  ;;  %v7782_v35 = vpop.permute.xlu1 %7781  ;;  %v21772_v13 = vld [vmem:[#allocation95_spill] sm:$0xff] }
 0xb19   : > { %14044 = vmatprep.mubr.msk.f32.mxu0 %vm1918_vm0, %v7073_v17  ;;  %14093 = vmatpush3.xpose.msk.msra.mxu1 %vm1918_vm0, %v7790_v57 }
 0xb1a   : > { %14094 = vmatprep.subr.msk.mxu1 %vm1918_vm0, %v19271_v34  ;;  %v7780_v22 = vpop.permute.xlu0 %7779 }
 0xb1b   : > { %8962 = vrot.lane.b32.xlu0 %v21761_v25, %s15428_s30 }
 0xb1c   : > { %14045 = vmatmul.mubr.msk.f32.gmra.mxu0 %vm1918_vm0, %v13958_v19  ;;  %8956 = vrot.lane.b32.xlu1 %v21762_v60, %s15428_s30  ;;  %v7961_v51 = vpop.permute.xlu1 %7960 }
 0xb1d   : > { %14047 = vmatprep.mubr.msk.f32.mxu0 %vm1918_vm0, %v7083_v39  ;;  %14095 = vmatpush3.xpose.msk.msra.mxu1 %vm1918_vm0, %v19271_v34 }
 0xb1e   : > { %14108 = vmatprep.subr.msk.mxu1 %vm1918_vm0, %v7971_v32  ;;  %v7963_v9 = vpop.permute.xlu0 %7962 }
 0xb1f   : > { %8954 = vrot.lane.b32.xlu0 %v21763_v61, %s15428_s30 }
 0xb20   : > { %14048 = vmatmul.mubr.msk.f32.gmra.mxu0 %vm1918_vm0, %v13961_v45  ;;  %14097 = vmatmul.mubr.msk.f32.vlgmr.msra.gmra.mxu1 %vm1918_vm0, %v7774_v12  ;;  %v7786_v2 = vpop.permute.xlu1 %7785 }
 0xb21   : > { %8952 = vrot.lane.b32.xlu1 %v21764_v38, %s15428_s30  ;;  %14050 = vmatprep.mubr.msk.f32.mxu0 %vm1918_vm0, %v7093_v36 }
 0xb22   : > { %14099 = vmatprep.mubr.msk.f32.mxu1 %vm1918_vm0, %v7776_v1  ;;  %14109 = vmatpush3.xpose.msk.msra.mxu1 %vm1918_vm0, %v7971_v32  ;;  %v7784_v4 = vpop.permute.xlu0 %7783 }
 0xb23   : > { %14110 = vmatprep.subr.msk.mxu1 %vm1918_vm0, %v7969_v37  ;;  %9119 = vrot.lane.b32.xlu0 %v21765_v11, %s15428_s30 }
 0xb24   : > { %14051 = vmatmul.mubr.msk.f32.gmra.mxu0 %vm1918_vm0, %v13964_v0  ;;  %14100 = vmatmul.mubr.msk.f32.gmra.mxu1 %vm1918_vm0, %v7778_v7  ;;  %v7957_v44 = vpop.permute.xlu1 %7956 }
 0xb25   : > { %9117 = vrot.lane.b32.xlu1 %v21766_v42, %s15428_s30  ;;  %14053 = vmatprep.mubr.msk.f32.mxu0 %vm1918_vm0, %v7103_v53 }
 0xb26   : > { %14102 = vmatprep.mubr.msk.f32.mxu1 %vm1918_vm0, %v7780_v22  ;;  %14111 = vmatpush3.xpose.msk.msra.mxu1 %vm1918_vm0, %v7969_v37  ;;  %v7959_v29 = vpop.permute.xlu0 %7958 }
 0xb27   : > { %14112 = vmatprep.subr.msk.mxu1 %vm1918_vm0, %v7967_v23  ;;  %9115 = vrot.lane.b32.xlu0 %v21767_v28, %s15428_s30 }
 0xb28   : > { %14054 = vmatmul.mubr.msk.f32.gmra.mxu0 %vm1918_vm0, %v13967_v6  ;;  %14103 = vmatmul.mubr.msk.f32.gmra.mxu1 %vm1918_vm0, %v7782_v35  ;;  %v7943_v48 = vpop.permute.xlu1 %7942 }
 0xb29   : > { %9113 = vrot.lane.b32.xlu1 %v21768_v52, %s15428_s30  ;;  %14105 = vmatprep.mubr.msk.f32.mxu1 %vm1918_vm0, %v7784_v4 }
 0xb2a   : > { %14113 = vmatpush3.xpose.msk.msra.mxu1 %vm1918_vm0, %v7967_v23  ;;  %v7941_v33 = vpop.permute.xlu0 %7940 }
 0xb2b   : > { %14114 = vmatprep.subr.msk.mxu1 %vm1918_vm0, %v7965_v16  ;;  %9107 = vrot.lane.b32.xlu0 %v21769_v58, %s15428_s30 }
 0xb2c   : > { %14106 = vmatmul.mubr.msk.f32.gmra.mxu1 %vm1918_vm0, %v7786_v2  ;;  %v8138_v59 = vpop.permute.xlu1 %8137 }
 0xb2d   : > { %9111 = vrot.lane.b32.xlu1 %v21770_v27, %s15428_s30  ;;  %14124 = vmatprep.mubr.msk.f32.mxu1 %vm1918_vm0, %v7941_v33 }
 0xb2e   : > { %14115 = vmatpush3.xpose.msk.msra.mxu1 %vm1918_vm0, %v7965_v16  ;;  %v8140_v15 = vpop.permute.xlu0 %8139 }
 0xb2f   : > { %14116 = vmatprep.subr.msk.mxu1 %vm1918_vm0, %v7963_v9  ;;  %14136 = vmatprep.subr.msk.mxu0 %vm1918_vm0, %v8140_v15 }
 0xb30   : > { %v7947_v34 = vpop.permute.xlu1 %7946  ;;  %14137 = vmatpush3.xpose.msk.msra.mxu0 %vm1918_vm0, %v8140_v15 }
 0xb31   : > { %9109 = vrot.lane.b32.xlu1 %v21771_v62, %s15428_s30  ;;  %14138 = vmatprep.subr.msk.mxu0 %vm1918_vm0, %v8138_v59 }
 0xb32   : > { %14117 = vmatpush3.xpose.msk.msra.mxu1 %vm1918_vm0, %v7963_v9  ;;  %v7945_v50 = vpop.permute.xlu0 %7944 }
 0xb33   : > { %14118 = vmatprep.subr.msk.mxu1 %vm1918_vm0, %v7961_v51 }
 0xb34   : > { %v8134_v26 = vpop.permute.xlu1 %8133  ;;  %14139 = vmatpush3.xpose.msk.msra.mxu0 %vm1918_vm0, %v8138_v59 }
 0xb35   : > { %9105 = vrot.lane.b32.xlu1 %v21772_v13, %s15428_s30 }
 0xb36   : > { %14119 = vmatpush3.xpose.msk.msra.mxu1 %vm1918_vm0, %v7961_v51  ;;  %v8136_v40 = vpop.permute.xlu0 %8135 }
 0xb37   : > { %14120 = vmatprep.subr.msk.mxu1 %vm1918_vm0, %v7959_v29  ;;  %14140 = vmatprep.subr.msk.mxu0 %vm1918_vm0, %v8136_v40 }
 0xb38   : > { %v7951_v57 = vpop.permute.xlu1 %7950  ;;  %14141 = vmatpush3.xpose.msk.msra.mxu0 %vm1918_vm0, %v8136_v40 }
 0xb39   : > { %14142 = vmatprep.subr.msk.mxu0 %vm1918_vm0, %v8134_v26 }
 0xb3a   : > { %14121 = vmatpush3.xpose.msk.msra.mxu1 %vm1918_vm0, %v7959_v29  ;;  %v7949_v41 = vpop.permute.xlu0 %7948 }
 0xb3b   : > { %14122 = vmatprep.subr.msk.mxu1 %vm1918_vm0, %v7957_v44 }
 0xb3c   : > { %v8130_v12 = vpop.permute.xlu1 %8129  ;;  %14143 = vmatpush3.xpose.msk.msra.mxu0 %vm1918_vm0, %v8134_v26 }
 0xb3e   : > { %14123 = vmatpush3.xpose.msk.msra.mxu1 %vm1918_vm0, %v7957_v44  ;;  %v8132_v49 = vpop.permute.xlu0 %8131 }
 0xb3f   : > { %14144 = vmatprep.subr.msk.mxu0 %vm1918_vm0, %v8132_v49 }
 0xb40   : > { %v7955_v21 = vpop.permute.xlu1 %7954  ;;  %14145 = vmatpush3.xpose.msk.msra.mxu0 %vm1918_vm0, %v8132_v49 }
 0xb41   : > { %14125 = vmatmul.mubr.msk.f32.vlgmr.msra.gmra.mxu1 %vm1918_vm0, %v7943_v48  ;;  %14146 = vmatprep.subr.msk.mxu0 %vm1918_vm0, %v8130_v12 }
 0xb42   : > { %14127 = vmatprep.mubr.msk.f32.mxu1 %vm1918_vm0, %v7945_v50  ;;  %v7953_v20 = vpop.permute.xlu0 %7952 }
 0xb44   : > { %v8126_v30 = vpop.permute.xlu1 %8125  ;;  %14147 = vmatpush3.xpose.msk.msra.mxu0 %vm1918_vm0, %v8130_v12 }
 0xb45   : > { %14128 = vmatmul.mubr.msk.f32.gmra.mxu1 %vm1918_vm0, %v7947_v34 }
 0xb46   : > { %14130 = vmatprep.mubr.msk.f32.mxu1 %vm1918_vm0, %v7949_v41  ;;  %v8128_v19 = vpop.permute.xlu0 %8127 }
 0xb47   : > { %14148 = vmatprep.subr.msk.mxu0 %vm1918_vm0, %v8128_v19 }
 0xb48   : > { %v19403_v54 = vpop.permute.xlu1 %8111  ;;  %14149 = vmatpush3.xpose.msk.msra.mxu0 %vm1918_vm0, %v8128_v19 }
 0xb49   : > { %14131 = vmatmul.mubr.msk.f32.gmra.mxu1 %vm1918_vm0, %v7951_v57  ;;  %14150 = vmatprep.subr.msk.mxu0 %vm1918_vm0, %v8126_v30 }
 0xb4a   : > { %14133 = vmatprep.mubr.msk.f32.mxu1 %vm1918_vm0, %v7953_v20  ;;  %v19409_v37 = vpop.permute.xlu0 %8109 }
 0xb4c   : > { %v8307_v32 = vpop.permute.xlu1 %8306  ;;  %14151 = vmatpush3.xpose.msk.msra.mxu0 %vm1918_vm0, %v8126_v30 }
 0xb4d   : > { %14134 = vmatmul.mubr.msk.f32.gmra.mxu1 %vm1918_vm0, %v7955_v21 }
 0xb4e   : > { %v8309_v56 = vpop.permute.xlu0 %8308 }
 0xb4f   : > { %14164 = vmatprep.subr.msk.mxu1 %vm1918_vm0, %v8309_v56 }
 0xb50   : > { %v19414_v17 = vpop.permute.xlu1 %8115  ;;  %14165 = vmatpush3.xpose.msk.msra.mxu1 %vm1918_vm0, %v8309_v56 }
 0xb51   : > { %14166 = vmatprep.subr.msk.mxu1 %vm1918_vm0, %v8307_v32 }
 0xb52   : > { %v19418_v3 = vpop.permute.xlu0 %8113 }
 0xb54   : > { %v8303_v7 = vpop.permute.xlu1 %8302  ;;  %14167 = vmatpush3.xpose.msk.msra.mxu1 %vm1918_vm0, %v8307_v32 }
 0xb56   : > { %v8305_v1 = vpop.permute.xlu0 %8304 }
 0xb57   : > { %14168 = vmatprep.subr.msk.mxu1 %vm1918_vm0, %v8305_v1 }
 0xb58   : > { %v19422_v46 = vpop.permute.xlu1 %8119  ;;  %14169 = vmatpush3.xpose.msk.msra.mxu1 %vm1918_vm0, %v8305_v1 }
 0xb59   : > { %14170 = vmatprep.subr.msk.mxu1 %vm1918_vm0, %v8303_v7 }
 0xb5a   : > { %v19426_v45 = vpop.permute.xlu0 %8117 }
 0xb5c   : > { %v8299_v18 = vpop.permute.xlu1 %8298  ;;  %14171 = vmatpush3.xpose.msk.msra.mxu1 %vm1918_vm0, %v8303_v7 }
 0xb5e   : > { %v8301_v16 = vpop.permute.xlu0 %8300 }
 0xb5f   : > { %14172 = vmatprep.subr.msk.mxu1 %vm1918_vm0, %v8301_v16 }
 0xb60   : > { %v19430_v23 = vpop.permute.xlu1 %8123  ;;  %14173 = vmatpush3.xpose.msk.msra.mxu1 %vm1918_vm0, %v8301_v16 }
 0xb61   : > { %14174 = vmatprep.subr.msk.mxu1 %vm1918_vm0, %v8299_v18 }
 0xb62   : > { %v19434_v14 = vpop.permute.xlu0 %8121 }
 0xb64   : > { %v8295_v39 = vpop.permute.xlu1 %8294  ;;  %14175 = vmatpush3.xpose.msk.msra.mxu1 %vm1918_vm0, %v8299_v18 }
 0xb66   : > { %v8297_v47 = vpop.permute.xlu0 %8296 }
 0xb67   : > { %14176 = vmatprep.subr.msk.mxu1 %vm1918_vm0, %v8297_v47 }
 0xb68   : > { %v8281_v35 = vpop.permute.xlu1 %8280  ;;  %14177 = vmatpush3.xpose.msk.msra.mxu1 %vm1918_vm0, %v8297_v47  ;;  %v21773_v47 = vld [vmem:[#allocation114_spill] sm:$0xff] }
 0xb69   : > { %14178 = vmatprep.subr.msk.mxu1 %vm1918_vm0, %v8295_v39 }
 0xb6a   : > { %v8279_v0 = vpop.permute.xlu0 %8278 }
 0xb6b   : > { %14180 = vmatprep.mubr.msk.f32.mxu1 %vm1918_vm0, %v8279_v0 }
 0xb6c   : > { %v8285_v22 = vpop.permute.xlu1 %8284  ;;  %14179 = vmatpush3.xpose.msk.msra.mxu1 %vm1918_vm0, %v8295_v39 }
 0xb6e   : > { %v8283_v25 = vpop.permute.xlu0 %8282 }
 0xb6f   : > { %14181 = vmatmul.mubr.msk.f32.vlgmr.msra.gmra.mxu1 %vm1918_vm0, %v8281_v35 }
 0xb70   : > { %v8289_v60 = vpop.permute.xlu1 %8288  ;;  %14183 = vmatprep.mubr.msk.f32.mxu1 %vm1918_vm0, %v8283_v25 }
 0xb72   : > { %v8287_v51 = vpop.permute.xlu0 %8286 }
 0xb73   : > { %14184 = vmatmul.mubr.msk.f32.gmra.mxu1 %vm1918_vm0, %v8285_v22 }
 0xb74   : > { %v8293_v36 = vpop.permute.xlu1 %8292  ;;  %14186 = vmatprep.mubr.msk.f32.mxu1 %vm1918_vm0, %v8287_v51 }
 0xb76   : > { %v8291_v9 = vpop.permute.xlu0 %8290 }
 0xb77   : > { %14187 = vmatmul.mubr.msk.f32.gmra.mxu1 %vm1918_vm0, %v8289_v60  ;;  %v21774_v60 = vld [vmem:[#allocation25_spill] sm:$0xff] }
 0xb78   : > { %v19447_v61 = vpop.permute.xlu1 %8811  ;;  %14189 = vmatprep.mubr.msk.f32.mxu1 %vm1918_vm0, %v8291_v9 }
 0xb7a   : > { %v19450_v6 = vpop.permute.xlu0 %8813 }
 0xb7b   : > { %14190 = vmatmul.mubr.msk.f32.gmra.mxu1 %vm1918_vm0, %v8293_v36  ;;  %14192 = vmatprep.subr.mxu0 %v19450_v6 }
 0xb7c   : > { %v19454_v2 = vpop.permute.xlu1 %8807 }
 0xb7e   : > { %v19456_v38 = vpop.permute.xlu0 %8809 }
 0xb80   : > { %v19458_v4 = vpop.permute.xlu1 %8805 }
 0xb82   : > { %v19460_v11 = vpop.permute.xlu0 %8803 }
 0xb84   : > { %v19462_v53 = vpop.permute.xlu1 %8799 }
 0xb86   : > { %v19464_v44 = vpop.permute.xlu0 %8801 }
 0xb88   : > { %v19466_v42 = vpop.permute.xlu1 %8964 }
 0xb8a   : > { %v19468_v29 = vpop.permute.xlu0 %8966 }
 0xb8c   : > { %v19470_v28 = vpop.permute.xlu1 %8960 }
 0xb8e   : > { %v19472_v48 = vpop.permute.xlu0 %8962 }
 0xb90   : > { %v19474_v52 = vpop.permute.xlu1 %8958 }
 0xb92   : > { %v19476_v33 = vpop.permute.xlu0 %8954 }
 0xb94   : > { %v19478_v58 = vpop.permute.xlu1 %8956 }
 0xb96   : > { %v9120_v59 = vpop.permute.xlu0 %9119 }
 0xb97   : > { %14248 = vmatprep.subr.mxu1 %v9120_v59 }
 0xb98   : > { %v19480_v27 = vpop.permute.xlu1 %8952  ;;  %14249 = vmatpush3.msra.mxu1 %v9120_v59 }
 0xb9a   : > { %v9116_v34 = vpop.permute.xlu0 %9115 }
 0xb9c   : > { %v9118_v15 = vpop.permute.xlu1 %9117 }
 0xb9d   : > { %14250 = vmatprep.subr.mxu1 %v9118_v15 }
 0xb9e   : > { %14251 = vmatpush3.msra.mxu1 %v9118_v15  ;;  %v9108_v13 = vpop.permute.xlu0 %9107  ;;  %v21775_v15 = vld [vmem:[#allocation27_spill] sm:$0xff] }
 0xb9f   : > { %14252 = vmatprep.subr.mxu1 %v9116_v34 }
 0xba0   : > { %v9114_v62 = vpop.permute.xlu1 %9113  ;;  %14253 = vmatpush3.msra.mxu1 %v9116_v34 }
 0xba1   : > { %14254 = vmatprep.subr.mxu1 %v9114_v62 }
 0xba2   : > { %14255 = vmatpush3.msra.mxu1 %v9114_v62 }
 0xba4   : > { %v9112_v50 = vpop.permute.xlu1 %9111 }
 0xba5   : > { %14256 = vmatprep.subr.mxu1 %v9112_v50 }
 0xba6   : > { %14257 = vmatpush3.msra.mxu1 %v9112_v50 }
 0xba8   : > { %v9110_v26 = vpop.permute.xlu1 %9109 }
 0xba9   : > { %14258 = vmatprep.subr.mxu1 %v9110_v26 }
 0xbaa   : > { %14259 = vmatpush3.msra.mxu1 %v9110_v26  ;;  %v21776_v26 = vld [vmem:[#allocation24_spill] sm:$0xff] }
 0xbab   : > { %14260 = vmatprep.subr.mxu1 %v9108_v13 }
 0xbac   : > { %v9106_v40 = vpop.permute.xlu1 %9105  ;;  %14261 = vmatpush3.msra.mxu1 %v9108_v13 }
 0xbad   : > { %14262 = vmatprep.subr.mxu1 %v9106_v40 }
 0xbae   : > { %14263 = vmatpush3.msra.mxu1 %v9106_v40 }
 0xbb7   : > { %v13986_v57 = vpop.f32.mrf.mxu0 }
 0xbb9   : > { %v7226_v41 = vpop.f32.mrf.mxu0 }
 0xbba   : > { %14056 = vmatprep.mubr.msk.f32.mxu0 %vm1918_vm0, %v7226_v41  ;;  %v21779_v41 = vld [vmem:[#allocation31_spill] sm:$0xff] }
 0xbbb   : > { %14057 = vmatmul.mubr.msk.f32.gmra.mxu0 %vm1918_vm0, %v13986_v57 }
 0xbbc   : > { %v13989_v12 = vpop.f32.mrf.mxu0  ;;  %v14014_v49 = vpop.f32.mrf.mxu1 }
 0xbbe   : > { %v7236_v21 = vpop.f32.mrf.mxu0  ;;  %v7379_v20 = vpop.f32.mrf.mxu1 }
 0xbbf   : > { %14059 = vmatprep.mubr.msk.f32.mxu0 %vm1918_vm0, %v7236_v21 }
 0xbc0   : > { %v13992_v30 = vpop.f32.mrf.mxu0  ;;  %14060 = vmatmul.mubr.msk.f32.gmra.mxu0 %vm1918_vm0, %v13989_v12 }
 0xbc1   : > { %v14017_v19 = vpop.f32.mrf.mxu1 }
 0xbc2   : > { %v7246_v32 = vpop.f32.mrf.mxu0 }
 0xbc3   : > { %14062 = vmatprep.mubr.msk.f32.mxu0 %vm1918_vm0, %v7246_v32  ;;  %v7389_v56 = vpop.f32.mrf.mxu1 }
 0xbc4   : > { %14063 = vmatmul.mubr.msk.f32.gmra.mxu0 %vm1918_vm0, %v13992_v30 }
 0xbc5   : > { %v13995_v7 = vpop.f32.mrf.mxu0 }
 0xbc6   : > { %v14020_v18 = vpop.f32.mrf.mxu1 }
 0xbc7   : > { %v7256_v1 = vpop.f32.mrf.mxu0 }
 0xbc8   : > { %14065 = vmatprep.mubr.msk.f32.mxu0 %vm1918_vm0, %v7256_v1  ;;  %v7399_v39 = vpop.f32.mrf.mxu1 }
 0xbc9   : > { %14066 = vmatmul.mubr.msk.f32.gmra.mxu0 %vm1918_vm0, %v13995_v7 }
 0xbca   : > { %14068 = vmatprep.mubr.msk.f32.mxu0 %vm1918_vm0, %v7379_v20 }
 0xbcb   : > { %v14023_v25 = vpop.f32.mrf.mxu1 }
 0xbcc   : > { %v14034_v16 = vpop.f32.mrf.mxu0 }
 0xbcd   : > { %v19492_v35 = vadd.f32 %v14034_v16, %v21773_v47  ;;  %14069 = vmatmul.mubr.msk.f32.gmra.mxu0 %vm1918_vm0, %v14014_v49  ;;  %v7409_v59 = vpop.f32.mrf.mxu1 }
 0xbce   : > { %v19495_v0 = vpop.f32.mrf.mxu0  ;;  %14071 = vmatprep.mubr.msk.f32.mxu0 %vm1918_vm0, %v7389_v56 }
 0xbd0   : > { %v14037_v22 = vpop.f32.mrf.mxu0 }
 0xbd1   : > { %v19499_v51 = vadd.f32 %v14037_v22, %v21774_v60  ;;  %14072 = vmatmul.mubr.msk.f32.gmra.mxu0 %vm1918_vm0, %v14017_v19 }
 0xbd2   : > { %v19502_v36 = vpop.f32.mrf.mxu0  ;;  %14074 = vmatprep.mubr.msk.f32.mxu0 %vm1918_vm0, %v7399_v39 }
 0xbd4   : > { %v14040_v9 = vpop.f32.mrf.mxu0 }
 0xbd5   : > { %v19506_v34 = vadd.f32 %v14040_v9, %v21775_v15  ;;  %14075 = vmatmul.mubr.msk.f32.gmra.mxu0 %vm1918_vm0, %v14020_v18 }
 0xbd6   : > { %v19509_v62 = vpop.f32.mrf.mxu0  ;;  %14077 = vmatprep.mubr.msk.f32.mxu0 %vm1918_vm0, %v7409_v59 }
 0xbd8   : > { %v14043_v50 = vpop.f32.mrf.mxu0 }
 0xbd9   : > { %v19513_v13 = vadd.f32 %v14043_v50, %v21776_v26  ;;  %14078 = vmatmul.mubr.msk.f32.gmra.mxu0 %vm1918_vm0, %v14023_v25 }
 0xbda   : > { %v19516_v40 = vpop.f32.mrf.mxu0  ;;  %14152 = vmatprep.mubr.msk.f32.mxu0 %vm1918_vm0, %v19409_v37  ;;  %v21782_v37 = vld [vmem:[#allocation148_spill] sm:$0xff] }
 0xbdb   : > { %21777 = vst [vmem:[#allocation109_spill] sm:$0xff] %v19513_v13  ;;  %21778 = vst [vmem:[#allocation108_spill] sm:$0xff] %v19516_v40 }
 0xbdc   : > { %v14046_v57 = vpop.f32.mrf.mxu0 }
 0xbdd   : > { %v19521_v12 = vadd.f32 %v14046_v57, %v21779_v41  ;;  %14153 = vmatmul.mubr.msk.f32.vlgmr.msra.gmra.mxu0 %vm1918_vm0, %v19403_v54 }
 0xbde   : > { %v19525_v49 = vpop.f32.mrf.mxu0  ;;  %14193 = vmatpush3.msra.mxu0 %v19450_v6  ;;  %14155 = vmatprep.mubr.msk.f32.mxu0 %vm1918_vm0, %v19418_v3 }
 0xbdf   : > { %21780 = vst [vmem:[#allocation110_spill] sm:$0xff] %v19521_v12  ;;  %21781 = vst [vmem:[#allocation112_spill] sm:$0xff] %v19525_v49  ;;  %14194 = vmatprep.subr.mxu0 %v19447_v61 }
 0xbe0   : > { %v14049_v21 = vpop.f32.mrf.mxu0  ;;  %v19531_v20 = vpop.f32.mrf.mxu1  ;;  %14195 = vmatpush3.msra.mxu0 %v19447_v61 }
 0xbe1   : > { %v19535_v30 = vadd.f32 %v14049_v21, %v21782_v37  ;;  %v8450_v54 = vsel %vm2531_vm1, %v19531_v20, -inf  ;;  %14196 = vmatprep.subr.mxu0 %v19456_v38  ;;  %14156 = vmatmul.mubr.msk.f32.gmra.mxu0 %vm1918_vm0, %v19414_v17  ;;  %v21785_v17 = vld [vmem:[#allocation116_spill] sm:$0xff] }
 0xbe2   : > { %v19542_v6 = vpop.f32.mrf.mxu0  ;;  %8451 = vmax.xlane.f32.xlu1 %v8450_v54  ;;  %v19544_v3 = vpop.f32.mrf.mxu1  ;;  %14197 = vmatpush3.msra.mxu0 %v19456_v38 }
 0xbe3   : > { %21783 = vst [vmem:[#allocation111_spill] sm:$0xff] %v19535_v30  ;;  %21784 = vst [vmem:[#allocation113_spill] sm:$0xff] %v19542_v6  ;;  %v8447_v61 = vsel %vm2531_vm1, %v19544_v3, -inf  ;;  %14158 = vmatprep.mubr.msk.f32.mxu0 %vm1918_vm0, %v19426_v45  ;;  %14198 = vmatprep.subr.mxu0 %v19454_v2 }
 0xbe4   : > { %v14052_v19 = vpop.f32.mrf.mxu0  ;;  %8448 = vmax.xlane.f32.xlu0 %v8447_v61  ;;  %v19552_v32 = vpop.f32.mrf.mxu1  ;;  %14199 = vmatpush3.msra.mxu0 %v19454_v2 }
 0xbe5   : > { %v19556_v56 = vadd.f32 %v14052_v19, %v21785_v17  ;;  %14200 = vmatprep.subr.mxu0 %v19458_v4  ;;  %14159 = vmatmul.mubr.msk.f32.gmra.mxu0 %vm1918_vm0, %v19422_v46  ;;  %v8456_v45 = vsel %vm2531_vm1, %v19552_v32, -inf  ;;  %v21788_v46 = vld [vmem:[#allocation120_spill] sm:$0xff] }
 0xbe6   : > { %v19561_v38 = vpop.f32.mrf.mxu0  ;;  %v19563_v7 = vpop.f32.mrf.mxu1  ;;  %14201 = vmatpush3.msra.mxu0 %v19458_v4  ;;  %14161 = vmatprep.mubr.msk.f32.mxu0 %vm1918_vm0, %v19434_v14 }
 0xbe7   : > { %21786 = vst [vmem:[#allocation44_spill] sm:$0xff] %v19556_v56  ;;  %21787 = vst [vmem:[#allocation33_spill] sm:$0xff] %v19561_v38  ;;  %14202 = vmatprep.subr.mxu0 %v19460_v11  ;;  %v8453_v16 = vsel %vm2531_vm1, %v19563_v7, -inf }
 0xbe8   : > { %v14055_v2 = vpop.f32.mrf.mxu0  ;;  %8457 = vmax.xlane.f32.xlu0 %v8456_v45  ;;  %v19571_v1 = vpop.f32.mrf.mxu1  ;;  %14203 = vmatpush3.msra.mxu0 %v19460_v11 }
 0xbe9   : > { %v19575_v18 = vadd.f32 %v14055_v2, %v21788_v46  ;;  %v8462_v4 = vsel %vm2531_vm1, %v19571_v1, -inf  ;;  %14204 = vmatprep.subr.mxu0 %v19464_v44  ;;  %14162 = vmatmul.mubr.msk.f32.gmra.mxu0 %vm1918_vm0, %v19430_v23 }
 0xbea   : > { %8463 = vmax.xlane.f32.xlu1 %v8462_v4  ;;  %v19582_v14 = vpop.f32.mrf.mxu1  ;;  %14205 = vmatpush3.msra.mxu0 %v19464_v44 }
 0xbeb   : > { %21789 = vst [vmem:[#allocation41_spill] sm:$0xff] %v19575_v18  ;;  %14206 = vmatprep.subr.mxu0 %v19462_v53  ;;  %v8459_v23 = vsel %vm2531_vm1, %v19582_v14, -inf }
 0xbec   : > { %8454 = vmax.xlane.f32.xlu0 %v8453_v16  ;;  %v19588_v11 = vpop.f32.mrf.mxu1  ;;  %14207 = vmatpush3.msra.mxu0 %v19462_v53 }
 0xbed   : > { %v8468_v39 = vsel %vm2531_vm1, %v19588_v11, -inf  ;;  %14220 = vmatprep.subr.mxu0 %v19468_v29 }
 0xbee   : > { %8469 = vmax.xlane.f32.xlu1 %v8468_v39  ;;  %v19596_v44 = vpop.f32.mrf.mxu1 }
 0xbef   : > { %v8465_v47 = vsel %vm2531_vm1, %v19596_v44, -inf }
 0xbf0   : > { %8460 = vmax.xlane.f32.xlu0 %v8459_v23 }
 0xbf4   : > { %8466 = vmax.xlane.f32.xlu0 %v8465_v47 }
 0xc01   : > { %v19600_v22 = vpop.f32.mrf.mxu1 }
 0xc02   : > { %v8474_v53 = vsel %vm2531_vm1, %v19600_v22, -inf }
 0xc03   : > { %8475 = vmax.xlane.f32.xlu1 %v8474_v53  ;;  %v19604_v25 = vpop.f32.mrf.mxu1 }
 0xc04   : > { %v8471_v60 = vsel %vm2531_vm1, %v19604_v25, -inf }
 0xc05   : > { %8472 = vmax.xlane.f32.xlu0 %v8471_v60  ;;  %v19608_v9 = vpop.f32.mrf.mxu1 }
 0xc06   : > { %v8480_v59 = vsel %vm2531_vm1, %v19608_v9, -inf }
 0xc07   : > { %8481 = vmax.xlane.f32.xlu1 %v8480_v59  ;;  %v19612_v15 = vpop.f32.mrf.mxu1 }
 0xc08   : > { %v8477_v50 = vsel %vm2531_vm1, %v19612_v15, -inf }
 0xc09   : > { %8478 = vmax.xlane.f32.xlu0 %v8477_v50  ;;  %v19616_v26 = vpop.f32.mrf.mxu1 }
 0xc0a   : > { %v8486_v57 = vsel %vm2531_vm1, %v19616_v26, -inf }
 0xc0b   : > { %8487 = vmax.xlane.f32.xlu1 %v8486_v57  ;;  %v19620_v41 = vpop.f32.mrf.mxu1 }
 0xc0c   : > { %v8483_v21 = vsel %vm2531_vm1, %v19620_v41, -inf }
 0xc0d   : > { %8484 = vmax.xlane.f32.xlu0 %v8483_v21  ;;  %v19624_v37 = vpop.f32.mrf.mxu1 }
 0xc0e   : > { %v8492_v54 = vsel %vm2531_vm1, %v19624_v37, -inf }
 0xc0f   : > { %8493 = vmax.xlane.f32.xlu1 %v8492_v54  ;;  %v19628_v61 = vpop.f32.mrf.mxu1 }
 0xc10   : > { %v8489_v19 = vsel %vm2531_vm1, %v19628_v61, -inf }
 0xc11   : > { %8490 = vmax.xlane.f32.xlu0 %v8489_v19 }
 0xc2f   : > { %v19632_v17 = vpop.f32.mrf.mxu1 }
 0xc30   : > { %v8522_v45 = vsel %vm2531_vm1, %v19632_v17, -inf }
 0xc31   : > { %8523 = vmax.xlane.f32.xlu1 %v8522_v45  ;;  %v19636_v2 = vpop.f32.mrf.mxu1 }
 0xc32   : > { %v8519_v46 = vsel %vm2531_vm1, %v19636_v2, -inf }
 0xc33   : > { %8520 = vmax.xlane.f32.xlu0 %v8519_v46  ;;  %v19640_v4 = vpop.f32.mrf.mxu1 }
 0xc34   : > { %v8528_v16 = vsel %vm2531_vm1, %v19640_v4, -inf }
 0xc35   : > { %8529 = vmax.xlane.f32.xlu1 %v8528_v16  ;;  %v19644_v39 = vpop.f32.mrf.mxu1 }
 0xc36   : > { %v8525_v47 = vsel %vm2531_vm1, %v19644_v39, -inf }
 0xc37   : > { %v19646_v23 = vpop.f32.mrf.mxu1 }
 0xc38   : > { %v8534_v53 = vsel %vm2531_vm1, %v19646_v23, -inf }
 0xc39   : > { %8526 = vmax.xlane.f32.xlu1 %v8525_v47  ;;  %8535 = vmax.xlane.f32.xlu0 %v8534_v53  ;;  %v19652_v60 = vpop.f32.mrf.mxu1 }
 0xc3a   : > { %v8531_v50 = vsel %vm2531_vm1, %v19652_v60, -inf }
 0xc3b   : > { %v19654_v59 = vpop.f32.mrf.mxu1 }
 0xc3c   : > { %v8540_v57 = vsel %vm2531_vm1, %v19654_v59, -inf }
 0xc3d   : > { %8532 = vmax.xlane.f32.xlu1 %v8531_v50  ;;  %8541 = vmax.xlane.f32.xlu0 %v8540_v57  ;;  %v19660_v21 = vpop.f32.mrf.mxu1 }
 0xc3e   : > { %v8537_v54 = vsel %vm2531_vm1, %v19660_v21, -inf }
 0xc41   : > { %8538 = vmax.xlane.f32.xlu1 %v8537_v54 }
 0xc6b   : > { %v8452_v19 = vpop.xlane.xlu1 %8451 }
 0xc6c   : > { %v8544_v45 = vsub.f32 %v19531_v20, %v8452_v19 }
 0xc6d   : > { %v8449_v46 = vpop.xlane.xlu0 %8448 }
 0xc6e   : > { %v8577_v16 = vmul.f32 1.442695, %v8544_v45  ;;  %v8543_v47 = vsub.f32 %v19544_v3, %v8449_v46  ;;  %v19670_v3 = vpop.f32.mrf.mxu0 }
 0xc6f   : > { %21790 = vst [vmem:[#allocation39_spill] sm:$0xff] %v19670_v3 }
 0xc70   : > { %14925 = vpow2.f32 %v8577_v16  ;;  %v8575_v53 = vmul.f32 1.442695, %v8543_v47  ;;  %v21791_v47 = vld [vmem:[#allocation124_spill] sm:$0xff] }
 0xc71   : > { %v8458_v18 = vpop.xlane.xlu0 %8457 }
 0xc72   : > { %14927 = vpow2.f32 %v8575_v53  ;;  %v8546_v50 = vsub.f32 %v19552_v32, %v8458_v18 }
 0xc73   : > { %v8464_v57 = vpop.xlane.xlu1 %8463 }
 0xc74   : > { %v8581_v38 = vmul.f32 1.442695, %v8546_v50  ;;  %v8548_v56 = vsub.f32 %v19571_v1, %v8464_v57 }
 0xc75   : > { %v8455_v6 = vpop.xlane.xlu0 %8454 }
 0xc76   : > { %14929 = vpow2.f32 %v8581_v38  ;;  %v8545_v54 = vsub.f32 %v19563_v7, %v8455_v6  ;;  %v8585_v30 = vmul.f32 1.442695, %v8548_v56 }
 0xc77   : > { %v8470_v20 = vpop.xlane.xlu1 %8469 }
 0xc78   : > { %v8579_v19 = vmul.f32 1.442695, %v8545_v54  ;;  %v8550_v45 = vsub.f32 %v19588_v11, %v8470_v20  ;;  %v21794_v54 = vld [vmem:[#allocation128_spill] sm:$0xff] }
 0xc79   : > { %v8461_v46 = vpop.xlane.xlu0 %8460 }
 0xc7a   : > { %14931 = vpow2.f32 %v8579_v19  ;;  %v8589_v16 = vmul.f32 1.442695, %v8550_v45  ;;  %v8547_v32 = vsub.f32 %v19582_v14, %v8461_v46 }
 0xc7b   : > { %14933 = vpow2.f32 %v8585_v30  ;;  %v14058_v18 = vpop.f32.mrf.mxu0 }
 0xc7c   : > { %14935 = vpow2.f32 %v8589_v16  ;;  %v8583_v1 = vmul.f32 1.442695, %v8547_v32  ;;  %v19674_v38 = vadd.f32 %v14058_v18, %v21791_v47  ;;  %v21797_v16 = vld [vmem:[#allocation132_spill] sm:$0xff] }
 0xc7d   : > { %v19676_v6 = vpop.eup %14925  ;;  %v8467_v56 = vpop.xlane.xlu0 %8466 }
 0xc7e   : > { %21792 = vst [vmem:[#allocation52_spill] sm:$0xff] %v19674_v38  ;;  %v19678_v7 = vpop.f32.mrf.mxu0  ;;  %v8549_v11 = vsub.f32 %v19596_v44, %v8467_v56  ;;  %v8642_v53 = vsel %vm2531_vm1, %v19676_v6, 0.0  ;;  %14937 = vpow2.f32 %v8583_v1 }
 0xc7f   : > { %21793 = vst [vmem:[#allocation38_spill] sm:$0xff] %v19678_v7  ;;  %v19683_v50 = vpop.eup %14927  ;;  %8643 = vadd.xlane.f32.xlu1 %v8642_v53 }
 0xc80   : > { %v8587_v30 = vmul.f32 1.442695, %v8549_v11  ;;  %v8639_v14 = vsel %vm2531_vm1, %v19683_v50, 0.0  ;;  %v14061_v57 = vpop.f32.mrf.mxu0 }
 0xc81   : > { %8640 = vadd.xlane.f32.xlu0 %v8639_v14  ;;  %v19688_v20 = vadd.f32 %v14061_v57, %v21794_v54  ;;  %v21800_v14 = vld [vmem:[#allocation136_spill] sm:$0xff] }
 0xc82   : > { %v19690_v19 = vpop.f32.mrf.mxu0  ;;  %14939 = vpow2.f32 %v8587_v30 }
 0xc83   : > { %21795 = vst [vmem:[#allocation46_spill] sm:$0xff] %v19688_v20  ;;  %21796 = vst [vmem:[#allocation49_spill] sm:$0xff] %v19690_v19  ;;  %v19692_v45 = vpop.eup %14929  ;;  %v21803_v20 = vld [vmem:[#allocation140_spill] sm:$0xff] }
 0xc84   : > { %v8648_v44 = vsel %vm2531_vm1, %v19692_v45, 0.0  ;;  %v14064_v46 = vpop.f32.mrf.mxu0 }
 0xc85   : > { %8649 = vadd.xlane.f32.xlu1 %v8648_v44  ;;  %v19697_v32 = vadd.f32 %v14064_v46, %v21797_v16 }
 0xc86   : > { %v19699_v18 = vpop.f32.mrf.mxu0 }
 0xc87   : > { %21798 = vst [vmem:[#allocation56_spill] sm:$0xff] %v19697_v32  ;;  %21799 = vst [vmem:[#allocation43_spill] sm:$0xff] %v19699_v18  ;;  %v19701_v1 = vpop.eup %14931 }
 0xc88   : > { %v19703_v47 = vpop.eup %14933  ;;  %v8645_v56 = vsel %vm2531_vm1, %v19701_v1, 0.0 }
 0xc89   : > { %v19707_v11 = vpop.eup %14935  ;;  %8646 = vadd.xlane.f32.xlu0 %v8645_v56  ;;  %v14067_v53 = vpop.f32.mrf.mxu0  ;;  %v8654_v46 = vsel %vm2531_vm1, %v19703_v47, 0.0 }
 0xc8a   : > { %v8660_v30 = vsel %vm2531_vm1, %v19707_v11, 0.0  ;;  %v19712_v57 = vadd.f32 %v14067_v53, %v21800_v14 }
 0xc8b   : > { %8661 = vadd.xlane.f32.xlu1 %v8660_v30  ;;  %v19714_v54 = vpop.f32.mrf.mxu0  ;;  %v19718_v16 = vpop.eup %14937 }
 0xc8c   : > { %21801 = vst [vmem:[#allocation59_spill] sm:$0xff] %v19712_v57  ;;  %21802 = vst [vmem:[#allocation54_spill] sm:$0xff] %v19714_v54  ;;  %v8476_v44 = vpop.xlane.xlu1 %8475  ;;  %v8651_v57 = vsel %vm2531_vm1, %v19718_v16, 0.0 }
 0xc8d   : > { %v8552_v32 = vsub.f32 %v19600_v22, %v8476_v44  ;;  %8655 = vadd.xlane.f32.xlu0 %v8654_v46  ;;  %v14070_v56 = vpop.f32.mrf.mxu0 }
 0xc8e   : > { %v8473_v18 = vpop.xlane.xlu0 %8472  ;;  %v19722_v19 = vadd.f32 %v14070_v56, %v21803_v20  ;;  %v21806_v20 = vld [vmem:[#allocation142_spill] sm:$0xff] }
 0xc8f   : > { %v8593_v38 = vmul.f32 1.442695, %v8552_v32  ;;  %v8551_v53 = vsub.f32 %v19604_v25, %v8473_v18  ;;  %v19725_v30 = vpop.f32.mrf.mxu0  ;;  %v19729_v54 = vpop.eup %14939 }
 0xc90   : > { %21804 = vst [vmem:[#allocation35_spill] sm:$0xff] %v19722_v19  ;;  %21805 = vst [vmem:[#allocation48_spill] sm:$0xff] %v19725_v30  ;;  %v8482_v14 = vpop.xlane.xlu1 %8481  ;;  %v8657_v30 = vsel %vm2531_vm1, %v19729_v54, 0.0 }
 0xc91   : > { %14941 = vpow2.f32 %v8593_v38  ;;  %v8591_v7 = vmul.f32 1.442695, %v8551_v53  ;;  %v8554_v22 = vsub.f32 %v19608_v9, %v8482_v14  ;;  %8652 = vadd.xlane.f32.xlu0 %v8651_v57  ;;  %v14073_v44 = vpop.f32.mrf.mxu0  ;;  %v21809_v14 = vld [vmem:[#allocation144_spill] sm:$0xff] }
 0xc92   : > { %v8479_v46 = vpop.xlane.xlu0 %8478  ;;  %v19733_v56 = vadd.f32 %v14073_v44, %v21806_v20 }
 0xc93   : > { %14943 = vpow2.f32 %v8591_v7  ;;  %v8597_v25 = vmul.f32 1.442695, %v8554_v22  ;;  %v8553_v32 = vsub.f32 %v19612_v15, %v8479_v46  ;;  %v19736_v18 = vpop.f32.mrf.mxu0 }
 0xc94   : > { %21807 = vst [vmem:[#allocation66_spill] sm:$0xff] %v19733_v56  ;;  %21808 = vst [vmem:[#allocation32_spill] sm:$0xff] %v19736_v18  ;;  %v8488_v19 = vpop.xlane.xlu1 %8487 }
 0xc95   : > { %14945 = vpow2.f32 %v8597_v25  ;;  %v8595_v38 = vmul.f32 1.442695, %v8553_v32  ;;  %v8556_v9 = vsub.f32 %v19616_v26, %v8488_v19  ;;  %8658 = vadd.xlane.f32.xlu0 %v8657_v30  ;;  %v14076_v57 = vpop.f32.mrf.mxu0  ;;  %v21812_v26 = vld [vmem:[#allocation146_spill] sm:$0xff] }
 0xc96   : > { %v8485_v53 = vpop.xlane.xlu0 %8484  ;;  %v19742_v44 = vadd.f32 %v14076_v57, %v21809_v14 }
 0xc97   : > { %14947 = vpow2.f32 %v8595_v38  ;;  %v8601_v7 = vmul.f32 1.442695, %v8556_v9  ;;  %v8555_v15 = vsub.f32 %v19620_v41, %v8485_v53  ;;  %v19745_v22 = vpop.f32.mrf.mxu0 }
 0xc98   : > { %21810 = vst [vmem:[#allocation45_spill] sm:$0xff] %v19742_v44  ;;  %21811 = vst [vmem:[#allocation61_spill] sm:$0xff] %v19745_v22  ;;  %v8494_v46 = vpop.xlane.xlu1 %8493 }
 0xc99   : > { %14949 = vpow2.f32 %v8601_v7  ;;  %v8599_v20 = vmul.f32 1.442695, %v8555_v15  ;;  %v8558_v25 = vsub.f32 %v19624_v37, %v8494_v46  ;;  %v14079_v32 = vpop.f32.mrf.mxu0 }
 0xc9a   : > { %v8491_v56 = vpop.xlane.xlu0 %8490  ;;  %v19749_v19 = vadd.f32 %v14079_v32, %v21812_v26 }
 0xc9b   : > { %14951 = vpow2.f32 %v8599_v20  ;;  %v8605_v30 = vmul.f32 1.442695, %v8558_v25  ;;  %v8557_v57 = vsub.f32 %v19628_v61, %v8491_v56 }
 0xc9c   : > { %21813 = vst [vmem:[#allocation75_spill] sm:$0xff] %v19749_v19  ;;  %v19786_v19 = vpop.f32.mrf.mxu0 }
 0xc9d   : > { %14953 = vpow2.f32 %v8605_v30  ;;  %v8603_v38 = vmul.f32 1.442695, %v8557_v57  ;;  %21814 = vst [vmem:[#allocation40_spill] sm:$0xff] %v19786_v19 }
 0xc9e   : > { %v19752_v9 = vpop.eup %14941  ;;  %v19789_v18 = vpop.f32.mrf.mxu0 }
 0xc9f   : > { %14955 = vpow2.f32 %v8603_v38  ;;  %v8666_v41 = vsel %vm2531_vm1, %v19752_v9, 0.0 }
 0xca0   : > { %v19756_v53 = vpop.eup %14943  ;;  %8667 = vadd.xlane.f32.xlu1 %v8666_v41 }
 0xca1   : > { %v8663_v37 = vsel %vm2531_vm1, %v19756_v53, 0.0 }
 0xca2   : > { %v19760_v14 = vpop.eup %14945  ;;  %8664 = vadd.xlane.f32.xlu0 %v8663_v37 }
 0xca3   : > { %v8672_v61 = vsel %vm2531_vm1, %v19760_v14, 0.0 }
 0xca4   : > { %v19764_v56 = vpop.eup %14947  ;;  %8673 = vadd.xlane.f32.xlu1 %v8672_v61 }
 0xca5   : > { %v8669_v7 = vsel %vm2531_vm1, %v19764_v56, 0.0 }
 0xca6   : > { %v19768_v15 = vpop.eup %14949  ;;  %8670 = vadd.xlane.f32.xlu0 %v8669_v7 }
 0xca7   : > { %v8678_v20 = vsel %vm2531_vm1, %v19768_v15, 0.0 }
 0xca8   : > { %v19770_v46 = vpop.eup %14951 }
 0xca9   : > { %v8675_v25 = vsel %vm2531_vm1, %v19770_v46, 0.0 }
 0xcaa   : > { %v19776_v32 = vpop.eup %14953  ;;  %8679 = vadd.xlane.f32.xlu0 %v8678_v20  ;;  %8676 = vadd.xlane.f32.xlu1 %v8675_v25 }
 0xcab   : > { %v8684_v30 = vsel %vm2531_vm1, %v19776_v32, 0.0 }
 0xcac   : > { %v19778_v26 = vpop.eup %14955 }
 0xcad   : > { %v8681_v57 = vsel %vm2531_vm1, %v19778_v26, 0.0 }
 0xcae   : > { %8685 = vadd.xlane.f32.xlu1 %v8684_v30  ;;  %8682 = vadd.xlane.f32.xlu0 %v8681_v57 }
 0xcba   : > { %v8524_v38 = vpop.xlane.xlu1 %8523 }
 0xcbb   : > { %v8568_v41 = vsub.f32 %v19632_v17, %v8524_v38  ;;  %v19792_v38 = vpop.f32.mrf.mxu0 }
 0xcbc   : > { %v8521_v37 = vpop.xlane.xlu0 %8520 }
 0xcbd   : > { %v8625_v61 = vmul.f32 1.442695, %v8568_v41  ;;  %v8567_v7 = vsub.f32 %v19636_v2, %v8521_v37  ;;  %v19794_v2 = vpop.f32.mrf.mxu0 }
 0xcbe   : > { %v8530_v20 = vpop.xlane.xlu1 %8529 }
 0xcbf   : > { %14957 = vpow2.f32 %v8625_v61  ;;  %v8623_v25 = vmul.f32 1.442695, %v8567_v7  ;;  %v8570_v44 = vsub.f32 %v19640_v4, %v8530_v20  ;;  %v8498_v61 = vsel %vm2531_vm1, %v19789_v18, -inf }
 0xcc1   : > { %14959 = vpow2.f32 %v8623_v25  ;;  %v8629_v22 = vmul.f32 1.442695, %v8570_v44  ;;  %v19802_v44 = vpop.f32.mrf.mxu0 }
 0xcc2   : > { %v8527_v30 = vpop.xlane.xlu1 %8526 }
 0xcc3   : > { %14961 = vpow2.f32 %v8629_v22  ;;  %v8569_v57 = vsub.f32 %v19644_v39, %v8527_v30  ;;  %v19810_v7 = vpop.f32.mrf.mxu0  ;;  %v8504_v30 = vsel %vm2531_vm1, %v19794_v2, -inf }
 0xcc5   : > { %v8627_v17 = vmul.f32 1.442695, %v8569_v57  ;;  %v19818_v57 = vpop.f32.mrf.mxu0 }
 0xcc7   : > { %14963 = vpow2.f32 %v8627_v17 }
 0xccc   : > { %v19796_v41 = vpop.eup %14957 }
 0xccd   : > { %v8714_v37 = vsel %vm2531_vm1, %v19796_v41, 0.0 }
 0xcce   : > { %v19800_v4 = vpop.eup %14959  ;;  %8715 = vadd.xlane.f32.xlu1 %v8714_v37  ;;  %v8510_v37 = vsel %vm2531_vm1, %v19810_v7, -inf }
 0xccf   : > { %v8711_v22 = vsel %vm2531_vm1, %v19800_v4, 0.0 }
 0xcd0   : > { %v19806_v39 = vpop.eup %14961  ;;  %8712 = vadd.xlane.f32.xlu0 %v8711_v22  ;;  %v19824_v22 = vpop.f32.mrf.mxu0 }
 0xcd1   : > { %v8720_v20 = vsel %vm2531_vm1, %v19806_v39, 0.0 }
 0xcd2   : > { %8499 = vmax.xlane.f32.xlu1 %v8498_v61  ;;  %v8495_v61 = vsel %vm2531_vm1, %v19792_v38, -inf  ;;  %v19834_v19 = vpop.f32.mrf.mxu0 }
 0xcd4   : > { %v19814_v25 = vpop.eup %14963  ;;  %8721 = vadd.xlane.f32.xlu0 %v8720_v20  ;;  %v8516_v20 = vsel %vm2531_vm1, %v19824_v22, -inf }
 0xcd5   : > { %v8717_v17 = vsel %vm2531_vm1, %v19814_v25, 0.0 }
 0xcd6   : > { %8505 = vmax.xlane.f32.xlu1 %v8504_v30  ;;  %v8501_v30 = vsel %vm2531_vm1, %v19802_v44, -inf }
 0xcd8   : > { %8718 = vadd.xlane.f32.xlu0 %v8717_v17  ;;  %v8507_v17 = vsel %vm2531_vm1, %v19818_v57, -inf }
 0xcda   : > { %8511 = vmax.xlane.f32.xlu1 %v8510_v37  ;;  %v8513_v37 = vsel %vm2531_vm1, %v19834_v19, -inf }
 0xcdc   : > { %8496 = vmax.xlane.f32.xlu0 %v8495_v61  ;;  %v8533_v61 = vpop.xlane.xlu1 %8532 }
 0xcde   : > { %8517 = vmax.xlane.f32.xlu1 %v8516_v20  ;;  %v8571_v20 = vsub.f32 %v19652_v60, %v8533_v61 }
 0xce0   : > { %8502 = vmax.xlane.f32.xlu0 %v8501_v30  ;;  %v8631_v3 = vmul.f32 1.442695, %v8571_v20  ;;  %v8536_v30 = vpop.xlane.xlu0 %8535  ;;  %v19844_v12 = vpop.xlane.xlu1 %8538 }
 0xce1   : > { %v8572_v49 = vsub.f32 %v19646_v23, %v8536_v30 }
 0xce2   : > { %14965 = vpow2.f32 %v8631_v3 }
 0xce3   : > { %v8633_v40 = vmul.f32 1.442695, %v8572_v49 }
 0xce4   : > { %8508 = vmax.xlane.f32.xlu0 %v8507_v17  ;;  %v19846_v17 = vpop.xlane.xlu0 %8541 }
 0xce8   : > { %8514 = vmax.xlane.f32.xlu0 %v8513_v37 }
 0xcef   : > { %9270 = vrot.lane.b32.xlu1 %v21687_v8, %s15428_s30  ;;  %v19848_v8 = vpop.eup %14965 }
 0xcfe   : > { %9272 = vrot.lane.b32.xlu0 %v21688_v55, %s15428_s30  ;;  %v8723_v55 = vsel %vm2531_vm1, %v19848_v8, 0.0 }
 0xd08   : > { %v8644_v37 = vpop.xlane.xlu1 %8643 }
 0xd09   : > { %14967 = vrcp.f32 %v8644_v37 }
 0xd0a   : > { %v8641_v13 = vpop.xlane.xlu0 %8640 }
 0xd0b   : > { %14969 = vrcp.f32 %v8641_v13 }
 0xd0c   : > { %14971 = vpow2.f32 %v8633_v40 }
 0xd0e   : > { %v8650_v60 = vpop.xlane.xlu1 %8649 }
 0xd0f   : > { %14973 = vrcp.f32 %v8650_v60 }
 0xd12   : > { %v8647_v61 = vpop.xlane.xlu0 %8646 }
 0xd13   : > { %14975 = vrcp.f32 %v8647_v61  ;;  %8724 = vadd.xlane.f32.xlu1 %v8723_v55 }
 0xd14   : > { %v8662_v37 = vpop.xlane.xlu1 %8661 }
 0xd16   : > { %v8656_v23 = vpop.xlane.xlu0 %8655  ;;  %v14968_v3 = vpop.eup %14967 }
 0xd17   : > { %v8768_v13 = vmul.f32 %v14968_v3, %v19676_v6  ;;  %14977 = vrcp.f32 %v8656_v23 }
 0xd18   : > { %v14970_v20 = vpop.eup %14969 }
 0xd19   : > { %v19852_v30 = vpop.eup %14971  ;;  %v8767_v49 = vmul.f32 %v14970_v20, %v19683_v50 }
 0xd1a   : > { %v8653_v40 = vpop.xlane.xlu0 %8652  ;;  %v8726_v60 = vsel %vm2531_vm1, %v19852_v30, 0.0 }
 0xd1b   : > { %14979 = vrcp.f32 %v8653_v40  ;;  %14208 = vmatprep.mubr.msk.f32.mxu0 %vm2531_vm1, %v8767_v49 }
 0xd1c   : > { %14209 = vmatmul.mubr.msk.f32.vlgmr.msra.gmra.mxu0 %vm2531_vm1, %v8768_v13  ;;  %14981 = vrcp.f32 %v8662_v37  ;;  %v14974_v61 = vpop.eup %14973 }
 0xd1d   : > { %14221 = vmatpush3.msra.mxu0 %v19468_v29  ;;  %8727 = vadd.xlane.f32.xlu0 %v8726_v60  ;;  %v8770_v29 = vmul.f32 %v14974_v61, %v19692_v45 }
 0xd1e   : > { %14222 = vmatprep.subr.mxu0 %v19466_v42  ;;  %v8659_v50 = vpop.xlane.xlu0 %8658 }
 0xd1f   : > { %14223 = vmatpush3.msra.mxu0 %v19466_v42  ;;  %14983 = vrcp.f32 %v8659_v50 }
 0xd20   : > { %v14976_v6 = vpop.eup %14975  ;;  %14224 = vmatprep.subr.mxu0 %v19472_v48 }
 0xd21   : > { %14225 = vmatpush3.msra.mxu0 %v19472_v48  ;;  %v8769_v55 = vmul.f32 %v14976_v6, %v19701_v1 }
 0xd22   : > { %14226 = vmatprep.subr.mxu0 %v19470_v28 }
 0xd23   : > { %14227 = vmatpush3.msra.mxu0 %v19470_v28  ;;  %14211 = vmatprep.mubr.msk.f32.mxu0 %vm2531_vm1, %v8769_v55 }
 0xd24   : > { %14228 = vmatprep.subr.mxu0 %v19474_v52  ;;  %14212 = vmatmul.mubr.msk.f32.gmra.mxu0 %vm2531_vm1, %v8770_v29  ;;  %v14978_v42 = vpop.eup %14977 }
 0xd25   : > { %14229 = vmatpush3.msra.mxu0 %v19474_v52  ;;  %v8772_v45 = vmul.f32 %v14978_v42, %v19703_v47 }
 0xd26   : > { %14230 = vmatprep.subr.mxu0 %v19478_v58 }
 0xd27   : > { %14231 = vmatpush3.msra.mxu0 %v19478_v58 }
 0xd28   : > { %v14980_v48 = vpop.eup %14979  ;;  %14232 = vmatprep.subr.mxu0 %v19476_v33 }
 0xd29   : > { %v8668_v1 = vpop.xlane.xlu1 %8667  ;;  %14233 = vmatpush3.msra.mxu0 %v19476_v33  ;;  %v8771_v28 = vmul.f32 %v14980_v48, %v19718_v16  ;;  %v14982_v23 = vpop.eup %14981 }
 0xd2a   : > { %14234 = vmatprep.subr.mxu0 %v19480_v27  ;;  %14985 = vrcp.f32 %v8668_v1  ;;  %v8774_v16 = vmul.f32 %v14982_v23, %v19707_v11 }
 0xd2b   : > { %14235 = vmatpush3.msra.mxu0 %v19480_v27  ;;  %v8665_v52 = vpop.xlane.xlu0 %8664  ;;  %14214 = vmatprep.mubr.msk.f32.mxu0 %vm2531_vm1, %v8771_v28 }
 0xd2c   : > { %v14984_v58 = vpop.eup %14983  ;;  %14987 = vrcp.f32 %v8665_v52  ;;  %14215 = vmatmul.mubr.msk.f32.gmra.mxu0 %vm2531_vm1, %v8772_v45 }
 0xd2d   : > { %v8674_v3 = vpop.xlane.xlu1 %8673  ;;  %v8773_v33 = vmul.f32 %v14984_v58, %v19729_v54 }
 0xd2e   : > { %14989 = vrcp.f32 %v8674_v3 }
 0xd2f   : > { %v8671_v20 = vpop.xlane.xlu0 %8670  ;;  %14217 = vmatprep.mubr.msk.f32.mxu0 %vm2531_vm1, %v8773_v33 }
 0xd30   : > { %14991 = vrcp.f32 %v8671_v20  ;;  %14218 = vmatmul.mubr.msk.f32.gmra.mxu0 %vm2531_vm1, %v8774_v16 }
 0xd33   : > { %v8677_v27 = vpop.xlane.xlu1 %8676  ;;  %v8680_v47 = vpop.xlane.xlu0 %8679 }
 0xd34   : > { %14993 = vrcp.f32 %v8677_v27 }
 0xd35   : > { %14995 = vrcp.f32 %v8680_v47 }
 0xd37   : > { %v8686_v49 = vpop.xlane.xlu1 %8685  ;;  %v8683_v13 = vpop.xlane.xlu0 %8682 }
 0xd38   : > { %v14986_v40 = vpop.eup %14985  ;;  %14997 = vrcp.f32 %v8686_v49 }
 0xd39   : > { %v14988_v37 = vpop.eup %14987  ;;  %14999 = vrcp.f32 %v8683_v13  ;;  %v8776_v11 = vmul.f32 %v14986_v40, %v19752_v9 }
 0xd3a   : > { %v8775_v54 = vmul.f32 %v14988_v37, %v19756_v53 }
 0xd3b   : > { %v14990_v60 = vpop.eup %14989 }
 0xd3c   : > { %14236 = vmatprep.mubr.msk.f32.mxu0 %vm2531_vm1, %v8775_v54  ;;  %v8778_v6 = vmul.f32 %v14990_v60, %v19760_v14 }
 0xd3d   : > { %v14992_v50 = vpop.eup %14991  ;;  %14237 = vmatmul.mubr.msk.f32.vlgmr.msra.gmra.mxu0 %vm2531_vm1, %v8776_v11 }
 0xd3e   : > { %v8777_v61 = vmul.f32 %v14992_v50, %v19764_v56 }
 0xd40   : > { %14239 = vmatprep.mubr.msk.f32.mxu0 %vm2531_vm1, %v8777_v61 }
 0xd41   : > { %v14994_v55 = vpop.eup %14993  ;;  %14240 = vmatmul.mubr.msk.f32.gmra.mxu0 %vm2531_vm1, %v8778_v6 }
 0xd42   : > { %v14996_v29 = vpop.eup %14995  ;;  %v8779_v53 = vmul.f32 %v14994_v55, %v19770_v46 }
 0xd43   : > { %v8780_v9 = vmul.f32 %v14996_v29, %v19768_v15 }
 0xd44   : > { %14242 = vmatprep.mubr.msk.f32.mxu0 %vm2531_vm1, %v8779_v53 }
 0xd45   : > { %v14998_v42 = vpop.eup %14997  ;;  %14243 = vmatmul.mubr.msk.f32.gmra.mxu0 %vm2531_vm1, %v8780_v9 }
 0xd46   : > { %v15000_v48 = vpop.eup %14999  ;;  %v8782_v56 = vmul.f32 %v14998_v42, %v19776_v32 }
 0xd47   : > { %v8781_v14 = vmul.f32 %v15000_v48, %v19778_v26 }
 0xd49   : > { %14245 = vmatprep.mubr.msk.f32.mxu0 %vm2531_vm1, %v8781_v14 }
 0xd4a   : > { %14246 = vmatmul.mubr.msk.f32.gmra.mxu0 %vm2531_vm1, %v8782_v56  ;;  %v8574_v56 = vsub.f32 %v19654_v59, %v19846_v17 }
 0xd57   : > { %v19903_v1 = vpop.xlane.xlu1 %8715 }
 0xd59   : > { %v8713_v28 = vpop.xlane.xlu0 %8712 }
 0xd5a   : > { %15001 = vrcp.f32 %v8713_v28 }
 0xd5b   : > { %v8500_v46 = vpop.xlane.xlu1 %8499 }
 0xd5c   : > { %v8560_v15 = vsub.f32 %v19789_v18, %v8500_v46 }
 0xd5d   : > { %v19906_v45 = vpop.xlane.xlu0 %8721 }
 0xd5e   : > { %v8609_v23 = vmul.f32 1.442695, %v8560_v15 }
 0xd5f   : > { %v8506_v52 = vpop.xlane.xlu1 %8505 }
 0xd60   : > { %15003 = vpow2.f32 %v8609_v23  ;;  %v8562_v32 = vsub.f32 %v19794_v2, %v8506_v52 }
 0xd61   : > { %v19908_v58 = vpop.xlane.xlu0 %8718 }
 0xd62   : > { %v8613_v16 = vmul.f32 1.442695, %v8562_v32  ;;  %v1878_v32 = vld [vmem:[#allocation10 + $0x78] sm:$0xff] }
 0xd63   : > { %v8512_v47 = vpop.xlane.xlu1 %8511  ;;  %14304 = vmatprep.subr.mxu1 %v1878_v32 }
 0xd64   : > { %v8564_v13 = vsub.f32 %v19810_v7, %v8512_v47 }
 0xd65   : > { %v8497_v26 = vpop.xlane.xlu0 %8496 }
 0xd66   : > { %v8559_v3 = vsub.f32 %v19792_v38, %v8497_v26  ;;  %v8617_v54 = vmul.f32 1.442695, %v8564_v13 }
 0xd67   : > { %v15002_v33 = vpop.eup %15001 }
 0xd68   : > { %v8607_v20 = vmul.f32 1.442695, %v8559_v3  ;;  %v8791_v27 = vmul.f32 %v15002_v33, %v19800_v4  ;;  %v8518_v4 = vpop.xlane.xlu1 %8517 }
 0xd69   : > { %v8503_v49 = vpop.xlane.xlu0 %8502 }
 0xd6a   : > { %15005 = vpow2.f32 %v8607_v20  ;;  %v8561_v18 = vsub.f32 %v19802_v44, %v8503_v49  ;;  %14292 = vmatprep.mubr.msk.f32.mxu0 %vm2531_vm1, %v8791_v27 }
 0xd6b   : > { %15007 = vpow2.f32 %v8613_v16 }
 0xd6c   : > { %v8611_v40 = vmul.f32 1.442695, %v8561_v18  ;;  %v9271_v50 = vpop.permute.xlu1 %9270 }
 0xd6d   : > { %v19916_v2 = vpop.eup %15003  ;;  %v8509_v37 = vpop.xlane.xlu0 %8508 }
 0xd6e   : > { %v8690_v38 = vsel %vm2531_vm1, %v19916_v2, 0.0  ;;  %15009 = vpow2.f32 %v8611_v40  ;;  %v8563_v42 = vsub.f32 %v19818_v57, %v8509_v37 }
 0xd6f   : > { %8691 = vadd.xlane.f32.xlu1 %v8690_v38  ;;  %15011 = vpow2.f32 %v8617_v54  ;;  %v1877_v38 = vld [vmem:[#allocation10 + $0x70] sm:$0xff]  ;;  %v1876_v54 = vld [vmem:[#allocation10 + $0x68] sm:$0xff] }
 0xd70   : > { %v8615_v48 = vmul.f32 1.442695, %v8563_v42 }
 0xd71   : > { %v8515_v11 = vpop.xlane.xlu0 %8514 }
 0xd72   : > { %15013 = vpow2.f32 %v8615_v48  ;;  %v8565_v28 = vsub.f32 %v19834_v19, %v8515_v11  ;;  %v1875_v11 = vld [vmem:[#allocation10 + $0x60] sm:$0xff] }
 0xd74   : > { %v8619_v57 = vmul.f32 1.442695, %v8565_v28 }
 0xd75   : > { %v9273_v60 = vpop.permute.xlu0 %9272 }
 0xd76   : > { %14276 = vmatprep.subr.mxu0 %v9273_v60 }
 0xd77   : > { %v19920_v44 = vpop.eup %15005  ;;  %14277 = vmatpush3.msra.mxu0 %v9273_v60 }
 0xd78   : > { %14278 = vmatprep.subr.mxu0 %v9271_v50  ;;  %v8687_v7 = vsel %vm2531_vm1, %v19920_v44, 0.0  ;;  %v19924_v61 = vpop.eup %15007 }
 0xd79   : > { %8688 = vadd.xlane.f32.xlu0 %v8687_v7  ;;  %14279 = vmatpush3.msra.mxu0 %v9271_v50  ;;  %v8696_v6 = vsel %vm2531_vm1, %v19924_v61, 0.0 }
 0xd7b   : > { %v19928_v55 = vpop.eup %15009 }
 0xd7c   : > { %v8693_v29 = vsel %vm2531_vm1, %v19928_v55, 0.0  ;;  %v19934_v53 = vpop.eup %15011 }
 0xd7d   : > { %8697 = vadd.xlane.f32.xlu0 %v8696_v6  ;;  %v8702_v9 = vsel %vm2531_vm1, %v19934_v53, 0.0 }
 0xd7f   : > { %v19951_v46 = vpop.eup %15013 }
 0xd80   : > { %9266 = vrot.lane.b32.xlu1 %v21691_v24, %s15428_s30  ;;  %v8566_v24 = vsub.f32 %v19824_v22, %v8518_v4  ;;  %v8699_v59 = vsel %vm2531_vm1, %v19951_v46, 0.0 }
 0xd81   : > { %8694 = vadd.xlane.f32.xlu0 %v8693_v29 }
 0xd82   : > { %v8621_v14 = vmul.f32 1.442695, %v8566_v24 }
 0xd84   : > { %9264 = vrot.lane.b32.xlu1 %v21690_v10, %s15428_s30  ;;  %v8637_v10 = vmul.f32 1.442695, %v8574_v56  ;;  %15015 = vpow2.f32 %v8621_v14 }
 0xd85   : > { %8703 = vadd.xlane.f32.xlu0 %v8702_v9 }
 0xd86   : > { %15017 = vpow2.f32 %v8637_v10 }
 0xd87   : > { %15019 = vpow2.f32 %v8619_v57 }
 0xd88   : > { %9262 = vrot.lane.b32.xlu1 %v21692_v43, %s15428_s30  ;;  %v8573_v43 = vsub.f32 %v19660_v21, %v19844_v12 }
 0xd8a   : > { %v8635_v22 = vmul.f32 1.442695, %v8573_v43 }
 0xd8c   : > { %15021 = vpow2.f32 %v8635_v22 }
 0xd91   : > { %v19955_v17 = vpop.eup %15015 }
 0xd93   : > { %v19959_v19 = vpop.eup %15017 }
 0xd94   : > { %v8732_v12 = vsel %vm2531_vm1, %v19959_v19, 0.0  ;;  %v19963_v21 = vpop.eup %15019 }
 0xd95   : > { %v8705_v15 = vsel %vm2531_vm1, %v19963_v21, 0.0 }
 0xd99   : > { %v19967_v23 = vpop.eup %15021 }
 0xd9a   : > { %v8729_v52 = vsel %vm2531_vm1, %v19967_v23, 0.0 }
 0xd9b   : > { %9268 = vrot.lane.b32.xlu0 %v21689_v63, %s15428_s30  ;;  %v8708_v63 = vsel %vm2531_vm1, %v19955_v17, 0.0 }
 0xd9c   : > { %v8725_v26 = vpop.xlane.xlu1 %8724 }
 0xda6   : > { %v19975_v3 = vpop.xlane.xlu0 %8727 }
 0xdac   : > { %8700 = vadd.xlane.f32.xlu1 %v8699_v59 }
 0xdb0   : > { %8709 = vadd.xlane.f32.xlu1 %v8708_v63 }
 0xdb4   : > { %8733 = vadd.xlane.f32.xlu1 %v8732_v12 }
 0xdba   : > { %8706 = vadd.xlane.f32.xlu0 %v8705_v15 }
 0xdbe   : > { %8730 = vadd.xlane.f32.xlu0 %v8729_v52 }
 0xdc5   : > { %9258 = vrot.lane.b32.xlu1 %v21548_v5, %s15428_s30 }
 0xdd4   : > { %9260 = vrot.lane.b32.xlu0 %v21547_v31, %s15428_s30  ;;  %s21889_s30 = sld [smem:[#allocation166_spill]] }
 0xddc   : > { %v14210_v6 = vpop.f32.mrf.mxu0 }
 0xdde   : > { %v8913_v29 = vpop.f32.mrf.mxu0 }
 0xdf8   : > { %v8692_v33 = vpop.xlane.xlu1 %8691 }
 0xdf9   : > { %15023 = vrcp.f32 %v8692_v33 }
 0xdfc   : > { %v9267_v47 = vpop.permute.xlu1 %9266 }
 0xe00   : > { %v9265_v31 = vpop.permute.xlu1 %9264 }
 0xe02   : > { %v8689_v16 = vpop.xlane.xlu0 %8688 }
 0xe03   : > { %15025 = vrcp.f32 %v8689_v16 }
 0xe06   : > { %v8698_v20 = vpop.xlane.xlu0 %8697  ;;  %v15024_v18 = vpop.eup %15023 }
 0xe07   : > { %15027 = vrcp.f32 %v8698_v20  ;;  %v8784_v40 = vmul.f32 %v15024_v18, %v19916_v2  ;;  %v9263_v2 = vpop.permute.xlu1 %9262 }
 0xe0a   : > { %v8695_v27 = vpop.xlane.xlu0 %8694 }
 0xe0b   : > { %15029 = vrcp.f32 %v8695_v27 }
 0xe0e   : > { %v8704_v49 = vpop.xlane.xlu0 %8703 }
 0xe0f   : > { %15031 = vrcp.f32 %v8704_v49 }
 0xe10   : > { %v15026_v5 = vpop.eup %15025 }
 0xe11   : > { %v8783_v13 = vmul.f32 %v15026_v5, %v19920_v44 }
 0xe12   : > { %v9269_v37 = vpop.permute.xlu0 %9268 }
 0xe13   : > { %14264 = vmatprep.mubr.msk.f32.mxu1 %vm2531_vm1, %v8783_v13  ;;  %14280 = vmatprep.subr.mxu0 %v9269_v37 }
 0xe14   : > { %14265 = vmatmul.mubr.msk.f32.vlgmr.msra.gmra.mxu1 %vm2531_vm1, %v8784_v40  ;;  %14281 = vmatpush3.msra.mxu0 %v9269_v37  ;;  %v15028_v4 = vpop.eup %15027 }
 0xe15   : > { %14282 = vmatprep.subr.mxu0 %v9267_v47  ;;  %14305 = vmatpush3.msra.mxu1 %v1878_v32  ;;  %v8786_v50 = vmul.f32 %v15028_v4, %v19924_v61  ;;  %v15134_v4 = vld [vmem:[%s15722_s7] sm:$0xff] }
 0xe16   : > { %14283 = vmatpush3.msra.mxu0 %v9267_v47  ;;  %14306 = vmatprep.subr.mxu1 %v1877_v38 }
 0xe17   : > { %14284 = vmatprep.subr.mxu0 %v9265_v31  ;;  %14307 = vmatpush3.msra.mxu1 %v1877_v38 }
 0xe18   : > { %v15030_v60 = vpop.eup %15029  ;;  %14285 = vmatpush3.msra.mxu0 %v9265_v31  ;;  %14308 = vmatprep.subr.mxu1 %v1876_v54 }
 0xe19   : > { %14286 = vmatprep.subr.mxu0 %v9263_v2  ;;  %v8785_v44 = vmul.f32 %v15030_v60, %v19928_v55  ;;  %14309 = vmatpush3.msra.mxu1 %v1876_v54  ;;  %v14213_v55 = vpop.f32.mrf.mxu0 }
 0xe1a   : > { %14287 = vmatpush3.msra.mxu0 %v9263_v2  ;;  %14310 = vmatprep.subr.mxu1 %v1875_v11 }
 0xe1b   : > { %14267 = vmatprep.mubr.msk.f32.mxu1 %vm2531_vm1, %v8785_v44  ;;  %14311 = vmatpush3.msra.mxu1 %v1875_v11  ;;  %v8923_v48 = vpop.f32.mrf.mxu0  ;;  %v20037_v11 = vld [vmem:[%s21068_s10] ss:$0 sm:$0xff] }
 0xe1c   : > { %14268 = vmatmul.mubr.msk.f32.gmra.mxu1 %vm2531_vm1, %v8786_v50  ;;  %v15032_v61 = vpop.eup %15031  ;;  %v1886_v60 = vadd.f32 %v20037_v11, %v15134_v4 }
 0xe1d   : > { %v8788_v14 = vmul.f32 %v15032_v61, %v19934_v53 }
 0xe35   : > { %v8701_v7 = vpop.xlane.xlu1 %8700 }
 0xe36   : > { %15033 = vrcp.f32 %v8701_v7  ;;  %v21815_v7 = vld [vmem:[#allocation117_spill] sm:$0xff] }
 0xe37   : > { %15035 = vrcp.f32 %v19903_v1  ;;  %v14216_v1 = vpop.f32.mrf.mxu0 }
 0xe38   : > { %15037 = vrcp.f32 %v19908_v58 }
 0xe39   : > { %v8710_v9 = vpop.xlane.xlu1 %8709  ;;  %15039 = vrcp.f32 %v19906_v45  ;;  %v8933_v28 = vpop.f32.mrf.mxu0 }
 0xe3a   : > { %15041 = vrcp.f32 %v8725_v26 }
 0xe3b   : > { %15043 = vrcp.f32 %v8710_v9  ;;  %v14219_v63 = vpop.f32.mrf.mxu0 }
 0xe3d   : > { %v8734_v58 = vpop.xlane.xlu1 %8733  ;;  %v8943_v33 = vpop.f32.mrf.mxu0 }
 0xe3f   : > { %v14238_v20 = vpop.f32.mrf.mxu0 }
 0xe41   : > { %v9259_v22 = vpop.permute.xlu1 %9258 }
 0xe43   : > { %v15034_v42 = vpop.eup %15033  ;;  %v8707_v24 = vpop.xlane.xlu0 %8706 }
 0xe44   : > { %15045 = vrcp.f32 %v8707_v24  ;;  %v8787_v56 = vmul.f32 %v15034_v42, %v19951_v46  ;;  %v15036_v10 = vpop.eup %15035  ;;  %v21816_v42 = vld [vmem:[#allocation115_spill] sm:$0xff] }
 0xe45   : > { %15047 = vrcp.f32 %v19975_v3  ;;  %v15038_v57 = vpop.eup %15037  ;;  %v8792_v53 = vmul.f32 %v15036_v10, %v19796_v41 }
 0xe46   : > { %14270 = vmatprep.mubr.msk.f32.mxu1 %vm2531_vm1, %v8787_v56  ;;  %v15040_v46 = vpop.eup %15039  ;;  %v8793_v12 = vmul.f32 %v15038_v57, %v19814_v25 }
 0xe47   : > { %14271 = vmatmul.mubr.msk.f32.gmra.mxu1 %vm2531_vm1, %v8788_v14  ;;  %v8731_v45 = vpop.xlane.xlu0 %8730  ;;  %v15042_v59 = vpop.eup %15041  ;;  %v8794_v26 = vmul.f32 %v15040_v46, %v19806_v39  ;;  %v21817_v14 = vld [vmem:[#allocation119_spill] sm:$0xff] }
 0xe48   : > { %15049 = vrcp.f32 %v8731_v45  ;;  %v15044_v15 = vpop.eup %15043  ;;  %v8795_v16 = vmul.f32 %v15042_v59, %v19848_v8  ;;  %v9066_v8 = vpop.f32.mrf.mxu0 }
 0xe49   : > { %15051 = vrcp.f32 %v8734_v58  ;;  %v8790_v41 = vmul.f32 %v15044_v15, %v19955_v17 }
 0xe4a   : > { %v14241_v47 = vpop.f32.mrf.mxu0 }
 0xe4b   : > { %v9261_v43 = vpop.permute.xlu0 %9260 }
 0xe4c   : > { %14288 = vmatprep.subr.mxu0 %v9261_v43 }
 0xe4d   : > { %14289 = vmatpush3.msra.mxu0 %v9261_v43 }
 0xe4e   : > { %14290 = vmatprep.subr.mxu0 %v9259_v22 }
 0xe4f   : > { %14291 = vmatpush3.msra.mxu0 %v9259_v22 }
 0xe50   : > { %14293 = vmatmul.mubr.msk.f32.vlgmr.msra.gmra.mxu0 %vm2531_vm1, %v8792_v53  ;;  %v15137_v53 = vld [vmem:[%s15722_s7 + $0x20] sm:$0xff] }
 0xe51   : > { %v15046_v52 = vpop.eup %15045  ;;  %14295 = vmatprep.mubr.msk.f32.mxu0 %vm2531_vm1, %v8793_v12 }
 0xe52   : > { %v8789_v32 = vmul.f32 %v15046_v52, %v19963_v21  ;;  %v15048_v3 = vpop.eup %15047  ;;  %v21819_v52 = vld [vmem:[#allocation121_spill] sm:$0xff] }
 0xe53   : > { %v8796_v39 = vmul.f32 %v15048_v3, %v19852_v30  ;;  %v9076_v30 = vpop.f32.mrf.mxu0 }
 0xe54   : > { %14273 = vmatprep.mubr.msk.f32.mxu1 %vm2531_vm1, %v8789_v32  ;;  %14296 = vmatmul.mubr.msk.f32.gmra.mxu0 %vm2531_vm1, %v8794_v26  ;;  %v15138_v26 = vld [vmem:[%s15722_s7 + $0x30] sm:$0xff] }
 0xe55   : > { %v15050_v25 = vpop.eup %15049  ;;  %14274 = vmatmul.mubr.msk.f32.gmra.mxu1 %vm2531_vm1, %v8790_v41  ;;  %14298 = vmatprep.mubr.msk.f32.mxu0 %vm2531_vm1, %v8795_v16  ;;  %v1892_v3 = vadd.f32 %v15138_v26, %v20037_v11  ;;  %v21820_v41 = vld [vmem:[#allocation29_spill] sm:$0xff]  ;;  %v21836_v26 = vld [vmem:[#allocation131_spill] sm:$0xff] }
 0xe56   : > { %14312 = vmatprep.mubr.msk.f32.mxu1 %vm1918_vm0, %v8913_v29  ;;  %v8797_v21 = vmul.f32 %v15050_v25, %v19967_v23  ;;  %v15052_v27 = vpop.eup %15051  ;;  %v14244_v23 = vpop.f32.mrf.mxu0  ;;  %v15136_v29 = vld [vmem:[%s15722_s7 + $0x10] sm:$0xff] }
 0xe57   : > { %v8798_v17 = vmul.f32 %v15052_v27, %v19959_v19 }
 0xe58   : > { %14299 = vmatmul.mubr.msk.f32.gmra.mxu0 %vm2531_vm1, %v8796_v39  ;;  %v9086_v49 = vpop.f32.mrf.mxu0 }
 0xe59   : > { %14301 = vmatprep.mubr.msk.f32.mxu0 %vm2531_vm1, %v8797_v21  ;;  %14313 = vmatmul.mubr.msk.f32.vlgmr.msra.gmra.mxu1 %vm1918_vm0, %v14210_v6  ;;  %v3721_v6 = vadd.f32 %v21815_v7, %v1886_v60  ;;  %v21827_v60 = vld [vmem:[#allocation34_spill] sm:$0xff]  ;;  %v21828_v7 = vld [vmem:[#allocation127_spill] sm:$0xff] }
 0xe5a   : > { %14315 = vmatprep.mubr.msk.f32.mxu1 %vm1918_vm0, %v8923_v48  ;;  %v14247_v19 = vpop.f32.mrf.mxu0 }
 0xe5b   : > { %v5746_v24 = vadd.f32 %v21816_v42, %v3721_v6  ;;  %v21830_v42 = vld [vmem:[#allocation111_spill] sm:$0xff] }
 0xe5c   : > { %14302 = vmatmul.mubr.msk.f32.gmra.mxu0 %vm2531_vm1, %v8798_v17  ;;  %v9096_v18 = vpop.f32.mrf.mxu0 }
 0xe5d   : > { %14316 = vmatmul.mubr.msk.f32.gmra.mxu1 %vm1918_vm0, %v14213_v55  ;;  %v1888_v55 = vadd.f32 %v15136_v29, %v20037_v11  ;;  %v7739_v58 = vadd.f32 %v19495_v0, %v5746_v24  ;;  %v1890_v0 = vadd.f32 %v15137_v53, %v20037_v11  ;;  %v15141_v29 = vld [vmem:[%s15722_s7 + $0x60] sm:$0xff] }
 0xe5e   : > { %14318 = vmatprep.mubr.msk.f32.mxu1 %vm1918_vm0, %v8933_v28  ;;  %v21818_v28 = vld [vmem:[#allocation26_spill] sm:$0xff] }
 0xe5f   : > { %v3725_v32 = vadd.f32 %v21819_v52, %v1890_v0  ;;  %v21834_v0 = vld [vmem:[#allocation44_spill] sm:$0xff] }
 0xe61   : > { %14319 = vmatmul.mubr.msk.f32.gmra.mxu1 %vm1918_vm0, %v14216_v1  ;;  %v3723_v1 = vadd.f32 %v21817_v14, %v1888_v55  ;;  %v5750_v16 = vadd.f32 %v21820_v41, %v3725_v32  ;;  %v1898_v55 = vadd.f32 %v15141_v29, %v20037_v11  ;;  %v21848_v29 = vld [vmem:[#allocation130_spill] sm:$0xff] }
 0xe62   : > { %14321 = vmatprep.mubr.msk.f32.mxu1 %vm1918_vm0, %v8943_v33 }
 0xe63   : > { %v5748_v43 = vadd.f32 %v21818_v28, %v3723_v1  ;;  %v7743_v17 = vadd.f32 %v19509_v62, %v5750_v16  ;;  %v21838_v16 = vld [vmem:[#allocation41_spill] sm:$0xff] }
 0xe65   : > { %14322 = vmatmul.mubr.msk.f32.gmra.mxu1 %vm1918_vm0, %v14219_v63 }
 0xe66   : > { %14324 = vmatprep.mubr.msk.f32.mxu1 %vm1918_vm0, %v9066_v8 }
 0xe69   : > { %14325 = vmatmul.mubr.msk.f32.gmra.mxu1 %vm1918_vm0, %v14238_v20  ;;  %v15139_v20 = vld [vmem:[%s15722_s7 + $0x40] sm:$0xff] }
 0xe6a   : > { %14327 = vmatprep.mubr.msk.f32.mxu1 %vm1918_vm0, %v9076_v30  ;;  %v1894_v39 = vadd.f32 %v15139_v20, %v20037_v11 }
 0xe6d   : > { %14328 = vmatmul.mubr.msk.f32.gmra.mxu1 %vm1918_vm0, %v14241_v47  ;;  %v21822_v47 = vld [vmem:[#allocation109_spill] sm:$0xff] }
 0xe6e   : > { %14330 = vmatprep.mubr.msk.f32.mxu1 %vm1918_vm0, %v9086_v49 }
 0xe71   : > { %14331 = vmatmul.mubr.msk.f32.gmra.mxu1 %vm1918_vm0, %v14244_v23  ;;  %v21823_v23 = vld [vmem:[#allocation30_spill] sm:$0xff] }
 0xe72   : > { %14333 = vmatprep.mubr.msk.f32.mxu1 %vm1918_vm0, %v9096_v18 }
 0xe75   : > { %14334 = vmatmul.mubr.msk.f32.gmra.mxu1 %vm1918_vm0, %v14247_v19 }
 0xed4   : > { %v14266_v5 = vpop.f32.mrf.mxu1 }
 0xed6   : > { %v9219_v13 = vpop.f32.mrf.mxu1 }
 0xed7   : > { %14336 = vmatprep.mubr.msk.f32.mxu1 %vm1918_vm0, %v9219_v13  ;;  %v15140_v13 = vld [vmem:[%s15722_s7 + $0x50] sm:$0xff] }
 0xed8   : > { %14337 = vmatmul.mubr.msk.f32.gmra.mxu1 %vm1918_vm0, %v14266_v5  ;;  %v21824_v5 = vld [vmem:[#allocation125_spill] sm:$0xff] }
 0xed9   : > { %v3729_v62 = vadd.f32 %v21824_v5, %v1894_v39  ;;  %v21839_v39 = vld [vmem:[#allocation122_spill] sm:$0xff] }
 0xeda   : > { %v21842_v5 = vld [vmem:[#allocation126_spill] sm:$0xff] }
 0xedc   : > { %v14269_v40 = vpop.f32.mrf.mxu1 }
 0xede   : > { %v9229_v31 = vpop.f32.mrf.mxu1 }
 0xedf   : > { %14339 = vmatprep.mubr.msk.f32.mxu1 %vm1918_vm0, %v9229_v31  ;;  %v21825_v31 = vld [vmem:[#allocation108_spill] sm:$0xff] }
 0xee0   : > { %14340 = vmatmul.mubr.msk.f32.gmra.mxu1 %vm1918_vm0, %v14269_v40  ;;  %v1896_v40 = vadd.f32 %v15140_v13, %v20037_v11 }
 0xee2   : > { %v3731_v6 = vadd.f32 %v21828_v7, %v1896_v40  ;;  %v15144_v40 = vld [vmem:[%s15722_s7 + $0x90] sm:$0xff]  ;;  %v21847_v7 = vld [vmem:[#allocation135_spill] sm:$0xff] }
 0xf07   : > { %v14272_v37 = vpop.f32.mrf.mxu1 }
 0xf09   : > { %v9239_v38 = vpop.f32.mrf.mxu1 }
 0xf0a   : > { %14342 = vmatprep.mubr.msk.f32.mxu1 %vm1918_vm0, %v9239_v38  ;;  %v21826_v38 = vld [vmem:[#allocation110_spill] sm:$0xff] }
 0xf0b   : > { %14343 = vmatmul.mubr.msk.f32.gmra.mxu1 %vm1918_vm0, %v14272_v37 }
 0xf10   : > { %v14294_v54 = vpop.f32.mrf.mxu0 }
 0xf12   : > { %v9372_v2 = vpop.f32.mrf.mxu0 }
 0xf14   : > { %v14297_v44 = vpop.f32.mrf.mxu0 }
 0xf15   : > { %v14275_v50 = vpop.f32.mrf.mxu1 }
 0xf16   : > { %v9382_v9 = vpop.f32.mrf.mxu0 }
 0xf17   : > { %v9249_v61 = vpop.f32.mrf.mxu1 }
 0xf18   : > { %14345 = vmatprep.mubr.msk.f32.mxu1 %vm1918_vm0, %v9249_v61  ;;  %v14300_v48 = vpop.f32.mrf.mxu0 }
 0xf19   : > { %v14314_v56 = vpop.f32.mrf.mxu1  ;;  %14346 = vmatmul.mubr.msk.f32.gmra.mxu1 %vm1918_vm0, %v14275_v50 }
 0xf1a   : > { %v20049_v45 = vadd.f32 %v14314_v56, %v19492_v35  ;;  %14348 = vmatprep.mubr.msk.f32.mxu1 %vm1918_vm0, %v9372_v2  ;;  %v9392_v22 = vpop.f32.mrf.mxu0  ;;  %v7741_v35 = vadd.f32 %v19502_v36, %v5748_v43  ;;  %v5754_v2 = vadd.f32 %v21827_v60, %v3729_v62  ;;  %v21831_v56 = vld [vmem:[#allocation36_spill] sm:$0xff]  ;;  %v15142_v43 = vld [vmem:[%s15722_s7 + $0x70] sm:$0xff] }
 0xf1b   : > { %v9573_v10 = vpop.f32.mrf.mxu1  ;;  %v5756_v14 = vadd.f32 %v21831_v56, %v3731_v6 }
 0xf1c   : > { %v20053_v57 = vadd.f32 %v9573_v10, %v7739_v58  ;;  %9766 = vadd.xlane.f32.xlu1 %v20049_v45  ;;  %v14303_v12 = vpop.f32.mrf.mxu0  ;;  %v21832_v10 = vld [vmem:[#allocation129_spill] sm:$0xff] }
 0xf1d   : > { %v14317_v46 = vpop.f32.mrf.mxu1  ;;  %14349 = vmatmul.mubr.msk.f32.gmra.mxu1 %vm1918_vm0, %v14294_v54  ;;  %v3733_v28 = vadd.f32 %v21832_v10, %v1898_v55 }
 0xf1e   : > { %14351 = vmatprep.mubr.msk.f32.mxu1 %vm1918_vm0, %v9382_v9  ;;  %9764 = vadd.xlane.f32.xlu0 %v20053_v57  ;;  %v20075_v25 = vadd.f32 %v14317_v46, %v19499_v51  ;;  %v9402_v21 = vpop.f32.mrf.mxu0  ;;  %v21829_v9 = vld [vmem:[#allocation112_spill] sm:$0xff]  ;;  %v21833_v46 = vld [vmem:[#allocation113_spill] sm:$0xff] }
 0xf1f   : > { %v9583_v59 = vpop.f32.mrf.mxu1  ;;  %v7747_v61 = vadd.f32 %v21829_v9, %v5754_v2  ;;  %v7749_v53 = vadd.f32 %v21833_v46, %v5756_v14 }
 0xf20   : > { %v20062_v63 = vadd.f32 %v9583_v59, %v7741_v35 }
 0xf21   : > { %v14320_v15 = vpop.f32.mrf.mxu1  ;;  %14352 = vmatmul.mubr.msk.f32.gmra.mxu1 %vm1918_vm0, %v14297_v44 }
 0xf22   : > { %v20069_v33 = vadd.f32 %v14320_v15, %v19506_v34  ;;  %14354 = vmatprep.mubr.msk.f32.mxu1 %vm1918_vm0, %v9392_v22  ;;  %9768 = vadd.xlane.f32.xlu0 %v20062_v63  ;;  %v21821_v34 = vld [vmem:[#allocation123_spill] sm:$0xff]  ;;  %v1900_v22 = vadd.f32 %v15142_v43, %v20037_v11 }
 0xf23   : > { %v9593_v36 = vpop.f32.mrf.mxu1  ;;  %v3727_v8 = vadd.f32 %v21821_v34, %v1892_v3 }
 0xf24   : > { %9774 = vadd.xlane.f32.xlu1 %v20069_v33  ;;  %v20089_v19 = vadd.f32 %v9593_v36, %v7743_v17  ;;  %v3735_v3 = vadd.f32 %v21836_v26, %v1900_v22  ;;  %v21837_v36 = vld [vmem:[#allocation33_spill] sm:$0xff] }
 0xf25   : > { %v14323_v27 = vpop.f32.mrf.mxu1  ;;  %14355 = vmatmul.mubr.msk.f32.gmra.mxu1 %vm1918_vm0, %v14300_v48  ;;  %v5752_v49 = vadd.f32 %v21823_v23, %v3727_v8  ;;  %v21840_v8 = vld [vmem:[#allocation39_spill] sm:$0xff] }
 0xf26   : > { %v20084_v30 = vadd.f32 %v14323_v27, %v21822_v47  ;;  %14357 = vmatprep.mubr.msk.f32.mxu1 %vm1918_vm0, %v9402_v21  ;;  %9770 = vadd.xlane.f32.xlu0 %v20075_v25  ;;  %v5760_v21 = vadd.f32 %v21839_v39, %v3735_v3  ;;  %v10256_v39 = vld [vmem:[#allocation11 + $0x1f0] sm:$0xff] }
 0xf27   : > { %v9603_v51 = vpop.f32.mrf.mxu1  ;;  %v7745_v37 = vadd.f32 %v21825_v31, %v5752_v49  ;;  %v21841_v49 = vld [vmem:[#allocation133_spill] sm:$0xff]  ;;  %v1904_v31 = vadd.f32 %v15144_v40, %v20037_v11  ;;  %v10246_v40 = vld [vmem:[#allocation11 + $0x1a0] sm:$0xff] }
 0xf28   : > { %9778 = vadd.xlane.f32.xlu1 %v20084_v30  ;;  %v7753_v17 = vadd.f32 %v21840_v8, %v5760_v21  ;;  %v10251_v21 = vld [vmem:[#allocation11 + $0x1c8] sm:$0xff] }
 0xf29   : > { %v14326_v18 = vpop.f32.mrf.mxu1  ;;  %14358 = vmatmul.mubr.msk.f32.gmra.mxu1 %vm1918_vm0, %v14303_v12  ;;  %v20102_v44 = vadd.f32 %v9603_v51, %v7745_v37  ;;  %v21835_v12 = vld [vmem:[#allocation118_spill] sm:$0xff]  ;;  %v15143_v51 = vld [vmem:[%s15722_s7 + $0x80] sm:$0xff]  ;;  %v3739_v6 = vadd.f32 %v21847_v7, %v1904_v31 }
 0xf2a   : > { %v20098_v54 = vadd.f32 %v14326_v18, %v21826_v38  ;;  %9772 = vadd.xlane.f32.xlu0 %v20089_v19  ;;  %v5758_v15 = vadd.f32 %v21835_v12, %v3733_v28  ;;  %v1902_v23 = vadd.f32 %v15143_v51, %v20037_v11  ;;  %v21843_v37 = vld [vmem:[#allocation38_spill] sm:$0xff] }
 0xf2b   : > { %v9613_v4 = vpop.f32.mrf.mxu1  ;;  %v5764_v55 = vadd.f32 %v21848_v29, %v3739_v6  ;;  %v10252_v51 = vld [vmem:[#allocation11 + $0x1d0] sm:$0xff] }
 0xf2c   : > { %9782 = vadd.xlane.f32.xlu1 %v20098_v54  ;;  %v20114_v1 = vadd.f32 %v9613_v4, %v7747_v61  ;;  %v7751_v41 = vadd.f32 %v21837_v36, %v5758_v15  ;;  %v3737_v18 = vadd.f32 %v21841_v49, %v1902_v23  ;;  %v21844_v4 = vld [vmem:[#allocation52_spill] sm:$0xff]  ;;  %v21849_v61 = vld [vmem:[#allocation49_spill] sm:$0xff]  ;;  %v10248_v31 = vld [vmem:[#allocation11 + $0x1b0] sm:$0xff] }
 0xf2d   : > { %v14329_v50 = vpop.f32.mrf.mxu1  ;;  %v10255_v36 = vld [vmem:[#allocation11 + $0x1e8] sm:$0xff]  ;;  %v10244_v29 = vld [vmem:[#allocation11 + $0x190] sm:$0xff] }
 0xf2e   : > { %v20110_v24 = vadd.f32 %v14329_v50, %v21830_v42  ;;  %9776 = vadd.xlane.f32.xlu0 %v20102_v44  ;;  %v5762_v62 = vadd.f32 %v21842_v5, %v3737_v18  ;;  %v7757_v42 = vadd.f32 %v21849_v61, %v5764_v55  ;;  %10280 = vmatprep.subr.mxu0 %v10255_v36  ;;  %v10247_v5 = vld [vmem:[#allocation11 + $0x1a8] sm:$0xff]  ;;  %v10236_v36 = vld [vmem:[#allocation11 + $0x150] sm:$0xff] }
 0xf2f   : > { %v9623_v48 = vpop.f32.mrf.mxu1 }
 0xf30   : > { %9786 = vadd.xlane.f32.xlu1 %v20110_v24  ;;  %v20126_v52 = vadd.f32 %v9623_v48, %v7749_v53  ;;  %v7755_v38 = vadd.f32 %v21843_v37, %v5762_v62  ;;  %v21850_v48 = vld [vmem:[#allocation46_spill] sm:$0xff]  ;;  %v10249_v62 = vld [vmem:[#allocation11 + $0x1b8] sm:$0xff]  ;;  %v10243_v37 = vld [vmem:[#allocation11 + $0x188] sm:$0xff] }
 0xf31   : > { %v14332_v58 = vpop.f32.mrf.mxu1 }
 0xf32   : > { %v20122_v35 = vadd.f32 %v14332_v58, %v21834_v0  ;;  %9780 = vadd.xlane.f32.xlu0 %v20114_v1 }
 0xf33   : > { %v9633_v59 = vpop.f32.mrf.mxu1 }
 0xf34   : > { %9790 = vadd.xlane.f32.xlu1 %v20122_v35  ;;  %v20136_v27 = vadd.f32 %v9633_v59, %v7751_v41  ;;  %v10257_v41 = vld [vmem:[#allocation11 + $0x1f8] sm:$0xff] }
 0xf35   : > { %v14335_v32 = vpop.f32.mrf.mxu1  ;;  %10537 = vmatprep.subr.mxu1 %v10257_v41  ;;  %v10231_v41 = vld [vmem:[#allocation11 + $0x128] sm:$0xff] }
 0xf36   : > { %v20132_v20 = vadd.f32 %v14335_v32, %v21838_v16  ;;  %9784 = vadd.xlane.f32.xlu0 %v20126_v52  ;;  %v10254_v16 = vld [vmem:[#allocation11 + $0x1e0] sm:$0xff]  ;;  %10538 = vmatpush1.msra.mxu1 %v10256_v39 }
 0xf37   : > { %v9643_v34 = vpop.f32.mrf.mxu1  ;;  %10281 = vmatpush1.msra.mxu0 %v10254_v16  ;;  %v10233_v16 = vld [vmem:[#allocation11 + $0x138] sm:$0xff]  ;;  %v10230_v39 = vld [vmem:[#allocation11 + $0x120] sm:$0xff] }
 0xf38   : > { %9794 = vadd.xlane.f32.xlu1 %v20132_v20  ;;  %v20141_v47 = vadd.f32 %v9643_v34, %v7753_v17  ;;  %v10253_v34 = vld [vmem:[#allocation11 + $0x1d8] sm:$0xff]  ;;  %v10250_v17 = vld [vmem:[#allocation11 + $0x1c0] sm:$0xff]  ;;  %10282 = vmatprep.subr.mxu0 %v10251_v21  ;;  %v10232_v21 = vld [vmem:[#allocation11 + $0x130] sm:$0xff] }
 0xf39   : > { %10539 = vmatprep.subr.mxu1 %v10253_v34  ;;  %10283 = vmatpush1.msra.mxu0 %v10250_v17  ;;  %v15145_v34 = vld [vmem:[%s15722_s7 + $0xa0] sm:$0xff] }
 0xf3a   : > { %9788 = vadd.xlane.f32.xlu0 %v20136_v27  ;;  %10540 = vmatpush1.msra.mxu1 %v10252_v51 }
 0xf3b   : > { %10284 = vmatprep.subr.mxu0 %v10247_v5  ;;  %10541 = vmatprep.subr.mxu1 %v10249_v62  ;;  %v10229_v5 = vld [vmem:[#allocation11 + $0x118] sm:$0xff] }
 0xf3c   : > { %10285 = vmatpush1.msra.mxu0 %v10246_v40  ;;  %10542 = vmatpush1.msra.mxu1 %v10248_v31  ;;  %v10228_v40 = vld [vmem:[#allocation11 + $0x110] sm:$0xff]  ;;  %v10223_v31 = vld [vmem:[#allocation11 + $0xe8] sm:$0xff] }
 0xf3d   : > { %10286 = vmatprep.subr.mxu0 %v10243_v37  ;;  %v10225_v37 = vld [vmem:[#allocation11 + $0xf8] sm:$0xff] }
 0xf3e   : > { %9792 = vadd.xlane.f32.xlu0 %v20141_v47 }
 0xf98   : > { %v14338_v13 = vpop.f32.mrf.mxu1 }
 0xf99   : > { %v20152_v60 = vadd.f32 %v14338_v13, %v21844_v4  ;;  %v10242_v4 = vld [vmem:[#allocation11 + $0x180] sm:$0xff] }
 0xf9a   : > { %v9653_v2 = vpop.f32.mrf.mxu1  ;;  %10287 = vmatpush1.msra.mxu0 %v10242_v4  ;;  %v10224_v4 = vld [vmem:[#allocation11 + $0xf0] sm:$0xff] }
 0xf9b   : > { %21845 = vst [vmem:[#allocation53_spill] sm:$0xff] %v20152_v60  ;;  %v20154_v50 = vadd.f32 %v9653_v2, %v7755_v38  ;;  %9798 = vadd.xlane.f32.xlu1 %v20152_v60  ;;  %v10245_v38 = vld [vmem:[#allocation11 + $0x198] sm:$0xff] }
 0xf9c   : > { %10543 = vmatprep.subr.mxu1 %v10245_v38  ;;  %v10222_v38 = vld [vmem:[#allocation11 + $0xe0] sm:$0xff] }
 0xf9d   : > { %21846 = vst [vmem:[#allocation68_spill] sm:$0xff] %v20154_v50  ;;  %9796 = vadd.xlane.f32.xlu0 %v20154_v50  ;;  %10544 = vmatpush1.msra.mxu1 %v10244_v29 }
 0xfa0   : > { %v14341_v9 = vpop.f32.mrf.mxu1 }
 0xfa1   : > { %v20162_v56 = vadd.f32 %v14341_v9, %v21850_v48 }
 0xfa2   : > { %v9663_v14 = vpop.f32.mrf.mxu1 }
 0xfa3   : > { %21851 = vst [vmem:[#allocation85_spill] sm:$0xff] %v20162_v56  ;;  %v20164_v58 = vadd.f32 %v9663_v14, %v7757_v42  ;;  %9802 = vadd.xlane.f32.xlu1 %v20162_v56  ;;  %v10239_v14 = vld [vmem:[#allocation11 + $0x168] sm:$0xff] }
 0xfa4   : > { %10288 = vmatprep.subr.mxu0 %v10239_v14 }
 0xfa5   : > { %21852 = vst [vmem:[#allocation50_spill] sm:$0xff] %v20164_v58  ;;  %v9767_v10 = vpop.xlane.xlu1 %9766  ;;  %9800 = vadd.xlane.f32.xlu0 %v20164_v58 }
 0xfa6   : > { %v9829_v43 = vmul.f32 0.0078125, %v9767_v10  ;;  %v10241_v10 = vld [vmem:[#allocation11 + $0x178] sm:$0xff] }
 0xfa7   : > { %v9765_v28 = vpop.xlane.xlu0 %9764  ;;  %10545 = vmatprep.subr.mxu1 %v10241_v10  ;;  %v10218_v10 = vld [vmem:[#allocation11 + $0xc0] sm:$0xff] }
 0xfa8   : > { %v9828_v22 = vmul.f32 0.0078125, %v9765_v28  ;;  %v20172_v0 = vsub.f32 %v20049_v45, %v9829_v43  ;;  %v10238_v28 = vld [vmem:[#allocation11 + $0x160] sm:$0xff]  ;;  %v10240_v43 = vld [vmem:[#allocation11 + $0x170] sm:$0xff] }
 0xfa9   : > { %10289 = vmatpush1.msra.mxu0 %v10238_v28  ;;  %10546 = vmatpush1.msra.mxu1 %v10240_v43  ;;  %v10220_v28 = vld [vmem:[#allocation11 + $0xd0] sm:$0xff] }
 0xfaa   : > { %v20169_v46 = vsub.f32 %v20053_v57, %v9828_v22  ;;  %v9893_v3 = vmul.f32 %v20172_v0, %v20172_v0  ;;  %v21854_v43 = vld [vmem:[#allocation134_spill] sm:$0xff] }
 0xfab   : > { %v9769_v53 = vpop.xlane.xlu0 %9768 }
 0xfac   : > { %v9830_v59 = vmul.f32 0.0078125, %v9769_v53  ;;  %v9892_v12 = vmul.f32 %v20169_v46, %v20169_v46 }
 0xfad   : > { %v9775_v13 = vpop.xlane.xlu1 %9774 }
 0xfae   : > { %9924 = vadd.xlane.f32.xlu0 %v9892_v12  ;;  %v20177_v32 = vsub.f32 %v20062_v63, %v9830_v59  ;;  %v9833_v2 = vmul.f32 0.0078125, %v9775_v13  ;;  %v10235_v12 = vld [vmem:[#allocation11 + $0x148] sm:$0xff]  ;;  %v10226_v13 = vld [vmem:[#allocation11 + $0x100] sm:$0xff] }
 0xfaf   : > { %v9771_v15 = vpop.xlane.xlu0 %9770  ;;  %10290 = vmatprep.subr.mxu0 %v10235_v12  ;;  %v10217_v12 = vld [vmem:[#allocation11 + $0xb8] sm:$0xff] }
 0xfb0   : > { %v9831_v26 = vmul.f32 0.0078125, %v9771_v15  ;;  %v9894_v18 = vmul.f32 %v20177_v32, %v20177_v32  ;;  %v20192_v9 = vsub.f32 %v20069_v33, %v9833_v2  ;;  %v10237_v15 = vld [vmem:[#allocation11 + $0x158] sm:$0xff]  ;;  %v21853_v2 = vld [vmem:[#allocation137_spill] sm:$0xff] }
 0xfb1   : > { %v9779_v48 = vpop.xlane.xlu1 %9778  ;;  %10547 = vmatprep.subr.mxu1 %v10237_v15 }
 0xfb2   : > { %9926 = vadd.xlane.f32.xlu0 %v9893_v3  ;;  %v20182_v23 = vsub.f32 %v20075_v25, %v9831_v26  ;;  %v9835_v22 = vmul.f32 0.0078125, %v9779_v48  ;;  %v9897_v59 = vmul.f32 %v20192_v9, %v20192_v9  ;;  %v10234_v3 = vld [vmem:[#allocation11 + $0x140] sm:$0xff]  ;;  %10548 = vmatpush1.msra.mxu1 %v10236_v36  ;;  %v10221_v48 = vld [vmem:[#allocation11 + $0xd8] sm:$0xff] }
 0xfb3   : > { %v9773_v8 = vpop.xlane.xlu0 %9772  ;;  %10291 = vmatpush1.msra.mxu0 %v10234_v3  ;;  %10549 = vmatprep.subr.mxu1 %v10233_v16  ;;  %v10216_v3 = vld [vmem:[#allocation11 + $0xb0] sm:$0xff]  ;;  %v21855_v36 = vld [vmem:[#allocation43_spill] sm:$0xff] }
 0xfb4   : > { %v9832_v49 = vmul.f32 0.0078125, %v9773_v8  ;;  %v9895_v6 = vmul.f32 %v20182_v23, %v20182_v23  ;;  %10292 = vmatprep.subr.mxu0 %v10231_v41  ;;  %v1906_v8 = vadd.f32 %v15145_v34, %v20037_v11  ;;  %v20204_v17 = vsub.f32 %v20084_v30, %v9835_v22  ;;  %10550 = vmatpush1.msra.mxu1 %v10232_v21  ;;  %v10211_v34 = vld [vmem:[#allocation11 + $0x88] sm:$0xff] }
 0xfb5   : > { %10293 = vmatpush1.msra.mxu0 %v10230_v39  ;;  %v9783_v62 = vpop.xlane.xlu1 %9782  ;;  %10551 = vmatprep.subr.mxu1 %v10229_v5 }
 0xfb6   : > { %9928 = vadd.xlane.f32.xlu0 %v9894_v18  ;;  %v20187_v7 = vsub.f32 %v20089_v19, %v9832_v49  ;;  %v10227_v18 = vld [vmem:[#allocation11 + $0x108] sm:$0xff]  ;;  %10552 = vmatpush1.msra.mxu1 %v10228_v40  ;;  %v9837_v29 = vmul.f32 0.0078125, %v9783_v62  ;;  %v10212_v62 = vld [vmem:[#allocation11 + $0x90] sm:$0xff] }
 0xfb7   : > { %v9777_v55 = vpop.xlane.xlu0 %9776  ;;  %10294 = vmatprep.subr.mxu0 %v10227_v18  ;;  %10553 = vmatprep.subr.mxu1 %v10225_v37  ;;  %v10210_v18 = vld [vmem:[#allocation11 + $0x80] sm:$0xff] }
 0xfb8   : > { %v9834_v61 = vmul.f32 0.0078125, %v9777_v55  ;;  %v9896_v42 = vmul.f32 %v20187_v7, %v20187_v7  ;;  %10295 = vmatpush1.msra.mxu0 %v10226_v13  ;;  %10554 = vmatpush1.msra.mxu1 %v10224_v4  ;;  %v20217_v16 = vsub.f32 %v20098_v54, %v9837_v29  ;;  %v10207_v13 = vld [vmem:[#allocation11 + $0x68] sm:$0xff]  ;;  %v15146_v29 = vld [vmem:[%s15722_s7 + $0xb0] sm:$0xff] }
 0xfb9   : > { %10296 = vmatprep.subr.mxu0 %v10223_v31  ;;  %10555 = vmatprep.subr.mxu1 %v10221_v48  ;;  %v10209_v31 = vld [vmem:[#allocation11 + $0x78] sm:$0xff]  ;;  %v21856_v48 = vld [vmem:[#allocation56_spill] sm:$0xff] }
 0xfba   : > { %9930 = vadd.xlane.f32.xlu0 %v9895_v6  ;;  %v20197_v53 = vsub.f32 %v20102_v44, %v9834_v61  ;;  %v3741_v6 = vadd.f32 %v21853_v2, %v1906_v8  ;;  %v9899_v61 = vmul.f32 %v20204_v17, %v20204_v17  ;;  %10297 = vmatpush1.msra.mxu0 %v10222_v38  ;;  %v10213_v8 = vld [vmem:[#allocation11 + $0x98] sm:$0xff]  ;;  %v10206_v2 = vld [vmem:[#allocation11 + $0x60] sm:$0xff] }
 0xfbb   : > { %v9781_v26 = vpop.xlane.xlu0 %9780  ;;  %10556 = vmatpush1.msra.mxu1 %v10220_v28  ;;  %v9901_v4 = vmul.f32 %v20217_v16, %v20217_v16  ;;  %v10202_v28 = vld [vmem:[#allocation11 + $0x40] sm:$0xff] }
 0xfbc   : > { %v9836_v51 = vmul.f32 0.0078125, %v9781_v26  ;;  %v9898_v49 = vmul.f32 %v20197_v53, %v20197_v53  ;;  %v5766_v22 = vadd.f32 %v21854_v43, %v3741_v6  ;;  %v10214_v26 = vld [vmem:[#allocation11 + $0xa0] sm:$0xff]  ;;  %10557 = vmatprep.subr.mxu1 %v10217_v12  ;;  %v10208_v6 = vld [vmem:[#allocation11 + $0x70] sm:$0xff] }
 0xfbd   : > { %10558 = vmatpush1.msra.mxu1 %v10216_v3  ;;  %v10204_v43 = vld [vmem:[#allocation11 + $0x50] sm:$0xff]  ;;  %v21858_v3 = vld [vmem:[#allocation139_spill] sm:$0xff] }
 0xfbe   : > { %9932 = vadd.xlane.f32.xlu0 %v9896_v42  ;;  %v20210_v55 = vsub.f32 %v20114_v1, %v9836_v51  ;;  %v10219_v42 = vld [vmem:[#allocation11 + $0xc8] sm:$0xff]  ;;  %v7759_v41 = vadd.f32 %v21855_v36, %v5766_v22  ;;  %v9787_v51 = vpop.xlane.xlu1 %9786  ;;  %10559 = vmatprep.subr.mxu1 %v10213_v8  ;;  %v10197_v8 = vld [vmem:[#allocation11 + $0x18] sm:$0xff] }
 0xfbf   : > { %v9785_v14 = vpop.xlane.xlu0 %9784  ;;  %10298 = vmatprep.subr.mxu0 %v10219_v42  ;;  %v9839_v37 = vmul.f32 0.0078125, %v9787_v51  ;;  %10560 = vmatpush1.msra.mxu1 %v10212_v62  ;;  %v10203_v42 = vld [vmem:[#allocation11 + $0x48] sm:$0xff]  ;;  %v21859_v51 = vld [vmem:[#allocation138_spill] sm:$0xff] }
 0xfc0   : > { %10299 = vmatpush1.msra.mxu0 %v10218_v10  ;;  %v9838_v39 = vmul.f32 0.0078125, %v9785_v14  ;;  %v9900_v21 = vmul.f32 %v20210_v55, %v20210_v55  ;;  %10561 = vmatprep.subr.mxu1 %v10209_v31  ;;  %v10205_v10 = vld [vmem:[#allocation11 + $0x58] sm:$0xff]  ;;  %v10196_v31 = vld [vmem:[#allocation11 + $0x10] sm:$0xff] }
 0xfc1   : > { %10562 = vmatpush1.msra.mxu1 %v10208_v6  ;;  %v20235_v22 = vsub.f32 %v20110_v24, %v9839_v37  ;;  %v21860_v6 = vld [vmem:[#allocation54_spill] sm:$0xff] }
 0xfc2   : > { %9934 = vadd.xlane.f32.xlu0 %v9897_v59  ;;  %v10215_v59 = vld [vmem:[#allocation11 + $0xa8] sm:$0xff]  ;;  %v20224_v38 = vsub.f32 %v20126_v52, %v9838_v39  ;;  %10563 = vmatprep.subr.mxu1 %v10205_v10  ;;  %v10198_v39 = vld [vmem:[#allocation11 + $0x20] sm:$0xff] }
 0xfc3   : > { %10300 = vmatprep.subr.mxu0 %v10215_v59  ;;  %v9789_v40 = vpop.xlane.xlu0 %9788  ;;  %10564 = vmatpush1.msra.mxu1 %v10204_v43 }
 0xfc4   : > { %10301 = vmatpush1.msra.mxu0 %v10214_v26  ;;  %v9840_v59 = vmul.f32 0.0078125, %v9789_v40  ;;  %v9902_v12 = vmul.f32 %v20224_v38, %v20224_v38  ;;  %v10199_v26 = vld [vmem:[#allocation11 + $0x28] sm:$0xff]  ;;  %v9903_v40 = vmul.f32 %v20235_v22, %v20235_v22 }
 0xfc5   : > { %10302 = vmatprep.subr.mxu0 %v10211_v34  ;;  %v10195_v34 = vld [vmem:[#allocation11 + $0x8] sm:$0xff] }
 0xfc6   : > { %9936 = vadd.xlane.f32.xlu0 %v9898_v49  ;;  %10303 = vmatpush1.msra.mxu0 %v10210_v18  ;;  %v10194_v18 = vld [vmem:[#allocation11] sm:$0xff]  ;;  %v20243_v62 = vsub.f32 %v20136_v27, %v9840_v59  ;;  %v21862_v59 = vld [vmem:[#allocation141_spill] sm:$0xff] }
 0xfc7   : > { %10304 = vmatprep.subr.mxu0 %v10207_v13 }
 0xfc8   : > { %10305 = vmatpush1.msra.mxu0 %v10206_v2 }
 0xfc9   : > { %10306 = vmatprep.subr.mxu0 %v10203_v42  ;;  %v21281_v42 = vmov 0.0  }
 0xfca   : > { %9938 = vadd.xlane.f32.xlu0 %v9899_v61  ;;  %v1908_v61 = vadd.f32 %v15146_v29, %v20037_v11  ;;  %10307 = vmatpush1.msra.mxu0 %v10202_v28  ;;  %v9904_v28 = vmul.f32 %v20243_v62, %v20243_v62 }
 0xfcb   : > { %v14344_v15 = vpop.f32.mrf.mxu1  ;;  %10308 = vmatprep.subr.mxu0 %v10199_v26  ;;  %10344 = vmatprep.mubr.f32.mxu0 %v21281_v42  ;;  %v21863_v26 = vld [vmem:[#allocation149_spill] sm:$0xff] }
 0xfcc   : > { %v20232_v14 = vadd.f32 %v14344_v15, %v21856_v48  ;;  %v10201_v15 = vld [vmem:[#allocation11 + $0x38] sm:$0xff]  ;;  %v3743_v36 = vadd.f32 %v21858_v3, %v1908_v61  ;;  %10309 = vmatpush1.msra.mxu0 %v10198_v39  ;;  %10601 = vmatprep.mubr.f32.mxu1 %v21281_v42 }
 0xfcd   : > { %v9673_v49 = vpop.f32.mrf.mxu1  ;;  %10565 = vmatprep.subr.mxu1 %v10201_v15  ;;  %10310 = vmatprep.subr.mxu0 %v10195_v34  ;;  %v21864_v3 = vld [vmem:[#allocation59_spill] sm:$0xff] }
 0xfce   : > { %v20221_v5 = vadd.f32 %v9673_v49, %v7759_v41  ;;  %9940 = vadd.xlane.f32.xlu0 %v9900_v21  ;;  %21857 = vst [vmem:[#allocation57_spill] sm:$0xff] %v20232_v14  ;;  %v9793_v41 = vpop.xlane.xlu0 %9792  ;;  %v10200_v21 = vld [vmem:[#allocation11 + $0x30] sm:$0xff]  ;;  %v5768_v49 = vadd.f32 %v21859_v51, %v3743_v36  ;;  %10311 = vmatpush1.msra.mxu0 %v10194_v18 }
 0xfcf   : > { %v9842_v13 = vmul.f32 0.0078125, %v9793_v41  ;;  %10566 = vmatpush1.msra.mxu1 %v10200_v21  ;;  %10993 = vmatprep.subr.mxu0 %v21281_v42  ;;  %v15148_v21 = vld [vmem:[%s15722_s7 + $0xd0] sm:$0xff] }
 0xfd0   : > { %9804 = vadd.xlane.f32.xlu1 %v20221_v5  ;;  %10567 = vmatprep.subr.mxu1 %v10197_v8  ;;  %v7761_v29 = vadd.f32 %v21860_v6, %v5768_v49  ;;  %v1912_v34 = vadd.f32 %v15148_v21, %v20037_v11  ;;  %v21866_v8 = vld [vmem:[#allocation48_spill] sm:$0xff]  ;;  %v21876_v21 = vld [vmem:[#allocation66_spill] sm:$0xff] }
 0xfd1   : > { %10568 = vmatpush1.msra.mxu1 %v10196_v31  ;;  %v20252_v48 = vsub.f32 %v20141_v47, %v9842_v13  ;;  %v21868_v13 = vld [vmem:[#allocation143_spill] sm:$0xff]  ;;  %v21869_v31 = vld [vmem:[#allocation150_spill] sm:$0xff] }
 0xfd2   : > { %9942 = vadd.xlane.f32.xlu0 %v9901_v4  ;;  %v15147_v4 = vld [vmem:[%s15722_s7 + $0xc0] sm:$0xff]  ;;  %11218 = vmatprep.subr.mxu1 %v21281_v42 }
 0xfd3   : > { %v1910_v2 = vadd.f32 %v15147_v4, %v20037_v11  ;;  %v9906_v41 = vmul.f32 %v20252_v48, %v20252_v48  ;;  %v21870_v4 = vld [vmem:[#allocation35_spill] sm:$0xff] }
 0xfd4   : > { %9806 = vadd.xlane.f32.xlu1 %v20232_v14 }
 0xfd6   : > { %9944 = vadd.xlane.f32.xlu0 %v9902_v12  ;;  %v3745_v12 = vadd.f32 %v21862_v59, %v1910_v2 }
 0xfd8   : > { %v5770_v15 = vadd.f32 %v21863_v26, %v3745_v12 }
 0xfd9   : > { %v14347_v37 = vpop.f32.mrf.mxu1 }
 0xfda   : > { %9946 = vadd.xlane.f32.xlu0 %v9903_v40  ;;  %v20265_v36 = vadd.f32 %v14347_v37, %v21864_v3  ;;  %v7763_v51 = vadd.f32 %v21866_v8, %v5770_v15  ;;  %v3747_v40 = vadd.f32 %v21868_v13, %v1912_v34  ;;  %v21874_v15 = vld [vmem:[#allocation145_spill] sm:$0xff]  ;;  %v15150_v8 = vld [vmem:[%s15722_s7 + $0xf0] sm:$0xff] }
 0xfdb   : > { %v9683_v61 = vpop.f32.mrf.mxu1  ;;  %v21878_v13 = vld [vmem:[#allocation61_spill] sm:$0xff] }
 0xfdc   : > { %v20254_v10 = vadd.f32 %v9683_v61, %v7761_v29  ;;  %21865 = vst [vmem:[#allocation62_spill] sm:$0xff] %v20265_v36  ;;  %v5772_v37 = vadd.f32 %v21869_v31, %v3747_v40  ;;  %v15149_v29 = vld [vmem:[%s15722_s7 + $0xe0] sm:$0xff] }
 0xfdd   : > { %v14350_v43 = vpop.f32.mrf.mxu1  ;;  %v1914_v61 = vadd.f32 %v15149_v29, %v20037_v11  ;;  %v9791_v29 = vpop.xlane.xlu1 %9790 }
 0xfde   : > { %21861 = vst [vmem:[#allocation78_spill] sm:$0xff] %v20254_v10  ;;  %9808 = vadd.xlane.f32.xlu1 %v20254_v10  ;;  %9948 = vadd.xlane.f32.xlu0 %v9904_v28  ;;  %v20279_v2 = vadd.f32 %v14350_v43, %v21870_v4  ;;  %v21872_v28 = vld [vmem:[#allocation32_spill] sm:$0xff]  ;;  %v21880_v4 = vld [vmem:[#allocation147_spill] sm:$0xff] }
 0xfdf   : > { %v9693_v39 = vpop.f32.mrf.mxu1  ;;  %v7765_v59 = vadd.f32 %v21872_v28, %v5772_v37  ;;  %v3749_v3 = vadd.f32 %v21874_v15, %v1914_v61  ;;  %v21881_v61 = vld [vmem:[#allocation152_spill] sm:$0xff] }
 0xfe0   : > { %v20273_v49 = vadd.f32 %v9693_v39, %v7763_v51  ;;  %21871 = vst [vmem:[#allocation65_spill] sm:$0xff] %v20279_v2  ;;  %v1916_v51 = vadd.f32 %v15150_v8, %v20037_v11 }
 0xfe1   : > { %v14353_v18 = vpop.f32.mrf.mxu1 }
 0xfe2   : > { %9810 = vadd.xlane.f32.xlu1 %v20265_v36  ;;  %9952 = vadd.xlane.f32.xlu0 %v9906_v41  ;;  %21867 = vst [vmem:[#allocation55_spill] sm:$0xff] %v20273_v49  ;;  %v21875_v41 = vld [vmem:[#allocation151_spill] sm:$0xff]  ;;  %v20291_v43 = vadd.f32 %v14353_v18, %v21876_v21  ;;  %v21882_v18 = vld [vmem:[#allocation45_spill] sm:$0xff]  ;;  %v9795_v21 = vpop.xlane.xlu1 %9794 }
 0xfe3   : > { %v9703_v6 = vpop.f32.mrf.mxu1  ;;  %v5774_v39 = vadd.f32 %v21875_v41, %v3749_v3  ;;  %v21884_v3 = vld [vmem:[#allocation40_spill] sm:$0xff]  ;;  %v9841_v41 = vmul.f32 0.0078125, %v9791_v29  ;;  %v9843_v8 = vmul.f32 0.0078125, %v9795_v21 }
 0xfe4   : > { %v20285_v12 = vadd.f32 %v9703_v6, %v7765_v59  ;;  %21877 = vst [vmem:[#allocation70_spill] sm:$0xff] %v20291_v43  ;;  %v3751_v6 = vadd.f32 %v21880_v4, %v1916_v51  ;;  %v21886_v51 = vld [vmem:[#allocation75_spill] sm:$0xff] }
 0xfe5   : > { %v14356_v26 = vpop.f32.mrf.mxu1  ;;  %v7767_v40 = vadd.f32 %v21878_v13, %v5774_v39 }
 0xfe6   : > { %9812 = vadd.xlane.f32.xlu1 %v20273_v49  ;;  %21873 = vst [vmem:[#allocation28_spill] sm:$0xff] %v20285_v12  ;;  %v5776_v28 = vadd.f32 %v21881_v61, %v3751_v6  ;;  %v20303_v59 = vadd.f32 %v14356_v26, %v21882_v18  ;;  %v20318_v26 = vsub.f32 %v20132_v20, %v9843_v8 }
 0xfe7   : > { %v9713_v34 = vpop.f32.mrf.mxu1 }
 0xfe8   : > { %v20297_v31 = vadd.f32 %v9713_v34, %v7767_v40  ;;  %21883 = vst [vmem:[#allocation83_spill] sm:$0xff] %v20303_v59  ;;  %v7769_v11 = vadd.f32 %v21884_v3, %v5776_v28  ;;  %v20311_v34 = vsub.f32 %v20122_v35, %v9841_v41  ;;  %v9907_v4 = vmul.f32 %v20318_v26, %v20318_v26 }
 0xfe9   : > { %v14359_v37 = vpop.f32.mrf.mxu1 }
 0xfea   : > { %9814 = vadd.xlane.f32.xlu1 %v20279_v2  ;;  %21879 = vst [vmem:[#allocation58_spill] sm:$0xff] %v20297_v31  ;;  %v20314_v13 = vadd.f32 %v14359_v37, %v21886_v51  ;;  %v9905_v40 = vmul.f32 %v20311_v34, %v20311_v34 }
 0xfeb   : > { %v9723_v15 = vpop.f32.mrf.mxu1 }
 0xfec   : > { %v20307_v39 = vadd.f32 %v9723_v15, %v7769_v11  ;;  %21887 = vst [vmem:[#allocation79_spill] sm:$0xff] %v20314_v13 }
 0xfee   : > { %9816 = vadd.xlane.f32.xlu1 %v20285_v12  ;;  %21885 = vst [vmem:[#allocation63_spill] sm:$0xff] %v20307_v39 }
 0xff2   : > { %9818 = vadd.xlane.f32.xlu1 %v20291_v43 }
 0xff6   : > { %9820 = vadd.xlane.f32.xlu1 %v20297_v31 }
 0xffa   : > { %9822 = vadd.xlane.f32.xlu1 %v20303_v59 }
 0xffe   : > { %9824 = vadd.xlane.f32.xlu1 %v20307_v39 }
0x1002   : > { %9826 = vadd.xlane.f32.xlu1 %v20314_v13 }
0x1006   : > { %9950 = vadd.xlane.f32.xlu1 %v9905_v40 }
0x100a   : > { %9954 = vadd.xlane.f32.xlu1 %v9907_v4 }
0x1024   : > { %v9799_v6 = vpop.xlane.xlu1 %9798 }
0x1025   : > { %v9845_v29 = vmul.f32 0.0078125, %v9799_v6 }
0x1026   : > { %v9797_v61 = vpop.xlane.xlu0 %9796 }
0x1027   : > { %v20325_v28 = vsub.f32 %v20152_v60, %v9845_v29  ;;  %v9844_v37 = vmul.f32 0.0078125, %v9797_v61 }
0x1029   : > { %v20328_v18 = vsub.f32 %v20154_v50, %v9844_v37  ;;  %v9909_v15 = vmul.f32 %v20325_v28, %v20325_v28 }
0x102b   : > { %9958 = vadd.xlane.f32.xlu1 %v9909_v15  ;;  %v9908_v3 = vmul.f32 %v20328_v18, %v20328_v18 }
0x102c   : > { %v9803_v11 = vpop.xlane.xlu1 %9802 }
0x102d   : > { %v9847_v41 = vmul.f32 0.0078125, %v9803_v11  ;;  %9956 = vadd.xlane.f32.xlu0 %v9908_v3 }
0x102e   : > { %v9801_v21 = vpop.xlane.xlu0 %9800 }
0x102f   : > { %v20335_v8 = vsub.f32 %v20162_v56, %v9847_v41  ;;  %v9846_v51 = vmul.f32 0.0078125, %v9801_v21 }
0x1031   : > { %v20338_v40 = vsub.f32 %v20164_v58, %v9846_v51  ;;  %v9911_v4 = vmul.f32 %v20335_v8, %v20335_v8 }
0x1033   : > { %9962 = vadd.xlane.f32.xlu1 %v9911_v4  ;;  %v9910_v6 = vmul.f32 %v20338_v40, %v20338_v40 }
0x1035   : > { %9960 = vadd.xlane.f32.xlu0 %v9910_v6  ;;  %v20347_v6 = vld [vmem:[%s21069_s11] ss:$0 sm:$0xff] }
0x1037   : > { %v9925_v29 = vpop.xlane.xlu0 %9924 }
0x1038   : > { %v9988_v61 = vmul.f32 0.0078125, %v9925_v29 }
0x103a   : > { %v10020_v37 = vadd.f32 1e-05, %v9988_v61 }
0x103b   : > { %v9927_v15 = vpop.xlane.xlu0 %9926 }
0x103c   : > { %15053 = vrsqrt.f32 %v10020_v37  ;;  %v9989_v3 = vmul.f32 0.0078125, %v9927_v15  ;;  %v20353_v15 = vld [vmem:[%s21070_s12] ss:$0 sm:$0xff] }
0x103e   : > { %v10021_v11 = vadd.f32 1e-05, %v9989_v3 }
0x103f   : > { %v9929_v41 = vpop.xlane.xlu0 %9928 }
0x1040   : > { %15055 = vrsqrt.f32 %v10021_v11  ;;  %v9990_v21 = vmul.f32 0.0078125, %v9929_v41 }
0x1042   : > { %v10022_v51 = vadd.f32 1e-05, %v9990_v21 }
0x1043   : > { %v9931_v42 = vpop.xlane.xlu0 %9930 }
0x1044   : > { %15057 = vrsqrt.f32 %v10022_v51  ;;  %v9991_v56 = vmul.f32 0.0078125, %v9931_v42  ;;  %v21888_v51 = vmov 0.0  }
0x1046   : > { %v10023_v58 = vadd.f32 1e-05, %v9991_v56 }
0x1047   : > { %v9933_v4 = vpop.xlane.xlu0 %9932 }
0x1048   : > { %15059 = vrsqrt.f32 %v10023_v58  ;;  %v9992_v60 = vmul.f32 0.0078125, %v9933_v4 }
0x1049   : > { %v15054_v50 = vpop.eup %15053 }
0x104a   : > { %v10084_v29 = vmul.f32 %v15054_v50, %v20169_v46  ;;  %v10024_v61 = vadd.f32 1e-05, %v9992_v60 }
0x104b   : > { %v9935_v37 = vpop.xlane.xlu0 %9934 }
0x104c   : > { %v10123_v56 = vmul.f32 %v20347_v6, %v10084_v29  ;;  %15061 = vrsqrt.f32 %v10024_v61  ;;  %v9993_v58 = vmul.f32 0.0078125, %v9935_v37 }
0x104d   : > { %v15056_v42 = vpop.eup %15055 }
0x104e   : > { %v10025_v3 = vadd.f32 1e-05, %v9993_v58  ;;  %v10162_v11 = vadd.f32 %v20353_v15, %v10123_v56  ;;  %v10085_v41 = vmul.f32 %v15056_v42, %v20172_v0 }
0x104f   : > { %v9937_v21 = vpop.xlane.xlu0 %9936 }
0x1050   : > { %15063 = vrsqrt.f32 %v10025_v3  ;;  %v9994_v50 = vmul.f32 0.0078125, %v9937_v21  ;;  %10345 = vmatmul.mubr.f32.vlgmr.msra.gmra.mxu0 %v10162_v11  ;;  %10602 = vmatmul.mubr.f32.vlgmr.msra.gmra.mxu1 %v10162_v11  ;;  %v10124_v60 = vmul.f32 %v20347_v6, %v10085_v41 }
0x1051   : > { %v15058_v46 = vpop.eup %15057  ;;  %10350 = vmatprep.mubr.f32.mxu0 %v21888_v51  ;;  %10607 = vmatprep.mubr.f32.mxu1 %v21888_v51 }
0x1052   : > { %v10026_v4 = vadd.f32 1e-05, %v9994_v50  ;;  %v10163_v29 = vadd.f32 %v20353_v15, %v10124_v60  ;;  %v10086_v61 = vmul.f32 %v15058_v46, %v20177_v32 }
0x1053   : > { %v9939_v37 = vpop.xlane.xlu0 %9938 }
0x1054   : > { %15065 = vrsqrt.f32 %v10026_v4  ;;  %v9995_v0 = vmul.f32 0.0078125, %v9939_v37  ;;  %10351 = vmatmul.mubr.f32.gmra.mxu0 %v10163_v29  ;;  %10608 = vmatmul.mubr.f32.gmra.mxu1 %v10163_v29  ;;  %v10125_v56 = vmul.f32 %v20347_v6, %v10086_v61 }
0x1055   : > { %v15060_v58 = vpop.eup %15059  ;;  %10356 = vmatprep.mubr.f32.mxu0 %v21888_v51  ;;  %10613 = vmatprep.mubr.f32.mxu1 %v21888_v51 }
0x1056   : > { %v10027_v42 = vadd.f32 1e-05, %v9995_v0  ;;  %v10164_v3 = vadd.f32 %v20353_v15, %v10125_v56  ;;  %v10087_v11 = vmul.f32 %v15060_v58, %v20182_v23 }
0x1057   : > { %v9941_v41 = vpop.xlane.xlu0 %9940 }
0x1058   : > { %15067 = vrsqrt.f32 %v10027_v42  ;;  %v9996_v32 = vmul.f32 0.0078125, %v9941_v41  ;;  %10357 = vmatmul.mubr.f32.gmra.mxu0 %v10164_v3  ;;  %10614 = vmatmul.mubr.f32.gmra.mxu1 %v10164_v3  ;;  %v10126_v21 = vmul.f32 %v20347_v6, %v10087_v11 }
0x1059   : > { %v15062_v50 = vpop.eup %15061  ;;  %v9805_v60 = vpop.xlane.xlu1 %9804  ;;  %10362 = vmatprep.mubr.f32.mxu0 %v21888_v51  ;;  %10619 = vmatprep.mubr.f32.mxu1 %v21888_v51 }
0x105a   : > { %v10028_v46 = vadd.f32 1e-05, %v9996_v32  ;;  %v9848_v4 = vmul.f32 0.0078125, %v9805_v60  ;;  %v10165_v29 = vadd.f32 %v20353_v15, %v10126_v21  ;;  %v10088_v61 = vmul.f32 %v15062_v50, %v20187_v7 }
0x105b   : > { %v9943_v23 = vpop.xlane.xlu0 %9942 }
0x105c   : > { %15069 = vrsqrt.f32 %v10028_v46  ;;  %v20374_v37 = vsub.f32 %v20221_v5, %v9848_v4  ;;  %v9997_v0 = vmul.f32 0.0078125, %v9943_v23  ;;  %10363 = vmatmul.mubr.f32.gmra.mxu0 %v10165_v29  ;;  %10620 = vmatmul.mubr.f32.gmra.mxu1 %v10165_v29  ;;  %v10127_v56 = vmul.f32 %v20347_v6, %v10088_v61 }
0x105d   : > { %v15064_v58 = vpop.eup %15063  ;;  %v9807_v42 = vpop.xlane.xlu1 %9806  ;;  %10368 = vmatprep.mubr.f32.mxu0 %v21888_v51  ;;  %10625 = vmatprep.mubr.f32.mxu1 %v21888_v51 }
0x105e   : > { %v10029_v3 = vadd.f32 1e-05, %v9997_v0  ;;  %v9849_v11 = vmul.f32 0.0078125, %v9807_v42  ;;  %v9912_v7 = vmul.f32 %v20374_v37, %v20374_v37  ;;  %v10166_v41 = vadd.f32 %v20353_v15, %v10127_v56 }
0x105f   : > { %v9945_v32 = vpop.xlane.xlu0 %9944  ;;  %v10089_v21 = vmul.f32 %v15064_v58, %v20192_v9 }
0x1060   : > { %15071 = vrsqrt.f32 %v10029_v3  ;;  %v20384_v50 = vsub.f32 %v20232_v14, %v9849_v11  ;;  %v9998_v60 = vmul.f32 0.0078125, %v9945_v32  ;;  %9964 = vadd.xlane.f32.xlu0 %v9912_v7  ;;  %10369 = vmatmul.mubr.f32.gmra.mxu0 %v10166_v41 }
0x1061   : > { %v15066_v46 = vpop.eup %15065  ;;  %10626 = vmatmul.mubr.f32.gmra.mxu1 %v10166_v41  ;;  %10374 = vmatprep.mubr.f32.mxu0 %v21888_v51  ;;  %v10128_v4 = vmul.f32 %v20347_v6, %v10089_v21 }
0x1062   : > { %v10030_v29 = vadd.f32 1e-05, %v9998_v60  ;;  %10631 = vmatprep.mubr.f32.mxu1 %v21888_v51  ;;  %v9913_v61 = vmul.f32 %v20384_v50, %v20384_v50  ;;  %v10090_v9 = vmul.f32 %v15066_v46, %v20197_v53 }
0x1063   : > { %v9947_v23 = vpop.xlane.xlu0 %9946  ;;  %v10167_v0 = vadd.f32 %v20353_v15, %v10128_v4 }
0x1064   : > { %15073 = vrsqrt.f32 %v10030_v29  ;;  %v9999_v56 = vmul.f32 0.0078125, %v9947_v23  ;;  %9966 = vadd.xlane.f32.xlu1 %v9913_v61  ;;  %v10129_v58 = vmul.f32 %v20347_v6, %v10090_v9 }
0x1065   : > { %v15068_v42 = vpop.eup %15067  ;;  %10375 = vmatmul.mubr.f32.gmra.mxu0 %v10167_v0  ;;  %10632 = vmatmul.mubr.f32.gmra.mxu1 %v10167_v0 }
0x1066   : > { %v10031_v3 = vadd.f32 1e-05, %v9999_v56  ;;  %10380 = vmatprep.mubr.f32.mxu0 %v21888_v51  ;;  %10637 = vmatprep.mubr.f32.mxu1 %v21888_v51  ;;  %v10168_v11 = vadd.f32 %v20353_v15, %v10129_v58  ;;  %v10091_v53 = vmul.f32 %v15068_v42, %v20204_v17 }
0x1067   : > { %v9809_v7 = vpop.xlane.xlu1 %9808  ;;  %v9949_v41 = vpop.xlane.xlu0 %9948 }
0x1068   : > { %15075 = vrsqrt.f32 %v10031_v3  ;;  %v9850_v32 = vmul.f32 0.0078125, %v9809_v7  ;;  %v10000_v21 = vmul.f32 0.0078125, %v9949_v41  ;;  %v10130_v60 = vmul.f32 %v20347_v6, %v10091_v53 }
0x1069   : > { %v15070_v46 = vpop.eup %15069  ;;  %10381 = vmatmul.mubr.f32.gmra.mxu0 %v10168_v11  ;;  %10638 = vmatmul.mubr.f32.gmra.mxu1 %v10168_v11 }
0x106a   : > { %v20400_v4 = vsub.f32 %v20254_v10, %v9850_v32  ;;  %v10032_v29 = vadd.f32 1e-05, %v10000_v21  ;;  %10386 = vmatprep.mubr.f32.mxu0 %v21888_v51  ;;  %10643 = vmatprep.mubr.f32.mxu1 %v21888_v51  ;;  %v10169_v17 = vadd.f32 %v20353_v15, %v10130_v60  ;;  %v10092_v61 = vmul.f32 %v15070_v46, %v20210_v55 }
0x106b   : > { %v9811_v9 = vpop.xlane.xlu1 %9810 }
0x106c   : > { %15077 = vrsqrt.f32 %v10032_v29  ;;  %v9851_v23 = vmul.f32 0.0078125, %v9811_v9  ;;  %v9914_v0 = vmul.f32 %v20400_v4, %v20400_v4  ;;  %v10131_v58 = vmul.f32 %v20347_v6, %v10092_v61 }
0x106d   : > { %v15072_v56 = vpop.eup %15071  ;;  %10387 = vmatmul.mubr.f32.gmra.mxu0 %v10169_v17  ;;  %10644 = vmatmul.mubr.f32.gmra.mxu1 %v10169_v17 }
0x106e   : > { %v20410_v42 = vsub.f32 %v20265_v36, %v9851_v23  ;;  %9968 = vadd.xlane.f32.xlu0 %v9914_v0  ;;  %10392 = vmatprep.mubr.f32.mxu0 %v21888_v51  ;;  %v10093_v3 = vmul.f32 %v15072_v56, %v20217_v16  ;;  %v10170_v11 = vadd.f32 %v20353_v15, %v10131_v58 }
0x106f   : > { %v9813_v55 = vpop.xlane.xlu1 %9812  ;;  %10649 = vmatprep.mubr.f32.mxu1 %v21888_v51 }
0x1070   : > { %v9852_v53 = vmul.f32 0.0078125, %v9813_v55  ;;  %v9915_v7 = vmul.f32 %v20410_v42, %v20410_v42  ;;  %v10132_v41 = vmul.f32 %v20347_v6, %v10093_v3 }
0x1071   : > { %v15074_v32 = vpop.eup %15073  ;;  %10393 = vmatmul.mubr.f32.gmra.mxu0 %v10170_v11  ;;  %10650 = vmatmul.mubr.f32.gmra.mxu1 %v10170_v11 }
0x1072   : > { %v20420_v21 = vsub.f32 %v20273_v49, %v9852_v53  ;;  %9970 = vadd.xlane.f32.xlu1 %v9915_v7  ;;  %10398 = vmatprep.mubr.f32.mxu0 %v21888_v51  ;;  %v10171_v16 = vadd.f32 %v20353_v15, %v10132_v41  ;;  %v10094_v60 = vmul.f32 %v15074_v32, %v20224_v38 }
0x1073   : > { %v9815_v46 = vpop.xlane.xlu1 %9814  ;;  %10655 = vmatprep.mubr.f32.mxu1 %v21888_v51 }
0x1074   : > { %v9853_v29 = vmul.f32 0.0078125, %v9815_v46  ;;  %v9916_v17 = vmul.f32 %v20420_v21, %v20420_v21  ;;  %v10133_v61 = vmul.f32 %v20347_v6, %v10094_v60  ;;  %v10937_v46 = vld [vmem:[#allocation13 + $0x78] sm:$0xff] }
0x1075   : > { %v15076_v9 = vpop.eup %15075  ;;  %10399 = vmatmul.mubr.f32.gmra.mxu0 %v10171_v16  ;;  %10656 = vmatmul.mubr.f32.gmra.mxu1 %v10171_v16 }
0x1076   : > { %v20430_v23 = vsub.f32 %v20279_v2, %v9853_v29  ;;  %9972 = vadd.xlane.f32.xlu0 %v9916_v17  ;;  %10404 = vmatprep.mubr.f32.mxu0 %v21888_v51  ;;  %v10172_v38 = vadd.f32 %v20353_v15, %v10133_v61  ;;  %v10095_v0 = vmul.f32 %v15076_v9, %v20235_v22  ;;  %v10969_v29 = vld [vmem:[#allocation13 + $0x178] sm:$0xff] }
0x1077   : > { %v9817_v56 = vpop.xlane.xlu1 %9816  ;;  %10661 = vmatprep.mubr.f32.mxu1 %v21888_v51  ;;  %10994 = vmatpush1.msra.mxu0 %v10937_v46 }
0x1078   : > { %v9854_v58 = vmul.f32 0.0078125, %v9817_v56  ;;  %v9917_v3 = vmul.f32 %v20430_v23, %v20430_v23  ;;  %v10134_v55 = vmul.f32 %v20347_v6, %v10095_v0  ;;  %11219 = vmatpush1.msra.mxu1 %v10969_v29  ;;  %10995 = vmatprep.subr.mxu0 %v21888_v51  ;;  %v10936_v0 = vld [vmem:[#allocation13 + $0x70] sm:$0xff] }
0x1079   : > { %v15078_v11 = vpop.eup %15077  ;;  %10405 = vmatmul.mubr.f32.gmra.mxu0 %v10172_v38  ;;  %10662 = vmatmul.mubr.f32.gmra.mxu1 %v10172_v38  ;;  %v10968_v56 = vld [vmem:[#allocation13 + $0x170] sm:$0xff] }
0x107a   : > { %v20440_v53 = vsub.f32 %v20285_v12, %v9854_v58  ;;  %9974 = vadd.xlane.f32.xlu1 %v9917_v3  ;;  %10410 = vmatprep.mubr.f32.mxu0 %v21888_v51  ;;  %v10173_v22 = vadd.f32 %v20353_v15, %v10134_v55  ;;  %v10096_v7 = vmul.f32 %v15078_v11, %v20243_v62  ;;  %v10935_v55 = vld [vmem:[#allocation13 + $0x68] sm:$0xff] }
0x107b   : > { %v9819_v41 = vpop.xlane.xlu1 %9818  ;;  %10667 = vmatprep.mubr.f32.mxu1 %v21888_v51  ;;  %11220 = vmatprep.subr.mxu1 %v21888_v51 }
0x107c   : > { %v9855_v32 = vmul.f32 0.0078125, %v9819_v41  ;;  %v9918_v16 = vmul.f32 %v20440_v53, %v20440_v53  ;;  %v10135_v60 = vmul.f32 %v20347_v6, %v10096_v7  ;;  %10996 = vmatpush1.msra.mxu0 %v10936_v0  ;;  %11221 = vmatpush1.msra.mxu1 %v10968_v56  ;;  %v10967_v7 = vld [vmem:[#allocation13 + $0x168] sm:$0xff]  ;;  %v10934_v41 = vld [vmem:[#allocation13 + $0x60] sm:$0xff]  ;;  %v10932_v56 = vld [vmem:[#allocation13 + $0x50] sm:$0xff] }
0x107d   : > { %10411 = vmatmul.mubr.f32.gmra.mxu0 %v10173_v22  ;;  %10668 = vmatmul.mubr.f32.gmra.mxu1 %v10173_v22 }
0x107e   : > { %v20450_v17 = vsub.f32 %v20291_v43, %v9855_v32  ;;  %9976 = vadd.xlane.f32.xlu0 %v9918_v16  ;;  %10416 = vmatprep.mubr.f32.mxu0 %v21888_v51  ;;  %v10174_v62 = vadd.f32 %v20353_v15, %v10135_v60  ;;  %v10966_v16 = vld [vmem:[#allocation13 + $0x160] sm:$0xff]  ;;  %v9953_v60 = vpop.xlane.xlu0 %9952 }
0x107f   : > { %v9821_v61 = vpop.xlane.xlu1 %9820  ;;  %10673 = vmatprep.mubr.f32.mxu1 %v21888_v51  ;;  %10997 = vmatprep.subr.mxu0 %v21888_v51 }
0x1080   : > { %v9856_v9 = vmul.f32 0.0078125, %v9821_v61  ;;  %v9919_v38 = vmul.f32 %v20450_v17, %v20450_v17  ;;  %11222 = vmatprep.subr.mxu1 %v21888_v51  ;;  %10998 = vmatpush1.msra.mxu0 %v10935_v55  ;;  %v10933_v61 = vld [vmem:[#allocation13 + $0x58] sm:$0xff] }
0x1081   : > { %10417 = vmatmul.mubr.f32.gmra.mxu0 %v10174_v62  ;;  %10674 = vmatmul.mubr.f32.gmra.mxu1 %v10174_v62 }
0x1082   : > { %v20459_v58 = vsub.f32 %v20297_v31, %v9856_v9  ;;  %9978 = vadd.xlane.f32.xlu1 %v9919_v38  ;;  %10422 = vmatprep.mubr.f32.mxu0 %v21888_v51  ;;  %v10965_v9 = vld [vmem:[#allocation13 + $0x158] sm:$0xff]  ;;  %v10002_v38 = vmul.f32 0.0078125, %v9953_v60 }
0x1083   : > { %v9823_v3 = vpop.xlane.xlu1 %9822  ;;  %10679 = vmatprep.mubr.f32.mxu1 %v21888_v51  ;;  %11223 = vmatpush1.msra.mxu1 %v10967_v7  ;;  %v10931_v7 = vld [vmem:[#allocation13 + $0x48] sm:$0xff] }
0x1084   : > { %v9857_v11 = vmul.f32 0.0078125, %v9823_v3  ;;  %v9920_v22 = vmul.f32 %v20459_v58, %v20459_v58  ;;  %10999 = vmatprep.subr.mxu0 %v21888_v51  ;;  %11224 = vmatprep.subr.mxu1 %v21888_v51  ;;  %v10964_v3 = vld [vmem:[#allocation13 + $0x150] sm:$0xff] }
0x1085   : > { %11000 = vmatpush1.msra.mxu0 %v10934_v41  ;;  %11225 = vmatpush1.msra.mxu1 %v10966_v16  ;;  %v10963_v41 = vld [vmem:[#allocation13 + $0x148] sm:$0xff]  ;;  %v10034_v16 = vadd.f32 1e-05, %v10002_v38  ;;  %v10929_v38 = vld [vmem:[#allocation13 + $0x38] sm:$0xff] }
0x1086   : > { %v20469_v32 = vsub.f32 %v20303_v59, %v9857_v11  ;;  %9980 = vadd.xlane.f32.xlu0 %v9920_v22  ;;  %11001 = vmatprep.subr.mxu0 %v21888_v51 }
0x1087   : > { %v9825_v46 = vpop.xlane.xlu1 %9824  ;;  %11226 = vmatprep.subr.mxu1 %v21888_v51  ;;  %11002 = vmatpush1.msra.mxu0 %v10933_v61  ;;  %15079 = vrsqrt.f32 %v10034_v16  ;;  %v10959_v16 = vld [vmem:[#allocation13 + $0x128] sm:$0xff] }
0x1088   : > { %v9858_v29 = vmul.f32 0.0078125, %v9825_v46  ;;  %v9921_v62 = vmul.f32 %v20469_v32, %v20469_v32  ;;  %11227 = vmatpush1.msra.mxu1 %v10965_v9  ;;  %11003 = vmatprep.subr.mxu0 %v21888_v51  ;;  %v10930_v46 = vld [vmem:[#allocation13 + $0x40] sm:$0xff] }
0x1089   : > { %11228 = vmatprep.subr.mxu1 %v21888_v51  ;;  %11004 = vmatpush1.msra.mxu0 %v10932_v56  ;;  %v10961_v56 = vld [vmem:[#allocation13 + $0x138] sm:$0xff] }
0x108a   : > { %v20477_v0 = vsub.f32 %v20307_v39, %v9858_v29  ;;  %9982 = vadd.xlane.f32.xlu1 %v9921_v62  ;;  %11229 = vmatpush1.msra.mxu1 %v10964_v3  ;;  %v10962_v62 = vld [vmem:[#allocation13 + $0x140] sm:$0xff] }
0x108b   : > { %v9827_v55 = vpop.xlane.xlu1 %9826  ;;  %11005 = vmatprep.subr.mxu0 %v21888_v51  ;;  %11230 = vmatprep.subr.mxu1 %v21888_v51 }
0x108c   : > { %v9859_v11 = vmul.f32 0.0078125, %v9827_v55  ;;  %v9922_v22 = vmul.f32 %v20477_v0, %v20477_v0  ;;  %11006 = vmatpush1.msra.mxu0 %v10931_v7  ;;  %11231 = vmatpush1.msra.mxu1 %v10963_v41  ;;  %v10927_v41 = vld [vmem:[#allocation13 + $0x28] sm:$0xff] }
0x108d   : > { %11007 = vmatprep.subr.mxu0 %v21888_v51  ;;  %11232 = vmatprep.subr.mxu1 %v21888_v51 }
0x108e   : > { %v20485_v60 = vsub.f32 %v20314_v13, %v9859_v11  ;;  %9984 = vadd.xlane.f32.xlu0 %v9922_v22  ;;  %11008 = vmatpush1.msra.mxu0 %v10930_v46  ;;  %v10928_v11 = vld [vmem:[#allocation13 + $0x30] sm:$0xff] }
0x108f   : > { %v9951_v29 = vpop.xlane.xlu1 %9950  ;;  %11233 = vmatpush1.msra.mxu1 %v10962_v62  ;;  %11009 = vmatprep.subr.mxu0 %v21888_v51  ;;  %v10960_v22 = vld [vmem:[#allocation13 + $0x130] sm:$0xff]  ;;  %v10958_v62 = vld [vmem:[#allocation13 + $0x120] sm:$0xff] }
0x1090   : > { %v10001_v61 = vmul.f32 0.0078125, %v9951_v29  ;;  %v9923_v9 = vmul.f32 %v20485_v60, %v20485_v60  ;;  %11234 = vmatprep.subr.mxu1 %v21888_v51  ;;  %11010 = vmatpush1.msra.mxu0 %v10929_v38  ;;  %v10926_v29 = vld [vmem:[#allocation13 + $0x20] sm:$0xff]  ;;  %v10924_v38 = vld [vmem:[#allocation13 + $0x10] sm:$0xff] }
0x1091   : > { %11235 = vmatpush1.msra.mxu1 %v10961_v56  ;;  %11011 = vmatprep.subr.mxu0 %v21888_v51  ;;  %v10956_v56 = vld [vmem:[#allocation13 + $0x110] sm:$0xff] }
0x1092   : > { %v10033_v3 = vadd.f32 1e-05, %v10001_v61  ;;  %9986 = vadd.xlane.f32.xlu1 %v9923_v9  ;;  %11236 = vmatprep.subr.mxu1 %v21888_v51  ;;  %v10925_v61 = vld [vmem:[#allocation13 + $0x18] sm:$0xff] }
0x1093   : > { %v9955_v55 = vpop.xlane.xlu1 %9954  ;;  %11012 = vmatpush1.msra.mxu0 %v10928_v11  ;;  %11237 = vmatpush1.msra.mxu1 %v10960_v22  ;;  %v10957_v9 = vld [vmem:[#allocation13 + $0x118] sm:$0xff]  ;;  %v10922_v22 = vld [vmem:[#allocation13] sm:$0xff] }
0x1094   : > { %15081 = vrsqrt.f32 %v10033_v3  ;;  %v10003_v7 = vmul.f32 0.0078125, %v9955_v55  ;;  %11013 = vmatprep.subr.mxu0 %v21888_v51  ;;  %11238 = vmatprep.subr.mxu1 %v21888_v51  ;;  %v10923_v3 = vld [vmem:[#allocation13 + $0x8] sm:$0xff]  ;;  %v15080_v11 = vpop.eup %15079 }
0x1095   : > { %11014 = vmatpush1.msra.mxu0 %v10927_v41  ;;  %11239 = vmatpush1.msra.mxu1 %v10959_v16  ;;  %v10955_v55 = vld [vmem:[#allocation13 + $0x108] sm:$0xff]  ;;  %v10953_v16 = vld [vmem:[#allocation13 + $0xf8] sm:$0xff] }
0x1096   : > { %v10035_v46 = vadd.f32 1e-05, %v10003_v7  ;;  %11015 = vmatprep.subr.mxu0 %v21888_v51  ;;  %11240 = vmatprep.subr.mxu1 %v21888_v51  ;;  %v10954_v7 = vld [vmem:[#allocation13 + $0x100] sm:$0xff] }
0x1097   : > { %11016 = vmatpush1.msra.mxu0 %v10926_v29  ;;  %11241 = vmatpush1.msra.mxu1 %v10958_v62  ;;  %v10098_v62 = vmul.f32 %v15080_v11, %v20252_v48  ;;  %v10983_v11 = vld [vmem:[#allocation13 + $0x1e8] sm:$0xff] }
0x1098   : > { %15083 = vrsqrt.f32 %v10035_v46  ;;  %11017 = vmatprep.subr.mxu0 %v21888_v51  ;;  %11242 = vmatprep.subr.mxu1 %v21888_v51  ;;  %v10985_v46 = vld [vmem:[#allocation13 + $0x1f8] sm:$0xff] }
0x1099   : > { %11018 = vmatpush1.msra.mxu0 %v10925_v61  ;;  %11243 = vmatpush1.msra.mxu1 %v10957_v9  ;;  %v10952_v61 = vld [vmem:[#allocation13 + $0xf0] sm:$0xff]  ;;  %v10137_v48 = vmul.f32 %v20347_v6, %v10098_v62 }
0x109a   : > { %11019 = vmatprep.subr.mxu0 %v21888_v51  ;;  %11244 = vmatprep.subr.mxu1 %v21888_v51  ;;  %v10984_v9 = vld [vmem:[#allocation13 + $0x1f0] sm:$0xff] }
0x109b   : > { %11020 = vmatpush1.msra.mxu0 %v10924_v38  ;;  %11245 = vmatpush1.msra.mxu1 %v10956_v56  ;;  %v10948_v62 = vld [vmem:[#allocation13 + $0xd0] sm:$0xff] }
0x109c   : > { %11021 = vmatprep.subr.mxu0 %v21888_v51  ;;  %11246 = vmatprep.subr.mxu1 %v21888_v51 }
0x109d   : > { %11022 = vmatpush1.msra.mxu0 %v10923_v3  ;;  %11247 = vmatpush1.msra.mxu1 %v10955_v55  ;;  %v10951_v55 = vld [vmem:[#allocation13 + $0xe8] sm:$0xff] }
0x109e   : > { %11023 = vmatprep.subr.mxu0 %v21888_v51  ;;  %11248 = vmatprep.subr.mxu1 %v21888_v51 }
0x109f   : > { %11024 = vmatpush1.msra.mxu0 %v10922_v22  ;;  %11249 = vmatpush1.msra.mxu1 %v10954_v7  ;;  %v10176_v22 = vadd.f32 %v20353_v15, %v10137_v48  ;;  %v10946_v48 = vld [vmem:[#allocation13 + $0xc0] sm:$0xff] }
0x10a0   : > { %11025 = vmatprep.subr.mxu0 %v21888_v51  ;;  %11250 = vmatprep.subr.mxu1 %v21888_v51 }
0x10a1   : > { %v15082_v41 = vpop.eup %15081  ;;  %11026 = vmatpush2.msra.mxu0 %v10953_v16  ;;  %11251 = vmatpush2.msra.mxu1 %v10985_v46  ;;  %v10949_v46 = vld [vmem:[#allocation13 + $0xd8] sm:$0xff] }
0x10a2   : > { %v10097_v29 = vmul.f32 %v15082_v41, %v20311_v34  ;;  %11027 = vmatprep.subr.mxu0 %v21888_v51  ;;  %11252 = vmatprep.subr.mxu1 %v21888_v51  ;;  %v10982_v41 = vld [vmem:[#allocation13 + $0x1e0] sm:$0xff] }
0x10a3   : > { %11028 = vmatpush2.msra.mxu0 %v10952_v61  ;;  %11253 = vmatpush2.msra.mxu1 %v10984_v9  ;;  %v10980_v61 = vld [vmem:[#allocation13 + $0x1d0] sm:$0xff]  ;;  %v10947_v9 = vld [vmem:[#allocation13 + $0xc8] sm:$0xff] }
0x10a4   : > { %v10136_v38 = vmul.f32 %v20347_v6, %v10097_v29  ;;  %11029 = vmatprep.subr.mxu0 %v21888_v51  ;;  %11254 = vmatprep.subr.mxu1 %v21888_v51  ;;  %v10981_v29 = vld [vmem:[#allocation13 + $0x1d8] sm:$0xff] }
0x10a5   : > { %v15084_v56 = vpop.eup %15083  ;;  %11030 = vmatpush2.msra.mxu0 %v10951_v55  ;;  %11255 = vmatpush2.msra.mxu1 %v10983_v11 }
0x10a6   : > { %v10175_v34 = vadd.f32 %v20353_v15, %v10136_v38  ;;  %v10099_v3 = vmul.f32 %v15084_v56, %v20318_v26  ;;  %11031 = vmatprep.subr.mxu0 %v21888_v51  ;;  %11256 = vmatprep.subr.mxu1 %v21888_v51  ;;  %v10950_v26 = vld [vmem:[#allocation13 + $0xe0] sm:$0xff]  ;;  %v10979_v38 = vld [vmem:[#allocation13 + $0x1c8] sm:$0xff] }
0x10a7   : > { %11032 = vmatpush2.msra.mxu0 %v10950_v26  ;;  %11257 = vmatpush2.msra.mxu1 %v10982_v41  ;;  %v10977_v26 = vld [vmem:[#allocation13 + $0x1b8] sm:$0xff] }
0x10a8   : > { %10423 = vmatmul.mubr.f32.gmra.mxu0 %v10175_v34  ;;  %10680 = vmatmul.mubr.f32.gmra.mxu1 %v10175_v34  ;;  %v10138_v7 = vmul.f32 %v20347_v6, %v10099_v3  ;;  %v10978_v3 = vld [vmem:[#allocation13 + $0x1c0] sm:$0xff] }
0x10a9   : > { %10428 = vmatprep.mubr.f32.mxu0 %v21888_v51  ;;  %10685 = vmatprep.mubr.f32.mxu1 %v21888_v51 }
0x10aa   : > { %v10177_v16 = vadd.f32 %v20353_v15, %v10138_v7  ;;  %11033 = vmatprep.subr.mxu0 %v21888_v51  ;;  %11258 = vmatprep.subr.mxu1 %v21888_v51  ;;  %v10945_v7 = vld [vmem:[#allocation13 + $0xb8] sm:$0xff] }
0x10ab   : > { %11034 = vmatpush2.msra.mxu0 %v10949_v46  ;;  %11259 = vmatpush2.msra.mxu1 %v10981_v29  ;;  %v10976_v46 = vld [vmem:[#allocation13 + $0x1b0] sm:$0xff]  ;;  %v10943_v29 = vld [vmem:[#allocation13 + $0xa8] sm:$0xff] }
0x10ac   : > { %10429 = vmatmul.mubr.f32.gmra.mxu0 %v10176_v22  ;;  %10686 = vmatmul.mubr.f32.gmra.mxu1 %v10176_v22 }
0x10ad   : > { %10434 = vmatprep.mubr.f32.mxu0 %v21888_v51  ;;  %10691 = vmatprep.mubr.f32.mxu1 %v21888_v51 }
0x10ae   : > { %11035 = vmatprep.subr.mxu0 %v21888_v51  ;;  %11260 = vmatprep.subr.mxu1 %v21888_v51 }
0x10af   : > { %11036 = vmatpush2.msra.mxu0 %v10948_v62  ;;  %11261 = vmatpush2.msra.mxu1 %v10980_v61  ;;  %v10975_v62 = vld [vmem:[#allocation13 + $0x1a8] sm:$0xff] }
0x10b0   : > { %10435 = vmatmul.mubr.f32.gmra.mxu0 %v10177_v16  ;;  %10692 = vmatmul.mubr.f32.gmra.mxu1 %v10177_v16  ;;  %v10944_v16 = vld [vmem:[#allocation13 + $0xb0] sm:$0xff] }
0x10b1   : > { %10440 = vmatprep.mubr.f32.mxu0 %v21888_v51  ;;  %10697 = vmatprep.mubr.f32.mxu1 %v21888_v51 }
0x10b2   : > { %11037 = vmatprep.subr.mxu0 %v21888_v51  ;;  %11262 = vmatprep.subr.mxu1 %v21888_v51 }
0x10b3   : > { %11038 = vmatpush2.msra.mxu0 %v10947_v9  ;;  %11263 = vmatpush2.msra.mxu1 %v10979_v38  ;;  %v10942_v38 = vld [vmem:[#allocation13 + $0xa0] sm:$0xff] }
0x10b4   : > { %v9959_v56 = vpop.xlane.xlu1 %9958  ;;  %11039 = vmatprep.subr.mxu0 %v21888_v51  ;;  %11264 = vmatprep.subr.mxu1 %v21888_v51 }
0x10b5   : > { %v10005_v34 = vmul.f32 0.0078125, %v9959_v56  ;;  %11040 = vmatpush2.msra.mxu0 %v10946_v48  ;;  %11265 = vmatpush2.msra.mxu1 %v10978_v3  ;;  %v10974_v56 = vld [vmem:[#allocation13 + $0x1a0] sm:$0xff] }
0x10b6   : > { %v9957_v55 = vpop.xlane.xlu0 %9956  ;;  %11041 = vmatprep.subr.mxu0 %v21888_v51  ;;  %11266 = vmatprep.subr.mxu1 %v21888_v51 }
0x10b7   : > { %v10037_v11 = vadd.f32 1e-05, %v10005_v34  ;;  %v10004_v22 = vmul.f32 0.0078125, %v9957_v55  ;;  %11042 = vmatpush2.msra.mxu0 %v10945_v7  ;;  %11267 = vmatpush2.msra.mxu1 %v10977_v26  ;;  %v10941_v55 = vld [vmem:[#allocation13 + $0x98] sm:$0xff]  ;;  %v10940_v7 = vld [vmem:[#allocation13 + $0x90] sm:$0xff] }
0x10b8   : > { %11043 = vmatprep.subr.mxu0 %v21888_v51  ;;  %11268 = vmatprep.subr.mxu1 %v21888_v51  ;;  %v10972_v26 = vld [vmem:[#allocation13 + $0x190] sm:$0xff] }
0x10b9   : > { %15085 = vrsqrt.f32 %v10037_v11  ;;  %v10036_v41 = vadd.f32 1e-05, %v10004_v22  ;;  %11044 = vmatpush2.msra.mxu0 %v10944_v16  ;;  %11269 = vmatpush2.msra.mxu1 %v10976_v46  ;;  %v10973_v11 = vld [vmem:[#allocation13 + $0x198] sm:$0xff]  ;;  %v10971_v16 = vld [vmem:[#allocation13 + $0x188] sm:$0xff]  ;;  %v10938_v46 = vld [vmem:[#allocation13 + $0x80] sm:$0xff] }
0x10ba   : > { %11045 = vmatprep.subr.mxu0 %v21888_v51  ;;  %11270 = vmatprep.subr.mxu1 %v21888_v51 }
0x10bb   : > { %15087 = vrsqrt.f32 %v10036_v41  ;;  %11046 = vmatpush2.msra.mxu0 %v10943_v29  ;;  %11271 = vmatpush2.msra.mxu1 %v10975_v62  ;;  %v10939_v41 = vld [vmem:[#allocation13 + $0x88] sm:$0xff]  ;;  %v10970_v29 = vld [vmem:[#allocation13 + $0x180] sm:$0xff] }
0x10bc   : > { %v9963_v61 = vpop.xlane.xlu1 %9962  ;;  %11047 = vmatprep.subr.mxu0 %v21888_v51  ;;  %11272 = vmatprep.subr.mxu1 %v21888_v51 }
0x10bd   : > { %v10007_v9 = vmul.f32 0.0078125, %v9963_v61  ;;  %11048 = vmatpush2.msra.mxu0 %v10942_v38  ;;  %11273 = vmatpush2.msra.mxu1 %v10974_v56 }
0x10be   : > { %v9961_v34 = vpop.xlane.xlu0 %9960  ;;  %11049 = vmatprep.subr.mxu0 %v21888_v51  ;;  %11274 = vmatprep.subr.mxu1 %v21888_v51 }
0x10bf   : > { %v10039_v48 = vadd.f32 1e-05, %v10007_v9  ;;  %v10006_v3 = vmul.f32 0.0078125, %v9961_v34  ;;  %11050 = vmatpush2.msra.mxu0 %v10941_v55  ;;  %11275 = vmatpush2.msra.mxu1 %v10973_v11 }
0x10c0   : > { %11051 = vmatprep.subr.mxu0 %v21888_v51  ;;  %11276 = vmatprep.subr.mxu1 %v21888_v51 }
0x10c1   : > { %15089 = vrsqrt.f32 %v10039_v48  ;;  %v10038_v22 = vadd.f32 1e-05, %v10006_v3  ;;  %11052 = vmatpush2.msra.mxu0 %v10940_v7  ;;  %11277 = vmatpush2.msra.mxu1 %v10972_v26 }
0x10c2   : > { %11053 = vmatprep.subr.mxu0 %v21888_v51  ;;  %11278 = vmatprep.subr.mxu1 %v21888_v51 }
0x10c3   : > { %15091 = vrsqrt.f32 %v10038_v22  ;;  %11054 = vmatpush2.msra.mxu0 %v10939_v41  ;;  %11279 = vmatpush2.msra.mxu1 %v10971_v16 }
0x10c4   : > { %11055 = vmatprep.subr.mxu0 %v21888_v51  ;;  %11280 = vmatprep.subr.mxu1 %v21888_v51 }
0x10c5   : > { %11056 = vmatpush2.msra.mxu0 %v10938_v46  ;;  %11281 = vmatpush2.msra.mxu1 %v10970_v29 }
0x10c6   : > { %v15086_v62 = vpop.eup %15085 }
0x10c7   : > { %v10101_v38 = vmul.f32 %v15086_v62, %v20325_v28 }
0x10c8   : > { %v15088_v61 = vpop.eup %15087 }
0x10c9   : > { %v10100_v9 = vmul.f32 %v15088_v61, %v20328_v18  ;;  %v10140_v48 = vmul.f32 %v20347_v6, %v10101_v38 }
0x10cb   : > { %v10139_v56 = vmul.f32 %v20347_v6, %v10100_v9  ;;  %v10179_v11 = vadd.f32 %v20353_v15, %v10140_v48 }
0x10cd   : > { %v10178_v34 = vadd.f32 %v20353_v15, %v10139_v56 }
0x10ce   : > { %v15090_v3 = vpop.eup %15089 }
0x10cf   : > { %10441 = vmatmul.mubr.f32.gmra.mxu0 %v10178_v34  ;;  %10698 = vmatmul.mubr.f32.gmra.mxu1 %v10178_v34  ;;  %v10103_v28 = vmul.f32 %v15090_v3, %v20335_v8 }
0x10d0   : > { %v15092_v55 = vpop.eup %15091  ;;  %10446 = vmatprep.mubr.f32.mxu0 %v21888_v51  ;;  %10703 = vmatprep.mubr.f32.mxu1 %v21888_v51 }
0x10d1   : > { %v10102_v18 = vmul.f32 %v15092_v55, %v20338_v40  ;;  %v10142_v26 = vmul.f32 %v20347_v6, %v10103_v28 }
0x10d3   : > { %10447 = vmatmul.mubr.f32.gmra.mxu0 %v10179_v11  ;;  %10704 = vmatmul.mubr.f32.gmra.mxu1 %v10179_v11  ;;  %v10141_v22 = vmul.f32 %v20347_v6, %v10102_v18  ;;  %v10181_v8 = vadd.f32 %v20353_v15, %v10142_v26 }
0x10d4   : > { %10452 = vmatprep.mubr.f32.mxu0 %v21888_v51  ;;  %10709 = vmatprep.mubr.f32.mxu1 %v21888_v51 }
0x10d5   : > { %v10180_v7 = vadd.f32 %v20353_v15, %v10141_v22 }
0x10d7   : > { %10453 = vmatmul.mubr.f32.gmra.mxu0 %v10180_v7  ;;  %10710 = vmatmul.mubr.f32.gmra.mxu1 %v10180_v7 }
0x10d8   : > { %10458 = vmatprep.mubr.f32.mxu0 %v21888_v51  ;;  %10715 = vmatprep.mubr.f32.mxu1 %v21888_v51 }
0x10db   : > { %10459 = vmatmul.mubr.f32.gmra.mxu0 %v10181_v8  ;;  %10716 = vmatmul.mubr.f32.gmra.mxu1 %v10181_v8 }
0x10dc   : > { %10464 = vmatprep.mubr.f32.mxu0 %v21888_v51  ;;  %10721 = vmatprep.mubr.f32.mxu1 %v21888_v51 }
0x10e9   : > { %v9965_v40 = vpop.xlane.xlu0 %9964 }
0x10ea   : > { %v10008_v41 = vmul.f32 0.0078125, %v9965_v40 }
0x10ec   : > { %v10040_v16 = vadd.f32 1e-05, %v10008_v41 }
0x10ed   : > { %v9967_v46 = vpop.xlane.xlu1 %9966 }
0x10ee   : > { %15093 = vrsqrt.f32 %v10040_v16  ;;  %v10009_v29 = vmul.f32 0.0078125, %v9967_v46 }
0x10f0   : > { %v10041_v62 = vadd.f32 1e-05, %v10009_v29 }
0x10f2   : > { %15095 = vrsqrt.f32 %v10041_v62 }
0x10f7   : > { %v9969_v61 = vpop.xlane.xlu0 %9968 }
0x10f8   : > { %v10010_v9 = vmul.f32 0.0078125, %v9969_v61 }
0x10fa   : > { %v10042_v38 = vadd.f32 1e-05, %v10010_v9 }
0x10fb   : > { %v15094_v56 = vpop.eup %15093  ;;  %v9971_v34 = vpop.xlane.xlu1 %9970 }
0x10fc   : > { %15097 = vrsqrt.f32 %v10042_v38  ;;  %v10011_v48 = vmul.f32 0.0078125, %v9971_v34  ;;  %v10104_v3 = vmul.f32 %v15094_v56, %v20374_v37 }
0x10fe   : > { %v10043_v55 = vadd.f32 1e-05, %v10011_v48  ;;  %v10143_v11 = vmul.f32 %v20347_v6, %v10104_v3  ;;  %v20596_v3 = vld [vmem:[%s21070_s12] ss:$0 sm:$0xff] }
0x10ff   : > { %v15096_v18 = vpop.eup %15095  ;;  %v9973_v28 = vpop.xlane.xlu0 %9972 }
0x1100   : > { %15099 = vrsqrt.f32 %v10043_v55  ;;  %v10012_v22 = vmul.f32 0.0078125, %v9973_v28  ;;  %v10182_v7 = vadd.f32 %v20353_v15, %v10143_v11  ;;  %v10105_v26 = vmul.f32 %v15096_v18, %v20384_v50 }
0x1102   : > { %v10044_v8 = vadd.f32 1e-05, %v10012_v22  ;;  %10465 = vmatmul.mubr.f32.gmra.mxu0 %v10182_v7  ;;  %10722 = vmatmul.mubr.f32.gmra.mxu1 %v10182_v7  ;;  %v10144_v40 = vmul.f32 %v20347_v6, %v10105_v26 }
0x1103   : > { %v9975_v41 = vpop.xlane.xlu1 %9974  ;;  %10470 = vmatprep.mubr.f32.mxu0 %v21888_v51  ;;  %10727 = vmatprep.mubr.f32.mxu1 %v21888_v51 }
0x1104   : > { %15101 = vrsqrt.f32 %v10044_v8  ;;  %v10013_v37 = vmul.f32 0.0078125, %v9975_v41  ;;  %v10183_v16 = vadd.f32 %v20353_v15, %v10144_v40  ;;  %v20590_v15 = vld [vmem:[%s21069_s11] ss:$0 sm:$0xff] }
0x1106   : > { %v10045_v46 = vadd.f32 1e-05, %v10013_v37  ;;  %10471 = vmatmul.mubr.f32.gmra.mxu0 %v10183_v16  ;;  %10728 = vmatmul.mubr.f32.gmra.mxu1 %v10183_v16 }
0x1107   : > { %v9977_v29 = vpop.xlane.xlu0 %9976  ;;  %10476 = vmatprep.mubr.f32.mxu0 %v21888_v51  ;;  %10733 = vmatprep.mubr.f32.mxu1 %v21888_v51 }
0x1108   : > { %15103 = vrsqrt.f32 %v10045_v46  ;;  %v10014_v50 = vmul.f32 0.0078125, %v9977_v29 }
0x1109   : > { %v15098_v6 = vpop.eup %15097 }
0x110a   : > { %v10046_v62 = vadd.f32 1e-05, %v10014_v50  ;;  %v10106_v61 = vmul.f32 %v15098_v6, %v20400_v4 }
0x110b   : > { %v9979_v9 = vpop.xlane.xlu1 %9978 }
0x110c   : > { %15105 = vrsqrt.f32 %v10046_v62  ;;  %v10015_v38 = vmul.f32 0.0078125, %v9979_v9  ;;  %v10145_v56 = vmul.f32 %v20590_v15, %v10106_v61 }
0x110d   : > { %v15100_v34 = vpop.eup %15099 }
0x110e   : > { %v10047_v48 = vadd.f32 1e-05, %v10015_v38  ;;  %v10184_v55 = vadd.f32 %v20596_v3, %v10145_v56  ;;  %v10107_v4 = vmul.f32 %v15100_v34, %v20410_v42 }
0x110f   : > { %v9981_v11 = vpop.xlane.xlu0 %9980 }
0x1110   : > { %15107 = vrsqrt.f32 %v10047_v48  ;;  %v10016_v18 = vmul.f32 0.0078125, %v9981_v11  ;;  %v20600_v28 = vpop.f32.mrf.mxu0  ;;  %10477 = vmatmul.mubr.f32.gmra.mxu0 %v10184_v55  ;;  %v20602_v22 = vpop.f32.mrf.mxu1  ;;  %10734 = vmatmul.mubr.f32.gmra.mxu1 %v10184_v55  ;;  %v10146_v7 = vmul.f32 %v20590_v15, %v10107_v4 }
0x1111   : > { %v15102_v26 = vpop.eup %15101  ;;  %10482 = vmatprep.mubr.f32.mxu0 %v21888_v51  ;;  %10739 = vmatprep.mubr.f32.mxu1 %v21888_v51 }
0x1112   : > { %v10048_v8 = vadd.f32 1e-05, %v10016_v18  ;;  %v20607_v40 = vpop.f32.mrf.mxu0  ;;  %v20609_v42 = vpop.f32.mrf.mxu1  ;;  %v10185_v41 = vadd.f32 %v20596_v3, %v10146_v7  ;;  %v10108_v37 = vmul.f32 %v15102_v26, %v20420_v21 }
0x1113   : > { %v9983_v16 = vpop.xlane.xlu1 %9982 }
0x1114   : > { %15109 = vrsqrt.f32 %v10048_v8  ;;  %v10017_v46 = vmul.f32 0.0078125, %v9983_v16  ;;  %v20613_v29 = vpop.f32.mrf.mxu0  ;;  %10483 = vmatmul.mubr.f32.gmra.mxu0 %v10185_v41  ;;  %v20615_v50 = vpop.f32.mrf.mxu1  ;;  %10740 = vmatmul.mubr.f32.gmra.mxu1 %v10185_v41  ;;  %v10147_v6 = vmul.f32 %v20590_v15, %v10108_v37 }
0x1115   : > { %v15104_v62 = vpop.eup %15103  ;;  %10488 = vmatprep.mubr.f32.mxu0 %v21888_v51  ;;  %10745 = vmatprep.mubr.f32.mxu1 %v21888_v51 }
0x1116   : > { %v10049_v61 = vadd.f32 1e-05, %v10017_v46  ;;  %v20620_v9 = vpop.f32.mrf.mxu0  ;;  %v20622_v21 = vpop.f32.mrf.mxu1  ;;  %v10186_v38 = vadd.f32 %v20596_v3, %v10147_v6  ;;  %v10109_v56 = vmul.f32 %v15104_v62, %v20430_v23 }
0x1117   : > { %v9985_v34 = vpop.xlane.xlu0 %9984 }
0x1118   : > { %15111 = vrsqrt.f32 %v10049_v61  ;;  %v10018_v48 = vmul.f32 0.0078125, %v9985_v34  ;;  %v20626_v55 = vpop.f32.mrf.mxu0  ;;  %10489 = vmatmul.mubr.f32.gmra.mxu0 %v10186_v38  ;;  %v20628_v4 = vpop.f32.mrf.mxu1  ;;  %10746 = vmatmul.mubr.f32.gmra.mxu1 %v10186_v38  ;;  %v10148_v11 = vmul.f32 %v20590_v15, %v10109_v56 }
0x1119   : > { %v15106_v18 = vpop.eup %15105  ;;  %10494 = vmatprep.mubr.f32.mxu0 %v21888_v51  ;;  %10751 = vmatprep.mubr.f32.mxu1 %v21888_v51 }
0x111a   : > { %v10050_v7 = vadd.f32 1e-05, %v10018_v48  ;;  %v20633_v26 = vpop.f32.mrf.mxu0  ;;  %v20635_v23 = vpop.f32.mrf.mxu1  ;;  %v10187_v8 = vadd.f32 %v20596_v3, %v10148_v11  ;;  %v10110_v41 = vmul.f32 %v15106_v18, %v20440_v53 }
0x111b   : > { %v9987_v37 = vpop.xlane.xlu1 %9986 }
0x111c   : > { %15113 = vrsqrt.f32 %v10050_v7  ;;  %v10019_v16 = vmul.f32 0.0078125, %v9987_v37  ;;  %v20639_v46 = vpop.f32.mrf.mxu0  ;;  %10495 = vmatmul.mubr.f32.gmra.mxu0 %v10187_v8  ;;  %v20641_v6 = vpop.f32.mrf.mxu1  ;;  %10752 = vmatmul.mubr.f32.gmra.mxu1 %v10187_v8  ;;  %v10149_v62 = vmul.f32 %v20590_v15, %v10110_v41  ;;  %v10260_v41 = vlaneseq }
0x111d   : > { %v15108_v61 = vpop.eup %15107  ;;  %10500 = vmatprep.mubr.f32.mxu0 %v21888_v51  ;;  %10757 = vmatprep.mubr.f32.mxu1 %v21888_v51 }
0x111e   : > { %v10051_v38 = vadd.f32 1e-05, %v10019_v16  ;;  %v20646_v56 = vpop.f32.mrf.mxu0  ;;  %v20648_v53 = vpop.f32.mrf.mxu1  ;;  %v10188_v34 = vadd.f32 %v20596_v3, %v10149_v62  ;;  %v10111_v48 = vmul.f32 %v15108_v61, %v20450_v17  ;;  %v10261_v13 = vshrl.u32 %v10260_v41, 7 }
0x1120   : > { %15115 = vrsqrt.f32 %v10051_v38  ;;  %v20652_v11 = vpop.f32.mrf.mxu0  ;;  %10501 = vmatmul.mubr.f32.gmra.mxu0 %v10188_v34  ;;  %10758 = vmatmul.mubr.f32.gmra.mxu1 %v10188_v34  ;;  %v10150_v18 = vmul.f32 %v20590_v15, %v10111_v48 }
0x1121   : > { %v15110_v7 = vpop.eup %15109  ;;  %v20655_v8 = vpop.f32.mrf.mxu1  ;;  %10506 = vmatprep.mubr.f32.mxu0 %v21888_v51  ;;  %10763 = vmatprep.mubr.f32.mxu1 %v21888_v51 }
0x1122   : > { %v20659_v37 = vpop.f32.mrf.mxu0  ;;  %v10189_v16 = vadd.f32 %v20596_v3, %v10150_v18  ;;  %v10112_v17 = vmul.f32 %v15110_v7, %v20459_v58 }
0x1123   : > { %v20663_v62 = vpop.f32.mrf.mxu1 }
0x1124   : > { %10507 = vmatmul.mubr.f32.gmra.mxu0 %v10189_v16  ;;  %10764 = vmatmul.mubr.f32.gmra.mxu1 %v10189_v16  ;;  %v10151_v61 = vmul.f32 %v20590_v15, %v10112_v17  ;;  %v10266_v16 = vsub.s32 1, %v10261_v13  ;;  %v10274_v17 = vsub.s32 3, %v10261_v13 }
0x1125   : > { %v15112_v38 = vpop.eup %15111  ;;  %v20666_v34 = vpop.f32.mrf.mxu0  ;;  %10512 = vmatprep.mubr.f32.mxu0 %v21888_v51  ;;  %10769 = vmatprep.mubr.f32.mxu1 %v21888_v51 }
0x1126   : > { %v20668_v48 = vpop.f32.mrf.mxu1  ;;  %v10190_v18 = vadd.f32 %v20596_v3, %v10151_v61  ;;  %v10113_v7 = vmul.f32 %v15112_v38, %v20469_v32  ;;  %v10258_v61 = vld [vmem:[%s21072_s14] sm:$0xf]  ;;  %v10262_v32 = vsub.s32 0, %v10261_v13  ;;  %v10270_v38 = vsub.s32 2, %v10261_v13 }
0x1127   : > { %v20673_v39 = vpop.f32.mrf.mxu0  ;;  %v20690_v2 = vrot.slane %v10258_v61, %v10266_v16  ;;  %v20692_v49 = vrot.slane %v10258_v61, %v10274_v17 }
0x1128   : > { %v20675_v58 = vpop.f32.mrf.mxu1  ;;  %10513 = vmatmul.mubr.f32.gmra.mxu0 %v10190_v18  ;;  %10770 = vmatmul.mubr.f32.gmra.mxu1 %v10190_v18  ;;  %v10152_v41 = vmul.f32 %v20590_v15, %v10113_v7  ;;  %v20701_v13 = vrot.slane %v10258_v61, %v10262_v32 }
0x1129   : > { %v15114_v59 = vpop.eup %15113  ;;  %v20678_v31 = vpop.f32.mrf.mxu0  ;;  %10518 = vmatprep.mubr.f32.mxu0 %v21888_v51  ;;  %10775 = vmatprep.mubr.f32.mxu1 %v21888_v51  ;;  %v10349_v17 = vadd.f32 %v20607_v40, %v20690_v2 }
0x112a   : > { %v20680_v43 = vpop.f32.mrf.mxu1  ;;  %v10191_v12 = vadd.f32 %v20596_v3, %v10152_v41  ;;  %v10114_v18 = vmul.f32 %v15114_v59, %v20477_v0  ;;  %v20703_v59 = vrot.slane %v10258_v61, %v10270_v38  ;;  %v10355_v38 = vadd.f32 %v20620_v9, %v20690_v2 }
0x112b   : > { %v20694_v10 = vpop.f32.mrf.mxu0 }
0x112c   : > { %v20696_v14 = vpop.f32.mrf.mxu1  ;;  %10519 = vmatmul.mubr.f32.gmra.mxu0 %v10191_v12  ;;  %10776 = vmatmul.mubr.f32.gmra.mxu1 %v10191_v12  ;;  %v10153_v7 = vmul.f32 %v20590_v15, %v10114_v18  ;;  %v10606_v12 = vadd.f32 %v20609_v42, %v20692_v49  ;;  %v10795_v42 = vmax.f32 %v10349_v17, 0.0  ;;  %v10799_v9 = vmax.f32 %v10355_v38, 0.0 }
0x112d   : > { %v15116_v36 = vpop.eup %15115  ;;  %10524 = vmatprep.mubr.f32.mxu0 %v21888_v51  ;;  %10781 = vmatprep.mubr.f32.mxu1 %v21888_v51  ;;  %v20711_v41 = vpop.f32.mrf.mxu0  ;;  %v10618_v17 = vadd.f32 %v20635_v23, %v20692_v49  ;;  %v10367_v23 = vadd.f32 %v20646_v56, %v20690_v2 }
0x112e   : > { %v10192_v0 = vadd.f32 %v20596_v3, %v10153_v7  ;;  %v10115_v16 = vmul.f32 %v15116_v36, %v20485_v60  ;;  %v20713_v18 = vpop.f32.mrf.mxu1  ;;  %v10347_v36 = vadd.f32 %v20600_v28, %v20701_v13  ;;  %v10604_v60 = vadd.f32 %v20602_v22, %v20703_v59 }
0x112f   : > { %v10797_v61 = vmax.f32 %v10606_v12, 0.0  ;;  %v20727_v7 = vpop.f32.mrf.mxu0  ;;  %v10610_v22 = vadd.f32 %v20615_v50, %v20703_v59  ;;  %v10359_v50 = vadd.f32 %v20626_v55, %v20701_v13  ;;  %v10807_v56 = vmax.f32 %v10367_v23, 0.0 }
0x1130   : > { %10525 = vmatmul.mubr.f32.gmra.mxu0 %v10192_v0  ;;  %10782 = vmatmul.mubr.f32.gmra.mxu1 %v10192_v0  ;;  %v10154_v32 = vmul.f32 %v20590_v15, %v10115_v16  ;;  %v10612_v15 = vadd.f32 %v20622_v21, %v20692_v49  ;;  %v20729_v0 = vpop.f32.mrf.mxu1  ;;  %v10796_v28 = vmax.f32 %v10604_v60, 0.0  ;;  %v10361_v21 = vadd.f32 %v20633_v26, %v20690_v2 }
0x1131   : > { %10530 = vmatprep.mubr.f32.mxu0 %v21888_v51  ;;  %10787 = vmatprep.mubr.f32.mxu1 %v21888_v51  ;;  %v10794_v51 = vmax.f32 %v10347_v36, 0.0  ;;  %v20739_v12 = vpop.f32.mrf.mxu0  ;;  %v10800_v36 = vmax.f32 %v10610_v22, 0.0  ;;  %v10616_v60 = vadd.f32 %v20628_v4, %v20703_v59  ;;  %v10802_v55 = vmax.f32 %v10359_v50, 0.0 }
0x1132   : > { %v10193_v40 = vadd.f32 %v20596_v3, %v10154_v32  ;;  %v10353_v3 = vadd.f32 %v20613_v29, %v20701_v13  ;;  %v10801_v16 = vmax.f32 %v10612_v15, 0.0  ;;  %v20741_v32 = vpop.f32.mrf.mxu1  ;;  %v10803_v26 = vmax.f32 %v10361_v21, 0.0 }
0x1133   : > { %v10804_v15 = vmax.f32 %v10616_v60, 0.0  ;;  %v10365_v4 = vadd.f32 %v20639_v46, %v20701_v13  ;;  %v10628_v21 = vadd.f32 %v20655_v8, %v20703_v59  ;;  %v10634_v8 = vadd.f32 %v20668_v48, %v20703_v59 }
0x1134   : > { %10531 = vmatmul.mubr.f32.gmra.mxu0 %v10193_v40  ;;  %10788 = vmatmul.mubr.f32.gmra.mxu1 %v10193_v40  ;;  %v10798_v29 = vmax.f32 %v10353_v3, 0.0  ;;  %v10805_v40 = vmax.f32 %v10618_v17, 0.0  ;;  %v20753_v38 = vpop.f32.mrf.mxu1  ;;  %v10630_v3 = vadd.f32 %v20663_v62, %v20692_v49  ;;  %v10379_v62 = vadd.f32 %v20673_v39, %v20690_v2 }
0x1135   : > { %11057 = vmatprep.mubr.f32.mxu0 %v10795_v42  ;;  %11282 = vmatprep.mubr.f32.mxu1 %v10797_v61  ;;  %v10624_v42 = vadd.f32 %v20648_v53, %v20692_v49  ;;  %v20751_v61 = vpop.f32.mrf.mxu0  ;;  %v10373_v53 = vadd.f32 %v20659_v37, %v20690_v2  ;;  %v10806_v46 = vmax.f32 %v10365_v4, 0.0  ;;  %v10385_v39 = vadd.f32 %v20694_v10, %v20690_v2 }
0x1136   : > { %v10813_v17 = vmax.f32 %v10630_v3, 0.0  ;;  %v10383_v48 = vadd.f32 %v20678_v31, %v20701_v13  ;;  %v10640_v4 = vadd.f32 %v20680_v43, %v20703_v59  ;;  %v10389_v31 = vadd.f32 %v20711_v41, %v20701_v13 }
0x1137   : > { %v20763_v22 = vpop.f32.mrf.mxu0  ;;  %v10811_v37 = vmax.f32 %v10373_v53, 0.0  ;;  %v10819_v10 = vmax.f32 %v10385_v39, 0.0  ;;  %v10646_v43 = vadd.f32 %v20713_v18, %v20703_v59  ;;  %v10395_v41 = vadd.f32 %v20739_v12, %v20701_v13 }
0x1138   : > { %11058 = vmatmul.mubr.f32.vlgmr.msra.gmra.mxu0 %v10794_v51  ;;  %11283 = vmatmul.mubr.f32.vlgmr.msra.gmra.mxu1 %v10796_v28  ;;  %v10622_v51 = vadd.f32 %v20641_v6, %v20703_v59  ;;  %v10809_v28 = vmax.f32 %v10624_v42, 0.0  ;;  %v10371_v6 = vadd.f32 %v20652_v11, %v20701_v13  ;;  %v10377_v11 = vadd.f32 %v20666_v34, %v20701_v13 }
0x1139   : > { %11062 = vmatprep.mubr.f32.mxu0 %v10799_v9  ;;  %11287 = vmatprep.mubr.f32.mxu1 %v10801_v16  ;;  %v20765_v9 = vpop.f32.mrf.mxu1  ;;  %v10818_v3 = vmax.f32 %v10383_v48, 0.0  ;;  %v10652_v18 = vadd.f32 %v20741_v32, %v20703_v59  ;;  %v10401_v12 = vadd.f32 %v20763_v22, %v20701_v13 }
0x113a   : > { %v10808_v16 = vmax.f32 %v10622_v51, 0.0  ;;  %v10810_v60 = vmax.f32 %v10371_v6, 0.0  ;;  %v10814_v34 = vmax.f32 %v10377_v11, 0.0  ;;  %v10658_v32 = vadd.f32 %v20765_v9, %v20703_v59 }
0x113b   : > { %v10659_v50 = vpop.f32.mrf.mxu1 }
0x113c   : > { %11063 = vmatmul.mubr.f32.gmra.mxu0 %v10798_v29  ;;  %11288 = vmatmul.mubr.f32.gmra.mxu1 %v10800_v36  ;;  %v10636_v29 = vadd.f32 %v20675_v58, %v20692_v49  ;;  %v10402_v36 = vpop.f32.mrf.mxu0  ;;  %v10642_v58 = vadd.f32 %v20696_v14, %v20692_v49  ;;  %v10391_v14 = vadd.f32 %v20727_v7, %v20690_v2  ;;  %v10832_v48 = vmax.f32 %v10658_v32, 0.0 }
0x113d   : > { %11067 = vmatprep.mubr.f32.mxu0 %v10803_v26  ;;  %11292 = vmatprep.mubr.f32.mxu1 %v10805_v40  ;;  %v10812_v26 = vmax.f32 %v10628_v21, 0.0  ;;  %v10815_v40 = vmax.f32 %v10379_v62, 0.0  ;;  %v10397_v7 = vadd.f32 %v20751_v61, %v20690_v2  ;;  %v10824_v62 = vmax.f32 %v10646_v43, 0.0 }
0x113e   : > { %v10817_v23 = vmax.f32 %v10636_v29, 0.0  ;;  %v20783_v42 = vpop.f32.mrf.mxu0  ;;  %v10821_v51 = vmax.f32 %v10642_v58, 0.0  ;;  %v10403_v61 = vadd.f32 %v10402_v36, %v20690_v2 }
0x113f   : > { %v10827_v29 = vmax.f32 %v10397_v7, 0.0  ;;  %v10407_v22 = vadd.f32 %v20783_v42, %v20701_v13 }
0x1140   : > { %11068 = vmatmul.mubr.f32.gmra.mxu0 %v10802_v55  ;;  %11293 = vmatmul.mubr.f32.gmra.mxu1 %v10804_v15  ;;  %v20785_v55 = vpop.f32.mrf.mxu1  ;;  %v10816_v15 = vmax.f32 %v10634_v8, 0.0  ;;  %v10826_v8 = vmax.f32 %v10395_v41, 0.0 }
0x1141   : > { %11072 = vmatprep.mubr.f32.mxu0 %v10807_v56  ;;  %11297 = vmatprep.mubr.f32.mxu1 %v10809_v28  ;;  %v10648_v56 = vadd.f32 %v20729_v0, %v20692_v49  ;;  %v10408_v28 = vpop.f32.mrf.mxu0  ;;  %v10654_v0 = vadd.f32 %v20753_v38, %v20692_v49  ;;  %v10660_v38 = vadd.f32 %v10659_v50, %v20692_v49 }
0x1142   : > { %v10665_v53 = vpop.f32.mrf.mxu1  ;;  %v10409_v36 = vadd.f32 %v10408_v28, %v20690_v2  ;;  %v10664_v9 = vadd.f32 %v20785_v55, %v20703_v59 }
0x1143   : > { %v10825_v6 = vmax.f32 %v10648_v56, 0.0  ;;  %v10412_v21 = vpop.f32.mrf.mxu0  ;;  %v10833_v39 = vmax.f32 %v10660_v38, 0.0  ;;  %v10666_v50 = vadd.f32 %v10665_v53, %v20692_v49  ;;  %v10834_v53 = vmax.f32 %v10407_v22, 0.0 }
0x1144   : > { %11073 = vmatmul.mubr.f32.gmra.mxu0 %v10806_v46  ;;  %11298 = vmatmul.mubr.f32.gmra.mxu1 %v10808_v16  ;;  %v10820_v46 = vmax.f32 %v10640_v4, 0.0  ;;  %v10823_v16 = vmax.f32 %v10391_v14, 0.0  ;;  %v10835_v4 = vmax.f32 %v10409_v36, 0.0 }
0x1145   : > { %11077 = vmatprep.mubr.f32.mxu0 %v10811_v37  ;;  %11302 = vmatprep.mubr.f32.mxu1 %v10813_v17  ;;  %v10669_v37 = vpop.f32.mrf.mxu1  ;;  %v10822_v17 = vmax.f32 %v10389_v31, 0.0 }
0x1146   : > { %v10670_v42 = vadd.f32 %v10669_v37, %v20703_v59 }
0x1147   : > { %v10671_v11 = vpop.f32.mrf.mxu1 }
0x1148   : > { %11078 = vmatmul.mubr.f32.gmra.mxu0 %v10810_v60  ;;  %11303 = vmatmul.mubr.f32.gmra.mxu1 %v10812_v26  ;;  %v10829_v60 = vmax.f32 %v10654_v0, 0.0  ;;  %v10414_v26 = vpop.f32.mrf.mxu0  ;;  %v10672_v14 = vadd.f32 %v10671_v11, %v20692_v49  ;;  %v10840_v7 = vmax.f32 %v10670_v42, 0.0 }
0x1149   : > { %11082 = vmatprep.mubr.f32.mxu0 %v10815_v40  ;;  %11307 = vmatprep.mubr.f32.mxu1 %v10817_v23  ;;  %v10828_v40 = vmax.f32 %v10652_v18, 0.0  ;;  %v10831_v23 = vmax.f32 %v10403_v61, 0.0 }
0x114a   : > { %v10418_v58 = vpop.f32.mrf.mxu0  ;;  %v10841_v55 = vmax.f32 %v10672_v14, 0.0 }
0x114b   : > { %v10419_v0 = vadd.f32 %v10418_v58, %v20701_v13 }
0x114c   : > { %11083 = vmatmul.mubr.f32.gmra.mxu0 %v10814_v34  ;;  %11308 = vmatmul.mubr.f32.gmra.mxu1 %v10816_v15  ;;  %v10675_v34 = vpop.f32.mrf.mxu1  ;;  %v10830_v15 = vmax.f32 %v10401_v12, 0.0  ;;  %v10420_v56 = vpop.f32.mrf.mxu0 }
0x114d   : > { %11087 = vmatprep.mubr.f32.mxu0 %v10819_v10  ;;  %11312 = vmatprep.mubr.f32.mxu1 %v10821_v51  ;;  %v10837_v10 = vmax.f32 %v10666_v50, 0.0  ;;  %v10415_v51 = vadd.f32 %v10414_v26, %v20690_v2  ;;  %v10421_v43 = vadd.f32 %v10420_v56, %v20690_v2  ;;  %v10842_v37 = vmax.f32 %v10419_v0, 0.0 }
0x114e   : > { %v10677_v28 = vpop.f32.mrf.mxu1 }
0x114f   : > { %v10839_v31 = vmax.f32 %v10415_v51, 0.0 }
0x1150   : > { %11088 = vmatmul.mubr.f32.gmra.mxu0 %v10818_v3  ;;  %11313 = vmatmul.mubr.f32.gmra.mxu1 %v10820_v46  ;;  %v10836_v3 = vmax.f32 %v10664_v9, 0.0  ;;  %v10413_v46 = vadd.f32 %v10412_v21, %v20701_v13 }
0x1151   : > { %11092 = vmatprep.mubr.f32.mxu0 %v10823_v16  ;;  %11317 = vmatprep.mubr.f32.mxu1 %v10825_v6  ;;  %v10678_v16 = vadd.f32 %v10677_v28, %v20692_v49 }
0x1152   : > { %v10838_v6 = vmax.f32 %v10413_v46, 0.0 }
0x1153   : > { %v10845_v21 = vmax.f32 %v10678_v16, 0.0 }
0x1154   : > { %11093 = vmatmul.mubr.f32.gmra.mxu0 %v10822_v17  ;;  %11318 = vmatmul.mubr.f32.gmra.mxu1 %v10824_v62  ;;  %v10676_v17 = vadd.f32 %v10675_v34, %v20703_v59  ;;  %v10843_v62 = vmax.f32 %v10421_v43, 0.0 }
0x1155   : > { %11097 = vmatprep.mubr.f32.mxu0 %v10827_v29  ;;  %11322 = vmatprep.mubr.f32.mxu1 %v10829_v60 }
0x1156   : > { %v10844_v41 = vmax.f32 %v10676_v17, 0.0 }
0x1158   : > { %11098 = vmatmul.mubr.f32.gmra.mxu0 %v10826_v8  ;;  %11323 = vmatmul.mubr.f32.gmra.mxu1 %v10828_v40 }
0x1159   : > { %11102 = vmatprep.mubr.f32.mxu0 %v10831_v23  ;;  %11327 = vmatprep.mubr.f32.mxu1 %v10833_v39 }
0x115c   : > { %11103 = vmatmul.mubr.f32.gmra.mxu0 %v10830_v15  ;;  %11328 = vmatmul.mubr.f32.gmra.mxu1 %v10832_v48 }
0x115d   : > { %11107 = vmatprep.mubr.f32.mxu0 %v10835_v4  ;;  %11332 = vmatprep.mubr.f32.mxu1 %v10837_v10 }
0x1160   : > { %11108 = vmatmul.mubr.f32.gmra.mxu0 %v10834_v53  ;;  %11333 = vmatmul.mubr.f32.gmra.mxu1 %v10836_v3 }
0x1161   : > { %11112 = vmatprep.mubr.f32.mxu0 %v10839_v31  ;;  %11337 = vmatprep.mubr.f32.mxu1 %v10841_v55 }
0x1164   : > { %11113 = vmatmul.mubr.f32.gmra.mxu0 %v10838_v6  ;;  %11338 = vmatmul.mubr.f32.gmra.mxu1 %v10840_v7 }
0x1165   : > { %11117 = vmatprep.mubr.f32.mxu0 %v10843_v62  ;;  %11342 = vmatprep.mubr.f32.mxu1 %v10845_v21 }
0x1168   : > { %v10424_v18 = vpop.f32.mrf.mxu0  ;;  %v10681_v29 = vpop.f32.mrf.mxu1  ;;  %11118 = vmatmul.mubr.f32.gmra.mxu0 %v10842_v37  ;;  %11343 = vmatmul.mubr.f32.gmra.mxu1 %v10844_v41 }
0x1169   : > { %v10425_v60 = vadd.f32 %v10424_v18, %v20701_v13  ;;  %v10682_v61 = vadd.f32 %v10681_v29, %v20703_v59 }
0x116a   : > { %v10426_v38 = vpop.f32.mrf.mxu0  ;;  %v10683_v26 = vpop.f32.mrf.mxu1 }
0x116b   : > { %v10427_v11 = vadd.f32 %v10426_v38, %v20690_v2  ;;  %v10684_v8 = vadd.f32 %v10683_v26, %v20692_v49  ;;  %v10846_v39 = vmax.f32 %v10425_v60, 0.0  ;;  %v10848_v36 = vmax.f32 %v10682_v61, 0.0 }
0x116c   : > { %v10430_v40 = vpop.f32.mrf.mxu0  ;;  %v10687_v12 = vpop.f32.mrf.mxu1 }
0x116d   : > { %v10847_v32 = vmax.f32 %v10427_v11, 0.0  ;;  %v10849_v23 = vmax.f32 %v10684_v8, 0.0  ;;  %v10431_v50 = vadd.f32 %v10430_v40, %v20701_v13  ;;  %v10688_v58 = vadd.f32 %v10687_v12, %v20703_v59 }
0x116e   : > { %v10432_v34 = vpop.f32.mrf.mxu0  ;;  %v10689_v15 = vpop.f32.mrf.mxu1 }
0x116f   : > { %v10433_v48 = vadd.f32 %v10432_v34, %v20690_v2  ;;  %v10690_v22 = vadd.f32 %v10689_v15, %v20692_v49  ;;  %11122 = vmatprep.mubr.f32.mxu0 %v10847_v32  ;;  %11347 = vmatprep.mubr.f32.mxu1 %v10849_v23  ;;  %v10850_v14 = vmax.f32 %v10431_v50, 0.0  ;;  %v10852_v56 = vmax.f32 %v10688_v58, 0.0 }
0x1170   : > { %v10436_v9 = vpop.f32.mrf.mxu0  ;;  %v10693_v4 = vpop.f32.mrf.mxu1  ;;  %11123 = vmatmul.mubr.f32.gmra.mxu0 %v10846_v39  ;;  %11348 = vmatmul.mubr.f32.gmra.mxu1 %v10848_v36 }
0x1171   : > { %v10851_v10 = vmax.f32 %v10433_v48, 0.0  ;;  %v10853_v51 = vmax.f32 %v10690_v22, 0.0  ;;  %v10437_v28 = vadd.f32 %v10436_v9, %v20701_v13  ;;  %v10694_v53 = vadd.f32 %v10693_v4, %v20703_v59 }
0x1172   : > { %v10438_v3 = vpop.f32.mrf.mxu0  ;;  %v10695_v46 = vpop.f32.mrf.mxu1 }
0x1173   : > { %v10439_v42 = vadd.f32 %v10438_v3, %v20690_v2  ;;  %v10696_v31 = vadd.f32 %v10695_v46, %v20692_v49  ;;  %11127 = vmatprep.mubr.f32.mxu0 %v10851_v10  ;;  %11352 = vmatprep.mubr.f32.mxu1 %v10853_v51  ;;  %v10854_v16 = vmax.f32 %v10437_v28, 0.0  ;;  %v10856_v6 = vmax.f32 %v10694_v53, 0.0 }
0x1174   : > { %11128 = vmatmul.mubr.f32.gmra.mxu0 %v10850_v14  ;;  %11353 = vmatmul.mubr.f32.gmra.mxu1 %v10852_v56 }
0x1175   : > { %v10855_v55 = vmax.f32 %v10439_v42, 0.0  ;;  %v10857_v43 = vmax.f32 %v10696_v31, 0.0 }
0x1177   : > { %11132 = vmatprep.mubr.f32.mxu0 %v10855_v55  ;;  %11357 = vmatprep.mubr.f32.mxu1 %v10857_v43 }
0x1178   : > { %11133 = vmatmul.mubr.f32.gmra.mxu0 %v10854_v16  ;;  %11358 = vmatmul.mubr.f32.gmra.mxu1 %v10856_v6 }
0x118f   : > { %v10442_v7 = vpop.f32.mrf.mxu0  ;;  %v10699_v0 = vpop.f32.mrf.mxu1 }
0x1190   : > { %v10443_v17 = vadd.f32 %v10442_v7, %v20701_v13  ;;  %v10700_v62 = vadd.f32 %v10699_v0, %v20703_v59 }
0x1191   : > { %v10444_v21 = vpop.f32.mrf.mxu0  ;;  %v10701_v37 = vpop.f32.mrf.mxu1 }
0x1192   : > { %v10445_v41 = vadd.f32 %v10444_v21, %v20690_v2  ;;  %v10702_v18 = vadd.f32 %v10701_v37, %v20692_v49  ;;  %v10858_v26 = vmax.f32 %v10443_v17, 0.0  ;;  %v10860_v11 = vmax.f32 %v10700_v62, 0.0 }
0x1193   : > { %v10448_v29 = vpop.f32.mrf.mxu0  ;;  %v10705_v60 = vpop.f32.mrf.mxu1 }
0x1194   : > { %v10859_v61 = vmax.f32 %v10445_v41, 0.0  ;;  %v10861_v38 = vmax.f32 %v10702_v18, 0.0  ;;  %v10449_v8 = vadd.f32 %v10448_v29, %v20701_v13  ;;  %v10706_v40 = vadd.f32 %v10705_v60, %v20703_v59 }
0x1195   : > { %v10450_v12 = vpop.f32.mrf.mxu0  ;;  %v10707_v32 = vpop.f32.mrf.mxu1 }
0x1196   : > { %v10451_v23 = vadd.f32 %v10450_v12, %v20690_v2  ;;  %v10708_v39 = vadd.f32 %v10707_v32, %v20692_v49  ;;  %11137 = vmatprep.mubr.f32.mxu0 %v10859_v61  ;;  %11362 = vmatprep.mubr.f32.mxu1 %v10861_v38  ;;  %v10862_v15 = vmax.f32 %v10449_v8, 0.0  ;;  %v10864_v48 = vmax.f32 %v10706_v40, 0.0 }
0x1197   : > { %v10454_v36 = vpop.f32.mrf.mxu0  ;;  %v10711_v50 = vpop.f32.mrf.mxu1  ;;  %11138 = vmatmul.mubr.f32.gmra.mxu0 %v10858_v26  ;;  %11363 = vmatmul.mubr.f32.gmra.mxu1 %v10860_v11 }
0x1198   : > { %v10863_v58 = vmax.f32 %v10451_v23, 0.0  ;;  %v10865_v34 = vmax.f32 %v10708_v39, 0.0  ;;  %v10455_v22 = vadd.f32 %v10454_v36, %v20701_v13  ;;  %v10712_v9 = vadd.f32 %v10711_v50, %v20703_v59 }
0x1199   : > { %v10456_v4 = vpop.f32.mrf.mxu0  ;;  %v10713_v10 = vpop.f32.mrf.mxu1 }
0x119a   : > { %v10457_v51 = vadd.f32 %v10456_v4, %v20690_v2  ;;  %v10714_v14 = vadd.f32 %v10713_v10, %v20692_v49  ;;  %11142 = vmatprep.mubr.f32.mxu0 %v10863_v58  ;;  %11367 = vmatprep.mubr.f32.mxu1 %v10865_v34  ;;  %v10866_v46 = vmax.f32 %v10455_v22, 0.0  ;;  %v10868_v42 = vmax.f32 %v10712_v9, 0.0 }
0x119b   : > { %v10460_v56 = vpop.f32.mrf.mxu0  ;;  %v10717_v28 = vpop.f32.mrf.mxu1  ;;  %11143 = vmatmul.mubr.f32.gmra.mxu0 %v10862_v15  ;;  %11368 = vmatmul.mubr.f32.gmra.mxu1 %v10864_v48 }
0x119c   : > { %v10867_v53 = vmax.f32 %v10457_v51, 0.0  ;;  %v10869_v3 = vmax.f32 %v10714_v14, 0.0  ;;  %v10461_v31 = vadd.f32 %v10460_v56, %v20701_v13  ;;  %v10718_v55 = vadd.f32 %v10717_v28, %v20703_v59 }
0x119d   : > { %v10462_v43 = vpop.f32.mrf.mxu0  ;;  %v10719_v16 = vpop.f32.mrf.mxu1 }
0x119e   : > { %v10463_v6 = vadd.f32 %v10462_v43, %v20690_v2  ;;  %v10720_v7 = vadd.f32 %v10719_v16, %v20692_v49  ;;  %11147 = vmatprep.mubr.f32.mxu0 %v10867_v53  ;;  %11372 = vmatprep.mubr.f32.mxu1 %v10869_v3  ;;  %v10870_v62 = vmax.f32 %v10461_v31, 0.0  ;;  %v10872_v21 = vmax.f32 %v10718_v55, 0.0 }
0x119f   : > { %11148 = vmatmul.mubr.f32.gmra.mxu0 %v10866_v46  ;;  %11373 = vmatmul.mubr.f32.gmra.mxu1 %v10868_v42 }
0x11a0   : > { %v10871_v0 = vmax.f32 %v10463_v6, 0.0  ;;  %v10873_v17 = vmax.f32 %v10720_v7, 0.0 }
0x11a2   : > { %11152 = vmatprep.mubr.f32.mxu0 %v10871_v0  ;;  %11377 = vmatprep.mubr.f32.mxu1 %v10873_v17 }
0x11a3   : > { %11153 = vmatmul.mubr.f32.gmra.mxu0 %v10870_v62  ;;  %11378 = vmatmul.mubr.f32.gmra.mxu1 %v10872_v21 }
0x11c2   : > { %v10466_v37 = vpop.f32.mrf.mxu0  ;;  %v10723_v41 = vpop.f32.mrf.mxu1 }
0x11c3   : > { %v10467_v18 = vadd.f32 %v10466_v37, %v20701_v13  ;;  %v10724_v29 = vadd.f32 %v10723_v41, %v20703_v59 }
0x11c4   : > { %v10468_v60 = vpop.f32.mrf.mxu0  ;;  %v10725_v61 = vpop.f32.mrf.mxu1 }
0x11c5   : > { %v10469_v38 = vadd.f32 %v10468_v60, %v20690_v2  ;;  %v10726_v26 = vadd.f32 %v10725_v61, %v20692_v49  ;;  %v10874_v32 = vmax.f32 %v10467_v18, 0.0  ;;  %v10876_v23 = vmax.f32 %v10724_v29, 0.0 }
0x11c6   : > { %v10472_v11 = vpop.f32.mrf.mxu0  ;;  %v10729_v8 = vpop.f32.mrf.mxu1 }
0x11c7   : > { %v10875_v40 = vmax.f32 %v10469_v38, 0.0  ;;  %v10877_v12 = vmax.f32 %v10726_v26, 0.0  ;;  %v10473_v39 = vadd.f32 %v10472_v11, %v20701_v13  ;;  %v10730_v36 = vadd.f32 %v10729_v8, %v20703_v59 }
0x11c8   : > { %v10474_v50 = vpop.f32.mrf.mxu0  ;;  %v10731_v58 = vpop.f32.mrf.mxu1 }
0x11c9   : > { %v10475_v34 = vadd.f32 %v10474_v50, %v20690_v2  ;;  %v10732_v15 = vadd.f32 %v10731_v58, %v20692_v49  ;;  %11157 = vmatprep.mubr.f32.mxu0 %v10875_v40  ;;  %11382 = vmatprep.mubr.f32.mxu1 %v10877_v12  ;;  %v10878_v9 = vmax.f32 %v10473_v39, 0.0  ;;  %v10880_v4 = vmax.f32 %v10730_v36, 0.0 }
0x11ca   : > { %11158 = vmatmul.mubr.f32.gmra.mxu0 %v10874_v32  ;;  %11383 = vmatmul.mubr.f32.gmra.mxu1 %v10876_v23 }
0x11cb   : > { %v10879_v48 = vmax.f32 %v10475_v34, 0.0  ;;  %v10881_v22 = vmax.f32 %v10732_v15, 0.0 }
0x11cd   : > { %11162 = vmatprep.mubr.f32.mxu0 %v10879_v48  ;;  %11387 = vmatprep.mubr.f32.mxu1 %v10881_v22 }
0x11ce   : > { %11163 = vmatmul.mubr.f32.gmra.mxu0 %v10878_v9  ;;  %11388 = vmatmul.mubr.f32.gmra.mxu1 %v10880_v4 }
0x11d0   : > { %v10478_v10 = vpop.f32.mrf.mxu0  ;;  %v10735_v51 = vpop.f32.mrf.mxu1 }
0x11d1   : > { %v10479_v14 = vadd.f32 %v10478_v10, %v20701_v13  ;;  %v10736_v56 = vadd.f32 %v10735_v51, %v20703_v59 }
0x11d2   : > { %v10480_v28 = vpop.f32.mrf.mxu0  ;;  %v10737_v53 = vpop.f32.mrf.mxu1 }
0x11d3   : > { %v10481_v3 = vadd.f32 %v10480_v28, %v20690_v2  ;;  %v10738_v46 = vadd.f32 %v10737_v53, %v20692_v49  ;;  %v10882_v16 = vmax.f32 %v10479_v14, 0.0  ;;  %v10884_v6 = vmax.f32 %v10736_v56, 0.0 }
0x11d4   : > { %v10484_v42 = vpop.f32.mrf.mxu0  ;;  %v10741_v31 = vpop.f32.mrf.mxu1 }
0x11d5   : > { %v10883_v55 = vmax.f32 %v10481_v3, 0.0  ;;  %v10885_v43 = vmax.f32 %v10738_v46, 0.0  ;;  %v10485_v7 = vadd.f32 %v10484_v42, %v20701_v13  ;;  %v10742_v0 = vadd.f32 %v10741_v31, %v20703_v59 }
0x11d6   : > { %v10486_v17 = vpop.f32.mrf.mxu0  ;;  %v10743_v62 = vpop.f32.mrf.mxu1 }
0x11d7   : > { %v10487_v21 = vadd.f32 %v10486_v17, %v20690_v2  ;;  %v10744_v37 = vadd.f32 %v10743_v62, %v20692_v49  ;;  %11167 = vmatprep.mubr.f32.mxu0 %v10883_v55  ;;  %11392 = vmatprep.mubr.f32.mxu1 %v10885_v43  ;;  %v10886_v61 = vmax.f32 %v10485_v7, 0.0  ;;  %v10888_v38 = vmax.f32 %v10742_v0, 0.0 }
0x11d8   : > { %v10490_v41 = vpop.f32.mrf.mxu0  ;;  %v10747_v18 = vpop.f32.mrf.mxu1  ;;  %11168 = vmatmul.mubr.f32.gmra.mxu0 %v10882_v16  ;;  %11393 = vmatmul.mubr.f32.gmra.mxu1 %v10884_v6 }
0x11d9   : > { %v10887_v29 = vmax.f32 %v10487_v21, 0.0  ;;  %v10889_v60 = vmax.f32 %v10744_v37, 0.0  ;;  %v10491_v26 = vadd.f32 %v10490_v41, %v20701_v13  ;;  %v10748_v11 = vadd.f32 %v10747_v18, %v20703_v59 }
0x11da   : > { %v10492_v8 = vpop.f32.mrf.mxu0  ;;  %v10749_v40 = vpop.f32.mrf.mxu1 }
0x11db   : > { %v10493_v12 = vadd.f32 %v10492_v8, %v20690_v2  ;;  %v10750_v32 = vadd.f32 %v10749_v40, %v20692_v49  ;;  %11172 = vmatprep.mubr.f32.mxu0 %v10887_v29  ;;  %11397 = vmatprep.mubr.f32.mxu1 %v10889_v60  ;;  %v10890_v58 = vmax.f32 %v10491_v26, 0.0  ;;  %v10892_v34 = vmax.f32 %v10748_v11, 0.0 }
0x11dc   : > { %v10496_v23 = vpop.f32.mrf.mxu0  ;;  %v10753_v39 = vpop.f32.mrf.mxu1  ;;  %11173 = vmatmul.mubr.f32.gmra.mxu0 %v10886_v61  ;;  %11398 = vmatmul.mubr.f32.gmra.mxu1 %v10888_v38 }
0x11dd   : > { %v10891_v36 = vmax.f32 %v10493_v12, 0.0  ;;  %v10893_v50 = vmax.f32 %v10750_v32, 0.0  ;;  %v10497_v15 = vadd.f32 %v10496_v23, %v20701_v13  ;;  %v10754_v48 = vadd.f32 %v10753_v39, %v20703_v59 }
0x11de   : > { %v10498_v22 = vpop.f32.mrf.mxu0  ;;  %v10755_v9 = vpop.f32.mrf.mxu1 }
0x11df   : > { %v10499_v4 = vadd.f32 %v10498_v22, %v20690_v2  ;;  %v10756_v10 = vadd.f32 %v10755_v9, %v20692_v49  ;;  %11177 = vmatprep.mubr.f32.mxu0 %v10891_v36  ;;  %11402 = vmatprep.mubr.f32.mxu1 %v10893_v50  ;;  %v10894_v53 = vmax.f32 %v10497_v15, 0.0  ;;  %v10896_v3 = vmax.f32 %v10754_v48, 0.0 }
0x11e0   : > { %v10502_v51 = vpop.f32.mrf.mxu0  ;;  %v10759_v14 = vpop.f32.mrf.mxu1  ;;  %11178 = vmatmul.mubr.f32.gmra.mxu0 %v10890_v58  ;;  %11403 = vmatmul.mubr.f32.gmra.mxu1 %v10892_v34 }
0x11e1   : > { %v10895_v56 = vmax.f32 %v10499_v4, 0.0  ;;  %v10897_v28 = vmax.f32 %v10756_v10, 0.0  ;;  %v10503_v46 = vadd.f32 %v10502_v51, %v20701_v13  ;;  %v10760_v42 = vadd.f32 %v10759_v14, %v20703_v59 }
0x11e2   : > { %v10504_v31 = vpop.f32.mrf.mxu0  ;;  %v10761_v55 = vpop.f32.mrf.mxu1 }
0x11e3   : > { %v10505_v43 = vadd.f32 %v10504_v31, %v20690_v2  ;;  %v10762_v16 = vadd.f32 %v10761_v55, %v20692_v49  ;;  %11182 = vmatprep.mubr.f32.mxu0 %v10895_v56  ;;  %11407 = vmatprep.mubr.f32.mxu1 %v10897_v28  ;;  %v10898_v62 = vmax.f32 %v10503_v46, 0.0  ;;  %v10900_v21 = vmax.f32 %v10760_v42, 0.0 }
0x11e4   : > { %v10508_v6 = vpop.f32.mrf.mxu0  ;;  %v10765_v7 = vpop.f32.mrf.mxu1  ;;  %11183 = vmatmul.mubr.f32.gmra.mxu0 %v10894_v53  ;;  %11408 = vmatmul.mubr.f32.gmra.mxu1 %v10896_v3 }
0x11e5   : > { %v10899_v0 = vmax.f32 %v10505_v43, 0.0  ;;  %v10901_v17 = vmax.f32 %v10762_v16, 0.0  ;;  %v10509_v37 = vadd.f32 %v10508_v6, %v20701_v13  ;;  %v10766_v41 = vadd.f32 %v10765_v7, %v20703_v59 }
0x11e6   : > { %v10510_v18 = vpop.f32.mrf.mxu0  ;;  %v10767_v29 = vpop.f32.mrf.mxu1 }
0x11e7   : > { %v10511_v60 = vadd.f32 %v10510_v18, %v20690_v2  ;;  %v10768_v61 = vadd.f32 %v10767_v29, %v20692_v49  ;;  %11187 = vmatprep.mubr.f32.mxu0 %v10899_v0  ;;  %11412 = vmatprep.mubr.f32.mxu1 %v10901_v17  ;;  %v10902_v40 = vmax.f32 %v10509_v37, 0.0  ;;  %v10904_v12 = vmax.f32 %v10766_v41, 0.0 }
0x11e8   : > { %v10514_v38 = vpop.f32.mrf.mxu0  ;;  %v10771_v26 = vpop.f32.mrf.mxu1  ;;  %11188 = vmatmul.mubr.f32.gmra.mxu0 %v10898_v62  ;;  %11413 = vmatmul.mubr.f32.gmra.mxu1 %v10900_v21 }
0x11e9   : > { %v10903_v11 = vmax.f32 %v10511_v60, 0.0  ;;  %v10905_v8 = vmax.f32 %v10768_v61, 0.0  ;;  %v10515_v32 = vadd.f32 %v10514_v38, %v20701_v13  ;;  %v10772_v23 = vadd.f32 %v10771_v26, %v20703_v59 }
0x11ea   : > { %v10516_v39 = vpop.f32.mrf.mxu0  ;;  %v10773_v36 = vpop.f32.mrf.mxu1 }
0x11eb   : > { %v10517_v50 = vadd.f32 %v10516_v39, %v20690_v2  ;;  %v10774_v58 = vadd.f32 %v10773_v36, %v20692_v49  ;;  %11192 = vmatprep.mubr.f32.mxu0 %v10903_v11  ;;  %11417 = vmatprep.mubr.f32.mxu1 %v10905_v8  ;;  %v10906_v9 = vmax.f32 %v10515_v32, 0.0  ;;  %v10908_v4 = vmax.f32 %v10772_v23, 0.0  ;;  %v20904_v8 = vld [vmem:[%s21889_s30] ss:$0 sm:$0xff] }
0x11ec   : > { %11193 = vmatmul.mubr.f32.gmra.mxu0 %v10902_v40  ;;  %11418 = vmatmul.mubr.f32.gmra.mxu1 %v10904_v12  ;;  %v10520_v48 = vpop.f32.mrf.mxu0  ;;  %v10777_v22 = vpop.f32.mrf.mxu1 }
0x11ed   : > { %v10907_v34 = vmax.f32 %v10517_v50, 0.0  ;;  %v10909_v15 = vmax.f32 %v10774_v58, 0.0  ;;  %v10521_v10 = vadd.f32 %v10520_v48, %v20701_v13  ;;  %v10778_v51 = vadd.f32 %v10777_v22, %v20703_v59 }
0x11ee   : > { %v10522_v14 = vpop.f32.mrf.mxu0  ;;  %v10779_v56 = vpop.f32.mrf.mxu1 }
0x11ef   : > { %11197 = vmatprep.mubr.f32.mxu0 %v10907_v34  ;;  %11422 = vmatprep.mubr.f32.mxu1 %v10909_v15  ;;  %v10523_v28 = vadd.f32 %v10522_v14, %v20690_v2  ;;  %v10780_v53 = vadd.f32 %v10779_v56, %v20692_v49  ;;  %v10910_v55 = vmax.f32 %v10521_v10, 0.0  ;;  %v10912_v43 = vmax.f32 %v10778_v51, 0.0 }
0x11f0   : > { %11198 = vmatmul.mubr.f32.gmra.mxu0 %v10906_v9  ;;  %11423 = vmatmul.mubr.f32.gmra.mxu1 %v10908_v4  ;;  %v10526_v3 = vpop.f32.mrf.mxu0  ;;  %v10783_v46 = vpop.f32.mrf.mxu1 }
0x11f1   : > { %v10911_v42 = vmax.f32 %v10523_v28, 0.0  ;;  %v10913_v31 = vmax.f32 %v10780_v53, 0.0  ;;  %v10527_v16 = vadd.f32 %v10526_v3, %v20701_v13  ;;  %v10784_v6 = vadd.f32 %v10783_v46, %v20703_v59 }
0x11f2   : > { %v10528_v7 = vpop.f32.mrf.mxu0  ;;  %v10785_v0 = vpop.f32.mrf.mxu1 }
0x11f3   : > { %v10529_v17 = vadd.f32 %v10528_v7, %v20690_v2  ;;  %v10786_v62 = vadd.f32 %v10785_v0, %v20692_v49  ;;  %11202 = vmatprep.mubr.f32.mxu0 %v10911_v42  ;;  %11427 = vmatprep.mubr.f32.mxu1 %v10913_v31  ;;  %v10914_v29 = vmax.f32 %v10527_v16, 0.0  ;;  %v10916_v60 = vmax.f32 %v10784_v6, 0.0 }
0x11f4   : > { %v10532_v21 = vpop.f32.mrf.mxu0  ;;  %v10789_v37 = vpop.f32.mrf.mxu1  ;;  %11203 = vmatmul.mubr.f32.gmra.mxu0 %v10910_v55  ;;  %11428 = vmatmul.mubr.f32.gmra.mxu1 %v10912_v43 }
0x11f5   : > { %v10915_v41 = vmax.f32 %v10529_v17, 0.0  ;;  %v10917_v18 = vmax.f32 %v10786_v62, 0.0  ;;  %v10533_v61 = vadd.f32 %v10532_v21, %v20701_v13  ;;  %v10790_v38 = vadd.f32 %v10789_v37, %v20703_v59 }
0x11f6   : > { %v10534_v26 = vpop.f32.mrf.mxu0  ;;  %v10791_v11 = vpop.f32.mrf.mxu1 }
0x11f7   : > { %v10535_v40 = vadd.f32 %v10534_v26, %v20690_v2  ;;  %v10792_v12 = vadd.f32 %v10791_v11, %v20692_v49  ;;  %11207 = vmatprep.mubr.f32.mxu0 %v10915_v41  ;;  %11432 = vmatprep.mubr.f32.mxu1 %v10917_v18  ;;  %v10918_v36 = vmax.f32 %v10533_v61, 0.0  ;;  %v10920_v50 = vmax.f32 %v10790_v38, 0.0 }
0x11f8   : > { %v11059_v32 = vpop.f32.mrf.mxu0  ;;  %11208 = vmatmul.mubr.f32.gmra.mxu0 %v10914_v29  ;;  %v11284_v23 = vpop.f32.mrf.mxu1  ;;  %11433 = vmatmul.mubr.f32.gmra.mxu1 %v10916_v60 }
0x11f9   : > { %v10919_v13 = vmax.f32 %v10535_v40, 0.0  ;;  %v10921_v39 = vmax.f32 %v10792_v12, 0.0  ;;  %v11060_v59 = vadd.f32 %v20904_v8, %v11059_v32 }
0x11fa   : > { %v11061_v58 = vpop.f32.mrf.mxu0  ;;  %v11286_v34 = vpop.f32.mrf.mxu1 }
0x11fb   : > { %v11285_v15 = vadd.f32 %v11284_v23, %v11060_v59  ;;  %11212 = vmatprep.mubr.f32.mxu0 %v10919_v13  ;;  %11437 = vmatprep.mubr.f32.mxu1 %v10921_v39 }
0x11fc   : > { %v11064_v2 = vpop.f32.mrf.mxu0  ;;  %11213 = vmatmul.mubr.f32.gmra.mxu0 %v10918_v36  ;;  %v11289_v49 = vpop.f32.mrf.mxu1  ;;  %11438 = vmatmul.mubr.f32.gmra.mxu1 %v10920_v50 }
0x11fd   : > { %v11443_v48 = vadd.f32 %v11285_v15, %v20053_v57  ;;  %v11065_v22 = vadd.f32 %v20904_v8, %v11064_v2 }
0x11fe   : > { %v11066_v9 = vpop.f32.mrf.mxu0  ;;  %v11291_v4 = vpop.f32.mrf.mxu1 }
0x11ff   : > { %11475 = vst [vmem:[%s20913_s29] sm:$0xff] %v11443_v48  ;;  %v11290_v10 = vadd.f32 %v11289_v49, %v11065_v22 }
0x1200   : > { %v11069_v51 = vpop.f32.mrf.mxu0  ;;  %v11294_v14 = vpop.f32.mrf.mxu1 }
0x1201   : > { %v11444_v56 = vadd.f32 %v11290_v10, %v20049_v45  ;;  %v11070_v28 = vadd.f32 %v20904_v8, %v11069_v51 }
0x1202   : > { %v11071_v53 = vpop.f32.mrf.mxu0  ;;  %v11296_v57 = vpop.f32.mrf.mxu1 }
0x1203   : > { %11476 = vst [vmem:[%s20913_s29 + $0x8] sm:$0xff] %v11444_v56  ;;  %v11295_v3 = vadd.f32 %v11294_v14, %v11070_v28 }
0x1204   : > { %v11074_v46 = vpop.f32.mrf.mxu0  ;;  %v11299_v42 = vpop.f32.mrf.mxu1 }
0x1205   : > { %v11445_v31 = vadd.f32 %v11295_v3, %v20062_v63  ;;  %v11075_v55 = vadd.f32 %v20904_v8, %v11074_v46 }
0x1206   : > { %v11076_v43 = vpop.f32.mrf.mxu0  ;;  %v11301_v16 = vpop.f32.mrf.mxu1 }
0x1207   : > { %11477 = vst [vmem:[%s20913_s29 + $0x10] sm:$0xff] %v11445_v31  ;;  %v11300_v6 = vadd.f32 %v11299_v42, %v11075_v55 }
0x1208   : > { %v11079_v7 = vpop.f32.mrf.mxu0  ;;  %v11304_v45 = vpop.f32.mrf.mxu1 }
0x1209   : > { %v11446_v0 = vadd.f32 %v11300_v6, %v20075_v25  ;;  %v11080_v17 = vadd.f32 %v20904_v8, %v11079_v7 }
0x120a   : > { %v11081_v62 = vpop.f32.mrf.mxu0  ;;  %v11306_v21 = vpop.f32.mrf.mxu1 }
0x120b   : > { %11478 = vst [vmem:[%s20913_s29 + $0x18] sm:$0xff] %v11446_v0  ;;  %v11305_v37 = vadd.f32 %v11304_v45, %v11080_v17 }
0x120c   : > { %v11084_v41 = vpop.f32.mrf.mxu0  ;;  %v11309_v63 = vpop.f32.mrf.mxu1 }
0x120d   : > { %v11447_v18 = vadd.f32 %v11305_v37, %v20089_v19  ;;  %v11085_v29 = vadd.f32 %v20904_v8, %v11084_v41 }
0x120e   : > { %v11086_v60 = vpop.f32.mrf.mxu0  ;;  %v11311_v61 = vpop.f32.mrf.mxu1 }
0x120f   : > { %11479 = vst [vmem:[%s20913_s29 + $0x20] sm:$0xff] %v11447_v18  ;;  %v11310_v38 = vadd.f32 %v11309_v63, %v11085_v29 }
0x1210   : > { %v11089_v26 = vpop.f32.mrf.mxu0  ;;  %v11314_v25 = vpop.f32.mrf.mxu1 }
0x1211   : > { %v11448_v11 = vadd.f32 %v11310_v38, %v20069_v33  ;;  %v11090_v40 = vadd.f32 %v20904_v8, %v11089_v26 }
0x1212   : > { %v11091_v12 = vpop.f32.mrf.mxu0  ;;  %v11316_v32 = vpop.f32.mrf.mxu1 }
0x1213   : > { %11480 = vst [vmem:[%s20913_s29 + $0x28] sm:$0xff] %v11448_v11  ;;  %v11315_v23 = vadd.f32 %v11314_v25, %v11090_v40 }
0x1214   : > { %v11094_v13 = vpop.f32.mrf.mxu0  ;;  %v11319_v19 = vpop.f32.mrf.mxu1 }
0x1215   : > { %v11449_v39 = vadd.f32 %v11315_v23, %v20102_v44  ;;  %v11095_v59 = vadd.f32 %v20904_v8, %v11094_v13 }
0x1216   : > { %v11096_v36 = vpop.f32.mrf.mxu0  ;;  %v11321_v50 = vpop.f32.mrf.mxu1 }
0x1217   : > { %11481 = vst [vmem:[%s20913_s29 + $0x30] sm:$0xff] %v11449_v39  ;;  %v11320_v58 = vadd.f32 %v11319_v19, %v11095_v59 }
0x1218   : > { %v11099_v34 = vpop.f32.mrf.mxu0  ;;  %v11324_v33 = vpop.f32.mrf.mxu1 }
0x1219   : > { %v11450_v15 = vadd.f32 %v11320_v58, %v20084_v30  ;;  %v11100_v2 = vadd.f32 %v20904_v8, %v11099_v34 }
0x121a   : > { %v11101_v49 = vpop.f32.mrf.mxu0  ;;  %v11326_v48 = vpop.f32.mrf.mxu1 }
0x121b   : > { %11482 = vst [vmem:[%s20913_s29 + $0x38] sm:$0xff] %v11450_v15  ;;  %v11325_v22 = vadd.f32 %v11324_v33, %v11100_v2  ;;  %v21890_v49 = vld [vmem:[#allocation68_spill] sm:$0xff] }
0x121c   : > { %v11104_v9 = vpop.f32.mrf.mxu0  ;;  %v11329_v44 = vpop.f32.mrf.mxu1 }
0x121d   : > { %v11451_v4 = vadd.f32 %v11325_v22, %v20114_v1  ;;  %v11105_v10 = vadd.f32 %v20904_v8, %v11104_v9 }
0x121e   : > { %v11106_v51 = vpop.f32.mrf.mxu0  ;;  %v11331_v14 = vpop.f32.mrf.mxu1 }
0x121f   : > { %11483 = vst [vmem:[%s20913_s29 + $0x40] sm:$0xff] %v11451_v4  ;;  %v11330_v56 = vadd.f32 %v11329_v44, %v11105_v10  ;;  %v21891_v51 = vld [vmem:[#allocation53_spill] sm:$0xff] }
0x1220   : > { %v11109_v28 = vpop.f32.mrf.mxu0  ;;  %v11334_v30 = vpop.f32.mrf.mxu1 }
0x1221   : > { %v11452_v53 = vadd.f32 %v11330_v56, %v20098_v54  ;;  %v11110_v57 = vadd.f32 %v20904_v8, %v11109_v28 }
0x1222   : > { %v11111_v3 = vpop.f32.mrf.mxu0  ;;  %v11336_v46 = vpop.f32.mrf.mxu1 }
0x1223   : > { %11484 = vst [vmem:[%s20913_s29 + $0x48] sm:$0xff] %v11452_v53  ;;  %v11335_v42 = vadd.f32 %v11334_v30, %v11110_v57  ;;  %v21892_v46 = vld [vmem:[#allocation50_spill] sm:$0xff] }
0x1224   : > { %v11114_v31 = vpop.f32.mrf.mxu0  ;;  %v11339_v1 = vpop.f32.mrf.mxu1 }
0x1225   : > { %v11453_v55 = vadd.f32 %v11335_v42, %v20126_v52  ;;  %v11115_v43 = vadd.f32 %v20904_v8, %v11114_v31 }
0x1226   : > { %v11116_v16 = vpop.f32.mrf.mxu0  ;;  %v11341_v6 = vpop.f32.mrf.mxu1 }
0x1227   : > { %11485 = vst [vmem:[%s20913_s29 + $0x50] sm:$0xff] %v11453_v55  ;;  %v11340_v7 = vadd.f32 %v11339_v1, %v11115_v43  ;;  %v21893_v16 = vld [vmem:[#allocation85_spill] sm:$0xff] }
0x1228   : > { %v11119_v45 = vpop.f32.mrf.mxu0  ;;  %v11344_v54 = vpop.f32.mrf.mxu1 }
0x1229   : > { %v11454_v0 = vadd.f32 %v11340_v7, %v20110_v24  ;;  %v11120_v17 = vadd.f32 %v20904_v8, %v11119_v45 }
0x122a   : > { %v11121_v62 = vpop.f32.mrf.mxu0  ;;  %v11346_v21 = vpop.f32.mrf.mxu1 }
0x122b   : > { %11486 = vst [vmem:[%s20913_s29 + $0x58] sm:$0xff] %v11454_v0  ;;  %v11345_v37 = vadd.f32 %v11344_v54, %v11120_v17 }
0x122d   : > { %v11455_v41 = vadd.f32 %v11345_v37, %v20136_v27 }
0x122f   : > { %11487 = vst [vmem:[%s20913_s29 + $0x60] sm:$0xff] %v11455_v41 }
0x1230   : > { %v11124_v52 = vpop.f32.mrf.mxu0  ;;  %v11349_v63 = vpop.f32.mrf.mxu1 }
0x1231   : > { %v11125_v18 = vadd.f32 %v20904_v8, %v11124_v52 }
0x1232   : > { %v11126_v29 = vpop.f32.mrf.mxu0  ;;  %v11351_v60 = vpop.f32.mrf.mxu1 }
0x1233   : > { %v11350_v61 = vadd.f32 %v11349_v63, %v11125_v18  ;;  %v21894_v60 = vld [vmem:[#allocation57_spill] sm:$0xff] }
0x1234   : > { %v11129_v38 = vpop.f32.mrf.mxu0  ;;  %v11354_v24 = vpop.f32.mrf.mxu1 }
0x1235   : > { %v11456_v26 = vadd.f32 %v11350_v61, %v20122_v35  ;;  %v11130_v25 = vadd.f32 %v20904_v8, %v11129_v38 }
0x1236   : > { %v11131_v11 = vpop.f32.mrf.mxu0  ;;  %v11356_v40 = vpop.f32.mrf.mxu1 }
0x1237   : > { %11488 = vst [vmem:[%s20913_s29 + $0x68] sm:$0xff] %v11456_v26  ;;  %v11355_v27 = vadd.f32 %v11354_v24, %v11130_v25 }
0x1238   : > { %v11134_v12 = vpop.f32.mrf.mxu0  ;;  %v11359_v32 = vpop.f32.mrf.mxu1 }
0x1239   : > { %v11457_v23 = vadd.f32 %v11355_v27, %v20141_v47  ;;  %v11135_v13 = vadd.f32 %v20904_v8, %v11134_v12  ;;  %v21895_v12 = vld [vmem:[#allocation78_spill] sm:$0xff] }
0x123a   : > { %v11136_v19 = vpop.f32.mrf.mxu0  ;;  %v11361_v39 = vpop.f32.mrf.mxu1 }
0x123b   : > { %11489 = vst [vmem:[%s20913_s29 + $0x70] sm:$0xff] %v11457_v23  ;;  %v11360_v59 = vadd.f32 %v11359_v32, %v11135_v13 }
0x123d   : > { %v11458_v36 = vadd.f32 %v11360_v59, %v20132_v20 }
0x123f   : > { %11490 = vst [vmem:[%s20913_s29 + $0x78] sm:$0xff] %v11458_v36 }
0x1257   : > { %v11139_v35 = vpop.f32.mrf.mxu0  ;;  %v11364_v50 = vpop.f32.mrf.mxu1 }
0x1258   : > { %v11140_v58 = vadd.f32 %v20904_v8, %v11139_v35  ;;  %v21896_v35 = vld [vmem:[#allocation62_spill] sm:$0xff] }
0x1259   : > { %v11141_v34 = vpop.f32.mrf.mxu0  ;;  %v11366_v33 = vpop.f32.mrf.mxu1 }
0x125a   : > { %v11365_v15 = vadd.f32 %v11364_v50, %v11140_v58 }
0x125b   : > { %v11144_v2 = vpop.f32.mrf.mxu0  ;;  %v11369_v47 = vpop.f32.mrf.mxu1 }
0x125c   : > { %v11459_v48 = vadd.f32 %v11365_v15, %v21890_v49  ;;  %v11145_v22 = vadd.f32 %v20904_v8, %v11144_v2  ;;  %v21897_v49 = vld [vmem:[#allocation55_spill] sm:$0xff] }
0x125d   : > { %v11146_v9 = vpop.f32.mrf.mxu0  ;;  %v11371_v44 = vpop.f32.mrf.mxu1 }
0x125e   : > { %11491 = vst [vmem:[%s20913_s29 + $0x80] sm:$0xff] %v11459_v48  ;;  %v11370_v20 = vadd.f32 %v11369_v47, %v11145_v22 }
0x125f   : > { %v11149_v4 = vpop.f32.mrf.mxu0  ;;  %v11374_v10 = vpop.f32.mrf.mxu1 }
0x1260   : > { %v11460_v14 = vadd.f32 %v11370_v20, %v21891_v51  ;;  %v11150_v56 = vadd.f32 %v20904_v8, %v11149_v4  ;;  %v21898_v51 = vld [vmem:[#allocation65_spill] sm:$0xff] }
0x1261   : > { %v11151_v28 = vpop.f32.mrf.mxu0  ;;  %v11376_v30 = vpop.f32.mrf.mxu1 }
0x1262   : > { %11492 = vst [vmem:[%s20913_s29 + $0x88] sm:$0xff] %v11460_v14  ;;  %v11375_v53 = vadd.f32 %v11374_v10, %v11150_v56 }
0x1263   : > { %v11154_v57 = vpop.f32.mrf.mxu0  ;;  %v11379_v3 = vpop.f32.mrf.mxu1 }
0x1264   : > { %v11461_v42 = vadd.f32 %v11375_v53, %v21892_v46  ;;  %v11155_v31 = vadd.f32 %v20904_v8, %v11154_v57  ;;  %v21899_v46 = vld [vmem:[#allocation28_spill] sm:$0xff] }
0x1265   : > { %v11156_v1 = vpop.f32.mrf.mxu0  ;;  %v11381_v55 = vpop.f32.mrf.mxu1 }
0x1266   : > { %11493 = vst [vmem:[%s20913_s29 + $0x90] sm:$0xff] %v11461_v42  ;;  %v11380_v43 = vadd.f32 %v11379_v3, %v11155_v31 }
0x1268   : > { %v11462_v6 = vadd.f32 %v11380_v43, %v21893_v16 }
0x126a   : > { %11494 = vst [vmem:[%s20913_s29 + $0x98] sm:$0xff] %v11462_v6 }
0x128a   : > { %v11159_v7 = vpop.f32.mrf.mxu0  ;;  %v11384_v45 = vpop.f32.mrf.mxu1 }
0x128b   : > { %v11160_v54 = vadd.f32 %v20904_v8, %v11159_v7  ;;  %v21900_v7 = vld [vmem:[#allocation70_spill] sm:$0xff] }
0x128c   : > { %v11161_v0 = vpop.f32.mrf.mxu0  ;;  %v11386_v17 = vpop.f32.mrf.mxu1 }
0x128d   : > { %v11385_v62 = vadd.f32 %v11384_v45, %v11160_v54 }
0x128e   : > { %v11164_v21 = vpop.f32.mrf.mxu0  ;;  %v11389_v37 = vpop.f32.mrf.mxu1 }
0x128f   : > { %v11463_v41 = vadd.f32 %v11385_v62, %v20221_v5  ;;  %v11165_v52 = vadd.f32 %v20904_v8, %v11164_v21  ;;  %v21901_v21 = vld [vmem:[#allocation58_spill] sm:$0xff] }
0x1290   : > { %v11166_v63 = vpop.f32.mrf.mxu0  ;;  %v11391_v18 = vpop.f32.mrf.mxu1 }
0x1291   : > { %11495 = vst [vmem:[%s20913_s29 + $0xa0] sm:$0xff] %v11463_v41  ;;  %v11390_v29 = vadd.f32 %v11389_v37, %v11165_v52 }
0x1293   : > { %v11464_v61 = vadd.f32 %v11390_v29, %v21894_v60 }
0x1295   : > { %11496 = vst [vmem:[%s20913_s29 + $0xa8] sm:$0xff] %v11464_v61 }
0x1298   : > { %v11169_v38 = vpop.f32.mrf.mxu0  ;;  %v11394_v24 = vpop.f32.mrf.mxu1 }
0x1299   : > { %v11170_v26 = vadd.f32 %v20904_v8, %v11169_v38 }
0x129a   : > { %v11171_v25 = vpop.f32.mrf.mxu0  ;;  %v11396_v11 = vpop.f32.mrf.mxu1 }
0x129b   : > { %v11395_v40 = vadd.f32 %v11394_v24, %v11170_v26  ;;  %v21902_v24 = vld [vmem:[#allocation83_spill] sm:$0xff] }
0x129c   : > { %v11174_v27 = vpop.f32.mrf.mxu0  ;;  %v11399_v5 = vpop.f32.mrf.mxu1 }
0x129d   : > { %v11465_v32 = vadd.f32 %v11395_v40, %v21895_v12  ;;  %v11175_v23 = vadd.f32 %v20904_v8, %v11174_v27 }
0x129e   : > { %v11176_v13 = vpop.f32.mrf.mxu0  ;;  %v11401_v19 = vpop.f32.mrf.mxu1 }
0x129f   : > { %11497 = vst [vmem:[%s20913_s29 + $0xb0] sm:$0xff] %v11465_v32  ;;  %v11400_v39 = vadd.f32 %v11399_v5, %v11175_v23  ;;  %v21903_v32 = vld [vmem:[#allocation63_spill] sm:$0xff] }
0x12a0   : > { %v11179_v59 = vpop.f32.mrf.mxu0  ;;  %v11404_v36 = vpop.f32.mrf.mxu1 }
0x12a1   : > { %v11466_v50 = vadd.f32 %v11400_v39, %v21896_v35  ;;  %v11180_v58 = vadd.f32 %v20904_v8, %v11179_v59 }
0x12a2   : > { %v11181_v34 = vpop.f32.mrf.mxu0  ;;  %v11406_v33 = vpop.f32.mrf.mxu1 }
0x12a3   : > { %11498 = vst [vmem:[%s20913_s29 + $0xb8] sm:$0xff] %v11466_v50  ;;  %v11405_v15 = vadd.f32 %v11404_v36, %v11180_v58  ;;  %v21905_v36 = vld [vmem:[#allocation79_spill] sm:$0xff] }
0x12a4   : > { %v11184_v2 = vpop.f32.mrf.mxu0  ;;  %v11409_v47 = vpop.f32.mrf.mxu1 }
0x12a5   : > { %v11467_v48 = vadd.f32 %v11405_v15, %v21897_v49  ;;  %v11185_v22 = vadd.f32 %v20904_v8, %v11184_v2 }
0x12a6   : > { %v11186_v9 = vpop.f32.mrf.mxu0  ;;  %v11411_v44 = vpop.f32.mrf.mxu1 }
0x12a7   : > { %11499 = vst [vmem:[%s20913_s29 + $0xc0] sm:$0xff] %v11467_v48  ;;  %v11410_v20 = vadd.f32 %v11409_v47, %v11185_v22 }
0x12a8   : > { %v11189_v4 = vpop.f32.mrf.mxu0  ;;  %v11414_v10 = vpop.f32.mrf.mxu1 }
0x12a9   : > { %v11468_v14 = vadd.f32 %v11410_v20, %v21898_v51  ;;  %v11190_v56 = vadd.f32 %v20904_v8, %v11189_v4 }
0x12aa   : > { %v11191_v28 = vpop.f32.mrf.mxu0  ;;  %v11416_v30 = vpop.f32.mrf.mxu1 }
0x12ab   : > { %11500 = vst [vmem:[%s20913_s29 + $0xc8] sm:$0xff] %v11468_v14  ;;  %v11415_v53 = vadd.f32 %v11414_v10, %v11190_v56 }
0x12ac   : > { %v11194_v57 = vpop.f32.mrf.mxu0  ;;  %v11419_v3 = vpop.f32.mrf.mxu1 }
0x12ad   : > { %v11469_v42 = vadd.f32 %v11415_v53, %v21899_v46  ;;  %v11195_v31 = vadd.f32 %v20904_v8, %v11194_v57 }
0x12ae   : > { %v11196_v1 = vpop.f32.mrf.mxu0  ;;  %v11421_v55 = vpop.f32.mrf.mxu1 }
0x12af   : > { %11501 = vst [vmem:[%s20913_s29 + $0xd0] sm:$0xff] %v11469_v42  ;;  %v11420_v43 = vadd.f32 %v11419_v3, %v11195_v31 }
0x12b0   : > { %v11199_v16 = vpop.f32.mrf.mxu0  ;;  %v11424_v6 = vpop.f32.mrf.mxu1 }
0x12b1   : > { %v11470_v45 = vadd.f32 %v11420_v43, %v21900_v7  ;;  %v11200_v54 = vadd.f32 %v20904_v8, %v11199_v16 }
0x12b2   : > { %v11201_v0 = vpop.f32.mrf.mxu0  ;;  %v11426_v17 = vpop.f32.mrf.mxu1 }
0x12b3   : > { %11502 = vst [vmem:[%s20913_s29 + $0xd8] sm:$0xff] %v11470_v45  ;;  %v11425_v62 = vadd.f32 %v11424_v6, %v11200_v54 }
0x12b4   : > { %v11204_v41 = vpop.f32.mrf.mxu0  ;;  %v11429_v52 = vpop.f32.mrf.mxu1 }
0x12b5   : > { %v11471_v37 = vadd.f32 %v11425_v62, %v21901_v21  ;;  %v11205_v63 = vadd.f32 %v20904_v8, %v11204_v41 }
0x12b6   : > { %v11206_v18 = vpop.f32.mrf.mxu0  ;;  %v11431_v29 = vpop.f32.mrf.mxu1 }
0x12b7   : > { %11503 = vst [vmem:[%s20913_s29 + $0xe0] sm:$0xff] %v11471_v37  ;;  %v11430_v60 = vadd.f32 %v11429_v52, %v11205_v63 }
0x12b8   : > { %v11209_v61 = vpop.f32.mrf.mxu0  ;;  %v11434_v38 = vpop.f32.mrf.mxu1 }
0x12b9   : > { %v11472_v26 = vadd.f32 %v11430_v60, %v21902_v24  ;;  %v11210_v25 = vadd.f32 %v20904_v8, %v11209_v61 }
0x12ba   : > { %v11211_v11 = vpop.f32.mrf.mxu0  ;;  %v11436_v40 = vpop.f32.mrf.mxu1 }
0x12bb   : > { %11504 = vst [vmem:[%s20913_s29 + $0xe8] sm:$0xff] %v11472_v26  ;;  %v11435_v27 = vadd.f32 %v11434_v38, %v11210_v25 }
0x12bc   : > { %v11214_v5 = vpop.f32.mrf.mxu0  ;;  %v11439_v12 = vpop.f32.mrf.mxu1 }
0x12bd   : > { %v11473_v23 = vadd.f32 %v11435_v27, %v21903_v32  ;;  %v11215_v13 = vadd.f32 %v20904_v8, %v11214_v5 }
0x12be   : > { %v11216_v19 = vpop.f32.mrf.mxu0  ;;  %v11441_v39 = vpop.f32.mrf.mxu1 }
0x12bf   : > { %11505 = vst [vmem:[%s20913_s29 + $0xf0] sm:$0xff] %v11473_v23  ;;  %v11440_v59 = vadd.f32 %v11439_v12, %v11215_v13 }
0x12c1   : > { %v11474_v35 = vadd.f32 %v11440_v59, %v21905_v36 }
0x12c3   : > { %11506 = vst [vmem:[%s20913_s29 + $0xf8] sm:$0xff] %v11474_v35 }
0x12c4   : > { %15350 = shalt.err (!%p15347_p3)
}
0x12c5   : > { %s15351_s16 = scalar_lea.hbm %s21011_s18, 4096  ;;  %s15355_s26 = scalar_lea.hbm %s21904_s3, 8192 }
0x12c6   : > { %p15352_p4 = scmp.ne.s32.totalorder %s21011_s18, %s15351_s16  ;;  %p15356_p0 = scmp.lt.s32.totalorder %s21011_s18, %s21904_s3 }
0x12c7   : > { %p15357_p7 = scmp.lt.s32.totalorder %s15355_s26, %s15351_s16 }
0x12c8   : > { %p15353_p6 = pnand %p15352_p4, %p21906_p8 }
0x12c9   : > { %p15358_p2 = por %p15357_p7, %p15356_p0 }
0x12ca   : > { %p15354_p12 = pneg %p15353_p6 }
0x12cc   : > { %p15359_p9 = pnand %p15358_p2, %p15354_p12 }
0x12ce   : > { %15362 = shalt.err (!%p15359_p9)
}
0x12cf   : > { %s15431_s27 = smov 128   ;;  %s15432_s7 = smov 8  }
0x12d0   : > { %14386 = dma.vmem_to_hbm [thread:$0]  (%p21906_p8), %s21013_s23, 4096, %s21011_s18, %s11508_s1, %s15431_s27, %s15431_s27, %s15432_s7  }
0x12d1 PF: > { %s21907_s28 = sld [smem:[#allocation21_spill]]  ;;  %s11536_s0 = sand.u32 1, %s15401_s24  }
0x12d2   : > { %p21908_p10 = scmp.ne.s32.totalorder %s21326_s21, 0  ;;  %s11537_s20 = scalar_lea.sflag [#allocation4], %s11536_s0 }
0x12d7   : > { %p21909_p11 = scmp.ge.s32.totalorder %s21907_s28, 2 }
0x12d9   : > { %p14412_p13 = pnand %p21909_p11, %p21908_p10 }
0x12db   : > { %p14413_p5 = pneg %p14412_p13 }
0x12dd   : > { %15396 = dma.done.wait (%p14413_p5), %s11537_s20, 4096  }
0x12de   : > { %15398 = vsyncadd (%p14413_p5), %s11537_s20, 4294963200  ;;  %s21910_s27 = sld [smem:[#allocation22_spill]]  ;;  %s21913_s24 = smov %s15405_s25 }
0x12df   : > { %s21911_s17 = sld [smem:[#allocation20_spill]] }
0x12e0   : > { %s21912_s26 = sld [smem:[#allocation23_spill]] }
0x12e4   : > { %p33_p1 = scmp.ge.s32.totalorder %s21910_s27, 4  }
0x12e5   : > { %s21914_s25 = smov %s21911_s17 }
0x12e6   :  { %35 = sbr.rel (!%p33_p1) target bundleno = 19 (0x13), region = 157 }
0x12eb   :  { %11542 = vsyncpa [#allocation3], 1 }
0x12ec   :  { %11544 = vsyncpa [#allocation3 + $0x1], 1 }
0x12ed   :  { %11545 = vsyncpa [#allocation6], 1 }
0x12ee   :  { %11546 = vsyncpa [#allocation9], 1 }
0x12ef   :  { %11547 = vsyncpa [#allocation12], 1 }
0x12f0   :  { %11548 = vsyncpa [#allocation4], 1 }
0x12f1   :  { %11550 = vsyncpa [#allocation4 + $0x1], 1 }

</bundles_post_ra>
